<compile_context>
chip_gen: v5e
topology: v5e:2x2
jax: 0.10.0
libtpu: 0.0.40
codegen_flags: <defaults>
</compile_context>

<pallas_src>
import numpy as np
import jax
import jax.numpy as jnp
from jax import lax
from jax.experimental import pallas as pl
from jax.experimental.pallas import tpu as pltpu


# ----------------------------------------------------------------------------
# Fused kernel: conv1+pool1 -> conv2+pool2 -> fc1 -> fc2 -> log_softmax
# ----------------------------------------------------------------------------
def mnist_fused_kernel(x3_ref, w1_ref, b1t_ref, w2_ref, b2t_ref,
                       wf1_ref, bf1_ref, wf2_ref, bf2_ref, out_ref):
    # x3_ref : (2, 14, TB, 128)  row-triple im2col of the padded image.
    #          dim0 = parity of the conv1 output row (even/odd -> pool pairs),
    #          dim1 = pooled row k, dim2 = batch (minor), lanes = ky*32 + wi
    #          (wi = zero-padded column 0..31, lanes 96..127 zero).
    # w1_ref : (128, 448)  banded conv1 weights, cols = (col_parity, v, c1)
    # w2_ref : (768, 448)  banded conv2 weights, rows = (ky, padded col, c1),
    #                      cols = (col_parity, u, c2)
    # wf1_ref: (7, 224, 128)   fc1 weights split per pooled row k
    # wf2_ref: (128, 128)      fc2 weights, output lanes padded 10 -> 128
    # out_ref: (TB, 128)       log-probs (lanes >= 10 are padding)
    TB = out_ref.shape[0]

    # ---- conv1 (two MXU matmuls) + bias + row-pool + col-pool + ReLU -------
    xe = x3_ref[0].reshape(14 * TB, 128)          # even conv1 output rows
    xo = x3_ref[1].reshape(14 * TB, 128)          # odd  conv1 output rows
    w1 = w1_ref[...]
    ye = jnp.dot(xe, w1, preferred_element_type=jnp.float32)
    yo = jnp.dot(xo, w1, preferred_element_type=jnp.float32)
    y = jnp.maximum(ye, yo) + b1t_ref[...]        # row pool (bias row-invariant)
    y = jnp.maximum(y[:, 0:224], y[:, 224:448])   # col pool (parity-major lanes)
    p1 = jnp.maximum(y, 0.0)                      # ReLU (commutes with max)
    # p1: (14*TB, 224), rows = k*TB + b, lanes = v*16 + c1  (14x14x16 grid)

    # ---- conv2: pad width to 16 cols, build dy = -1/0/+1 row-shifted copies
    zl = jnp.zeros((14 * TB, 16), jnp.float32)
    p1p = jnp.concatenate([zl, p1, zl], axis=-1)              # (14*TB, 256)
    zr = jnp.zeros((TB, 256), jnp.float32)
    down = jnp.concatenate([zr, p1p[:-TB, :]], axis=0)        # row i -> input i-1
    up = jnp.concatenate([p1p[TB:, :], zr], axis=0)           # row i -> input i+1
    lhs2 = jnp.concatenate([down, p1p, up], axis=-1)          # (14*TB, 768)

    z = jnp.dot(lhs2, w2_ref[...], preferred_element_type=jnp.float32)
    z = z + b2t_ref[...]
    z = jnp.maximum(z[:, 0:224], z[:, 224:448])               # col pool
    z = jnp.maximum(z, 0.0)                                   # ReLU
    # z: (14*TB, 224), rows = i*TB + b, lanes = u*32 + c2

    # ---- pool2 rows (contiguous TB-row blocks) + fc1 accumulated per chunk -
    acc = None
    for k in range(7):
        even = z[(2 * k) * TB:(2 * k + 1) * TB, :]
        odd = z[(2 * k + 1) * TB:(2 * k + 2) * TB, :]
        pk = jnp.maximum(even, odd)                           # (TB, 224)
        t = jnp.dot(pk, wf1_ref[k], preferred_element_type=jnp.float32)
        acc = t if acc is None else acc + t
    h = jnp.maximum(acc + bf1_ref[...], 0.0)                  # (TB, 128)

    # ---- fc2 + masked log_softmax (lanes >= 10 are padding) ----------------
    logits = jnp.dot(h, wf2_ref[...], preferred_element_type=jnp.float32)
    logits = logits + bf2_ref[...]
    col = lax.broadcasted_iota(jnp.int32, logits.shape, 1)
    logits = jnp.where(col < 10, logits, -1e30)
    m = jnp.max(logits, axis=-1, keepdims=True)
    s = logits - m
    lse = jnp.log(jnp.sum(jnp.exp(s), axis=-1, keepdims=True))
    out_ref[...] = s - lse


# ----------------------------------------------------------------------------
# Parameter preparation (pure layout plumbing, canonical torch layouts in)
# ----------------------------------------------------------------------------
def _prepare_params(params):
    w1, b1, w2, b2, wf1, bf1, wf2, bf2 = params
    c16 = np.arange(16)
    c32 = np.arange(32)

    # conv1 -> banded (128, 448) matmul weight.
    # row = ky*32 + wi (padded col), col = (wo%2)*224 + (wo//2)*16 + c1,
    # nonzero where wi = wo + kx.
    wo = np.arange(28)
    col1 = (wo % 2) * 224 + (wo // 2) * 16
    W1 = jnp.zeros((128, 448), jnp.float32)
    for ky in range(3):
        for kx in range(3):
            rows = ky * 32 + wo + kx
            cols = col1[:, None] + c16[None, :]
            vals = jnp.broadcast_to(w1[:, 0, ky, kx][None, :], (28, 16))
            W1 = W1.at[rows[:, None], cols].set(vals)
    b1t = jnp.tile(b1, 28).reshape(1, 448)

    # conv2 -> banded (768, 448) matmul weight.
    # row = ky*256 + vp*16 + c1 (vp = padded input col), col = (j%2)*224 +
    # (j//2)*32 + c2, nonzero where vp = j + kx.
    jj = np.arange(14)
    col2 = (jj % 2) * 224 + (jj // 2) * 32
    W2 = jnp.zeros((768, 448), jnp.float32)
    for ky in range(3):
        for kx in range(3):
            rows = (ky * 256 + (jj + kx) * 16)[:, None] + c16[None, :]
            cols = col2[:, None] + c32[None, :]
            vals = jnp.broadcast_to(w2[:, :, ky, kx].T[None, :, :], (14, 16, 32))
            W2 = W2.at[rows[:, :, None], cols[:, None, :]].set(vals)
    b2t = jnp.tile(b2, 14).reshape(1, 448)

    # fc1: permute canonical (c*49 + h*7 + w) rows to kernel order (h, w, c),
    # split per pooled row h -> (7, 224, 128).
    kk, uu, cc = np.meshgrid(np.arange(7), np.arange(7), np.arange(32),
                             indexing="ij")
    perm = (cc * 49 + kk * 7 + uu).reshape(-1)
    Wf1 = wf1.T[perm, :].reshape(7, 224, 128)
    bf1k = bf1.reshape(1, 128)

    # fc2: lane-pad outputs 10 -> 128 (masked before log_softmax in-kernel).
    Wf2 = jnp.pad(wf2.T, ((0, 0), (0, 128 - 10)))
    bf2k = jnp.pad(bf2, (0, 128 - 10)).reshape(1, 128)
    return W1, b1t, W2, b2t, Wf1, bf1k, Wf2, bf2k


# ----------------------------------------------------------------------------
# Wrapper
# ----------------------------------------------------------------------------
def mnist_cnn_forward(x, params, tb=None):
    B = x.shape[0]
    if tb is None:
        tb = next((t for t in (64, 32, 16, 8) if B % t == 0), 8)
    TB = tb
    assert TB % 8 == 0, "TB must be a multiple of 8"
    Bp = -(-B // TB) * TB
    if Bp != B:
        x = jnp.pad(x, ((0, Bp - B), (0, 0), (0, 0), (0, 0)))

    W1, b1t, W2, b2t, Wf1, bf1k, Wf2, bf2k = _prepare_params(params)

    # Layout prep (plumbing only): zero-pad the image to 30x32, build the
    # 3-row im2col, pad lanes to 128, reorder rows to (conv1-row, batch) and
    # split by row parity -> (2, 14, Bp, 128).
    xp = jnp.pad(x.reshape(Bp, 28, 28), ((0, 0), (1, 1), (1, 3)))     # (Bp,30,32)
    x3 = jnp.concatenate([xp[:, 0:28], xp[:, 1:29], xp[:, 2:30]], axis=-1)
    x3 = jnp.pad(x3, ((0, 0), (0, 0), (0, 32)))                       # (Bp,28,128)
    x3 = jnp.transpose(x3, (1, 0, 2))                                 # (28,Bp,128)
    x3s = jnp.stack([x3[0::2], x3[1::2]], axis=0)                     # (2,14,Bp,128)

    grid = (Bp // TB,)
    out = pl.pallas_call(
        mnist_fused_kernel,
        out_shape=jax.ShapeDtypeStruct((Bp, 128), jnp.float32),
        grid=grid,
        in_specs=[
            pl.BlockSpec((2, 14, TB, 128), lambda i: (0, 0, i, 0)),
            pl.BlockSpec((128, 448), lambda i: (0, 0)),     # resident weights
            pl.BlockSpec((1, 448), lambda i: (0, 0)),
            pl.BlockSpec((768, 448), lambda i: (0, 0)),
            pl.BlockSpec((1, 448), lambda i: (0, 0)),
            pl.BlockSpec((7, 224, 128), lambda i: (0, 0, 0)),
            pl.BlockSpec((1, 128), lambda i: (0, 0)),
            pl.BlockSpec((128, 128), lambda i: (0, 0)),
            pl.BlockSpec((1, 128), lambda i: (0, 0)),
        ],
        out_specs=pl.BlockSpec((TB, 128), lambda i: (i, 0)),
        compiler_params=pltpu.CompilerParams(
            dimension_semantics=("parallel",),
            vmem_limit_bytes=32 * 1024 * 1024),
    )(x3s, W1, b1t, W2, b2t, Wf1, bf1k, Wf2, bf2k)

    return out[:B, :10]


# ----------------------------------------------------------------------------
# Params (canonical PyTorch layouts) & pure-JAX reference
# ----------------------------------------------------------------------------
def init_params(key):
    ks = jax.random.split(key, 8)
    w1 = jax.random.normal(ks[0], (16, 1, 3, 3), jnp.float32) * 0.20
    b1 = jax.random.normal(ks[1], (16,), jnp.float32) * 0.10
    w2 = jax.random.normal(ks[2], (32, 16, 3, 3), jnp.float32) * 0.08
    b2 = jax.random.normal(ks[3], (32,), jnp.float32) * 0.05
    wf1 = jax.random.normal(ks[4], (128, 7 * 7 * 32), jnp.float32) * 0.02
    bf1 = jax.random.normal(ks[5], (128,), jnp.float32) * 0.02
    wf2 = jax.random.normal(ks[6], (10, 128), jnp.float32) * 0.05
    bf2 = jax.random.normal(ks[7], (10,), jnp.float32) * 0.05
    return (w1, b1, w2, b2, wf1, bf1, wf2, bf2)


def reference_forward(x, params):
    w1, b1, w2, b2, wf1, bf1, wf2, bf2 = params
    B = x.shape[0]
    prec = lax.Precision.HIGHEST
    y = lax.conv_general_dilated(
        x, jnp.transpose(w1, (2, 3, 1, 0)), (1, 1), "SAME",
        dimension_numbers=("NCHW", "HWIO", "NCHW"), precision=prec)
    y = jnp.maximum(y + b1.reshape(1, -1, 1, 1), 0.0)
    y = lax.reduce_window(y, -jnp.inf, lax.max, (1, 1, 2, 2), (1, 1, 2, 2), "VALID")
    z = lax.conv_general_dilated(
        y, jnp.transpose(w2, (2, 3, 1, 0)), (1, 1), "SAME",
        dimension_numbers=("NCHW", "HWIO", "NCHW"), precision=prec)
    z = jnp.maximum(z + b2.reshape(1, -1, 1, 1), 0.0)
    z = lax.reduce_window(z, -jnp.inf, lax.max, (1, 1, 2, 2), (1, 1, 2, 2), "VALID")
    feat = z.reshape(B, 7 * 7 * 32)                      # (c, h, w) flatten
    h = jnp.maximum(jnp.dot(feat, wf1.T, precision=prec) + bf1, 0.0)
    logits = jnp.dot(h, wf2.T, precision=prec) + bf2
    return jax.nn.log_softmax(logits, axis=-1)


if __name__ == "__main__":
    key = jax.random.PRNGKey(0)
    kx, kp = jax.random.split(key)
    B = 16
    x = jax.random.normal(kx, (B, 1, 28, 28), jnp.float32)
    params = init_params(kp)

    fwd = jax.jit(lambda xx: mnist_cnn_forward(xx, params))
    out = jax.block_until_ready(fwd(x))

    ref = reference_forward(x, params)
    assert out.shape == (B, 10)
    err = float(jnp.max(jnp.abs(out - ref)))
    # Tolerance note: kernel matmuls use the MXU's default f32 path while the
    # reference pins Precision.HIGHEST; 5e-3 abs/rel on O(1) log-probs leaves
    # margin for bf16-pass defaults while still catching any layout/index bug.
    assert jnp.allclose(out, ref, atol=5e-3, rtol=5e-3), err
    print("KERNEL_OK")
</pallas_src>

<mosaic_0001>
module attributes {stable_mosaic.version = 11 : i64} {
  func.func @mnist_fused_kernel(%arg0: i32, %arg1: memref<2x14x16x128xf32, #tpu.memory_space<vmem>>, %arg2: memref<128x448xf32, #tpu.memory_space<vmem>>, %arg3: memref<1x448xf32, #tpu.memory_space<vmem>>, %arg4: memref<768x448xf32, #tpu.memory_space<vmem>>, %arg5: memref<1x448xf32, #tpu.memory_space<vmem>>, %arg6: memref<7x224x128xf32, #tpu.memory_space<vmem>>, %arg7: memref<1x128xf32, #tpu.memory_space<vmem>>, %arg8: memref<128x128xf32, #tpu.memory_space<vmem>>, %arg9: memref<1x128xf32, #tpu.memory_space<vmem>>, %arg10: memref<16x128xf32, #tpu.memory_space<vmem>>) attributes {dimension_semantics = [#tpu.dimension_semantics<parallel>], iteration_bounds = array<i64: 1>, scalar_prefetch = 0 : i64, scratch_operands = 0 : i64, tpu.core_type = #tpu.core_type<tc>, window_params = [{transform_indices = @transform_0, window_bounds = array<i64: 2, 14, 16, 128>}, {pipeline_mode = #tpu.pipeline_mode<synchronous>, transform_indices = @transform_1, window_bounds = array<i64: 128, 448>}, {pipeline_mode = #tpu.pipeline_mode<synchronous>, transform_indices = @transform_2, window_bounds = array<i64: 1, 448>}, {pipeline_mode = #tpu.pipeline_mode<synchronous>, transform_indices = @transform_3, window_bounds = array<i64: 768, 448>}, {pipeline_mode = #tpu.pipeline_mode<synchronous>, transform_indices = @transform_4, window_bounds = array<i64: 1, 448>}, {pipeline_mode = #tpu.pipeline_mode<synchronous>, transform_indices = @transform_5, window_bounds = array<i64: 7, 224, 128>}, {pipeline_mode = #tpu.pipeline_mode<synchronous>, transform_indices = @transform_6, window_bounds = array<i64: 1, 128>}, {pipeline_mode = #tpu.pipeline_mode<synchronous>, transform_indices = @transform_7, window_bounds = array<i64: 128, 128>}, {pipeline_mode = #tpu.pipeline_mode<synchronous>, transform_indices = @transform_8, window_bounds = array<i64: 1, 128>}, {transform_indices = @transform_9, window_bounds = array<i64: 16, 128>}]} {
    %c0 = arith.constant 0 : index
    %c0_0 = arith.constant 0 : index
    %c0_1 = arith.constant 0 : index
    %c0_2 = arith.constant 0 : index
    %0 = vector.load %arg1[%c0, %c0_0, %c0_1, %c0_2] : memref<2x14x16x128xf32, #tpu.memory_space<vmem>>, vector<1x14x16x128xf32>
    %1 = vector.shape_cast %0 : vector<1x14x16x128xf32> to vector<14x16x128xf32>
    %2 = vector.shape_cast %1 : vector<14x16x128xf32> to vector<224x128xf32>
    %c1 = arith.constant 1 : index
    %c0_3 = arith.constant 0 : index
    %c0_4 = arith.constant 0 : index
    %c0_5 = arith.constant 0 : index
    %3 = vector.load %arg1[%c1, %c0_3, %c0_4, %c0_5] : memref<2x14x16x128xf32, #tpu.memory_space<vmem>>, vector<1x14x16x128xf32>
    %4 = vector.shape_cast %3 : vector<1x14x16x128xf32> to vector<14x16x128xf32>
    %5 = vector.shape_cast %4 : vector<14x16x128xf32> to vector<224x128xf32>
    %c0_6 = arith.constant 0 : index
    %c0_7 = arith.constant 0 : index
    %6 = vector.load %arg2[%c0_6, %c0_7] : memref<128x448xf32, #tpu.memory_space<vmem>>, vector<128x448xf32>
    %cst = arith.constant dense<0.000000e+00> : vector<224x448xf32>
    %7 = tpu.matmul %2, %6, %cst {dimension_numbers = #tpu.dot_dimension_numbers<[1], [0], [0], [1], [0, 0, 1, 1], [], []>} : vector<224x128xf32>, vector<128x448xf32>, vector<224x448xf32> -> vector<224x448xf32>
    %cst_8 = arith.constant dense<0.000000e+00> : vector<224x448xf32>
    %8 = tpu.matmul %5, %6, %cst_8 {dimension_numbers = #tpu.dot_dimension_numbers<[1], [0], [0], [1], [0, 0, 1, 1], [], []>} : vector<224x128xf32>, vector<128x448xf32>, vector<224x448xf32> -> vector<224x448xf32>
    %9 = arith.maximumf %7, %8 : vector<224x448xf32>
    %c0_9 = arith.constant 0 : index
    %c0_10 = arith.constant 0 : index
    %10 = vector.load %arg3[%c0_9, %c0_10] : memref<1x448xf32, #tpu.memory_space<vmem>>, vector<1x448xf32>
    %11 = vector.broadcast %10 : vector<1x448xf32> to vector<224x448xf32>
    %12 = arith.addf %9, %11 : vector<224x448xf32>
    %13 = vector.extract_strided_slice %12 {offsets = [0, 0], sizes = [224, 224], strides = [1, 1]} : vector<224x448xf32> to vector<224x224xf32>
    %14 = vector.extract_strided_slice %12 {offsets = [0, 224], sizes = [224, 224], strides = [1, 1]} : vector<224x448xf32> to vector<224x224xf32>
    %15 = arith.maximumf %13, %14 : vector<224x224xf32>
    %cst_11 = arith.constant 0.000000e+00 : f32
    %16 = vector.broadcast %cst_11 : f32 to vector<224x224xf32>
    %17 = arith.maximumf %15, %16 : vector<224x224xf32>
    %cst_12 = arith.constant 0.000000e+00 : f32
    %18 = vector.broadcast %cst_12 : f32 to vector<224x16xf32>
    %19 = tpu.concatenate %18, %17, %18 in 1 : vector<224x16xf32>, vector<224x224xf32>, vector<224x16xf32> -> vector<224x256xf32>
    %cst_13 = arith.constant 0.000000e+00 : f32
    %20 = vector.broadcast %cst_13 : f32 to vector<16x256xf32>
    %21 = vector.extract_strided_slice %19 {offsets = [0, 0], sizes = [208, 256], strides = [1, 1]} : vector<224x256xf32> to vector<208x256xf32>
    %22 = tpu.concatenate %20, %21 in 0 : vector<16x256xf32>, vector<208x256xf32> -> vector<224x256xf32>
    %23 = vector.extract_strided_slice %19 {offsets = [16, 0], sizes = [208, 256], strides = [1, 1]} : vector<224x256xf32> to vector<208x256xf32>
    %24 = tpu.concatenate %23, %20 in 0 : vector<208x256xf32>, vector<16x256xf32> -> vector<224x256xf32>
    %25 = tpu.concatenate %22, %19, %24 in 1 : vector<224x256xf32>, vector<224x256xf32>, vector<224x256xf32> -> vector<224x768xf32>
    %c0_14 = arith.constant 0 : index
    %c0_15 = arith.constant 0 : index
    %26 = vector.load %arg4[%c0_14, %c0_15] : memref<768x448xf32, #tpu.memory_space<vmem>>, vector<768x448xf32>
    %cst_16 = arith.constant dense<0.000000e+00> : vector<224x448xf32>
    %27 = tpu.matmul %25, %26, %cst_16 {dimension_numbers = #tpu.dot_dimension_numbers<[1], [0], [0], [1], [0, 0, 1, 1], [], []>} : vector<224x768xf32>, vector<768x448xf32>, vector<224x448xf32> -> vector<224x448xf32>
    %c0_17 = arith.constant 0 : index
    %c0_18 = arith.constant 0 : index
    %28 = vector.load %arg5[%c0_17, %c0_18] : memref<1x448xf32, #tpu.memory_space<vmem>>, vector<1x448xf32>
    %29 = vector.broadcast %28 : vector<1x448xf32> to vector<224x448xf32>
    %30 = arith.addf %27, %29 : vector<224x448xf32>
    %31 = vector.extract_strided_slice %30 {offsets = [0, 0], sizes = [224, 224], strides = [1, 1]} : vector<224x448xf32> to vector<224x224xf32>
    %32 = vector.extract_strided_slice %30 {offsets = [0, 224], sizes = [224, 224], strides = [1, 1]} : vector<224x448xf32> to vector<224x224xf32>
    %33 = arith.maximumf %31, %32 : vector<224x224xf32>
    %cst_19 = arith.constant 0.000000e+00 : f32
    %34 = vector.broadcast %cst_19 : f32 to vector<224x224xf32>
    %35 = arith.maximumf %33, %34 : vector<224x224xf32>
    %36 = vector.extract_strided_slice %35 {offsets = [0, 0], sizes = [16, 224], strides = [1, 1]} : vector<224x224xf32> to vector<16x224xf32>
    %37 = vector.extract_strided_slice %35 {offsets = [16, 0], sizes = [16, 224], strides = [1, 1]} : vector<224x224xf32> to vector<16x224xf32>
    %38 = arith.maximumf %36, %37 : vector<16x224xf32>
    %c0_20 = arith.constant 0 : index
    %c0_21 = arith.constant 0 : index
    %c0_22 = arith.constant 0 : index
    %39 = vector.load %arg6[%c0_20, %c0_21, %c0_22] : memref<7x224x128xf32, #tpu.memory_space<vmem>>, vector<1x224x128xf32>
    %40 = vector.shape_cast %39 : vector<1x224x128xf32> to vector<224x128xf32>
    %cst_23 = arith.constant dense<0.000000e+00> : vector<16x128xf32>
    %41 = tpu.matmul %38, %40, %cst_23 {dimension_numbers = #tpu.dot_dimension_numbers<[1], [0], [0], [1], [0, 0, 1, 1], [], []>} : vector<16x224xf32>, vector<224x128xf32>, vector<16x128xf32> -> vector<16x128xf32>
    %42 = vector.extract_strided_slice %35 {offsets = [32, 0], sizes = [16, 224], strides = [1, 1]} : vector<224x224xf32> to vector<16x224xf32>
    %43 = vector.extract_strided_slice %35 {offsets = [48, 0], sizes = [16, 224], strides = [1, 1]} : vector<224x224xf32> to vector<16x224xf32>
    %44 = arith.maximumf %42, %43 : vector<16x224xf32>
    %c1_24 = arith.constant 1 : index
    %c0_25 = arith.constant 0 : index
    %c0_26 = arith.constant 0 : index
    %45 = vector.load %arg6[%c1_24, %c0_25, %c0_26] : memref<7x224x128xf32, #tpu.memory_space<vmem>>, vector<1x224x128xf32>
    %46 = vector.shape_cast %45 : vector<1x224x128xf32> to vector<224x128xf32>
    %cst_27 = arith.constant dense<0.000000e+00> : vector<16x128xf32>
    %47 = tpu.matmul %44, %46, %cst_27 {dimension_numbers = #tpu.dot_dimension_numbers<[1], [0], [0], [1], [0, 0, 1, 1], [], []>} : vector<16x224xf32>, vector<224x128xf32>, vector<16x128xf32> -> vector<16x128xf32>
    %48 = arith.addf %41, %47 : vector<16x128xf32>
    %49 = vector.extract_strided_slice %35 {offsets = [64, 0], sizes = [16, 224], strides = [1, 1]} : vector<224x224xf32> to vector<16x224xf32>
    %50 = vector.extract_strided_slice %35 {offsets = [80, 0], sizes = [16, 224], strides = [1, 1]} : vector<224x224xf32> to vector<16x224xf32>
    %51 = arith.maximumf %49, %50 : vector<16x224xf32>
    %c2 = arith.constant 2 : index
    %c0_28 = arith.constant 0 : index
    %c0_29 = arith.constant 0 : index
    %52 = vector.load %arg6[%c2, %c0_28, %c0_29] : memref<7x224x128xf32, #tpu.memory_space<vmem>>, vector<1x224x128xf32>
    %53 = vector.shape_cast %52 : vector<1x224x128xf32> to vector<224x128xf32>
    %cst_30 = arith.constant dense<0.000000e+00> : vector<16x128xf32>
    %54 = tpu.matmul %51, %53, %cst_30 {dimension_numbers = #tpu.dot_dimension_numbers<[1], [0], [0], [1], [0, 0, 1, 1], [], []>} : vector<16x224xf32>, vector<224x128xf32>, vector<16x128xf32> -> vector<16x128xf32>
    %55 = arith.addf %48, %54 : vector<16x128xf32>
    %56 = vector.extract_strided_slice %35 {offsets = [96, 0], sizes = [16, 224], strides = [1, 1]} : vector<224x224xf32> to vector<16x224xf32>
    %57 = vector.extract_strided_slice %35 {offsets = [112, 0], sizes = [16, 224], strides = [1, 1]} : vector<224x224xf32> to vector<16x224xf32>
    %58 = arith.maximumf %56, %57 : vector<16x224xf32>
    %c3 = arith.constant 3 : index
    %c0_31 = arith.constant 0 : index
    %c0_32 = arith.constant 0 : index
    %59 = vector.load %arg6[%c3, %c0_31, %c0_32] : memref<7x224x128xf32, #tpu.memory_space<vmem>>, vector<1x224x128xf32>
    %60 = vector.shape_cast %59 : vector<1x224x128xf32> to vector<224x128xf32>
    %cst_33 = arith.constant dense<0.000000e+00> : vector<16x128xf32>
    %61 = tpu.matmul %58, %60, %cst_33 {dimension_numbers = #tpu.dot_dimension_numbers<[1], [0], [0], [1], [0, 0, 1, 1], [], []>} : vector<16x224xf32>, vector<224x128xf32>, vector<16x128xf32> -> vector<16x128xf32>
    %62 = arith.addf %55, %61 : vector<16x128xf32>
    %63 = vector.extract_strided_slice %35 {offsets = [128, 0], sizes = [16, 224], strides = [1, 1]} : vector<224x224xf32> to vector<16x224xf32>
    %64 = vector.extract_strided_slice %35 {offsets = [144, 0], sizes = [16, 224], strides = [1, 1]} : vector<224x224xf32> to vector<16x224xf32>
    %65 = arith.maximumf %63, %64 : vector<16x224xf32>
    %c4 = arith.constant 4 : index
    %c0_34 = arith.constant 0 : index
    %c0_35 = arith.constant 0 : index
    %66 = vector.load %arg6[%c4, %c0_34, %c0_35] : memref<7x224x128xf32, #tpu.memory_space<vmem>>, vector<1x224x128xf32>
    %67 = vector.shape_cast %66 : vector<1x224x128xf32> to vector<224x128xf32>
    %cst_36 = arith.constant dense<0.000000e+00> : vector<16x128xf32>
    %68 = tpu.matmul %65, %67, %cst_36 {dimension_numbers = #tpu.dot_dimension_numbers<[1], [0], [0], [1], [0, 0, 1, 1], [], []>} : vector<16x224xf32>, vector<224x128xf32>, vector<16x128xf32> -> vector<16x128xf32>
    %69 = arith.addf %62, %68 : vector<16x128xf32>
    %70 = vector.extract_strided_slice %35 {offsets = [160, 0], sizes = [16, 224], strides = [1, 1]} : vector<224x224xf32> to vector<16x224xf32>
    %71 = vector.extract_strided_slice %35 {offsets = [176, 0], sizes = [16, 224], strides = [1, 1]} : vector<224x224xf32> to vector<16x224xf32>
    %72 = arith.maximumf %70, %71 : vector<16x224xf32>
    %c5 = arith.constant 5 : index
    %c0_37 = arith.constant 0 : index
    %c0_38 = arith.constant 0 : index
    %73 = vector.load %arg6[%c5, %c0_37, %c0_38] : memref<7x224x128xf32, #tpu.memory_space<vmem>>, vector<1x224x128xf32>
    %74 = vector.shape_cast %73 : vector<1x224x128xf32> to vector<224x128xf32>
    %cst_39 = arith.constant dense<0.000000e+00> : vector<16x128xf32>
    %75 = tpu.matmul %72, %74, %cst_39 {dimension_numbers = #tpu.dot_dimension_numbers<[1], [0], [0], [1], [0, 0, 1, 1], [], []>} : vector<16x224xf32>, vector<224x128xf32>, vector<16x128xf32> -> vector<16x128xf32>
    %76 = arith.addf %69, %75 : vector<16x128xf32>
    %77 = vector.extract_strided_slice %35 {offsets = [192, 0], sizes = [16, 224], strides = [1, 1]} : vector<224x224xf32> to vector<16x224xf32>
    %78 = vector.extract_strided_slice %35 {offsets = [208, 0], sizes = [16, 224], strides = [1, 1]} : vector<224x224xf32> to vector<16x224xf32>
    %79 = arith.maximumf %77, %78 : vector<16x224xf32>
    %c6 = arith.constant 6 : index
    %c0_40 = arith.constant 0 : index
    %c0_41 = arith.constant 0 : index
    %80 = vector.load %arg6[%c6, %c0_40, %c0_41] : memref<7x224x128xf32, #tpu.memory_space<vmem>>, vector<1x224x128xf32>
    %81 = vector.shape_cast %80 : vector<1x224x128xf32> to vector<224x128xf32>
    %cst_42 = arith.constant dense<0.000000e+00> : vector<16x128xf32>
    %82 = tpu.matmul %79, %81, %cst_42 {dimension_numbers = #tpu.dot_dimension_numbers<[1], [0], [0], [1], [0, 0, 1, 1], [], []>} : vector<16x224xf32>, vector<224x128xf32>, vector<16x128xf32> -> vector<16x128xf32>
    %83 = arith.addf %76, %82 : vector<16x128xf32>
    %c0_43 = arith.constant 0 : index
    %c0_44 = arith.constant 0 : index
    %84 = vector.load %arg7[%c0_43, %c0_44] : memref<1x128xf32, #tpu.memory_space<vmem>>, vector<1x128xf32>
    %85 = vector.broadcast %84 : vector<1x128xf32> to vector<16x128xf32>
    %86 = arith.addf %83, %85 : vector<16x128xf32>
    %cst_45 = arith.constant 0.000000e+00 : f32
    %87 = vector.broadcast %cst_45 : f32 to vector<16x128xf32>
    %88 = arith.maximumf %86, %87 : vector<16x128xf32>
    %c0_46 = arith.constant 0 : index
    %c0_47 = arith.constant 0 : index
    %89 = vector.load %arg8[%c0_46, %c0_47] : memref<128x128xf32, #tpu.memory_space<vmem>>, vector<128x128xf32>
    %cst_48 = arith.constant dense<0.000000e+00> : vector<16x128xf32>
    %90 = tpu.matmul %88, %89, %cst_48 {dimension_numbers = #tpu.dot_dimension_numbers<[1], [0], [0], [1], [0, 0, 1, 1], [], []>} : vector<16x128xf32>, vector<128x128xf32>, vector<16x128xf32> -> vector<16x128xf32>
    %c0_49 = arith.constant 0 : index
    %c0_50 = arith.constant 0 : index
    %91 = vector.load %arg9[%c0_49, %c0_50] : memref<1x128xf32, #tpu.memory_space<vmem>>, vector<1x128xf32>
    %92 = vector.broadcast %91 : vector<1x128xf32> to vector<16x128xf32>
    %93 = arith.addf %90, %92 : vector<16x128xf32>
    %94 = tpu.iota {dimensions = array<i32: 1>} : vector<16x128xi32>
    %c10_i32 = arith.constant 10 : i32
    %95 = vector.broadcast %c10_i32 : i32 to vector<16x128xi32>
    %96 = arith.cmpi slt, %94, %95 : vector<16x128xi32>
    %cst_51 = arith.constant -1.000000e+30 : f32
    %97 = vector.broadcast %cst_51 : f32 to vector<16x128xf32>
    %98 = arith.select %96, %93, %97 : vector<16x128xi1>, vector<16x128xf32>
    %cst_52 = arith.constant dense<0xFF800000> : vector<16xf32>
    %99 = vector.multi_reduction <maximumf>, %98, %cst_52 [1] : vector<16x128xf32> to vector<16xf32>
    %100 = vector.shape_cast %99 : vector<16xf32> to vector<16x1xf32>
    %101 = vector.broadcast %100 : vector<16x1xf32> to vector<16x128xf32>
    %102 = arith.subf %98, %101 : vector<16x128xf32>
    %103 = math.exp %102 : vector<16x128xf32>
    %cst_53 = arith.constant dense<0.000000e+00> : vector<16xf32>
    %104 = vector.multi_reduction <add>, %103, %cst_53 [1] : vector<16x128xf32> to vector<16xf32>
    %105 = vector.shape_cast %104 : vector<16xf32> to vector<16x1xf32>
    %106 = math.log %105 : vector<16x1xf32>
    %107 = vector.broadcast %106 : vector<16x1xf32> to vector<16x128xf32>
    %108 = arith.subf %102, %107 : vector<16x128xf32>
    %c0_54 = arith.constant 0 : index
    %c0_55 = arith.constant 0 : index
    %109 = vector.load %arg10[%c0_54, %c0_55] : memref<16x128xf32, #tpu.memory_space<vmem>>, vector<16x128xf32>
    tpu.vector_store %arg10[%c0_54, %c0_55], %108 {strides = array<i32>} : memref<16x128xf32, #tpu.memory_space<vmem>>, vector<16x128xf32>,
    return
  }
  func.func @transform_0(%arg0: i32) -> (i32, i32, i32, i32) {
    %c0_i32 = arith.constant 0 : i32
    %c0_i32_0 = arith.constant 0 : i32
    %c0_i32_1 = arith.constant 0 : i32
    %c0_i32_2 = arith.constant 0 : i32
    return %c0_i32, %c0_i32_0, %arg0, %c0_i32_1 : i32, i32, i32, i32
  }
  func.func @transform_1(%arg0: i32) -> (i32, i32) {
    %c0_i32 = arith.constant 0 : i32
    %c0_i32_0 = arith.constant 0 : i32
    %c0_i32_1 = arith.constant 0 : i32
    return %c0_i32, %c0_i32_0 : i32, i32
  }
  func.func @transform_2(%arg0: i32) -> (i32, i32) {
    %c0_i32 = arith.constant 0 : i32
    %c0_i32_0 = arith.constant 0 : i32
    %c0_i32_1 = arith.constant 0 : i32
    return %c0_i32, %c0_i32_0 : i32, i32
  }
  func.func @transform_3(%arg0: i32) -> (i32, i32) {
    %c0_i32 = arith.constant 0 : i32
    %c0_i32_0 = arith.constant 0 : i32
    %c0_i32_1 = arith.constant 0 : i32
    return %c0_i32, %c0_i32_0 : i32, i32
  }
  func.func @transform_4(%arg0: i32) -> (i32, i32) {
    %c0_i32 = arith.constant 0 : i32
    %c0_i32_0 = arith.constant 0 : i32
    %c0_i32_1 = arith.constant 0 : i32
    return %c0_i32, %c0_i32_0 : i32, i32
  }
  func.func @transform_5(%arg0: i32) -> (i32, i32, i32) {
    %c0_i32 = arith.constant 0 : i32
    %c0_i32_0 = arith.constant 0 : i32
    %c0_i32_1 = arith.constant 0 : i32
    %c0_i32_2 = arith.constant 0 : i32
    return %c0_i32, %c0_i32_0, %c0_i32_1 : i32, i32, i32
  }
  func.func @transform_6(%arg0: i32) -> (i32, i32) {
    %c0_i32 = arith.constant 0 : i32
    %c0_i32_0 = arith.constant 0 : i32
    %c0_i32_1 = arith.constant 0 : i32
    return %c0_i32, %c0_i32_0 : i32, i32
  }
  func.func @transform_7(%arg0: i32) -> (i32, i32) {
    %c0_i32 = arith.constant 0 : i32
    %c0_i32_0 = arith.constant 0 : i32
    %c0_i32_1 = arith.constant 0 : i32
    return %c0_i32, %c0_i32_0 : i32, i32
  }
  func.func @transform_8(%arg0: i32) -> (i32, i32) {
    %c0_i32 = arith.constant 0 : i32
    %c0_i32_0 = arith.constant 0 : i32
    %c0_i32_1 = arith.constant 0 : i32
    return %c0_i32, %c0_i32_0 : i32, i32
  }
  func.func @transform_9(%arg0: i32) -> (i32, i32) {
    %c0_i32 = arith.constant 0 : i32
    %c0_i32_0 = arith.constant 0 : i32
    return %arg0, %c0_i32 : i32, i32
  }
}

</mosaic_0001>

<bundles_post_ra>
// kernel: tile.10
= control target key start
LH: loop header
LB: loop body
LE: loop exit
PB: predicated region body
PF: predicated region fallthrough
CT: control target
= control target key end

     0   :  { %2 = vsyncpa [#allocation1], 0  ;;  %s57_s8 = smov [#allocation0]   ;;  %s83_s0 = inlined_call_operand.hbm [shape: f32[16], index: 0, kind: input, shape index: {}]   ;;  %s84_s1 = inlined_call_operand.vmem [shape: f32[28,16], index: 1, kind: output, shape index: {}]  }
   0x1   :  { %s8_s0 = sshll.u32 %s83_s0, 4  ;;  %s10_s9 = sshll.u32 %s57_s8, 4  ;;  %s9_s0 = int_to_ptr.hbm [resolvable:$true] %s8_s0  ;;  %s11_s9 = int_to_ptr.vmem [resolvable:$true] %s10_s9 }
   0x2   :  { %13 = dma.hbm_to_vmem [thread:$0]  %s9_s0, 16, %s11_s9, [#allocation1]  }
   0x3   :  { %55 = dma.done.wait [#allocation1], 16  }
   0x4   :  { %56 = vsyncadd [#allocation1], 4294967280  ;;  %v18_v0 = vld [vmem:[#allocation0] ss:$0 sm:$0xff] }
   0x5   :  { %19 = vst [vmem:[%s84_s1] sm:$0xff] %v18_v0 }
   0x6   :  { %27 = vst [vmem:[%s84_s1 + $0x8] sm:$0xff] %v18_v0 }
   0x7   :  { %28 = vst [vmem:[%s84_s1 + $0x10] sm:$0xff] %v18_v0 }
   0x8   :  { %29 = vst [vmem:[%s84_s1 + $0x18] sm:$0xff] %v18_v0 }
   0x9   :  { %26 = vsyncpa [#allocation1], 1 }

// kernel: tile.14
= control target key start
LH: loop header
LB: loop body
LE: loop exit
PB: predicated region body
PF: predicated region fallthrough
CT: control target
= control target key end

     0   :  { %2 = vsyncpa [#allocation1], 0  ;;  %s51_s8 = smov [#allocation0]   ;;  %s71_s0 = inlined_call_operand.hbm [shape: f32[32], index: 0, kind: input, shape index: {}]   ;;  %s72_s1 = inlined_call_operand.vmem [shape: f32[14,32], index: 1, kind: output, shape index: {}]  }
   0x1   :  { %s8_s0 = sshll.u32 %s71_s0, 4  ;;  %s10_s9 = sshll.u32 %s51_s8, 4  ;;  %s9_s0 = int_to_ptr.hbm [resolvable:$true] %s8_s0  ;;  %s11_s9 = int_to_ptr.vmem [resolvable:$true] %s10_s9 }
   0x2   :  { %13 = dma.hbm_to_vmem [thread:$0]  %s9_s0, 16, %s11_s9, [#allocation1]  }
   0x3   :  { %49 = dma.done.wait [#allocation1], 16  }
   0x4   :  { %50 = vsyncadd [#allocation1], 4294967280  ;;  %v18_v0 = vld [vmem:[#allocation0] ss:$0 sm:$0xff] }
   0x5   :  { %19 = vst [vmem:[%s72_s1] sm:$0xff] %v18_v0 }
   0x6   :  { %23 = vst [vmem:[%s72_s1 + $0x8] sm:$0xff] %v18_v0 }
   0x7   :  { %22 = vsyncpa [#allocation1], 1 }

// kernel: tile.11
= control target key start
LH: loop header
LB: loop body
LE: loop exit
PB: predicated region body
PF: predicated region fallthrough
CT: control target
= control target key end

     0   :  { %s125_s8 = smov 112   ;;  %s126_s11 = smov 80   ;;  %s170_s0 = inlined_call_operand.vmem [shape: f32[28,16], index: 0, kind: input, shape index: {}]   ;;  %s171_s1 = inlined_call_operand.hbm [shape: f32[1,448], index: 1, kind: output, shape index: {}]  }
   0x1   :  { %v84_v0 = vld [vmem:[%s170_s0 + $0x7] ss:$8 sm:$0x7]   ;;  %v86_v1 = vld [vmem:[%s170_s0 + $0x5] ss:$8 sm:$0x7]  }
   0x2   :  { %8 = vrot.lane.b32.xlu0 %v84_v0, %s125_s8  ;;  %20 = vrot.lane.b32.xlu1 %v86_v1, %s126_s11  ;;  %v88_v2 = vld [vmem:[%s170_s0 + $0x3] ss:$8 sm:$0xf]   ;;  %s127_s14 = smov 48  }
   0x3   :  { %32 = vrot.lane.b32.xlu2 %v88_v2, %s127_s14 }
   0x4   :  { %2 = vsyncpa [#allocation1], 0  ;;  %v85_v3 = vld [vmem:[%s170_s0 + $0x6] ss:$8 sm:$0x7]   ;;  %s128_s19 = smov 96  }
   0x5   :  { %v87_v4 = vld [vmem:[%s170_s0 + $0x4] ss:$8 sm:$0x7]   ;;  %s129_s20 = smov 64   ;;  %s130_s23 = smov 32   ;;  %vm4_vm0 = vcmask 130048  }
   0x6   :  { %v89_v5 = vld [vmem:[%s170_s0 + $0x2] ss:$8 sm:$0xf]   ;;  %v90_v6 = vld [vmem:[%s170_s0 + $0x1] ss:$8 sm:$0xf]  }
   0x7   :  { %s131_s26 = smov 16   ;;  %v3_v7 = vld [vmem:[%s170_s0] ss:$8 sm:$0xf]   ;;  %vm10_vm1 = vcmask 1048448   ;;  %vm16_vm2 = vcmask 917248  }
   0x8   :  { %5 = vst.msk [vmem:[#allocation2] ss:$8 sm:$0xf] %vm4_vm0, %v3_v7   ;;  %vm22_vm3 = vcmask 786048   ;;  %vm28_vm4 = vcmask 654848   ;;  %vm34_vm5 = vcmask 523648  }
   0x9   :  { %vm40_vm6 = vcmask 392448   ;;  %vm46_vm7 = vcmask 261248   ;;  %s132_s0 = smov [#allocation0]   ;;  %s77_s1 = sshll.u32 %s171_s1, 4  ;;  %s78_s1 = int_to_ptr.hbm [resolvable:$true] %s77_s1 }
   0xa   :  { %14 = vrot.lane.b32.xlu0 %v85_v3, %s128_s19  ;;  %26 = vrot.lane.b32.xlu1 %v87_v4, %s129_s20  ;;  %s75_s29 = sshll.u32 %s132_s0, 4  ;;  %s76_s29 = int_to_ptr.vmem [resolvable:$true] %s75_s29 }
   0xb   :  { %38 = vrot.lane.b32.xlu2 %v89_v5, %s130_s23 }
  0x12   :  { %44 = vrot.lane.b32.xlu0 %v90_v6, %s131_s26 }
  0x5d   :  { %v33_v8 = vpop.permute.xlu2 %32  }
  0x65   :  { %v39_v9 = vpop.permute.xlu2 %38  }
  0x74   :  { %v9_v10 = vpop.permute.xlu0 %8   ;;  %v21_v11 = vpop.permute.xlu1 %20  }
  0x75   :  { %11 = vst.msk [vmem:[#allocation2] ss:$8 sm:$0x7] %vm10_vm1, %v9_v10  }
  0x7c   :  { %v15_v12 = vpop.permute.xlu0 %14   ;;  %v27_v13 = vpop.permute.xlu1 %26  }
  0x7d   :  { %17 = vst.msk [vmem:[#allocation2] ss:$8 sm:$0x7] %vm16_vm2, %v15_v12  }
  0x7e   :  { %23 = vst.msk [vmem:[#allocation2] ss:$8 sm:$0x7] %vm22_vm3, %v21_v11  }
  0x7f   :  { %29 = vst.msk [vmem:[#allocation2] ss:$8 sm:$0x7] %vm28_vm4, %v27_v13  }
  0x80   :  { %35 = vst.msk [vmem:[#allocation2] ss:$8 sm:$0xf] %vm34_vm5, %v33_v8  }
  0x81   :  { %41 = vst.msk [vmem:[#allocation2] ss:$8 sm:$0xf] %vm40_vm6, %v39_v9  }
  0x84   :  { %v45_v14 = vpop.permute.xlu0 %44  }
  0x85   :  { %47 = vst.msk [vmem:[#allocation2] ss:$8 sm:$0xf] %vm46_vm7, %v45_v14  }
  0x8c   :  { %v50_v15 = vld [vmem:[#allocation2] sm:$0x1]  ;;  %v55_v16 = vld [vmem:[#allocation2 + $0x8] sm:$0x1]  ;;  %v61_v17 = vld [vmem:[#allocation2 + $0x10] sm:$0x1] }
  0x8d   :  { %53 = vst [vmem:[#allocation0] sm:$0x1] %v50_v15  ;;  %v67_v18 = vld [vmem:[#allocation2 + $0x18] sm:$0x1] }
  0x8e   :  { %59 = vst [vmem:[#allocation0 + $0x1] sm:$0x1] %v55_v16 }
  0x8f   :  { %65 = vst [vmem:[#allocation0 + $0x2] sm:$0x1] %v61_v17 }
  0x90   :  { %71 = vst [vmem:[#allocation0 + $0x3] sm:$0x1] %v67_v18 }
  0x91   :  { %80 = dma.vmem_to_hbm [thread:$0]  %s76_s29, 64, %s78_s1, [#allocation1]  }
  0x92   :  { %123 = dma.done.wait [#allocation1], 64  }
  0x93   :  { %124 = vsyncadd [#allocation1], 4294967232 }
  0x94   :  { %83 = vsyncpa [#allocation1], 1 }

// kernel: tile.15
= control target key start
LH: loop header
LB: loop body
LE: loop exit
PB: predicated region body
PF: predicated region fallthrough
CT: control target
= control target key end

     0   :  { %s93_s8 = smov 96   ;;  %s122_s0 = inlined_call_operand.vmem [shape: f32[14,32], index: 0, kind: input, shape index: {}]   ;;  %s123_s1 = inlined_call_operand.hbm [shape: f32[1,448], index: 1, kind: output, shape index: {}]  }
   0x1   :  { %v60_v0 = vld [vmem:[%s122_s0 + $0x3] ss:$4 sm:$0x7]   ;;  %v62_v1 = vld [vmem:[%s122_s0 + $0x1] ss:$4 sm:$0xf]  }
   0x2   :  { %8 = vrot.lane.b32.xlu0 %v60_v0, %s93_s8 }
   0x3   :  { %2 = vsyncpa [#allocation1], 0  ;;  %s94_s11 = smov 32   ;;  %v61_v2 = vld [vmem:[%s122_s0 + $0x2] ss:$4 sm:$0x7]  }
   0x4   :  { %20 = vrot.lane.b32.xlu1 %v62_v1, %s94_s11  ;;  %s95_s14 = smov 64   ;;  %v3_v3 = vld [vmem:[%s122_s0] ss:$4 sm:$0xf]   ;;  %vm4_vm0 = vcmask 261120   ;;  %vm10_vm1 = vcmask 1048320  }
   0x5   :  { %5 = vst.msk [vmem:[#allocation2] ss:$8 sm:$0xf] %vm4_vm0, %v3_v3   ;;  %vm16_vm2 = vcmask 785920   ;;  %vm22_vm3 = vcmask 523520   ;;  %s96_s0 = smov [#allocation0]  }
   0x6   :  { %s51_s17 = sshll.u32 %s96_s0, 4  ;;  %s53_s1 = sshll.u32 %s123_s1, 4  ;;  %s52_s17 = int_to_ptr.vmem [resolvable:$true] %s51_s17  ;;  %s54_s1 = int_to_ptr.hbm [resolvable:$true] %s53_s1 }
   0xa   :  { %14 = vrot.lane.b32.xlu0 %v61_v2, %s95_s14 }
  0x74   :  { %v9_v4 = vpop.permute.xlu0 %8  }
  0x75   :  { %11 = vst.msk [vmem:[#allocation2] ss:$8 sm:$0x7] %vm10_vm1, %v9_v4  }
  0x76   :  { %v21_v5 = vpop.permute.xlu1 %20  }
  0x7c   :  { %v15_v6 = vpop.permute.xlu0 %14  }
  0x7d   :  { %17 = vst.msk [vmem:[#allocation2] ss:$8 sm:$0x7] %vm16_vm2, %v15_v6  }
  0x7e   :  { %23 = vst.msk [vmem:[#allocation2] ss:$8 sm:$0xf] %vm22_vm3, %v21_v5  }
  0x85   :  { %v26_v7 = vld [vmem:[#allocation2] sm:$0x1]  ;;  %v31_v8 = vld [vmem:[#allocation2 + $0x8] sm:$0x1]  ;;  %v37_v9 = vld [vmem:[#allocation2 + $0x10] sm:$0x1] }
  0x86   :  { %29 = vst [vmem:[#allocation0] sm:$0x1] %v26_v7  ;;  %v43_v10 = vld [vmem:[#allocation2 + $0x18] sm:$0x1] }
  0x87   :  { %35 = vst [vmem:[#allocation0 + $0x1] sm:$0x1] %v31_v8 }
  0x88   :  { %41 = vst [vmem:[#allocation0 + $0x2] sm:$0x1] %v37_v9 }
  0x89   :  { %47 = vst [vmem:[#allocation0 + $0x3] sm:$0x1] %v43_v10 }
  0x8a   :  { %56 = dma.vmem_to_hbm [thread:$0]  %s52_s17, 64, %s54_s1, [#allocation1]  }
  0x8b   :  { %91 = dma.done.wait [#allocation1], 64  }
  0x8c   :  { %92 = vsyncadd [#allocation1], 4294967232 }
  0x8d   :  { %59 = vsyncpa [#allocation1], 1 }

// kernel: _lambda_.1
= control target key start
LH: loop header
LB: loop body
LE: loop exit
PB: predicated region body
PF: predicated region fallthrough
CT: control target
= control target key end

     0   :  { %s14252_s0 = inlined_call_operand.vmem [shape: f32[2,14,16,128], index: 0, kind: input, shape index: {}]   ;;  %s14253_s1 = inlined_call_operand.vmem [shape: f32[128,448], index: 1, kind: input, shape index: {}]   ;;  %s14254_s2 = inlined_call_operand.vmem [shape: f32[1,448], index: 2, kind: input, shape index: {}]   ;;  %s14255_s3 = inlined_call_operand.vmem [shape: f32[768,448], index: 3, kind: input, shape index: {}]   ;;  %s14256_s4 = inlined_call_operand.vmem [shape: f32[1,448], index: 4, kind: input, shape index: {}]   ;;  %s14257_s5 = inlined_call_operand.vmem [shape: f32[7,224,128], index: 5, kind: input, shape index: {}]   ;;  %s14258_s6 = inlined_call_operand.vmem [shape: f32[1,128], index: 6, kind: input, shape index: {}]   ;;  %s14259_s7 = inlined_call_operand.vmem [shape: f32[128,128], index: 7, kind: input, shape index: {}]   ;;  %s14260_s8 = inlined_call_operand.vmem [shape: f32[1,128], index: 8, kind: input, shape index: {}]   ;;  %s14261_s9 = inlined_call_operand.hbm [shape: f32[16,128], index: 9, kind: output, shape index: {}]  }
   0x1   :  { %v7320_v0 = vld [vmem:[%s14253_s1 + $0x1e0] sm:$0xff]  ;;  %v7325_v1 = vld [vmem:[%s14253_s1 + $0x1e8] sm:$0xff]  ;;  %v7330_v2 = vld [vmem:[%s14253_s1 + $0x1f0] sm:$0xff] }
   0x2   :  { %154 = vmatpush.msra.mxu0 %v7320_v0  ;;  %255 = vmatpush.msra.mxu1 %v7325_v1  ;;  %v7337_v3 = vld [vmem:[%s14253_s1 + $0x1f8] sm:$0xff]  ;;  %v7342_v4 = vld [vmem:[%s14253_s1 + $0x1c0] sm:$0xff]  ;;  %v7347_v5 = vld [vmem:[%s14253_s1 + $0x1c8] sm:$0xff] }
   0x3   :  { %356 = vmatpush.msra.mxu2 %v7330_v2  ;;  %457 = vmatpush.msra.mxu3 %v7337_v3  ;;  %v7354_v6 = vld [vmem:[%s14253_s1 + $0x1d0] sm:$0xff]  ;;  %v7359_v7 = vld [vmem:[%s14253_s1 + $0x1d8] sm:$0xff]  ;;  %v7364_v8 = vld [vmem:[%s14253_s1 + $0x1a0] sm:$0xff] }
   0x4   :  { %155 = vmatpush.msra.mxu0 %v7342_v4  ;;  %256 = vmatpush.msra.mxu1 %v7347_v5  ;;  %v7371_v9 = vld [vmem:[%s14253_s1 + $0x1a8] sm:$0xff]  ;;  %v7376_v10 = vld [vmem:[%s14253_s1 + $0x1b0] sm:$0xff]  ;;  %v7381_v11 = vld [vmem:[%s14253_s1 + $0x1b8] sm:$0xff] }
   0x5   :  { %357 = vmatpush.msra.mxu2 %v7354_v6  ;;  %458 = vmatpush.msra.mxu3 %v7359_v7  ;;  %v7388_v12 = vld [vmem:[%s14253_s1 + $0x180] sm:$0xff]  ;;  %v7393_v13 = vld [vmem:[%s14253_s1 + $0x188] sm:$0xff]  ;;  %v7400_v14 = vld [vmem:[%s14253_s1 + $0x190] sm:$0xff] }
   0x6   :  { %156 = vmatpush.msra.mxu0 %v7364_v8  ;;  %257 = vmatpush.msra.mxu1 %v7371_v9  ;;  %v7405_v15 = vld [vmem:[%s14253_s1 + $0x198] sm:$0xff]  ;;  %v7412_v16 = vld [vmem:[%s14253_s1 + $0x160] sm:$0xff]  ;;  %v7417_v17 = vld [vmem:[%s14253_s1 + $0x168] sm:$0xff] }
   0x7   :  { %358 = vmatpush.msra.mxu2 %v7376_v10  ;;  %459 = vmatpush.msra.mxu3 %v7381_v11  ;;  %v7424_v18 = vld [vmem:[%s14253_s1 + $0x170] sm:$0xff]  ;;  %v7429_v19 = vld [vmem:[%s14253_s1 + $0x178] sm:$0xff]  ;;  %v7436_v20 = vld [vmem:[%s14253_s1 + $0x140] sm:$0xff] }
   0x8   :  { %157 = vmatpush.msra.mxu0 %v7388_v12  ;;  %258 = vmatpush.msra.mxu1 %v7393_v13  ;;  %v7441_v21 = vld [vmem:[%s14253_s1 + $0x148] sm:$0xff]  ;;  %v7448_v22 = vld [vmem:[%s14253_s1 + $0x150] sm:$0xff]  ;;  %v7453_v23 = vld [vmem:[%s14253_s1 + $0x158] sm:$0xff] }
   0x9   :  { %359 = vmatpush.msra.mxu2 %v7400_v14  ;;  %460 = vmatpush.msra.mxu3 %v7405_v15  ;;  %v7460_v24 = vld [vmem:[%s14253_s1 + $0x120] sm:$0xff]  ;;  %v7465_v25 = vld [vmem:[%s14253_s1 + $0x128] sm:$0xff]  ;;  %v7472_v26 = vld [vmem:[%s14253_s1 + $0x130] sm:$0xff] }
   0xa   :  { %158 = vmatpush.msra.mxu0 %v7412_v16  ;;  %259 = vmatpush.msra.mxu1 %v7417_v17  ;;  %v7477_v27 = vld [vmem:[%s14253_s1 + $0x138] sm:$0xff]  ;;  %v7484_v28 = vld [vmem:[%s14253_s1 + $0x100] sm:$0xff]  ;;  %v7489_v29 = vld [vmem:[%s14253_s1 + $0x108] sm:$0xff] }
   0xb   :  { %360 = vmatpush.msra.mxu2 %v7424_v18  ;;  %461 = vmatpush.msra.mxu3 %v7429_v19  ;;  %v7496_v30 = vld [vmem:[%s14253_s1 + $0x110] sm:$0xff]  ;;  %v7501_v31 = vld [vmem:[%s14253_s1 + $0x118] sm:$0xff]  ;;  %v7508_v32 = vld [vmem:[%s14253_s1 + $0xe0] sm:$0xff] }
   0xc   :  { %159 = vmatpush.msra.mxu0 %v7436_v20  ;;  %260 = vmatpush.msra.mxu1 %v7441_v21  ;;  %v7513_v33 = vld [vmem:[%s14253_s1 + $0xe8] sm:$0xff]  ;;  %v7520_v34 = vld [vmem:[%s14253_s1 + $0xf0] sm:$0xff]  ;;  %v7525_v35 = vld [vmem:[%s14253_s1 + $0xf8] sm:$0xff] }
   0xd   :  { %361 = vmatpush.msra.mxu2 %v7448_v22  ;;  %462 = vmatpush.msra.mxu3 %v7453_v23  ;;  %v7532_v36 = vld [vmem:[%s14253_s1 + $0xc0] sm:$0xff]  ;;  %v7537_v37 = vld [vmem:[%s14253_s1 + $0xc8] sm:$0xff]  ;;  %v7544_v38 = vld [vmem:[%s14253_s1 + $0xd0] sm:$0xff] }
   0xe   :  { %160 = vmatpush.msra.mxu0 %v7460_v24  ;;  %261 = vmatpush.msra.mxu1 %v7465_v25  ;;  %v7549_v39 = vld [vmem:[%s14253_s1 + $0xd8] sm:$0xff]  ;;  %v7556_v40 = vld [vmem:[%s14253_s1 + $0xa0] sm:$0xff]  ;;  %v7561_v41 = vld [vmem:[%s14253_s1 + $0xa8] sm:$0xff] }
   0xf   :  { %362 = vmatpush.msra.mxu2 %v7472_v26  ;;  %463 = vmatpush.msra.mxu3 %v7477_v27  ;;  %v7568_v42 = vld [vmem:[%s14253_s1 + $0xb0] sm:$0xff]  ;;  %v7573_v43 = vld [vmem:[%s14253_s1 + $0xb8] sm:$0xff]  ;;  %v7580_v44 = vld [vmem:[%s14253_s1 + $0x80] sm:$0xff] }
  0x10   :  { %161 = vmatpush.msra.mxu0 %v7484_v28  ;;  %262 = vmatpush.msra.mxu1 %v7489_v29  ;;  %v7585_v45 = vld [vmem:[%s14253_s1 + $0x88] sm:$0xff]  ;;  %v7592_v46 = vld [vmem:[%s14253_s1 + $0x90] sm:$0xff]  ;;  %v7597_v47 = vld [vmem:[%s14253_s1 + $0x98] sm:$0xff] }
  0x11   :  { %363 = vmatpush.msra.mxu2 %v7496_v30  ;;  %464 = vmatpush.msra.mxu3 %v7501_v31  ;;  %v7602_v48 = vld [vmem:[%s14253_s1 + $0x60] sm:$0xff]  ;;  %v7609_v49 = vld [vmem:[%s14253_s1 + $0x68] sm:$0xff]  ;;  %v7614_v50 = vld [vmem:[%s14253_s1 + $0x70] sm:$0xff] }
  0x12   :  { %162 = vmatpush.msra.mxu0 %v7508_v32  ;;  %263 = vmatpush.msra.mxu1 %v7513_v33  ;;  %v7621_v51 = vld [vmem:[%s14253_s1 + $0x78] sm:$0xff] }
  0x13   :  { %364 = vmatpush.msra.mxu2 %v7520_v34  ;;  %465 = vmatpush.msra.mxu3 %v7525_v35 }
  0x14   :  { %163 = vmatpush.msra.mxu0 %v7532_v36  ;;  %264 = vmatpush.msra.mxu1 %v7537_v37 }
  0x15   :  { %365 = vmatpush.msra.mxu2 %v7544_v38  ;;  %466 = vmatpush.msra.mxu3 %v7549_v39 }
  0x16   :  { %164 = vmatpush.msra.mxu0 %v7556_v40  ;;  %265 = vmatpush.msra.mxu1 %v7561_v41 }
  0x17   :  { %366 = vmatpush.msra.mxu2 %v7568_v42  ;;  %467 = vmatpush.msra.mxu3 %v7573_v43 }
  0x18   :  { %165 = vmatpush.msra.mxu0 %v7580_v44  ;;  %266 = vmatpush.msra.mxu1 %v7585_v45 }
  0x19   :  { %14 = vsyncpa [#allocation3], 0  ;;  %367 = vmatpush.msra.mxu2 %v7592_v46  ;;  %468 = vmatpush.msra.mxu3 %v7597_v47  ;;  %v7628_v52 = vld [vmem:[%s14253_s1 + $0x40] sm:$0xff]  ;;  %v7633_v53 = vld [vmem:[%s14253_s1 + $0x48] sm:$0xff]  ;;  %vm1448_vm0 = vcmask 261120   ;;  %s7262_s29 = smov 16  }
  0x1a   :  { %166 = vmatpush.msra.mxu0 %v7602_v48  ;;  %267 = vmatpush.msra.mxu1 %v7609_v49  ;;  %v7640_v54 = vld [vmem:[%s14253_s1 + $0x50] sm:$0xff]  ;;  %v7645_v55 = vld [vmem:[%s14253_s1 + $0x58] sm:$0xff]  ;;  %v7652_v56 = vld [vmem:[%s14253_s1 + $0x20] sm:$0xff]  ;;  %vm1841_vm1 = vcmask 130048   ;;  %vm1954_vm3 = vcmask 916480   ;;  %vm5342_vm4 = vcmask 785408  }
  0x1b   :  { %368 = vmatpush.msra.mxu2 %v7614_v50  ;;  %469 = vmatpush.msra.mxu3 %v7621_v51  ;;  %14439 = vst [vmem:[#allocation5_spill] sm:$0xff] %v7652_v56  ;;  %v7657_v57 = vld [vmem:[%s14253_s1 + $0x28] sm:$0xff]  ;;  %v7664_v58 = vld [vmem:[%s14253_s1 + $0x30] sm:$0xff]  ;;  %v7669_v59 = vld [vmem:[%s14253_s1 + $0x38] sm:$0xff]  ;;  %s5966_s24 = sshll.u32 %s14261_s9, 4  ;;  %s7265_s25 = smov 128   ;;  %s5967_s24 = int_to_ptr.hbm [resolvable:$true] %s5966_s24 }
  0x1c   :  { %167 = vmatpush.msra.mxu0 %v7628_v52  ;;  %268 = vmatpush.msra.mxu1 %v7633_v53  ;;  %v7676_v60 = vld [vmem:[%s14253_s1] sm:$0xff]  ;;  %v7681_v61 = vld [vmem:[%s14253_s1 + $0x8] sm:$0xff]  ;;  %v7688_v62 = vld [vmem:[%s14253_s1 + $0x10] sm:$0xff]  ;;  %s7266_s26 = smov 8  }
  0x1d   :  { %369 = vmatpush.msra.mxu2 %v7640_v54  ;;  %470 = vmatpush.msra.mxu3 %v7645_v55  ;;  %14440 = vst [vmem:[#allocation6_spill] sm:$0xff] %v7676_v60  ;;  %v7693_v63 = vld [vmem:[%s14253_s1 + $0x18] sm:$0xff]  ;;  %vm8858_vm2 = vmneg %vm1841_vm1 }
  0x1e   :  { %168 = vmatpush.msra.mxu0 %v7652_v56  ;;  %269 = vmatpush.msra.mxu1 %v7657_v57  ;;  %v33_v56 = vld [vmem:[%s14252_s0] sm:$0xff] }
  0x1f   :  { %370 = vmatpush.msra.mxu2 %v7664_v58  ;;  %471 = vmatpush.msra.mxu3 %v7669_v59 }
  0x20   :  { %169 = vmatpush.msra.mxu0 %v7676_v60  ;;  %270 = vmatpush.msra.mxu1 %v7681_v61  ;;  %v34_v60 = vld [vmem:[%s14252_s0 + $0x8] sm:$0xff] }
  0x21   :  { %371 = vmatpush.msra.mxu2 %v7688_v62  ;;  %472 = vmatpush.msra.mxu3 %v7693_v63 }
  0x22   :  { %170 = vmatmul.f32.vlgmr.msra.gmra.mxu0 %v33_v56  ;;  %271 = vmatmul.f32.vlgmr.msra.gmra.mxu1 %v33_v56 }
  0x23   :  { %372 = vmatmul.f32.vlgmr.msra.gmra.mxu2 %v33_v56  ;;  %473 = vmatmul.f32.vlgmr.msra.gmra.mxu3 %v33_v56  ;;  %v57_v56 = vld [vmem:[%s14252_s0 + $0xc0] sm:$0xff] }
  0x24   :  { %659 = vmatpush.msrb.mxu1 %v7325_v1  ;;  %760 = vmatpush.msrb.mxu2 %v7330_v2  ;;  %v36_v1 = vld [vmem:[%s14252_s0 + $0x18] sm:$0xff]  ;;  %v37_v2 = vld [vmem:[%s14252_s0 + $0x20] sm:$0xff] }
  0x25   :  { %861 = vmatpush.msrb.mxu3 %v7337_v3  ;;  %558 = vmatpush.msrb.mxu0 %v7320_v0  ;;  %v35_v0 = vld [vmem:[%s14252_s0 + $0x10] sm:$0xff]  ;;  %v38_v3 = vld [vmem:[%s14252_s0 + $0x28] sm:$0xff] }
  0x26   :  { %660 = vmatpush.msrb.mxu1 %v7347_v5  ;;  %761 = vmatpush.msrb.mxu2 %v7354_v6  ;;  %v14442_v5 = vld [vmem:[#allocation6_spill] sm:$0xff]  ;;  %v39_v6 = vld [vmem:[%s14252_s0 + $0x30] sm:$0xff] }
  0x27   :  { %862 = vmatpush.msrb.mxu3 %v7359_v7  ;;  %559 = vmatpush.msrb.mxu0 %v7342_v4  ;;  %v14441_v4 = vld [vmem:[#allocation5_spill] sm:$0xff]  ;;  %v40_v7 = vld [vmem:[%s14252_s0 + $0x38] sm:$0xff] }
  0x28   :  { %661 = vmatpush.msrb.mxu1 %v7371_v9  ;;  %762 = vmatpush.msrb.mxu2 %v7376_v10  ;;  %v42_v9 = vld [vmem:[%s14252_s0 + $0x48] sm:$0xff]  ;;  %v43_v10 = vld [vmem:[%s14252_s0 + $0x50] sm:$0xff] }
  0x29   :  { %863 = vmatpush.msrb.mxu3 %v7381_v11  ;;  %560 = vmatpush.msrb.mxu0 %v7364_v8  ;;  %v41_v8 = vld [vmem:[%s14252_s0 + $0x40] sm:$0xff]  ;;  %v44_v11 = vld [vmem:[%s14252_s0 + $0x58] sm:$0xff] }
  0x2a   :  { %173 = vmatmul.f32.gmra.mxu0 %v34_v60  ;;  %274 = vmatmul.f32.gmra.mxu1 %v34_v60 }
  0x2b   :  { %375 = vmatmul.f32.gmra.mxu2 %v34_v60  ;;  %476 = vmatmul.f32.gmra.mxu3 %v34_v60  ;;  %v58_v60 = vld [vmem:[%s14252_s0 + $0xc8] sm:$0xff] }
  0x2c   :  { %662 = vmatpush.msrb.mxu1 %v7393_v13  ;;  %763 = vmatpush.msrb.mxu2 %v7400_v14  ;;  %v46_v13 = vld [vmem:[%s14252_s0 + $0x68] sm:$0xff]  ;;  %v47_v14 = vld [vmem:[%s14252_s0 + $0x70] sm:$0xff] }
  0x2d   :  { %864 = vmatpush.msrb.mxu3 %v7405_v15  ;;  %561 = vmatpush.msrb.mxu0 %v7388_v12  ;;  %v45_v12 = vld [vmem:[%s14252_s0 + $0x60] sm:$0xff]  ;;  %v48_v15 = vld [vmem:[%s14252_s0 + $0x78] sm:$0xff] }
  0x2e   :  { %663 = vmatpush.msrb.mxu1 %v7417_v17  ;;  %764 = vmatpush.msrb.mxu2 %v7424_v18  ;;  %v49_v17 = vld [vmem:[%s14252_s0 + $0x80] sm:$0xff] }
  0x2f   :  { %865 = vmatpush.msrb.mxu3 %v7429_v19  ;;  %562 = vmatpush.msrb.mxu0 %v7412_v16 }
  0x30   :  { %664 = vmatpush.msrb.mxu1 %v7441_v21  ;;  %765 = vmatpush.msrb.mxu2 %v7448_v22  ;;  %v50_v22 = vld [vmem:[%s14252_s0 + $0x88] sm:$0xff] }
  0x31   :  { %866 = vmatpush.msrb.mxu3 %v7453_v23  ;;  %563 = vmatpush.msrb.mxu0 %v7436_v20 }
  0x32   :  { %176 = vmatmul.f32.gmra.mxu0 %v35_v0  ;;  %277 = vmatmul.f32.gmra.mxu1 %v35_v0 }
  0x33   :  { %378 = vmatmul.f32.gmra.mxu2 %v35_v0  ;;  %479 = vmatmul.f32.gmra.mxu3 %v35_v0 }
  0x34   :  { %665 = vmatpush.msrb.mxu1 %v7465_v25  ;;  %766 = vmatpush.msrb.mxu2 %v7472_v26 }
  0x35   :  { %867 = vmatpush.msrb.mxu3 %v7477_v27  ;;  %564 = vmatpush.msrb.mxu0 %v7460_v24  ;;  %v51_v27 = vld [vmem:[%s14252_s0 + $0x90] sm:$0xff] }
  0x36   :  { %666 = vmatpush.msrb.mxu1 %v7489_v29  ;;  %767 = vmatpush.msrb.mxu2 %v7496_v30 }
  0x37   :  { %868 = vmatpush.msrb.mxu3 %v7501_v31  ;;  %565 = vmatpush.msrb.mxu0 %v7484_v28 }
  0x38   :  { %667 = vmatpush.msrb.mxu1 %v7513_v33  ;;  %768 = vmatpush.msrb.mxu2 %v7520_v34 }
  0x39   :  { %869 = vmatpush.msrb.mxu3 %v7525_v35  ;;  %566 = vmatpush.msrb.mxu0 %v7508_v32  ;;  %v52_v32 = vld [vmem:[%s14252_s0 + $0x98] sm:$0xff] }
  0x3a   :  { %179 = vmatmul.f32.gmra.mxu0 %v36_v1  ;;  %280 = vmatmul.f32.gmra.mxu1 %v36_v1 }
  0x3b   :  { %381 = vmatmul.f32.gmra.mxu2 %v36_v1  ;;  %482 = vmatmul.f32.gmra.mxu3 %v36_v1  ;;  %v59_v1 = vld [vmem:[%s14252_s0 + $0xd0] sm:$0xff] }
  0x3c   :  { %668 = vmatpush.msrb.mxu1 %v7537_v37  ;;  %769 = vmatpush.msrb.mxu2 %v7544_v38 }
  0x3d   :  { %870 = vmatpush.msrb.mxu3 %v7549_v39  ;;  %567 = vmatpush.msrb.mxu0 %v7532_v36  ;;  %v53_v36 = vld [vmem:[%s14252_s0 + $0xa0] sm:$0xff] }
  0x3e   :  { %669 = vmatpush.msrb.mxu1 %v7561_v41  ;;  %770 = vmatpush.msrb.mxu2 %v7568_v42  ;;  %v54_v41 = vld [vmem:[%s14252_s0 + $0xa8] sm:$0xff] }
  0x3f   :  { %871 = vmatpush.msrb.mxu3 %v7573_v43  ;;  %568 = vmatpush.msrb.mxu0 %v7556_v40 }
  0x40   :  { %670 = vmatpush.msrb.mxu1 %v7585_v45  ;;  %771 = vmatpush.msrb.mxu2 %v7592_v46  ;;  %v55_v46 = vld [vmem:[%s14252_s0 + $0xb0] sm:$0xff] }
  0x41   :  { %872 = vmatpush.msrb.mxu3 %v7597_v47  ;;  %569 = vmatpush.msrb.mxu0 %v7580_v44 }
  0x42   :  { %182 = vmatmul.f32.gmra.mxu0 %v37_v2  ;;  %283 = vmatmul.f32.gmra.mxu1 %v37_v2 }
  0x43   :  { %384 = vmatmul.f32.gmra.mxu2 %v37_v2  ;;  %485 = vmatmul.f32.gmra.mxu3 %v37_v2 }
  0x44   :  { %671 = vmatpush.msrb.mxu1 %v7609_v49  ;;  %772 = vmatpush.msrb.mxu2 %v7614_v50 }
  0x45   :  { %873 = vmatpush.msrb.mxu3 %v7621_v51  ;;  %570 = vmatpush.msrb.mxu0 %v7602_v48  ;;  %v56_v51 = vld [vmem:[%s14252_s0 + $0xb8] sm:$0xff] }
  0x46   :  { %672 = vmatpush.msrb.mxu1 %v7633_v53  ;;  %773 = vmatpush.msrb.mxu2 %v7640_v54 }
  0x47   :  { %874 = vmatpush.msrb.mxu3 %v7645_v55  ;;  %571 = vmatpush.msrb.mxu0 %v7628_v52 }
  0x48   :  { %673 = vmatpush.msrb.mxu1 %v7657_v57  ;;  %774 = vmatpush.msrb.mxu2 %v7664_v58 }
  0x49   :  { %875 = vmatpush.msrb.mxu3 %v7669_v59  ;;  %572 = vmatpush.msrb.mxu0 %v14441_v4 }
  0x4a   :  { %185 = vmatmul.f32.gmra.mxu0 %v38_v3  ;;  %286 = vmatmul.f32.gmra.mxu1 %v38_v3 }
  0x4b   :  { %387 = vmatmul.f32.gmra.mxu2 %v38_v3  ;;  %488 = vmatmul.f32.gmra.mxu3 %v38_v3 }
  0x4c   :  { %674 = vmatpush.msrb.mxu1 %v7681_v61  ;;  %775 = vmatpush.msrb.mxu2 %v7688_v62 }
  0x4d   :  { %876 = vmatpush.msrb.mxu3 %v7693_v63  ;;  %573 = vmatpush.msrb.mxu0 %v14442_v5 }
  0x52   :  { %188 = vmatmul.f32.gmra.mxu0 %v39_v6  ;;  %289 = vmatmul.f32.gmra.mxu1 %v39_v6 }
  0x53   :  { %390 = vmatmul.f32.gmra.mxu2 %v39_v6  ;;  %491 = vmatmul.f32.gmra.mxu3 %v39_v6  ;;  %v60_v6 = vld [vmem:[%s14252_s0 + $0xd8] sm:$0xff] }
  0x5a   :  { %191 = vmatmul.f32.gmra.mxu0 %v40_v7  ;;  %292 = vmatmul.f32.gmra.mxu1 %v40_v7 }
  0x5b   :  { %393 = vmatmul.f32.gmra.mxu2 %v40_v7  ;;  %494 = vmatmul.f32.gmra.mxu3 %v40_v7 }
  0x62   :  { %194 = vmatmul.f32.gmra.mxu0 %v41_v8  ;;  %295 = vmatmul.f32.gmra.mxu1 %v41_v8 }
  0x63   :  { %396 = vmatmul.f32.gmra.mxu2 %v41_v8  ;;  %497 = vmatmul.f32.gmra.mxu3 %v41_v8 }
  0x6a   :  { %197 = vmatmul.f32.gmra.mxu0 %v42_v9  ;;  %298 = vmatmul.f32.gmra.mxu1 %v42_v9 }
  0x6b   :  { %399 = vmatmul.f32.gmra.mxu2 %v42_v9  ;;  %500 = vmatmul.f32.gmra.mxu3 %v42_v9 }
  0x72   :  { %200 = vmatmul.f32.gmra.mxu0 %v43_v10  ;;  %301 = vmatmul.f32.gmra.mxu1 %v43_v10 }
  0x73   :  { %402 = vmatmul.f32.gmra.mxu2 %v43_v10  ;;  %503 = vmatmul.f32.gmra.mxu3 %v43_v10 }
  0x7a   :  { %203 = vmatmul.f32.gmra.mxu0 %v44_v11  ;;  %304 = vmatmul.f32.gmra.mxu1 %v44_v11 }
  0x7b   :  { %405 = vmatmul.f32.gmra.mxu2 %v44_v11  ;;  %506 = vmatmul.f32.gmra.mxu3 %v44_v11  ;;  %v5978_v11 = vld [vmem:[%s14252_s0 + $0xe0] sm:$0xff] }
  0x82   :  { %206 = vmatmul.f32.gmra.mxu0 %v45_v12  ;;  %307 = vmatmul.f32.gmra.mxu1 %v45_v12 }
  0x83   :  { %408 = vmatmul.f32.gmra.mxu2 %v45_v12  ;;  %509 = vmatmul.f32.gmra.mxu3 %v45_v12 }
  0x8a   :  { %209 = vmatmul.f32.gmra.mxu0 %v46_v13  ;;  %310 = vmatmul.f32.gmra.mxu1 %v46_v13 }
  0x8b   :  { %411 = vmatmul.f32.gmra.mxu2 %v46_v13  ;;  %512 = vmatmul.f32.gmra.mxu3 %v46_v13 }
  0x92   :  { %212 = vmatmul.f32.gmra.mxu0 %v47_v14  ;;  %313 = vmatmul.f32.gmra.mxu1 %v47_v14 }
  0x93   :  { %414 = vmatmul.f32.gmra.mxu2 %v47_v14  ;;  %515 = vmatmul.f32.gmra.mxu3 %v47_v14 }
  0x9a   :  { %215 = vmatmul.f32.gmra.mxu0 %v48_v15  ;;  %316 = vmatmul.f32.gmra.mxu1 %v48_v15 }
  0x9b   :  { %417 = vmatmul.f32.gmra.mxu2 %v48_v15  ;;  %518 = vmatmul.f32.gmra.mxu3 %v48_v15 }
  0x9f   :  { %v7813_v16 = vpop.f32.mrf.mxu1  ;;  %v7818_v18 = vpop.f32.mrf.mxu0 }
  0xa2   :  { %218 = vmatmul.f32.gmra.mxu0 %v49_v17  ;;  %319 = vmatmul.f32.gmra.mxu1 %v49_v17 }
  0xa3   :  { %420 = vmatmul.f32.gmra.mxu2 %v49_v17  ;;  %521 = vmatmul.f32.gmra.mxu3 %v49_v17  ;;  %v5979_v17 = vld [vmem:[%s14252_s0 + $0xe8] sm:$0xff] }
  0xa6   :  { %v7820_v19 = vpop.f32.mrf.mxu2  ;;  %v7822_v20 = vpop.f32.mrf.mxu3 }
  0xa7   :  { %v7824_v21 = vpop.f32.mrf.mxu1  ;;  %v7829_v23 = vpop.f32.mrf.mxu0 }
  0xaa   :  { %221 = vmatmul.f32.gmra.mxu0 %v50_v22  ;;  %322 = vmatmul.f32.gmra.mxu1 %v50_v22 }
  0xab   :  { %423 = vmatmul.f32.gmra.mxu2 %v50_v22  ;;  %524 = vmatmul.f32.gmra.mxu3 %v50_v22 }
  0xae   :  { %v7831_v24 = vpop.f32.mrf.mxu2  ;;  %v7833_v25 = vpop.f32.mrf.mxu3 }
  0xaf   :  { %v7835_v26 = vpop.f32.mrf.mxu1  ;;  %v7844_v30 = vpop.f32.mrf.mxu0 }
  0xb0   :  { %14443 = vst [vmem:[#allocation5_spill] sm:$0xff] %v7844_v30 }
  0xb2   :  { %224 = vmatmul.f32.gmra.mxu0 %v51_v27  ;;  %325 = vmatmul.f32.gmra.mxu1 %v51_v27 }
  0xb3   :  { %426 = vmatmul.f32.gmra.mxu2 %v51_v27  ;;  %527 = vmatmul.f32.gmra.mxu3 %v51_v27 }
  0xb6   :  { %v7840_v28 = vpop.f32.mrf.mxu2  ;;  %v7842_v29 = vpop.f32.mrf.mxu3 }
  0xb7   :  { %v7846_v31 = vpop.f32.mrf.mxu1  ;;  %v7860_v37 = vpop.f32.mrf.mxu0 }
  0xb8   :  { %14444 = vst [vmem:[#allocation6_spill] sm:$0xff] %v7860_v37 }
  0xba   :  { %227 = vmatmul.f32.gmra.mxu0 %v52_v32  ;;  %328 = vmatmul.f32.gmra.mxu1 %v52_v32 }
  0xbb   :  { %429 = vmatmul.f32.gmra.mxu2 %v52_v32  ;;  %530 = vmatmul.f32.gmra.mxu3 %v52_v32 }
  0xbe   :  { %v7851_v33 = vpop.f32.mrf.mxu2  ;;  %v7853_v34 = vpop.f32.mrf.mxu3 }
  0xbf   :  { %v7855_v35 = vpop.f32.mrf.mxu1  ;;  %v7871_v42 = vpop.f32.mrf.mxu0 }
  0xc0   :  { %14445 = vst [vmem:[#allocation7_spill] sm:$0xff] %v7871_v42 }
  0xc2   :  { %230 = vmatmul.f32.gmra.mxu0 %v53_v36  ;;  %331 = vmatmul.f32.gmra.mxu1 %v53_v36 }
  0xc3   :  { %432 = vmatmul.f32.gmra.mxu2 %v53_v36  ;;  %533 = vmatmul.f32.gmra.mxu3 %v53_v36  ;;  %v5980_v36 = vld [vmem:[%s14252_s0 + $0xf0] sm:$0xff] }
  0xc6   :  { %v7862_v38 = vpop.f32.mrf.mxu2  ;;  %v7864_v39 = vpop.f32.mrf.mxu3 }
  0xc7   :  { %v7866_v40 = vpop.f32.mrf.mxu1  ;;  %v7882_v47 = vpop.f32.mrf.mxu0 }
  0xc8   :  { %14446 = vst [vmem:[#allocation8_spill] sm:$0xff] %v7882_v47 }
  0xca   :  { %233 = vmatmul.f32.gmra.mxu0 %v54_v41  ;;  %334 = vmatmul.f32.gmra.mxu1 %v54_v41 }
  0xcb   :  { %435 = vmatmul.f32.gmra.mxu2 %v54_v41  ;;  %536 = vmatmul.f32.gmra.mxu3 %v54_v41 }
  0xce   :  { %v7873_v43 = vpop.f32.mrf.mxu2  ;;  %v7875_v44 = vpop.f32.mrf.mxu3 }
  0xcf   :  { %v7877_v45 = vpop.f32.mrf.mxu1  ;;  %v7897_v54 = vpop.f32.mrf.mxu0 }
  0xd0   :  { %14447 = vst [vmem:[#allocation9_spill] sm:$0xff] %v7897_v54  ;;  %v5984_v54 = vld [vmem:[%s14252_s0 + $0x110] sm:$0xff] }
  0xd2   :  { %236 = vmatmul.f32.gmra.mxu0 %v55_v46  ;;  %337 = vmatmul.f32.gmra.mxu1 %v55_v46 }
  0xd3   :  { %438 = vmatmul.f32.gmra.mxu2 %v55_v46  ;;  %539 = vmatmul.f32.gmra.mxu3 %v55_v46 }
  0xd6   :  { %v7884_v48 = vpop.f32.mrf.mxu2  ;;  %v7886_v49 = vpop.f32.mrf.mxu3 }
  0xd7   :  { %v7888_v50 = vpop.f32.mrf.mxu1  ;;  %v7913_v61 = vpop.f32.mrf.mxu0 }
  0xd8   :  { %14448 = vst [vmem:[#allocation10_spill] sm:$0xff] %v7913_v61 }
  0xda   :  { %239 = vmatmul.f32.gmra.mxu0 %v56_v51  ;;  %340 = vmatmul.f32.gmra.mxu1 %v56_v51 }
  0xdb   :  { %441 = vmatmul.f32.gmra.mxu2 %v56_v51  ;;  %542 = vmatmul.f32.gmra.mxu3 %v56_v51 }
  0xde   :  { %v7893_v52 = vpop.f32.mrf.mxu2  ;;  %v7895_v53 = vpop.f32.mrf.mxu3 }
  0xdf   :  { %v7899_v55 = vpop.f32.mrf.mxu1  ;;  %v7924_v2 = vpop.f32.mrf.mxu0 }
  0xe0   :  { %14449 = vst [vmem:[#allocation11_spill] sm:$0xff] %v7924_v2 }
  0xe2   :  { %242 = vmatmul.f32.gmra.mxu0 %v57_v56  ;;  %343 = vmatmul.f32.gmra.mxu1 %v57_v56 }
  0xe3   :  { %444 = vmatmul.f32.gmra.mxu2 %v57_v56  ;;  %545 = vmatmul.f32.gmra.mxu3 %v57_v56 }
  0xe6   :  { %v7904_v57 = vpop.f32.mrf.mxu2  ;;  %v7906_v58 = vpop.f32.mrf.mxu3 }
  0xe7   :  { %v7908_v59 = vpop.f32.mrf.mxu1  ;;  %v7935_v7 = vpop.f32.mrf.mxu0 }
  0xe8   :  { %14450 = vst [vmem:[#allocation12_spill] sm:$0xff] %v7935_v7  ;;  %v5983_v7 = vld [vmem:[%s14252_s0 + $0x108] sm:$0xff] }
  0xea   :  { %245 = vmatmul.f32.gmra.mxu0 %v58_v60  ;;  %346 = vmatmul.f32.gmra.mxu1 %v58_v60 }
  0xeb   :  { %447 = vmatmul.f32.gmra.mxu2 %v58_v60  ;;  %548 = vmatmul.f32.gmra.mxu3 %v58_v60  ;;  %v5981_v60 = vld [vmem:[%s14252_s0 + $0xf8] sm:$0xff] }
  0xee   :  { %v7915_v62 = vpop.f32.mrf.mxu2  ;;  %v7917_v63 = vpop.f32.mrf.mxu3 }
  0xef   :  { %v7919_v0 = vpop.f32.mrf.mxu1  ;;  %v7950_v14 = vpop.f32.mrf.mxu0 }
  0xf0   :  { %14451 = vst [vmem:[#allocation13_spill] sm:$0xff] %v7950_v14 }
  0xf2   :  { %248 = vmatmul.f32.gmra.mxu0 %v59_v1  ;;  %349 = vmatmul.f32.gmra.mxu1 %v59_v1 }
  0xf3   :  { %450 = vmatmul.f32.gmra.mxu2 %v59_v1  ;;  %551 = vmatmul.f32.gmra.mxu3 %v59_v1 }
  0xf6   :  { %v7926_v3 = vpop.f32.mrf.mxu2  ;;  %v7928_v4 = vpop.f32.mrf.mxu3 }
  0xf7   :  { %v7930_v5 = vpop.f32.mrf.mxu1  ;;  %v7966_v41 = vpop.f32.mrf.mxu0 }
  0xf8   :  { %14452 = vst [vmem:[#allocation14_spill] sm:$0xff] %v7966_v41 }
  0xfa   :  { %251 = vmatmul.f32.gmra.mxu0 %v60_v6  ;;  %352 = vmatmul.f32.gmra.mxu1 %v60_v6 }
  0xfb   :  { %453 = vmatmul.f32.gmra.mxu2 %v60_v6  ;;  %554 = vmatmul.f32.gmra.mxu3 %v60_v6 }
  0xfe   :  { %v7937_v8 = vpop.f32.mrf.mxu2  ;;  %v7939_v9 = vpop.f32.mrf.mxu3 }
  0xff   :  { %v7941_v10 = vpop.f32.mrf.mxu1  ;;  %v7977_v1 = vpop.f32.mrf.mxu0 }
 0x100   :  { %14453 = vst [vmem:[#allocation15_spill] sm:$0xff] %v7977_v1 }
 0x102   :  { %574 = vmatmul.f32.vlgmr.msrb.gmra.mxu0 %v5978_v11  ;;  %675 = vmatmul.f32.vlgmr.msrb.gmra.mxu1 %v5978_v11 }
 0x103   :  { %776 = vmatmul.f32.vlgmr.msrb.gmra.mxu2 %v5978_v11  ;;  %877 = vmatmul.f32.vlgmr.msrb.gmra.mxu3 %v5978_v11 }
 0x106   :  { %v7946_v12 = vpop.f32.mrf.mxu2  ;;  %v7948_v13 = vpop.f32.mrf.mxu3 }
 0x107   :  { %v7952_v15 = vpop.f32.mrf.mxu1  ;;  %v7988_v41 = vpop.f32.mrf.mxu0 }
 0x108   :  { %14455 = vst [vmem:[#allocation17_spill] sm:$0xff] %v7988_v41 }
 0x10a   :  { %577 = vmatmul.f32.gmra.mxu0 %v5979_v17  ;;  %678 = vmatmul.f32.gmra.mxu1 %v5979_v17 }
 0x10b   :  { %779 = vmatmul.f32.gmra.mxu2 %v5979_v17  ;;  %880 = vmatmul.f32.gmra.mxu3 %v5979_v17 }
 0x10e   :  { %v7957_v22 = vpop.f32.mrf.mxu2  ;;  %v7959_v27 = vpop.f32.mrf.mxu3 }
 0x10f   :  { %v7961_v32 = vpop.f32.mrf.mxu1 }
 0x112   :  { %580 = vmatmul.f32.gmra.mxu0 %v5980_v36  ;;  %681 = vmatmul.f32.gmra.mxu1 %v5980_v36 }
 0x113   :  { %782 = vmatmul.f32.gmra.mxu2 %v5980_v36  ;;  %883 = vmatmul.f32.gmra.mxu3 %v5980_v36  ;;  %v5982_v36 = vld [vmem:[%s14252_s0 + $0x100] sm:$0xff] }
 0x116   :  { %v7968_v46 = vpop.f32.mrf.mxu2  ;;  %v7970_v51 = vpop.f32.mrf.mxu3 }
 0x117   :  { %v7972_v56 = vpop.f32.mrf.mxu1 }
 0x11a   :  { %583 = vmatmul.f32.gmra.mxu0 %v5981_v60  ;;  %684 = vmatmul.f32.gmra.mxu1 %v5981_v60 }
 0x11b   :  { %785 = vmatmul.f32.gmra.mxu2 %v5981_v60  ;;  %886 = vmatmul.f32.gmra.mxu3 %v5981_v60 }
 0x11e   :  { %v7979_v6 = vpop.f32.mrf.mxu2  ;;  %v7981_v11 = vpop.f32.mrf.mxu3 }
 0x11f   :  { %v7983_v17 = vpop.f32.mrf.mxu1 }
 0x120   :  { %14454 = vst [vmem:[#allocation16_spill] sm:$0xff] %v7983_v17 }
 0x122   :  { %586 = vmatmul.f32.gmra.mxu0 %v5982_v36  ;;  %687 = vmatmul.f32.gmra.mxu1 %v5982_v36 }
 0x123   :  { %788 = vmatmul.f32.gmra.mxu2 %v5982_v36  ;;  %889 = vmatmul.f32.gmra.mxu3 %v5982_v36  ;;  %v8003_v36 = vpop.f32.mrf.mxu0 }
 0x124   :  { %14461 = vst [vmem:[#allocation23_spill] sm:$0xff] %v8003_v36  ;;  %v5985_v36 = vld [vmem:[%s14252_s0 + $0x118] sm:$0xff] }
 0x126   :  { %v7990_v14 = vpop.f32.mrf.mxu2  ;;  %v7992_v1 = vpop.f32.mrf.mxu3 }
 0x127   :  { %14456 = vst [vmem:[#allocation18_spill] sm:$0xff] %v7990_v14  ;;  %v7994_v60 = vpop.f32.mrf.mxu1 }
 0x128   :  { %14457 = vst [vmem:[#allocation19_spill] sm:$0xff] %v7992_v1 }
 0x129   :  { %14458 = vst [vmem:[#allocation20_spill] sm:$0xff] %v7994_v60 }
 0x12a   :  { %589 = vmatmul.f32.gmra.mxu0 %v5983_v7  ;;  %690 = vmatmul.f32.gmra.mxu1 %v5983_v7 }
 0x12b   :  { %791 = vmatmul.f32.gmra.mxu2 %v5983_v7  ;;  %892 = vmatmul.f32.gmra.mxu3 %v5983_v7 }
 0x12e   :  { %v7999_v2 = vpop.f32.mrf.mxu2  ;;  %v8001_v61 = vpop.f32.mrf.mxu3 }
 0x12f   :  { %14459 = vst [vmem:[#allocation21_spill] sm:$0xff] %v7999_v2  ;;  %v8005_v41 = vpop.f32.mrf.mxu1 }
 0x130   :  { %14460 = vst [vmem:[#allocation22_spill] sm:$0xff] %v8001_v61  ;;  %v8019_v61 = vpop.f32.mrf.mxu0 }
 0x131   :  { %14462 = vst [vmem:[#allocation24_spill] sm:$0xff] %v8005_v41 }
 0x132   :  { %592 = vmatmul.f32.gmra.mxu0 %v5984_v54  ;;  %693 = vmatmul.f32.gmra.mxu1 %v5984_v54  ;;  %14466 = vst [vmem:[#allocation28_spill] sm:$0xff] %v8019_v61 }
 0x133   :  { %794 = vmatmul.f32.gmra.mxu2 %v5984_v54  ;;  %895 = vmatmul.f32.gmra.mxu3 %v5984_v54 }
 0x136   :  { %v8010_v47 = vpop.f32.mrf.mxu2  ;;  %v8012_v42 = vpop.f32.mrf.mxu3 }
 0x137   :  { %14463 = vst [vmem:[#allocation25_spill] sm:$0xff] %v8010_v47  ;;  %v8014_v7 = vpop.f32.mrf.mxu1 }
 0x138   :  { %14464 = vst [vmem:[#allocation26_spill] sm:$0xff] %v8012_v42  ;;  %v8030_v47 = vpop.f32.mrf.mxu0 }
 0x139   :  { %14465 = vst [vmem:[#allocation27_spill] sm:$0xff] %v8014_v7  ;;  %v5986_v7 = vld [vmem:[%s14252_s0 + $0x120] sm:$0xff] }
 0x13a   :  { %595 = vmatmul.f32.gmra.mxu0 %v5985_v36  ;;  %696 = vmatmul.f32.gmra.mxu1 %v5985_v36  ;;  %14470 = vst [vmem:[#allocation32_spill] sm:$0xff] %v8030_v47 }
 0x13b   :  { %797 = vmatmul.f32.gmra.mxu2 %v5985_v36  ;;  %898 = vmatmul.f32.gmra.mxu3 %v5985_v36 }
 0x13e   :  { %v8021_v41 = vpop.f32.mrf.mxu2  ;;  %v8023_v37 = vpop.f32.mrf.mxu3 }
 0x13f   :  { %14467 = vst [vmem:[#allocation29_spill] sm:$0xff] %v8021_v41  ;;  %v8025_v54 = vpop.f32.mrf.mxu1 }
 0x140   :  { %14468 = vst [vmem:[#allocation30_spill] sm:$0xff] %v8023_v37  ;;  %v8041_v37 = vpop.f32.mrf.mxu0 }
 0x141   :  { %14469 = vst [vmem:[#allocation31_spill] sm:$0xff] %v8025_v54  ;;  %v5987_v54 = vld [vmem:[%s14252_s0 + $0x128] sm:$0xff] }
 0x142   :  { %598 = vmatmul.f32.gmra.mxu0 %v5986_v7  ;;  %699 = vmatmul.f32.gmra.mxu1 %v5986_v7  ;;  %14474 = vst [vmem:[#allocation36_spill] sm:$0xff] %v8041_v37 }
 0x143   :  { %800 = vmatmul.f32.gmra.mxu2 %v5986_v7  ;;  %901 = vmatmul.f32.gmra.mxu3 %v5986_v7 }
 0x146   :  { %v8032_v61 = vpop.f32.mrf.mxu2  ;;  %v8034_v42 = vpop.f32.mrf.mxu3 }
 0x147   :  { %14471 = vst [vmem:[#allocation33_spill] sm:$0xff] %v8032_v61  ;;  %v8036_v36 = vpop.f32.mrf.mxu1 }
 0x148   :  { %14472 = vst [vmem:[#allocation34_spill] sm:$0xff] %v8034_v42 }
 0x149   :  { %14473 = vst [vmem:[#allocation35_spill] sm:$0xff] %v8036_v36  ;;  %v5988_v36 = vld [vmem:[%s14252_s0 + $0x130] sm:$0xff] }
 0x14a   :  { %601 = vmatmul.f32.gmra.mxu0 %v5987_v54  ;;  %702 = vmatmul.f32.gmra.mxu1 %v5987_v54 }
 0x14b   :  { %803 = vmatmul.f32.gmra.mxu2 %v5987_v54  ;;  %904 = vmatmul.f32.gmra.mxu3 %v5987_v54  ;;  %v8056_v54 = vpop.f32.mrf.mxu0 }
 0x14c   :  { %14480 = vst [vmem:[#allocation42_spill] sm:$0xff] %v8056_v54  ;;  %v5990_v54 = vld [vmem:[%s14252_s0 + $0x140] sm:$0xff] }
 0x14e   :  { %v8043_v41 = vpop.f32.mrf.mxu2  ;;  %v8045_v47 = vpop.f32.mrf.mxu3 }
 0x14f   :  { %14475 = vst [vmem:[#allocation37_spill] sm:$0xff] %v8043_v41  ;;  %v8047_v7 = vpop.f32.mrf.mxu1 }
 0x150   :  { %14476 = vst [vmem:[#allocation38_spill] sm:$0xff] %v8045_v47 }
 0x151   :  { %14477 = vst [vmem:[#allocation39_spill] sm:$0xff] %v8047_v7  ;;  %v5989_v7 = vld [vmem:[%s14252_s0 + $0x138] sm:$0xff] }
 0x152   :  { %604 = vmatmul.f32.gmra.mxu0 %v5988_v36  ;;  %705 = vmatmul.f32.gmra.mxu1 %v5988_v36 }
 0x153   :  { %806 = vmatmul.f32.gmra.mxu2 %v5988_v36  ;;  %907 = vmatmul.f32.gmra.mxu3 %v5988_v36 }
 0x156   :  { %v8052_v42 = vpop.f32.mrf.mxu2  ;;  %v8054_v61 = vpop.f32.mrf.mxu3 }
 0x157   :  { %14478 = vst [vmem:[#allocation40_spill] sm:$0xff] %v8052_v42  ;;  %v8058_v37 = vpop.f32.mrf.mxu1 }
 0x158   :  { %14479 = vst [vmem:[#allocation41_spill] sm:$0xff] %v8054_v61  ;;  %v8072_v61 = vpop.f32.mrf.mxu0 }
 0x159   :  { %14481 = vst [vmem:[#allocation43_spill] sm:$0xff] %v8058_v37 }
 0x15a   :  { %607 = vmatmul.f32.gmra.mxu0 %v5989_v7  ;;  %708 = vmatmul.f32.gmra.mxu1 %v5989_v7  ;;  %14485 = vst [vmem:[#allocation47_spill] sm:$0xff] %v8072_v61 }
 0x15b   :  { %809 = vmatmul.f32.gmra.mxu2 %v5989_v7  ;;  %910 = vmatmul.f32.gmra.mxu3 %v5989_v7 }
 0x15e   :  { %v8063_v41 = vpop.f32.mrf.mxu2  ;;  %v8065_v47 = vpop.f32.mrf.mxu3 }
 0x15f   :  { %14482 = vst [vmem:[#allocation44_spill] sm:$0xff] %v8063_v41  ;;  %v8067_v36 = vpop.f32.mrf.mxu1 }
 0x160   :  { %14483 = vst [vmem:[#allocation45_spill] sm:$0xff] %v8065_v47  ;;  %v8083_v41 = vpop.f32.mrf.mxu0 }
 0x161   :  { %14484 = vst [vmem:[#allocation46_spill] sm:$0xff] %v8067_v36  ;;  %v5991_v36 = vld [vmem:[%s14252_s0 + $0x148] sm:$0xff] }
 0x162   :  { %610 = vmatmul.f32.gmra.mxu0 %v5990_v54  ;;  %711 = vmatmul.f32.gmra.mxu1 %v5990_v54  ;;  %14489 = vst [vmem:[#allocation51_spill] sm:$0xff] %v8083_v41 }
 0x163   :  { %812 = vmatmul.f32.gmra.mxu2 %v5990_v54  ;;  %913 = vmatmul.f32.gmra.mxu3 %v5990_v54 }
 0x166   :  { %v8074_v37 = vpop.f32.mrf.mxu2  ;;  %v8076_v42 = vpop.f32.mrf.mxu3 }
 0x167   :  { %14486 = vst [vmem:[#allocation48_spill] sm:$0xff] %v8074_v37  ;;  %v8078_v7 = vpop.f32.mrf.mxu1 }
 0x168   :  { %14487 = vst [vmem:[#allocation49_spill] sm:$0xff] %v8076_v42  ;;  %v8094_v37 = vpop.f32.mrf.mxu0 }
 0x169   :  { %14488 = vst [vmem:[#allocation50_spill] sm:$0xff] %v8078_v7  ;;  %v5992_v7 = vld [vmem:[%s14252_s0 + $0x150] sm:$0xff] }
 0x16a   :  { %613 = vmatmul.f32.gmra.mxu0 %v5991_v36  ;;  %714 = vmatmul.f32.gmra.mxu1 %v5991_v36  ;;  %14493 = vst [vmem:[#allocation55_spill] sm:$0xff] %v8094_v37 }
 0x16b   :  { %815 = vmatmul.f32.gmra.mxu2 %v5991_v36  ;;  %916 = vmatmul.f32.gmra.mxu3 %v5991_v36 }
 0x16e   :  { %v8085_v61 = vpop.f32.mrf.mxu2  ;;  %v8087_v47 = vpop.f32.mrf.mxu3 }
 0x16f   :  { %14490 = vst [vmem:[#allocation52_spill] sm:$0xff] %v8085_v61  ;;  %v8089_v54 = vpop.f32.mrf.mxu1  ;;  %v5994_v61 = vld [vmem:[%s14252_s0 + $0x160] sm:$0xff] }
 0x170   :  { %14491 = vst [vmem:[#allocation53_spill] sm:$0xff] %v8087_v47 }
 0x171   :  { %14492 = vst [vmem:[#allocation54_spill] sm:$0xff] %v8089_v54  ;;  %v5993_v54 = vld [vmem:[%s14252_s0 + $0x158] sm:$0xff] }
 0x172   :  { %616 = vmatmul.f32.gmra.mxu0 %v5992_v7  ;;  %717 = vmatmul.f32.gmra.mxu1 %v5992_v7 }
 0x173   :  { %818 = vmatmul.f32.gmra.mxu2 %v5992_v7  ;;  %919 = vmatmul.f32.gmra.mxu3 %v5992_v7  ;;  %v8108_v7 = vld [vmem:[%s14254_s2] sm:$0xf]  ;;  %s7261_s2 = smov 32  }
 0x176   :  { %v8096_v42 = vpop.f32.mrf.mxu2  ;;  %v8098_v41 = vpop.f32.mrf.mxu3 }
 0x177   :  { %14494 = vst [vmem:[#allocation56_spill] sm:$0xff] %v8096_v42  ;;  %v8100_v36 = vpop.f32.mrf.mxu1 }
 0x178   :  { %14495 = vst [vmem:[#allocation57_spill] sm:$0xff] %v8098_v41  ;;  %v8115_v41 = vperm.slane %v8108_v7, 1 }
 0x179   :  { %14496 = vst [vmem:[#allocation58_spill] sm:$0xff] %v8100_v36  ;;  %v8117_v36 = vpop.f32.mrf.mxu0 }
 0x17a   :  { %619 = vmatmul.f32.gmra.mxu0 %v5993_v54  ;;  %720 = vmatmul.f32.gmra.mxu1 %v5993_v54  ;;  %14499 = vst [vmem:[#allocation61_spill] sm:$0xff] %v8117_v36  ;;  %v8132_v36 = vperm.slane %v8108_v7, 2 }
 0x17b   :  { %821 = vmatmul.f32.gmra.mxu2 %v5993_v54  ;;  %922 = vmatmul.f32.gmra.mxu3 %v5993_v54 }
 0x17e   :  { %v8110_v37 = vpop.f32.mrf.mxu2  ;;  %v8112_v42 = vpop.f32.mrf.mxu3 }
 0x17f   :  { %14497 = vst [vmem:[#allocation59_spill] sm:$0xff] %v8110_v37  ;;  %v676_v47 = vpop.f32.mrf.mxu1 }
 0x180   :  { %14498 = vst [vmem:[#allocation60_spill] sm:$0xff] %v8112_v42  ;;  %v963_v54 = vmax.f32 %v7813_v16, %v676_v47  ;;  %v8129_v42 = vperm.slane %v8108_v7, 3 }
 0x181   :  { %v8139_v1 = vpop.f32.mrf.mxu0 }
 0x182   :  { %622 = vmatmul.f32.gmra.mxu0 %v5994_v61  ;;  %723 = vmatmul.f32.gmra.mxu1 %v5994_v61  ;;  %v8124_v60 = vadd.f32 %v8115_v41, %v963_v54  ;;  %14500 = vst [vmem:[#allocation62_spill] sm:$0xff] %v8139_v1 }
 0x183   :  { %824 = vmatmul.f32.gmra.mxu2 %v5994_v61  ;;  %925 = vmatmul.f32.gmra.mxu3 %v5994_v61  ;;  %v5995_v61 = vld [vmem:[%s14252_s0 + $0x168] sm:$0xff] }
 0x184   :  { %1280 = vrot.lane.b32.xlu0 %v8124_v60, %s7261_s2 }
 0x186   :  { %v777_v37 = vpop.f32.mrf.mxu2  ;;  %v878_v2 = vpop.f32.mrf.mxu3 }
 0x187   :  { %v964_v16 = vmax.f32 %v7820_v19, %v777_v37  ;;  %v965_v47 = vmax.f32 %v7822_v20, %v878_v2  ;;  %v679_v54 = vpop.f32.mrf.mxu1 }
 0x188   :  { %v967_v19 = vmax.f32 %v7824_v21, %v679_v54 }
 0x189   :  { %v1087_v14 = vadd.f32 %v8129_v42, %v965_v47  ;;  %v1086_v30 = vadd.f32 %v8132_v36, %v964_v16  ;;  %v5996_v47 = vld [vmem:[%s14252_s0 + $0x170] sm:$0xff]  ;;  %v8158_v21 = vpop.f32.mrf.mxu0 }
 0x18a   :  { %625 = vmatmul.f32.gmra.mxu0 %v5995_v61  ;;  %726 = vmatmul.f32.gmra.mxu1 %v5995_v61 }
 0x18b   :  { %928 = vmatmul.f32.gmra.mxu3 %v5995_v61  ;;  %1284 = vrot.lane.b32.xlu1 %v1087_v14, %s7261_s2  ;;  %v8153_v14 = vadd.f32 %v8115_v41, %v967_v19  ;;  %v5997_v19 = vld [vmem:[%s14252_s0 + $0x178] sm:$0xff] }
 0x18c   :  { %827 = vmatmul.f32.gmra.mxu2 %v5995_v61  ;;  %1282 = vrot.lane.b32.xlu0 %v1086_v30, %s7261_s2 }
 0x18e   :  { %v780_v20 = vpop.f32.mrf.mxu2  ;;  %v881_v37 = vpop.f32.mrf.mxu3 }
 0x18f   :  { %v968_v2 = vmax.f32 %v7831_v24, %v780_v20  ;;  %v682_v17 = vpop.f32.mrf.mxu1  ;;  %v969_v24 = vmax.f32 %v7833_v25, %v881_v37 }
 0x190   :  { %v971_v16 = vmax.f32 %v7835_v26, %v682_v17 }
 0x191   :  { %v1090_v1 = vadd.f32 %v8132_v36, %v968_v2  ;;  %v1091_v20 = vadd.f32 %v8129_v42, %v969_v24 }
 0x192   :  { %v8156_v30 = vadd.f32 %v8115_v41, %v971_v16  ;;  %729 = vmatmul.f32.gmra.mxu1 %v5996_v47  ;;  %628 = vmatmul.f32.gmra.mxu0 %v5996_v47 }
 0x193   :  { %931 = vmatmul.f32.gmra.mxu3 %v5996_v47  ;;  %1288 = vrot.lane.b32.xlu2 %v1090_v1, %s7261_s2 }
 0x194   :  { %830 = vmatmul.f32.gmra.mxu2 %v5996_v47  ;;  %1286 = vrot.lane.b32.xlu1 %v8153_v14, %s7261_s2 }
 0x195   :  { %1292 = vrot.lane.b32.xlu0 %v8156_v30, %s7261_s2 }
 0x196   :  { %v783_v26 = vpop.f32.mrf.mxu2  ;;  %v884_v17 = vpop.f32.mrf.mxu3 }
 0x197   :  { %v972_v54 = vmax.f32 %v7840_v28, %v783_v26  ;;  %v685_v61 = vpop.f32.mrf.mxu1  ;;  %v8178_v28 = vpop.f32.mrf.mxu0  ;;  %v973_v37 = vmax.f32 %v7842_v29, %v884_v17  ;;  %v5998_v26 = vld [vmem:[%s14252_s0 + $0x180] sm:$0xff] }
 0x198   :  { %v975_v1 = vmax.f32 %v7846_v31, %v685_v61 }
 0x199   :  { %v1094_v2 = vadd.f32 %v8132_v36, %v972_v54  ;;  %v1095_v61 = vadd.f32 %v8129_v42, %v973_v37  ;;  %v5999_v37 = vld [vmem:[%s14252_s0 + $0x188] sm:$0xff] }
 0x19a   :  { %v8174_v25 = vadd.f32 %v8115_v41, %v975_v1  ;;  %732 = vmatmul.f32.gmra.mxu1 %v5997_v19  ;;  %631 = vmatmul.f32.gmra.mxu0 %v5997_v19 }
 0x19b   :  { %934 = vmatmul.f32.gmra.mxu3 %v5997_v19  ;;  %1290 = vrot.lane.b32.xlu2 %v1091_v20, %s7261_s2 }
 0x19c   :  { %833 = vmatmul.f32.gmra.mxu2 %v5997_v19  ;;  %1294 = vrot.lane.b32.xlu1 %v1094_v2, %s7261_s2 }
 0x19d   :  { %1298 = vrot.lane.b32.xlu0 %v8174_v25, %s7261_s2 }
 0x19e   :  { %v786_v31 = vpop.f32.mrf.mxu2  ;;  %v887_v47 = vpop.f32.mrf.mxu3 }
 0x19f   :  { %v976_v16 = vmax.f32 %v7851_v33, %v786_v31  ;;  %v688_v24 = vpop.f32.mrf.mxu1  ;;  %v977_v33 = vmax.f32 %v7853_v34, %v887_v47  ;;  %v8198_v1 = vpop.f32.mrf.mxu0 }
 0x1a0   :  { %v979_v54 = vmax.f32 %v7855_v35, %v688_v24 }
 0x1a1   :  { %v1098_v19 = vadd.f32 %v8132_v36, %v976_v16  ;;  %v1099_v16 = vadd.f32 %v8129_v42, %v977_v33 }
 0x1a2   :  { %v8191_v29 = vadd.f32 %v8115_v41, %v979_v54  ;;  %735 = vmatmul.f32.gmra.mxu1 %v5998_v26  ;;  %634 = vmatmul.f32.gmra.mxu0 %v5998_v26 }
 0x1a3   :  { %937 = vmatmul.f32.gmra.mxu3 %v5998_v26  ;;  %1296 = vrot.lane.b32.xlu2 %v1095_v61, %s7261_s2  ;;  %v6000_v61 = vld [vmem:[%s14252_s0 + $0x190] sm:$0xff] }
 0x1a4   :  { %836 = vmatmul.f32.gmra.mxu2 %v5998_v26  ;;  %1300 = vrot.lane.b32.xlu1 %v1098_v19, %s7261_s2 }
 0x1a5   :  { %1304 = vrot.lane.b32.xlu0 %v8191_v29, %s7261_s2 }
 0x1a6   :  { %v789_v35 = vpop.f32.mrf.mxu2  ;;  %v890_v17 = vpop.f32.mrf.mxu3 }
 0x1a7   :  { %v980_v20 = vmax.f32 %v7862_v38, %v789_v35  ;;  %v691_v2 = vpop.f32.mrf.mxu1  ;;  %v981_v38 = vmax.f32 %v7864_v39, %v890_v17  ;;  %v8219_v19 = vpop.f32.mrf.mxu0 }
 0x1a8   :  { %v983_v31 = vmax.f32 %v7866_v40, %v691_v2 }
 0x1a9   :  { %v1102_v34 = vadd.f32 %v8132_v36, %v980_v20  ;;  %v1103_v33 = vadd.f32 %v8129_v42, %v981_v38 }
 0x1aa   :  { %v8208_v47 = vadd.f32 %v8115_v41, %v983_v31  ;;  %738 = vmatmul.f32.gmra.mxu1 %v5999_v37  ;;  %637 = vmatmul.f32.gmra.mxu0 %v5999_v37  ;;  %v6001_v31 = vld [vmem:[%s14252_s0 + $0x198] sm:$0xff] }
 0x1ab   :  { %940 = vmatmul.f32.gmra.mxu3 %v5999_v37  ;;  %1302 = vrot.lane.b32.xlu2 %v1099_v16, %s7261_s2 }
 0x1ac   :  { %839 = vmatmul.f32.gmra.mxu2 %v5999_v37  ;;  %1306 = vrot.lane.b32.xlu1 %v1102_v34, %s7261_s2 }
 0x1ad   :  { %1310 = vrot.lane.b32.xlu0 %v8208_v47, %s7261_s2 }
 0x1ae   :  { %v792_v40 = vpop.f32.mrf.mxu2  ;;  %v893_v24 = vpop.f32.mrf.mxu3 }
 0x1af   :  { %v984_v26 = vmax.f32 %v7873_v43, %v792_v40  ;;  %v694_v54 = vpop.f32.mrf.mxu1  ;;  %v985_v39 = vmax.f32 %v7875_v44, %v893_v24  ;;  %v8234_v44 = vpop.f32.mrf.mxu0 }
 0x1b1   :  { %v1106_v35 = vadd.f32 %v8132_v36, %v984_v26  ;;  %v1107_v16 = vadd.f32 %v8129_v42, %v985_v39 }
 0x1b2   :  { %741 = vmatmul.f32.gmra.mxu1 %v6000_v61  ;;  %640 = vmatmul.f32.gmra.mxu0 %v6000_v61 }
 0x1b3   :  { %943 = vmatmul.f32.gmra.mxu3 %v6000_v61  ;;  %1308 = vrot.lane.b32.xlu2 %v1103_v33, %s7261_s2  ;;  %v6002_v33 = vld [vmem:[%s14252_s0 + $0x1a0] sm:$0xff] }
 0x1b4   :  { %842 = vmatmul.f32.gmra.mxu2 %v6000_v61  ;;  %1312 = vrot.lane.b32.xlu1 %v1106_v35, %s7261_s2 }
 0x1b6   :  { %v795_v43 = vpop.f32.mrf.mxu2  ;;  %v896_v17 = vpop.f32.mrf.mxu3 }
 0x1b7   :  { %v988_v20 = vmax.f32 %v7884_v48, %v795_v43  ;;  %v989_v2 = vmax.f32 %v7886_v49, %v896_v17  ;;  %v697_v37 = vpop.f32.mrf.mxu1  ;;  %v987_v48 = vmax.f32 %v7877_v45, %v694_v54 }
 0x1b8   :  { %v991_v49 = vmax.f32 %v7888_v50, %v697_v37  ;;  %v8256_v50 = vpop.f32.mrf.mxu0  ;;  %v6003_v37 = vld [vmem:[%s14252_s0 + $0x1a8] sm:$0xff] }
 0x1b9   :  { %v1110_v34 = vadd.f32 %v8132_v36, %v988_v20  ;;  %v1111_v38 = vadd.f32 %v8129_v42, %v989_v2  ;;  %v8246_v35 = vadd.f32 %v8115_v41, %v987_v48 }
 0x1ba   :  { %744 = vmatmul.f32.gmra.mxu1 %v6001_v31  ;;  %643 = vmatmul.f32.gmra.mxu0 %v6001_v31  ;;  %v8250_v45 = vadd.f32 %v8115_v41, %v991_v49 }
 0x1bb   :  { %946 = vmatmul.f32.gmra.mxu3 %v6001_v31  ;;  %1314 = vrot.lane.b32.xlu2 %v1107_v16, %s7261_s2 }
 0x1bc   :  { %845 = vmatmul.f32.gmra.mxu2 %v6001_v31  ;;  %1320 = vrot.lane.b32.xlu1 %v1111_v38, %s7261_s2 }
 0x1bd   :  { %1318 = vrot.lane.b32.xlu0 %v1110_v34, %s7261_s2 }
 0x1be   :  { %v798_v40 = vpop.f32.mrf.mxu2  ;;  %v899_v24 = vpop.f32.mrf.mxu3 }
 0x1bf   :  { %v993_v26 = vmax.f32 %v7895_v53, %v899_v24  ;;  %v700_v61 = vpop.f32.mrf.mxu1  ;;  %v992_v53 = vmax.f32 %v7893_v52, %v798_v40  ;;  %v6004_v40 = vld [vmem:[%s14252_s0 + $0x1b0] sm:$0xff] }
 0x1c0   :  { %v995_v17 = vmax.f32 %v7899_v55, %v700_v61  ;;  %v8280_v24 = vpop.f32.mrf.mxu0 }
 0x1c1   :  { %v1115_v39 = vadd.f32 %v8129_v42, %v993_v26  ;;  %v1114_v31 = vadd.f32 %v8132_v36, %v992_v53 }
 0x1c2   :  { %747 = vmatmul.f32.gmra.mxu1 %v6002_v33  ;;  %646 = vmatmul.f32.gmra.mxu0 %v6002_v33  ;;  %v8268_v52 = vadd.f32 %v8115_v41, %v995_v17 }
 0x1c3   :  { %949 = vmatmul.f32.gmra.mxu3 %v6002_v33  ;;  %1316 = vrot.lane.b32.xlu2 %v8246_v35, %s7261_s2 }
 0x1c4   :  { %848 = vmatmul.f32.gmra.mxu2 %v6002_v33  ;;  %1322 = vrot.lane.b32.xlu1 %v8250_v45, %s7261_s2 }
 0x1c5   :  { %1326 = vrot.lane.b32.xlu0 %v1115_v39, %s7261_s2 }
 0x1c6   :  { %v801_v54 = vpop.f32.mrf.mxu2  ;;  %v902_v43 = vpop.f32.mrf.mxu3 }
 0x1c7   :  { %v996_v20 = vmax.f32 %v7904_v57, %v801_v54  ;;  %v703_v2 = vpop.f32.mrf.mxu1  ;;  %v997_v55 = vmax.f32 %v7906_v58, %v902_v43  ;;  %v6005_v43 = vld [vmem:[%s14252_s0 + $0x1b8] sm:$0xff] }
 0x1c9   :  { %v1118_v16 = vadd.f32 %v8132_v36, %v996_v20  ;;  %v1119_v26 = vadd.f32 %v8129_v42, %v997_v55 }
 0x1ca   :  { %750 = vmatmul.f32.gmra.mxu1 %v6003_v37  ;;  %649 = vmatmul.f32.gmra.mxu0 %v6003_v37 }
 0x1cb   :  { %952 = vmatmul.f32.gmra.mxu3 %v6003_v37  ;;  %1324 = vrot.lane.b32.xlu2 %v1114_v31, %s7261_s2 }
 0x1cc   :  { %851 = vmatmul.f32.gmra.mxu2 %v6003_v37  ;;  %1330 = vrot.lane.b32.xlu1 %v1118_v16, %s7261_s2  ;;  %v8298_v37 = vpop.f32.mrf.mxu0 }
 0x1cd   :  { %1328 = vrot.lane.b32.xlu0 %v8268_v52, %s7261_s2 }
 0x1ce   :  { %v804_v57 = vpop.f32.mrf.mxu2  ;;  %v905_v34 = vpop.f32.mrf.mxu3 }
 0x1cf   :  { %v1000_v38 = vmax.f32 %v7915_v62, %v804_v57  ;;  %v1001_v48 = vmax.f32 %v7917_v63, %v905_v34  ;;  %v706_v49 = vpop.f32.mrf.mxu1  ;;  %v999_v62 = vmax.f32 %v7908_v59, %v703_v2 }
 0x1d0   :  { %v1003_v63 = vmax.f32 %v7919_v0, %v706_v49 }
 0x1d1   :  { %v1122_v58 = vadd.f32 %v8132_v36, %v1000_v38  ;;  %v1123_v61 = vadd.f32 %v8129_v42, %v1001_v48  ;;  %v8295_v17 = vadd.f32 %v8115_v41, %v999_v62 }
 0x1d2   :  { %753 = vmatmul.f32.gmra.mxu1 %v6004_v40  ;;  %652 = vmatmul.f32.gmra.mxu0 %v6004_v40  ;;  %v8301_v59 = vadd.f32 %v8115_v41, %v1003_v63 }
 0x1d3   :  { %955 = vmatmul.f32.gmra.mxu3 %v6004_v40  ;;  %1332 = vrot.lane.b32.xlu2 %v1119_v26, %s7261_s2 }
 0x1d4   :  { %854 = vmatmul.f32.gmra.mxu2 %v6004_v40  ;;  %1338 = vrot.lane.b32.xlu1 %v1123_v61, %s7261_s2 }
 0x1d5   :  { %1336 = vrot.lane.b32.xlu0 %v1122_v58, %s7261_s2 }
 0x1d6   :  { %v807_v33 = vpop.f32.mrf.mxu2  ;;  %v908_v39 = vpop.f32.mrf.mxu3 }
 0x1d7   :  { %v1005_v53 = vmax.f32 %v7928_v4, %v908_v39  ;;  %v709_v54 = vpop.f32.mrf.mxu1  ;;  %v1004_v0 = vmax.f32 %v7926_v3, %v807_v33 }
 0x1d8   :  { %v1007_v31 = vmax.f32 %v7930_v5, %v709_v54 }
 0x1d9   :  { %v1127_v20 = vadd.f32 %v8129_v42, %v1005_v53  ;;  %v1126_v57 = vadd.f32 %v8132_v36, %v1004_v0 }
 0x1da   :  { %756 = vmatmul.f32.gmra.mxu1 %v6005_v43  ;;  %655 = vmatmul.f32.gmra.mxu0 %v6005_v43  ;;  %v8314_v38 = vadd.f32 %v8115_v41, %v1007_v31 }
 0x1db   :  { %958 = vmatmul.f32.gmra.mxu3 %v6005_v43  ;;  %1334 = vrot.lane.b32.xlu2 %v8295_v17, %s7261_s2 }
 0x1dc   :  { %857 = vmatmul.f32.gmra.mxu2 %v6005_v43  ;;  %1340 = vrot.lane.b32.xlu1 %v8301_v59, %s7261_s2  ;;  %v2235_v43 = vld [vmem:[%s14255_s3 + $0x7e0] sm:$0xff] }
 0x1dd   :  { %1344 = vrot.lane.b32.xlu0 %v1127_v20, %s7261_s2  ;;  %2680 = vmatpush.msra.mxu3 %v2235_v43  ;;  %v966_v43 = vmax.f32 %v7829_v23, %v8256_v50 }
 0x1de   :  { %v810_v4 = vpop.f32.mrf.mxu2  ;;  %v911_v2 = vpop.f32.mrf.mxu3 }
 0x1df   :  { %v1008_v16 = vmax.f32 %v7937_v8, %v810_v4  ;;  %v712_v55 = vpop.f32.mrf.mxu1  ;;  %v1009_v3 = vmax.f32 %v7939_v9, %v911_v2  ;;  %v2107_v4 = vld [vmem:[%s14255_s3 + $0x3e0] sm:$0xff] }
 0x1e0   :  { %v1011_v9 = vmax.f32 %v7941_v10, %v712_v55  ;;  %2478 = vmatpush.msra.mxu1 %v2107_v4 }
 0x1e1   :  { %v1130_v34 = vadd.f32 %v8132_v36, %v1008_v16  ;;  %v1131_v40 = vadd.f32 %v8129_v42, %v1009_v3 }
 0x1e2   :  { %v8335_v39 = vadd.f32 %v8115_v41, %v1011_v9 }
 0x1e3   :  { %1342 = vrot.lane.b32.xlu2 %v1126_v57, %s7261_s2 }
 0x1e4   :  { %1348 = vrot.lane.b32.xlu1 %v1130_v34, %s7261_s2 }
 0x1e5   :  { %1346 = vrot.lane.b32.xlu0 %v8314_v38, %s7261_s2 }
 0x1e6   :  { %v813_v5 = vpop.f32.mrf.mxu2  ;;  %v914_v48 = vpop.f32.mrf.mxu3 }
 0x1e7   :  { %v1012_v8 = vmax.f32 %v7946_v12, %v813_v5  ;;  %v1013_v49 = vmax.f32 %v7948_v13, %v914_v48  ;;  %v715_v61 = vpop.f32.mrf.mxu1  ;;  %v962_v5 = vmax.f32 %v7818_v18, %v8234_v44  ;;  %v8372_v48 = vperm.slane %v8108_v7, 0 }
 0x1e8   :  { %v1015_v12 = vmax.f32 %v7952_v15, %v715_v61  ;;  %v2171_v15 = vld [vmem:[%s14255_s3 + $0x5e0] sm:$0xff] }
 0x1e9   :  { %v1134_v26 = vadd.f32 %v8132_v36, %v1012_v8  ;;  %v1135_v58 = vadd.f32 %v8129_v42, %v1013_v49  ;;  %2579 = vmatpush.msra.mxu2 %v2171_v15  ;;  %v2167_v61 = vld [vmem:[%s14255_s3 + $0x5c0] sm:$0xff] }
 0x1ea   :  { %v8339_v54 = vadd.f32 %v8115_v41, %v1015_v12 }
 0x1eb   :  { %1350 = vrot.lane.b32.xlu2 %v1131_v40, %s7261_s2  ;;  %v1084_v40 = vadd.f32 %v8372_v48, %v962_v5  ;;  %2580 = vmatpush.msra.mxu2 %v2167_v61  ;;  %v14501_v5 = vld [vmem:[#allocation16_spill] sm:$0xff]  ;;  %v14503_v61 = vld [vmem:[#allocation18_spill] sm:$0xff] }
 0x1ec   :  { %1356 = vrot.lane.b32.xlu1 %v1135_v58, %s7261_s2 }
 0x1ed   :  { %1354 = vrot.lane.b32.xlu0 %v1134_v26, %s7261_s2  ;;  %v8330_v62 = vpop.permute.xlu2 %1288 }
 0x1ee   :  { %v816_v13 = vpop.f32.mrf.mxu2  ;;  %v917_v63 = vpop.f32.mrf.mxu3 }
 0x1ef   :  { %v1017_v33 = vmax.f32 %v7959_v27, %v917_v63  ;;  %v718_v10 = vpop.f32.mrf.mxu1  ;;  %v2043_v27 = vld [vmem:[%s14255_s3 + $0x1e0] sm:$0xff]  ;;  %v1016_v20 = vmax.f32 %v7957_v22, %v816_v13 }
 0x1f0   :  { %2377 = vmatpush.msra.mxu0 %v2043_v27  ;;  %v1019_v31 = vmax.f32 %v7961_v32, %v718_v10  ;;  %v2039_v63 = vld [vmem:[%s14255_s3 + $0x1c0] sm:$0xff] }
 0x1f1   :  { %v1139_v53 = vadd.f32 %v8129_v42, %v1017_v33  ;;  %v1138_v22 = vadd.f32 %v8132_v36, %v1016_v20  ;;  %v2103_v33 = vld [vmem:[%s14255_s3 + $0x3c0] sm:$0xff] }
 0x1f2   :  { %v8366_v3 = vadd.f32 %v8115_v41, %v1019_v31  ;;  %2378 = vmatpush.msra.mxu0 %v2039_v63  ;;  %2479 = vmatpush.msra.mxu1 %v2103_v33  ;;  %v8452_v33 = vpop.f32.mrf.mxu0 }
 0x1f3   :  { %1352 = vrot.lane.b32.xlu2 %v8335_v39, %s7261_s2 }
 0x1f4   :  { %1358 = vrot.lane.b32.xlu1 %v8339_v54, %s7261_s2 }
 0x1f5   :  { %1362 = vrot.lane.b32.xlu0 %v1139_v53, %s7261_s2  ;;  %v8356_v0 = vpop.permute.xlu2 %1290 }
 0x1f6   :  { %v819_v2 = vpop.f32.mrf.mxu2  ;;  %v1281_v55 = vpop.permute.xlu0 %1280  ;;  %v1452_v50 = vsel %vm1448_vm0, %v8330_v62, %v8356_v0 }
 0x1f7   :  { %v1020_v16 = vmax.f32 %v7968_v46, %v819_v2  ;;  %v920_v34 = vpop.f32.mrf.mxu3  ;;  %v721_v58 = vpop.f32.mrf.mxu1 }
 0x1f8   :  { %v1021_v32 = vmax.f32 %v7970_v51, %v920_v34  ;;  %v1023_v53 = vmax.f32 %v7972_v56, %v721_v58 }
 0x1f9   :  { %v1142_v57 = vadd.f32 %v8132_v36, %v1020_v16  ;;  %v1088_v16 = vadd.f32 %v8372_v48, %v966_v43 }
 0x1fa   :  { %v1143_v7 = vadd.f32 %v8129_v42, %v1021_v32  ;;  %v8408_v56 = vadd.f32 %v8115_v41, %v1023_v53  ;;  %v14504_v53 = vld [vmem:[#allocation19_spill] sm:$0xff] }
 0x1fb   :  { %1360 = vrot.lane.b32.xlu2 %v1138_v22, %s7261_s2 }
 0x1fc   :  { %1366 = vrot.lane.b32.xlu1 %v1142_v57, %s7261_s2 }
 0x1fd   :  { %1364 = vrot.lane.b32.xlu0 %v8366_v3, %s7261_s2  ;;  %v1285_v46 = vpop.permute.xlu1 %1284  ;;  %v8378_v8 = vpop.permute.xlu2 %1296 }
 0x1fe   :  { %v1283_v49 = vpop.permute.xlu0 %1282  ;;  %v822_v10 = vpop.f32.mrf.mxu2 }
 0x1ff   :  { %v1449_v26 = vsel %vm1448_vm0, %v1281_v55, %v1283_v49  ;;  %v1450_v18 = vsel %vm1448_vm0, %v1283_v49, %v1285_v46  ;;  %v923_v12 = vpop.f32.mrf.mxu3  ;;  %v1024_v4 = vmax.f32 %v7979_v6, %v822_v10  ;;  %v2163_v6 = vld [vmem:[%s14255_s3 + $0x5a0] sm:$0xff]  ;;  %v1564_v46 = vmax.f32 %v8153_v14, %v1452_v50  ;;  %v14502_v49 = vld [vmem:[#allocation5_spill] sm:$0xff] }
 0x200   :  { %v1562_v44 = vmax.f32 %v8124_v60, %v1450_v18  ;;  %v1561_v51 = vmax.f32 %v1084_v40, %v1449_v26  ;;  %v2231_v60 = vld [vmem:[%s14255_s3 + $0x7c0] sm:$0xff]  ;;  %v1025_v20 = vmax.f32 %v7981_v11, %v923_v12  ;;  %v724_v11 = vpop.f32.mrf.mxu1  ;;  %2581 = vmatpush.msra.mxu2 %v2163_v6  ;;  %v970_v40 = vmax.f32 %v14502_v49, %v8280_v24  ;;  %v14507_v49 = vld [vmem:[#allocation6_spill] sm:$0xff] }
 0x201   :  { %2681 = vmatpush.msra.mxu3 %v2231_v60  ;;  %v1146_v23 = vadd.f32 %v8132_v36, %v1024_v4  ;;  %v1027_v32 = vmax.f32 %v14501_v5, %v724_v11  ;;  %v1620_v14 = vmax.f32 %v1564_v46, 0.0  ;;  %v2099_v24 = vld [vmem:[%s14255_s3 + $0x3a0] sm:$0xff]  ;;  %v14506_v5 = vld [vmem:[#allocation20_spill] sm:$0xff] }
 0x202   :  { %v1618_v9 = vmax.f32 %v1562_v44, 0.0  ;;  %v1617_v13 = vmax.f32 %v1561_v51, 0.0  ;;  %v1147_v55 = vadd.f32 %v8129_v42, %v1025_v20  ;;  %v2227_v44 = vld [vmem:[%s14255_s3 + $0x7a0] sm:$0xff]  ;;  %v1092_v51 = vadd.f32 %v8372_v48, %v970_v40  ;;  %2480 = vmatpush.msra.mxu1 %v2099_v24 }
 0x203   :  { %1368 = vrot.lane.b32.xlu2 %v1143_v7, %s7261_s2  ;;  %v2035_v7 = vld [vmem:[%s14255_s3 + $0x1a0] sm:$0xff]  ;;  %2682 = vmatpush.msra.mxu3 %v2227_v44  ;;  %v974_v40 = vmax.f32 %v14507_v49, %v8298_v37  ;;  %v14512_v49 = vld [vmem:[#allocation25_spill] sm:$0xff] }
 0x204   :  { %1731 = vrot.lane.b32.xlu1 %v1618_v9, %s7262_s29  ;;  %2379 = vmatpush.msra.mxu0 %v2035_v7 }
 0x205   :  { %v8399_v15 = vpop.permute.xlu2 %1302  ;;  %1729 = vrot.lane.b32.xlu0 %v1617_v13, %s7262_s29 }
 0x206   :  { %v1287_v27 = vpop.permute.xlu1 %1286  ;;  %v825_v18 = vpop.f32.mrf.mxu2 }
 0x207   :  { %v1293_v2 = vpop.permute.xlu0 %1292  ;;  %v1451_v31 = vsel %vm1448_vm0, %v1287_v27, %v8330_v62  ;;  %v8432_v62 = vadd.f32 %v8115_v41, %v1027_v32  ;;  %v1028_v9 = vmax.f32 %v14503_v61, %v825_v18  ;;  %v926_v12 = vpop.f32.mrf.mxu3  ;;  %v1096_v61 = vadd.f32 %v8372_v48, %v974_v40 }
 0x208   :  { %v1563_v22 = vmax.f32 %v1088_v16, %v1451_v31  ;;  %v1029_v10 = vmax.f32 %v14504_v53, %v926_v12  ;;  %v2159_v16 = vld [vmem:[%s14255_s3 + $0x580] sm:$0xff] }
 0x209   :  { %v1150_v27 = vadd.f32 %v8132_v36, %v1028_v9  ;;  %2582 = vmatpush.msra.mxu2 %v2159_v16 }
 0x20a   :  { %v1619_v26 = vmax.f32 %v1563_v22, 0.0  ;;  %v1151_v4 = vadd.f32 %v8129_v42, %v1029_v10  ;;  %v14505_v22 = vld [vmem:[#allocation21_spill] sm:$0xff] }
 0x20b   :  { %1370 = vrot.lane.b32.xlu2 %v8408_v56, %s7261_s2 }
 0x20c   :  { %1374 = vrot.lane.b32.xlu1 %v1147_v55, %s7261_s2  ;;  %v2031_v55 = vld [vmem:[%s14255_s3 + $0x180] sm:$0xff] }
 0x20d   :  { %v8423_v57 = vpop.permute.xlu2 %1308  ;;  %1372 = vrot.lane.b32.xlu0 %v1146_v23, %s7261_s2  ;;  %v2223_v23 = vld [vmem:[%s14255_s3 + $0x780] sm:$0xff]  ;;  %2380 = vmatpush.msra.mxu0 %v2031_v55 }
 0x20e   :  { %v1295_v34 = vpop.permute.xlu1 %1294  ;;  %2683 = vmatpush.msra.mxu3 %v2223_v23  ;;  %v2091_v23 = vld [vmem:[%s14255_s3 + $0x360] sm:$0xff] }
 0x20f   :  { %v1299_v0 = vpop.permute.xlu0 %1298  ;;  %v1453_v58 = vsel %vm1448_vm0, %v1293_v2, %v1295_v34  ;;  %v1454_v43 = vsel %vm1448_vm0, %v1295_v34, %v8378_v8  ;;  %v727_v2 = vpop.f32.mrf.mxu1 }
 0x210   :  { %v1565_v60 = vmax.f32 %v1092_v51, %v1453_v58  ;;  %v828_v31 = vpop.f32.mrf.mxu2  ;;  %v1566_v6 = vmax.f32 %v8156_v30, %v1454_v43  ;;  %v1031_v32 = vmax.f32 %v14506_v5, %v727_v2  ;;  %v929_v18 = vpop.f32.mrf.mxu3  ;;  %v2095_v30 = vld [vmem:[%s14255_s3 + $0x380] sm:$0xff]  ;;  %v14508_v58 = vld [vmem:[#allocation22_spill] sm:$0xff]  ;;  %v14509_v2 = vld [vmem:[#allocation24_spill] sm:$0xff] }
 0x211   :  { %v1032_v34 = vmax.f32 %v14505_v22, %v828_v31  ;;  %2481 = vmatpush.msra.mxu1 %v2095_v30  ;;  %v1033_v37 = vmax.f32 %v14508_v58, %v929_v18  ;;  %v14510_v22 = vld [vmem:[#allocation7_spill] sm:$0xff]  ;;  %v14511_v5 = vld [vmem:[#allocation26_spill] sm:$0xff] }
 0x212   :  { %v1621_v20 = vmax.f32 %v1565_v60, 0.0  ;;  %v1622_v46 = vmax.f32 %v1566_v6, 0.0  ;;  %v8486_v44 = vadd.f32 %v8115_v41, %v1031_v32 }
 0x213   :  { %1733 = vrot.lane.b32.xlu2 %v1619_v26, %s7262_s29  ;;  %v8478_v26 = vpop.f32.mrf.mxu0  ;;  %v1154_v7 = vadd.f32 %v8132_v36, %v1032_v34  ;;  %v1155_v53 = vadd.f32 %v8129_v42, %v1033_v37  ;;  %v978_v34 = vmax.f32 %v14510_v22, %v8452_v33  ;;  %2482 = vmatpush.msra.mxu1 %v2091_v23  ;;  %v2023_v37 = vld [vmem:[%s14255_s3 + $0x140] sm:$0xff] }
 0x214   :  { %1376 = vrot.lane.b32.xlu1 %v8432_v62, %s7261_s2  ;;  %v2075_v22 = vld [vmem:[%s14255_s3 + $0x2e0] sm:$0xff] }
 0x215   :  { %v8447_v13 = vpop.permute.xlu2 %1314  ;;  %1735 = vrot.lane.b32.xlu0 %v1620_v14, %s7262_s29  ;;  %v1100_v30 = vadd.f32 %v8372_v48, %v978_v34 }
 0x216   :  { %v1301_v63 = vpop.permute.xlu1 %1300 }
 0x217   :  { %v1305_v8 = vpop.permute.xlu0 %1304  ;;  %v1456_v14 = vsel %vm1448_vm0, %v1301_v63, %v8399_v15  ;;  %v1455_v24 = vsel %vm1448_vm0, %v1299_v0, %v1301_v63  ;;  %v730_v10 = vpop.f32.mrf.mxu1 }
 0x218   :  { %v1568_v15 = vmax.f32 %v8174_v25, %v1456_v14  ;;  %v1567_v60 = vmax.f32 %v1096_v61, %v1455_v24  ;;  %v2219_v25 = vld [vmem:[%s14255_s3 + $0x760] sm:$0xff]  ;;  %v1035_v31 = vmax.f32 %v14509_v2, %v730_v10  ;;  %v831_v16 = vpop.f32.mrf.mxu2 }
 0x219   :  { %2684 = vmatpush.msra.mxu3 %v2219_v25  ;;  %v1036_v40 = vmax.f32 %v14512_v49, %v831_v16  ;;  %v2087_v24 = vld [vmem:[%s14255_s3 + $0x340] sm:$0xff] }
 0x21a   :  { %v1624_v0 = vmax.f32 %v1568_v15, 0.0  ;;  %v1623_v43 = vmax.f32 %v1567_v60, 0.0  ;;  %v8533_v18 = vadd.f32 %v8115_v41, %v1035_v31  ;;  %2483 = vmatpush.msra.mxu1 %v2087_v24  ;;  %v2019_v10 = vld [vmem:[%s14255_s3 + $0x120] sm:$0xff] }
 0x21b   :  { %1378 = vrot.lane.b32.xlu2 %v1150_v27, %s7261_s2  ;;  %v8505_v63 = vpop.f32.mrf.mxu0  ;;  %v932_v27 = vpop.f32.mrf.mxu3  ;;  %v1158_v33 = vadd.f32 %v8132_v36, %v1036_v40  ;;  %v2079_v31 = vld [vmem:[%s14255_s3 + $0x300] sm:$0xff] }
 0x21c   :  { %1737 = vrot.lane.b32.xlu1 %v1621_v20, %s7262_s29  ;;  %v2155_v20 = vld [vmem:[%s14255_s3 + $0x560] sm:$0xff]  ;;  %v1037_v32 = vmax.f32 %v14511_v5, %v932_v27 }
 0x21d   :  { %v8469_v11 = vpop.permute.xlu2 %1316  ;;  %1380 = vrot.lane.b32.xlu0 %v1151_v4, %s7261_s2  ;;  %v2027_v4 = vld [vmem:[%s14255_s3 + $0x160] sm:$0xff]  ;;  %2583 = vmatpush.msra.mxu2 %v2155_v20 }
 0x21e   :  { %v1307_v50 = vpop.permute.xlu1 %1306  ;;  %2381 = vmatpush.msra.mxu0 %v2027_v4  ;;  %v1159_v14 = vadd.f32 %v8129_v42, %v1037_v32  ;;  %v2015_v20 = vld [vmem:[%s14255_s3 + $0x100] sm:$0xff]  ;;  %v14514_v4 = vld [vmem:[#allocation8_spill] sm:$0xff] }
 0x21f   :  { %v8500_v12 = vpop.permute.xlu0 %1310  ;;  %v733_v58 = vpop.f32.mrf.mxu1  ;;  %v982_v25 = vmax.f32 %v14514_v4, %v8478_v26  ;;  %v2151_v26 = vld [vmem:[%s14255_s3 + $0x540] sm:$0xff] }
 0x220   :  { %2382 = vmatpush.msra.mxu0 %v2023_v37  ;;  %v834_v16 = vpop.f32.mrf.mxu2  ;;  %2584 = vmatpush.msra.mxu2 %v2151_v26  ;;  %v2215_v32 = vld [vmem:[%s14255_s3 + $0x740] sm:$0xff] }
 0x221   :  { %v2007_v49 = vld [vmem:[%s14255_s3 + $0xc0] sm:$0xff]  ;;  %2685 = vmatpush.msra.mxu3 %v2215_v32 }
 0x222   :  { %2383 = vmatpush.msra.mxu0 %v2019_v10  ;;  %v2071_v40 = vld [vmem:[%s14255_s3 + $0x2c0] sm:$0xff] }
 0x223   :  { %1739 = vrot.lane.b32.xlu2 %v1622_v46, %s7262_s29  ;;  %v8552_v60 = vpop.f32.mrf.mxu0  ;;  %v2003_v37 = vld [vmem:[%s14255_s3 + $0xa0] sm:$0xff] }
 0x224   :  { %1384 = vrot.lane.b32.xlu1 %v1154_v7, %s7261_s2  ;;  %v1457_v7 = vsel %vm1448_vm0, %v1305_v8, %v1307_v50  ;;  %v1458_v8 = vsel %vm1448_vm0, %v1307_v50, %v8423_v57  ;;  %v2083_v50 = vld [vmem:[%s14255_s3 + $0x320] sm:$0xff]  ;;  %2384 = vmatpush.msra.mxu0 %v2015_v20 }
 0x225   :  { %v8492_v51 = vpop.permute.xlu2 %1324  ;;  %1382 = vrot.lane.b32.xlu0 %v8486_v44, %s7261_s2  ;;  %v1569_v15 = vmax.f32 %v1100_v30, %v1457_v7  ;;  %2484 = vmatpush.msra.mxu1 %v2083_v50  ;;  %v1104_v7 = vadd.f32 %v8372_v48, %v982_v25  ;;  %v14515_v30 = vld [vmem:[#allocation29_spill] sm:$0xff]  ;;  %v1999_v50 = vld [vmem:[%s14255_s3 + $0x80] sm:$0xff] }
 0x226   :  { %v8496_v9 = vpop.permute.xlu1 %1312  ;;  %v2063_v20 = vld [vmem:[%s14255_s3 + $0x280] sm:$0xff] }
 0x227   :  { %v1625_v2 = vmax.f32 %v1569_v15, 0.0  ;;  %2485 = vmatpush.msra.mxu1 %v2079_v31  ;;  %v1459_v34 = vsel %vm1448_vm0, %v8500_v12, %v8496_v9  ;;  %v935_v12 = vpop.f32.mrf.mxu3  ;;  %v2067_v15 = vld [vmem:[%s14255_s3 + $0x2a0] sm:$0xff]  ;;  %v1460_v4 = vsel %vm1448_vm0, %v8496_v9, %v8447_v13 }
 0x228   :  { %v1995_v25 = vld [vmem:[%s14255_s3 + $0x60] sm:$0xff]  ;;  %v837_v13 = vpop.f32.mrf.mxu2 }
 0x229   :  { %2486 = vmatpush.msra.mxu1 %v2075_v22  ;;  %v2059_v31 = vld [vmem:[%s14255_s3 + $0x260] sm:$0xff]  ;;  %v736_v22 = vpop.f32.mrf.mxu1 }
 0x22a   :  { %v2055_v9 = vld [vmem:[%s14255_s3 + $0x240] sm:$0xff] }
 0x22b   :  { %1386 = vrot.lane.b32.xlu2 %v1155_v53, %s7261_s2  ;;  %2487 = vmatpush.msra.mxu1 %v2071_v40  ;;  %v8617_v10 = vpop.f32.mrf.mxu0  ;;  %v2147_v26 = vld [vmem:[%s14255_s3 + $0x520] sm:$0xff]  ;;  %v14517_v40 = vld [vmem:[#allocation33_spill] sm:$0xff] }
 0x22c   :  { %1743 = vrot.lane.b32.xlu1 %v1624_v0, %s7262_s29  ;;  %v14513_v0 = vld [vmem:[#allocation27_spill] sm:$0xff]  ;;  %2585 = vmatpush.msra.mxu2 %v2147_v26  ;;  %v14520_v26 = vld [vmem:[#allocation34_spill] sm:$0xff] }
 0x22d   :  { %v8517_v55 = vpop.permute.xlu2 %1332  ;;  %1741 = vrot.lane.b32.xlu0 %v1623_v43, %s7262_s29  ;;  %v1039_v27 = vmax.f32 %v14513_v0, %v733_v58  ;;  %v1570_v43 = vmax.f32 %v8191_v29, %v1458_v8  ;;  %v2011_v29 = vld [vmem:[%s14255_s3 + $0xe0] sm:$0xff]  ;;  %v1571_v8 = vmax.f32 %v1104_v7, %v1459_v34  ;;  %v14516_v0 = vld [vmem:[#allocation30_spill] sm:$0xff]  ;;  %2488 = vmatpush.msra.mxu1 %v2067_v15 }
 0x22e   :  { %v8523_v6 = vpop.permute.xlu1 %1320  ;;  %2385 = vmatpush.msra.mxu0 %v2011_v29  ;;  %v1044_v7 = vmax.f32 %v14517_v40, %v837_v13  ;;  %v2143_v15 = vld [vmem:[%s14255_s3 + $0x500] sm:$0xff] }
 0x22f   :  { %v8529_v46 = vpop.permute.xlu0 %1318  ;;  %v8579_v23 = vadd.f32 %v8115_v41, %v1039_v27  ;;  %v1626_v5 = vmax.f32 %v1570_v43, 0.0  ;;  %v1041_v27 = vmax.f32 %v14516_v0, %v935_v12  ;;  %2489 = vmatpush.msra.mxu1 %v2063_v20  ;;  %v14518_v12 = vld [vmem:[#allocation31_spill] sm:$0xff]  ;;  %2586 = vmatpush.msra.mxu2 %v2143_v15 }
 0x230   :  { %2386 = vmatpush.msra.mxu0 %v2007_v49  ;;  %v1987_v49 = vld [vmem:[%s14255_s3 + $0x20] sm:$0xff]  ;;  %v1462_v13 = vsel %vm1448_vm0, %v8529_v46, %v8523_v6 }
 0x231   :  { %v1163_v29 = vadd.f32 %v8129_v42, %v1041_v27  ;;  %2490 = vmatpush.msra.mxu1 %v2059_v31  ;;  %v2047_v27 = vld [vmem:[%s14255_s3 + $0x200] sm:$0xff]  ;;  %v1166_v31 = vadd.f32 %v8132_v36, %v1044_v7 }
 0x232   :  { %2387 = vmatpush.msra.mxu0 %v2003_v37  ;;  %v1043_v37 = vmax.f32 %v14518_v12, %v736_v22  ;;  %v2199_v6 = vld [vmem:[%s14255_s3 + $0x6c0] sm:$0xff] }
 0x233   :  { %1388 = vrot.lane.b32.xlu2 %v8533_v18, %s7261_s2  ;;  %2491 = vmatpush.msra.mxu1 %v2055_v9  ;;  %v2135_v9 = vld [vmem:[%s14255_s3 + $0x4c0] sm:$0xff] }
 0x234   :  { %1392 = vrot.lane.b32.xlu1 %v1159_v14, %s7261_s2  ;;  %v1040_v14 = vmax.f32 %v14515_v30, %v834_v16  ;;  %2388 = vmatpush.msra.mxu0 %v1999_v50  ;;  %v1991_v16 = vld [vmem:[%s14255_s3 + $0x40] sm:$0xff] }
 0x235   :  { %v8549_v61 = vpop.permute.xlu2 %1334  ;;  %1390 = vrot.lane.b32.xlu0 %v1158_v33, %s7261_s2  ;;  %v2207_v50 = vld [vmem:[%s14255_s3 + $0x700] sm:$0xff] }
 0x236   :  { %v8554_v53 = vpop.permute.xlu1 %1322  ;;  %v1162_v43 = vadd.f32 %v8132_v36, %v1040_v14  ;;  %2389 = vmatpush.msra.mxu0 %v1995_v25  ;;  %v2211_v14 = vld [vmem:[%s14255_s3 + $0x720] sm:$0xff]  ;;  %v938_v25 = vpop.f32.mrf.mxu3 }
 0x237   :  { %v8561_v57 = vpop.permute.xlu0 %1326  ;;  %2686 = vmatpush.msra.mxu3 %v2211_v14  ;;  %v1045_v22 = vmax.f32 %v14520_v26, %v938_v25  ;;  %v2195_v14 = vld [vmem:[%s14255_s3 + $0x6a0] sm:$0xff] }
 0x238   :  { %2390 = vmatpush.msra.mxu0 %v1991_v16  ;;  %v14264_v16 = vmov 0.0   ;;  %v2191_v15 = vld [vmem:[%s14255_s3 + $0x680] sm:$0xff] }
 0x239   :  { %2687 = vmatpush.msra.mxu3 %v2207_v50  ;;  %v2187_v25 = vld [vmem:[%s14255_s3 + $0x660] sm:$0xff] }
 0x23a   :  { %2391 = vmatpush.msra.mxu0 %v1987_v49 }
 0x23b   :  { %1745 = vrot.lane.b32.xlu2 %v1625_v2, %s7262_s29  ;;  %v1627_v2 = vmax.f32 %v1571_v8, 0.0  ;;  %v1983_v8 = vld [vmem:[%s14255_s3] sm:$0xff] }
 0x23c   :  { %1394 = vrot.lane.b32.xlu1 %v8579_v23, %s7261_s2  ;;  %2392 = vmatpush.msra.mxu0 %v1983_v8  ;;  %v1167_v8 = vadd.f32 %v8129_v42, %v1045_v22  ;;  %v2183_v22 = vld [vmem:[%s14255_s3 + $0x640] sm:$0xff] }
 0x23d   :  { %v8602_v33 = vpop.permute.xlu2 %1342  ;;  %1747 = vrot.lane.b32.xlu0 %v1626_v5, %s7262_s29  ;;  %v1572_v5 = vmax.f32 %v8208_v47, %v1460_v4  ;;  %v2051_v47 = vld [vmem:[%s14255_s3 + $0x220] sm:$0xff]  ;;  %v8681_v4 = vpop.f32.mrf.mxu0  ;;  %2393 = vmatmul.f32.vlgmr.msra.gmra.mxu0 %v14264_v16 }
 0x23e   :  { %v8606_v58 = vpop.permute.xlu1 %1330  ;;  %2492 = vmatpush.msra.mxu1 %v2051_v47  ;;  %v1574_v47 = vmax.f32 %v8246_v35, %v1462_v13 }
 0x23f   :  { %v8612_v24 = vpop.permute.xlu0 %1328  ;;  %v1628_v0 = vmax.f32 %v1572_v5, 0.0  ;;  %v1461_v5 = vsel %vm1448_vm0, %v8469_v11, %v8529_v46  ;;  %v2131_v11 = vld [vmem:[%s14255_s3 + $0x4a0] sm:$0xff] }
 0x240   :  { %2493 = vmatpush.msra.mxu1 %v2047_v27  ;;  %v1630_v35 = vmax.f32 %v1574_v47, 0.0  ;;  %v2123_v27 = vld [vmem:[%s14255_s3 + $0x460] sm:$0xff] }
 0x241   :  { %2494 = vmatmul.f32.vlgmr.msra.gmra.mxu1 %v14264_v16 }
 0x243   :  { %1396 = vrot.lane.b32.xlu2 %v1162_v43, %s7261_s2  ;;  %v14519_v43 = vld [vmem:[#allocation9_spill] sm:$0xff] }
 0x244   :  { %1749 = vrot.lane.b32.xlu1 %v1627_v2, %s7262_s29  ;;  %v986_v20 = vmax.f32 %v14519_v43, %v8505_v63  ;;  %v2139_v2 = vld [vmem:[%s14255_s3 + $0x4e0] sm:$0xff]  ;;  %v941_v43 = vpop.f32.mrf.mxu3 }
 0x245   :  { %v8647_v34 = vpop.permute.xlu2 %1350  ;;  %1398 = vrot.lane.b32.xlu0 %v1163_v29, %s7261_s2  ;;  %v2203_v63 = vld [vmem:[%s14255_s3 + $0x6e0] sm:$0xff]  ;;  %v8693_v29 = vadd.f32 %v8115_v41, %v1043_v37  ;;  %2587 = vmatpush.msra.mxu2 %v2139_v2  ;;  %v8737_v50 = vpop.f32.mrf.mxu0 }
 0x246   :  { %v8651_v32 = vpop.permute.xlu1 %1338  ;;  %v1108_v40 = vadd.f32 %v8372_v48, %v986_v20  ;;  %2688 = vmatpush.msra.mxu3 %v2203_v63  ;;  %v2127_v37 = vld [vmem:[%s14255_s3 + $0x480] sm:$0xff]  ;;  %2396 = vmatmul.f32.gmra.mxu0 %v14264_v16  ;;  %v840_v63 = vpop.f32.mrf.mxu2 }
 0x247   :  { %v8658_v30 = vpop.permute.xlu0 %1336  ;;  %2588 = vmatpush.msra.mxu2 %v2135_v9  ;;  %v14521_v2 = vld [vmem:[#allocation35_spill] sm:$0xff] }
 0x248   :  { %v1573_v12 = vmax.f32 %v1108_v40, %v1461_v5  ;;  %2689 = vmatpush.msra.mxu3 %v2199_v6  ;;  %v2119_v9 = vld [vmem:[%s14255_s3 + $0x440] sm:$0xff]  ;;  %v14522_v5 = vld [vmem:[#allocation10_spill] sm:$0xff] }
 0x249   :  { %2589 = vmatpush.msra.mxu2 %v2131_v11  ;;  %2497 = vmatmul.f32.gmra.mxu1 %v14264_v16  ;;  %v990_v6 = vmax.f32 %v14522_v5, %v8552_v60  ;;  %v14523_v40 = vld [vmem:[#allocation38_spill] sm:$0xff]  ;;  %v2111_v60 = vld [vmem:[%s14255_s3 + $0x400] sm:$0xff] }
 0x24a   :  { %2690 = vmatpush.msra.mxu3 %v2195_v14  ;;  %v1629_v20 = vmax.f32 %v1573_v12, 0.0  ;;  %v1049_v11 = vmax.f32 %v14523_v40, %v941_v43  ;;  %v2115_v14 = vld [vmem:[%s14255_s3 + $0x420] sm:$0xff]  ;;  %v14524_v12 = vld [vmem:[#allocation37_spill] sm:$0xff] }
 0x24b   :  { %1751 = vrot.lane.b32.xlu2 %v1628_v0, %s7262_s29  ;;  %v739_v0 = vpop.f32.mrf.mxu1  ;;  %2590 = vmatpush.msra.mxu2 %v2127_v37  ;;  %v1048_v37 = vmax.f32 %v14524_v12, %v840_v63 }
 0x24c   :  { %1402 = vrot.lane.b32.xlu1 %v1166_v31, %s7261_s2  ;;  %2691 = vmatpush.msra.mxu3 %v2191_v15  ;;  %v1047_v31 = vmax.f32 %v14521_v2, %v739_v0  ;;  %v1463_v0 = vsel %vm1448_vm0, %v8554_v53, %v8492_v51  ;;  %v1171_v43 = vadd.f32 %v8129_v42, %v1049_v11 }
 0x24d   :  { %v8705_v49 = vpop.permute.xlu2 %1352  ;;  %1400 = vrot.lane.b32.xlu0 %v8693_v29, %s7261_s2  ;;  %2591 = vmatpush.msra.mxu2 %v2123_v27  ;;  %v1112_v27 = vadd.f32 %v8372_v48, %v990_v6  ;;  %v1464_v53 = vsel %vm1448_vm0, %v8492_v51, %v8561_v57  ;;  %v8792_v63 = vpop.f32.mrf.mxu0  ;;  %v14526_v51 = vld [vmem:[#allocation11_spill] sm:$0xff] }
 0x24e   :  { %v8713_v7 = vpop.permute.xlu1 %1340  ;;  %2692 = vmatpush.msra.mxu3 %v2187_v25  ;;  %v8770_v15 = vadd.f32 %v8115_v41, %v1047_v31  ;;  %v1576_v40 = vmax.f32 %v8250_v45, %v1464_v53  ;;  %v994_v57 = vmax.f32 %v14526_v51, %v8617_v10  ;;  %v944_v45 = vpop.f32.mrf.mxu3 }
 0x24f   :  { %v8720_v46 = vpop.permute.xlu0 %1344  ;;  %2592 = vmatpush.msra.mxu2 %v2119_v9  ;;  %v1575_v2 = vmax.f32 %v1112_v27, %v1463_v0  ;;  %v14527_v0 = vld [vmem:[#allocation40_spill] sm:$0xff] }
 0x250   :  { %2693 = vmatpush.msra.mxu3 %v2183_v22  ;;  %v14525_v22 = vld [vmem:[#allocation39_spill] sm:$0xff] }
 0x251   :  { %2593 = vmatpush.msra.mxu2 %v2115_v14  ;;  %v1631_v11 = vmax.f32 %v1575_v2, 0.0  ;;  %v843_v14 = vpop.f32.mrf.mxu2 }
 0x253   :  { %1404 = vrot.lane.b32.xlu2 %v1167_v8, %s7261_s2  ;;  %v2179_v8 = vld [vmem:[%s14255_s3 + $0x620] sm:$0xff]  ;;  %v742_v25 = vpop.f32.mrf.mxu1  ;;  %2594 = vmatpush.msra.mxu2 %v2111_v60  ;;  %v1116_v60 = vadd.f32 %v8372_v48, %v994_v57 }
 0x254   :  { %1755 = vrot.lane.b32.xlu1 %v1630_v35, %s7262_s29  ;;  %v2175_v35 = vld [vmem:[%s14255_s3 + $0x600] sm:$0xff]  ;;  %2694 = vmatpush.msra.mxu3 %v2179_v8  ;;  %v1051_v5 = vmax.f32 %v14525_v22, %v742_v25  ;;  %v1465_v8 = vsel %vm1448_vm0, %v8612_v24, %v8606_v58  ;;  %v14528_v24 = vld [vmem:[#allocation41_spill] sm:$0xff]  ;;  %v14529_v22 = vld [vmem:[#allocation12_spill] sm:$0xff] }
 0x255   :  { %v8744_v13 = vpop.permute.xlu2 %1360  ;;  %1753 = vrot.lane.b32.xlu0 %v1629_v20, %s7262_s29  ;;  %v1170_v20 = vadd.f32 %v8132_v36, %v1048_v37  ;;  %v1632_v37 = vmax.f32 %v1576_v40, 0.0  ;;  %v8821_v25 = vpop.f32.mrf.mxu0  ;;  %v1053_v53 = vmax.f32 %v14528_v24, %v944_v45  ;;  %v1466_v40 = vsel %vm1448_vm0, %v8606_v58, %v8517_v55  ;;  %v14531_v24 = vld [vmem:[#allocation45_spill] sm:$0xff] }
 0x256   :  { %v8751_v26 = vpop.permute.xlu1 %1348  ;;  %2695 = vmatpush.msra.mxu3 %v2175_v35  ;;  %v8804_v12 = vadd.f32 %v8115_v41, %v1051_v5  ;;  %v1052_v35 = vmax.f32 %v14527_v0, %v843_v14  ;;  %v998_v5 = vmax.f32 %v14529_v22, %v8681_v4  ;;  %v1467_v14 = vsel %vm1448_vm0, %v8549_v61, %v8658_v30  ;;  %v947_v61 = vpop.f32.mrf.mxu3  ;;  %v14534_v22 = vld [vmem:[#allocation13_spill] sm:$0xff] }
 0x257   :  { %v8760_v47 = vpop.permute.xlu0 %1346  ;;  %v1175_v57 = vadd.f32 %v8129_v42, %v1053_v53  ;;  %v1578_v4 = vmax.f32 %v8268_v52, %v1466_v40  ;;  %v1057_v53 = vmax.f32 %v14531_v24, %v947_v61  ;;  %v14535_v40 = vld [vmem:[#allocation44_spill] sm:$0xff] }
 0x258   :  { %v1174_v2 = vadd.f32 %v8132_v36, %v1052_v35  ;;  %v1120_v55 = vadd.f32 %v8372_v48, %v998_v5  ;;  %v1002_v5 = vmax.f32 %v14534_v22, %v8737_v50 }
 0x259   :  { %v1634_v0 = vmax.f32 %v1578_v4, 0.0  ;;  %v846_v52 = vpop.f32.mrf.mxu2 }
 0x25b   :  { %1406 = vrot.lane.b32.xlu2 %v8770_v15, %s7261_s2 }
 0x25c   :  { %1410 = vrot.lane.b32.xlu1 %v1171_v43, %s7261_s2  ;;  %v1577_v43 = vmax.f32 %v1116_v60, %v1465_v8 }
 0x25d   :  { %v8789_v31 = vpop.permute.xlu2 %1368  ;;  %1408 = vrot.lane.b32.xlu0 %v1170_v20, %s7261_s2  ;;  %v8849_v35 = vpop.f32.mrf.mxu0 }
 0x25e   :  { %v8794_v9 = vpop.permute.xlu1 %1356  ;;  %v1633_v51 = vmax.f32 %v1577_v43, 0.0  ;;  %v745_v43 = vpop.f32.mrf.mxu1 }
 0x25f   :  { %v8798_v6 = vpop.permute.xlu0 %1354 }
 0x263   :  { %1757 = vrot.lane.b32.xlu2 %v1631_v11, %s7262_s29  ;;  %v1468_v11 = vsel %vm1448_vm0, %v8658_v30, %v8651_v32  ;;  %v1579_v32 = vmax.f32 %v1120_v55, %v1467_v14  ;;  %v14538_v55 = vld [vmem:[#allocation14_spill] sm:$0xff] }
 0x264   :  { %1412 = vrot.lane.b32.xlu1 %v8804_v12, %s7261_s2  ;;  %v1580_v8 = vmax.f32 %v8295_v17, %v1468_v11  ;;  %v14536_v11 = vld [vmem:[#allocation43_spill] sm:$0xff]  ;;  %v7035_v17 = vld [vmem:[%s14257_s5 + $0x2d8] sm:$0xff] }
 0x265   :  { %v8812_v27 = vpop.permute.xlu2 %1370  ;;  %1759 = vrot.lane.b32.xlu0 %v1632_v37, %s7262_s29  ;;  %v1635_v45 = vmax.f32 %v1579_v32, 0.0  ;;  %v1055_v14 = vmax.f32 %v14536_v11, %v745_v43  ;;  %v1179_v32 = vadd.f32 %v8129_v42, %v1057_v53  ;;  %v1470_v43 = vsel %vm1448_vm0, %v8602_v33, %v8720_v46 }
 0x266   :  { %v8816_v10 = vpop.permute.xlu1 %1358  ;;  %v1636_v30 = vmax.f32 %v1580_v8, 0.0  ;;  %v1006_v8 = vmax.f32 %v14538_v55, %v8792_v63  ;;  %v1124_v63 = vadd.f32 %v8372_v48, %v1002_v5  ;;  %v1473_v55 = vsel %vm1448_vm0, %v8705_v49, %v8798_v6 }
 0x267   :  { %v8819_v20 = vpop.permute.xlu0 %1362 }
 0x26b   :  { %1414 = vrot.lane.b32.xlu2 %v1174_v2, %s7261_s2 }
 0x26c   :  { %1761 = vrot.lane.b32.xlu1 %v1633_v51, %s7262_s29  ;;  %v1056_v51 = vmax.f32 %v14535_v40, %v846_v52  ;;  %v8894_v52 = vadd.f32 %v8115_v41, %v1055_v14  ;;  %v1582_v40 = vmax.f32 %v8301_v59, %v1470_v43  ;;  %v1474_v14 = vsel %vm1448_vm0, %v8798_v6, %v8794_v9 }
 0x26d   :  { %v8838_v37 = vpop.permute.xlu2 %1733  ;;  %1416 = vrot.lane.b32.xlu0 %v1175_v57, %s7261_s2 }
 0x26e   :  { %14530 = vst [vmem:[#allocation16_spill] sm:$0xff] %v8838_v37  ;;  %v8844_v58 = vpop.permute.xlu1 %1366  ;;  %v1178_v61 = vadd.f32 %v8132_v36, %v1056_v51  ;;  %v1638_v59 = vmax.f32 %v1582_v40, 0.0  ;;  %v14543_v40 = vld [vmem:[#allocation17_spill] sm:$0xff] }
 0x26f   :  { %v8847_v60 = vpop.permute.xlu0 %1364 }
 0x273   :  { %1763 = vrot.lane.b32.xlu2 %v1634_v0, %s7262_s29  ;;  %v1469_v0 = vsel %vm1448_vm0, %v8713_v7, %v8602_v33  ;;  %v1471_v7 = vsel %vm1448_vm0, %v8760_v47, %v8751_v26  ;;  %v14540_v33 = vld [vmem:[#allocation15_spill] sm:$0xff] }
 0x274   :  { %1767 = vrot.lane.b32.xlu1 %v1636_v30, %s7262_s29  ;;  %v8891_v30 = vpop.f32.mrf.mxu0  ;;  %v1581_v24 = vmax.f32 %v1124_v63, %v1469_v0  ;;  %v1010_v46 = vmax.f32 %v14540_v33, %v8821_v25  ;;  %v1586_v0 = vmax.f32 %v8335_v39, %v1474_v14  ;;  %v14542_v39 = vld [vmem:[#allocation46_spill] sm:$0xff]  ;;  %v14544_v33 = vld [vmem:[#allocation49_spill] sm:$0xff] }
 0x275   :  { %v8853_v2 = vpop.permute.xlu2 %1378  ;;  %1765 = vrot.lane.b32.xlu0 %v1635_v45, %s7262_s29  ;;  %v1128_v45 = vadd.f32 %v8372_v48, %v1006_v8 }
 0x276   :  { %v1732_v57 = vpop.permute.xlu1 %1731  ;;  %v1637_v47 = vmax.f32 %v1581_v24, 0.0  ;;  %v849_v24 = vpop.f32.mrf.mxu2 }
 0x277   :  { %v8866_v4 = vpop.permute.xlu0 %1729  ;;  %v1583_v22 = vmax.f32 %v1128_v45, %v1471_v7  ;;  %v950_v7 = vpop.f32.mrf.mxu3 }
 0x278   :  { %14537 = vst [vmem:[#allocation5_spill] sm:$0xff] %v8866_v4  ;;  %6007 = vmatmul.msk.f32.gmra.mxu0 %vm8858_vm2, %v8866_v4  ;;  %6085 = vmatmul.msk.f32.vlgmr.msra.gmra.mxu2 %vm8858_vm2, %v8866_v4  ;;  %v8879_v50 = vsel %vm1841_vm1, %v8866_v4, %v1732_v57  ;;  %v1472_v57 = vsel %vm1448_vm0, %v8751_v26, %v8647_v34 }
 0x279   :  { %14539 = vst [vmem:[#allocation18_spill] sm:$0xff] %v8879_v50  ;;  %6058 = vmatmul.msk.f32.gmra.mxu1 %vm1954_vm3, %v8879_v50  ;;  %6140 = vmatmul.msk.f32.vlgmr.msra.gmra.mxu3 %vm1954_vm3, %v8879_v50  ;;  %v1639_v11 = vmax.f32 %v1583_v22, 0.0  ;;  %v1584_v25 = vmax.f32 %v8314_v38, %v1472_v57  ;;  %v1132_v34 = vadd.f32 %v8372_v48, %v1010_v46  ;;  %v1642_v38 = vmax.f32 %v1586_v0, 0.0 }
 0x27a   :  { %v1061_v46 = vmax.f32 %v14544_v33, %v950_v7 }
 0x27b   :  { %1422 = vrot.lane.b32.xlu2 %v1179_v32, %s7261_s2  ;;  %v1585_v63 = vmax.f32 %v1132_v34, %v1473_v55  ;;  %v1640_v6 = vmax.f32 %v1584_v25, 0.0  ;;  %v14548_v25 = vld [vmem:[#allocation23_spill] sm:$0xff] }
 0x27c   :  { %1420 = vrot.lane.b32.xlu1 %v1178_v61, %s7261_s2  ;;  %v620_v26 = vpop.f32.mrf.mxu0  ;;  %v748_v61 = vpop.f32.mrf.mxu1  ;;  %v1018_v34 = vmax.f32 %v14548_v25, %v8891_v30 }
 0x27d   :  { %v1740_v53 = vpop.permute.xlu2 %1739  ;;  %1418 = vrot.lane.b32.xlu0 %v8894_v52, %s7261_s2  ;;  %v1641_v45 = vmax.f32 %v1585_v63, 0.0  ;;  %v1059_v43 = vmax.f32 %v14542_v39, %v748_v61  ;;  %v1476_v61 = vsel %vm1448_vm0, %v8744_v13, %v8819_v20 }
 0x27e   :  { %v8906_v5 = vpop.permute.xlu1 %1374 }
 0x27f   :  { %v8909_v51 = vpop.permute.xlu0 %1372  ;;  %v8975_v0 = vadd.f32 %v8115_v41, %v1059_v43  ;;  %v1588_v43 = vmax.f32 %v8339_v54, %v1476_v61 }
 0x280   :  { %6009 = vmatmul.msk.f32.gmra.mxu0 %vm8858_vm2, %v8838_v37  ;;  %6087 = vmatmul.msk.f32.gmra.mxu2 %vm8858_vm2, %v8838_v37  ;;  %v1479_v54 = vsel %vm1448_vm0, %v8812_v27, %v8909_v51 }
 0x283   :  { %1769 = vrot.lane.b32.xlu2 %v1637_v47, %s7262_s29  ;;  %v1014_v47 = vmax.f32 %v14543_v40, %v8849_v35  ;;  %v14549_v40 = vld [vmem:[#allocation28_spill] sm:$0xff] }
 0x284   :  { %1773 = vrot.lane.b32.xlu1 %v1639_v11, %s7262_s29  ;;  %v8957_v11 = vpop.f32.mrf.mxu0 }
 0x285   :  { %v8929_v8 = vpop.permute.xlu2 %1386  ;;  %1771 = vrot.lane.b32.xlu0 %v1638_v59, %s7262_s29  ;;  %v14546_v59 = vld [vmem:[#allocation48_spill] sm:$0xff]  ;;  %v1136_v63 = vadd.f32 %v8372_v48, %v1014_v47  ;;  %v1022_v47 = vmax.f32 %v14549_v40, %v620_v26 }
 0x286   :  { %v8935_v32 = vpop.permute.xlu1 %1376  ;;  %v1060_v14 = vmax.f32 %v14546_v59, %v849_v24  ;;  %v1480_v59 = vsel %vm1448_vm0, %v8909_v51, %v8906_v5  ;;  %v852_v51 = vpop.f32.mrf.mxu2 }
 0x287   :  { %v1736_v9 = vpop.permute.xlu0 %1735  ;;  %v1592_v25 = vmax.f32 %v8408_v56, %v1480_v59 }
 0x288   :  { %v8940_v49 = vsel %vm1841_vm1, %v8838_v37, %v1736_v9  ;;  %v1475_v9 = vsel %vm1448_vm0, %v8816_v10, %v8744_v13  ;;  %v1182_v30 = vadd.f32 %v8132_v36, %v1060_v14  ;;  %v1140_v10 = vadd.f32 %v8372_v48, %v1018_v34 }
 0x289   :  { %14541 = vst [vmem:[#allocation19_spill] sm:$0xff] %v8940_v49  ;;  %6059 = vmatmul.msk.f32.gmra.mxu1 %vm1954_vm3, %v8940_v49  ;;  %6141 = vmatmul.msk.f32.gmra.mxu3 %vm1954_vm3, %v8940_v49  ;;  %v1478_v13 = vsel %vm1448_vm0, %v8844_v58, %v8789_v31  ;;  %v1144_v31 = vadd.f32 %v8372_v48, %v1022_v47  ;;  %v1648_v56 = vmax.f32 %v1592_v25, 0.0  ;;  %v14555_v47 = vld [vmem:[#allocation53_spill] sm:$0xff] }
 0x28a   :  { %v1590_v26 = vmax.f32 %v8366_v3, %v1478_v13 }
 0x28b   :  { %1775 = vrot.lane.b32.xlu2 %v1640_v6, %s7262_s29  ;;  %v1477_v6 = vsel %vm1448_vm0, %v8847_v60, %v8844_v58  ;;  %v1591_v5 = vmax.f32 %v1144_v31, %v1479_v54 }
 0x28c   :  { %1779 = vrot.lane.b32.xlu1 %v1642_v38, %s7262_s29  ;;  %v1587_v38 = vmax.f32 %v1136_v63, %v1475_v9  ;;  %v626_v33 = vpop.f32.mrf.mxu0  ;;  %v1646_v27 = vmax.f32 %v1590_v26, 0.0  ;;  %v751_v63 = vpop.f32.mrf.mxu1 }
 0x28d   :  { %v8948_v22 = vpop.permute.xlu2 %1388  ;;  %1777 = vrot.lane.b32.xlu0 %v1641_v45, %s7262_s29  ;;  %v1589_v45 = vmax.f32 %v1140_v10, %v1477_v6  ;;  %v953_v10 = vpop.f32.mrf.mxu3 }
 0x28e   :  { %v8955_v57 = vpop.permute.xlu1 %1737  ;;  %v1643_v60 = vmax.f32 %v1587_v38, 0.0  ;;  %v14553_v38 = vld [vmem:[#allocation32_spill] sm:$0xff]  ;;  %v1065_v13 = vmax.f32 %v14555_v47, %v953_v10  ;;  %v14558_v10 = vld [vmem:[#allocation42_spill] sm:$0xff] }
 0x28f   :  { %14545 = vst [vmem:[#allocation21_spill] sm:$0xff] %v8955_v57  ;;  %v8960_v55 = vpop.permute.xlu0 %1380  ;;  %6011 = vmatmul.msk.f32.gmra.mxu0 %vm8858_vm2, %v8955_v57  ;;  %6089 = vmatmul.msk.f32.gmra.mxu2 %vm8858_vm2, %v8955_v57  ;;  %v8970_v35 = vsel %vm1841_vm1, %v8955_v57, %v1740_v53  ;;  %v1183_v53 = vadd.f32 %v8129_v42, %v1061_v46  ;;  %v1645_v20 = vmax.f32 %v1589_v45, 0.0  ;;  %v1644_v46 = vmax.f32 %v1588_v43, 0.0  ;;  %v14554_v43 = vld [vmem:[#allocation50_spill] sm:$0xff] }
 0x290   :  { %14547 = vst [vmem:[#allocation20_spill] sm:$0xff] %v8970_v35  ;;  %v1026_v45 = vmax.f32 %v14553_v38, %v8957_v11  ;;  %v1481_v11 = vsel %vm1448_vm0, %v8935_v32, %v8853_v2 }
 0x291   :  { %6060 = vmatmul.msk.f32.gmra.mxu1 %vm1954_vm3, %v8970_v35  ;;  %6142 = vmatmul.msk.f32.gmra.mxu3 %vm1954_vm3, %v8970_v35 }
 0x292   :  { %v1148_v26 = vadd.f32 %v8372_v48, %v1026_v45 }
 0x293   :  { %1424 = vrot.lane.b32.xlu2 %v8975_v0, %s7261_s2 }
 0x294   :  { %1428 = vrot.lane.b32.xlu1 %v1183_v53, %s7261_s2  ;;  %v629_v9 = vpop.f32.mrf.mxu0  ;;  %v1647_v53 = vmax.f32 %v1591_v5, 0.0  ;;  %v1593_v5 = vmax.f32 %v1148_v26, %v1481_v11  ;;  %v754_v11 = vpop.f32.mrf.mxu1  ;;  %v14561_v26 = vld [vmem:[#allocation57_spill] sm:$0xff] }
 0x295   :  { %v8996_v7 = vpop.permute.xlu2 %1745  ;;  %1426 = vrot.lane.b32.xlu0 %v1182_v30, %s7261_s2  ;;  %v14552_v30 = vld [vmem:[#allocation52_spill] sm:$0xff] }
 0x296   :  { %v9000_v39 = vpop.permute.xlu1 %1384  ;;  %v1064_v6 = vmax.f32 %v14552_v30, %v852_v51  ;;  %v1649_v30 = vmax.f32 %v1593_v5, 0.0  ;;  %v14564_v5 = vld [vmem:[#allocation56_spill] sm:$0xff] }
 0x297   :  { %v1383_v24 = vpop.permute.xlu0 %1382 }
 0x298   :  { %v1186_v54 = vadd.f32 %v8132_v36, %v1064_v6 }
 0x29b   :  { %1781 = vrot.lane.b32.xlu2 %v1643_v60, %s7262_s29  ;;  %v1063_v60 = vmax.f32 %v14554_v43, %v751_v63 }
 0x29c   :  { %1785 = vrot.lane.b32.xlu1 %v1645_v20, %s7262_s29  ;;  %v632_v51 = vpop.f32.mrf.mxu0 }
 0x29d   :  { %v9014_v14 = vpop.permute.xlu2 %1396  ;;  %1783 = vrot.lane.b32.xlu0 %v1644_v46, %s7262_s29  ;;  %v14556_v46 = vld [vmem:[#allocation36_spill] sm:$0xff]  ;;  %v9058_v31 = vadd.f32 %v8115_v41, %v1063_v60 }
 0x29e   :  { %v1744_v58 = vpop.permute.xlu1 %1743  ;;  %v1030_v59 = vmax.f32 %v14556_v46, %v626_v33  ;;  %v1187_v33 = vadd.f32 %v8129_v42, %v1065_v13 }
 0x29f   :  { %v9021_v34 = vpop.permute.xlu0 %1741 }
 0x2a0   :  { %14550 = vst [vmem:[#allocation6_spill] sm:$0xff] %v9021_v34  ;;  %6013 = vmatmul.msk.f32.gmra.mxu0 %vm8858_vm2, %v9021_v34  ;;  %6091 = vmatmul.msk.f32.gmra.mxu2 %vm8858_vm2, %v9021_v34  ;;  %v9031_v3 = vsel %vm1841_vm1, %v9021_v34, %v1744_v58  ;;  %v1483_v58 = vsel %vm1448_vm0, %v1383_v24, %v9000_v39 }
 0x2a1   :  { %14551 = vst [vmem:[#allocation22_spill] sm:$0xff] %v9031_v3  ;;  %6061 = vmatmul.msk.f32.gmra.mxu1 %vm1954_vm3, %v9031_v3  ;;  %6143 = vmatmul.msk.f32.gmra.mxu3 %vm1954_vm3, %v9031_v3  ;;  %v1152_v25 = vadd.f32 %v8372_v48, %v1030_v59  ;;  %v855_v59 = vpop.f32.mrf.mxu2 }
 0x2a3   :  { %1787 = vrot.lane.b32.xlu2 %v1646_v27, %s7262_s29  ;;  %v1482_v27 = vsel %vm1448_vm0, %v8853_v2, %v8960_v55  ;;  %v1595_v63 = vmax.f32 %v1152_v25, %v1483_v58  ;;  %v1034_v2 = vmax.f32 %v14558_v10, %v629_v9  ;;  %v1484_v55 = vsel %vm1448_vm0, %v9000_v39, %v8929_v8  ;;  %v14566_v10 = vld [vmem:[#allocation51_spill] sm:$0xff] }
 0x2a4   :  { %1791 = vrot.lane.b32.xlu1 %v1648_v56, %s7262_s29  ;;  %v1596_v8 = vmax.f32 %v8486_v44, %v1484_v55  ;;  %v635_v13 = vpop.f32.mrf.mxu0 }
 0x2a5   :  { %v1752_v61 = vpop.permute.xlu2 %1751  ;;  %1789 = vrot.lane.b32.xlu0 %v1647_v53, %s7262_s29  ;;  %v1594_v53 = vmax.f32 %v8432_v62, %v1482_v27  ;;  %v1651_v62 = vmax.f32 %v1595_v63, 0.0  ;;  %v1156_v39 = vadd.f32 %v8372_v48, %v1034_v2  ;;  %v1068_v27 = vmax.f32 %v14564_v5, %v855_v59 }
 0x2a6   :  { %v1393_v40 = vpop.permute.xlu1 %1392  ;;  %v1042_v2 = vmax.f32 %v14566_v10, %v635_v13 }
 0x2a7   :  { %v1391_v20 = vpop.permute.xlu0 %1390  ;;  %v1650_v38 = vmax.f32 %v1594_v53, 0.0  ;;  %v14565_v53 = vld [vmem:[#allocation54_spill] sm:$0xff] }
 0x2a8   :  { %6015 = vmatmul.msk.f32.gmra.mxu0 %vm8858_vm2, %v8996_v7  ;;  %6093 = vmatmul.msk.f32.gmra.mxu2 %vm8858_vm2, %v8996_v7  ;;  %v1486_v45 = vsel %vm1448_vm0, %v1391_v20, %v1393_v40  ;;  %v1485_v43 = vsel %vm1448_vm0, %v8948_v22, %v1391_v20  ;;  %v1652_v40 = vmax.f32 %v1596_v8, 0.0  ;;  %v956_v20 = vpop.f32.mrf.mxu3 }
 0x2a9   :  { %v1598_v47 = vmax.f32 %v8533_v18, %v1486_v45  ;;  %v1597_v22 = vmax.f32 %v1156_v39, %v1485_v43  ;;  %v1190_v43 = vadd.f32 %v8132_v36, %v1068_v27  ;;  %v1164_v39 = vadd.f32 %v8372_v48, %v1042_v2  ;;  %v858_v2 = vpop.f32.mrf.mxu2 }
 0x2ab   :  { %1432 = vrot.lane.b32.xlu2 %v1186_v54, %s7261_s2  ;;  %v1654_v18 = vmax.f32 %v1598_v47, 0.0  ;;  %v1653_v54 = vmax.f32 %v1597_v22, 0.0 }
 0x2ac   :  { %1430 = vrot.lane.b32.xlu1 %v9058_v31, %s7261_s2 }
 0x2ad   :  { %v9068_v32 = vpop.permute.xlu2 %1404  ;;  %1434 = vrot.lane.b32.xlu0 %v1187_v33, %s7261_s2  ;;  %v1069_v33 = vmax.f32 %v14561_v26, %v956_v20 }
 0x2ae   :  { %v1395_v56 = vpop.permute.xlu1 %1394 }
 0x2af   :  { %v1748_v24 = vpop.permute.xlu0 %1747  ;;  %v1191_v55 = vadd.f32 %v8129_v42, %v1069_v33 }
 0x2b0   :  { %v9076_v6 = vsel %vm1841_vm1, %v8996_v7, %v1748_v24  ;;  %v1067_v24 = vmax.f32 %v14565_v53, %v754_v11 }
 0x2b1   :  { %14557 = vst [vmem:[#allocation24_spill] sm:$0xff] %v9076_v6  ;;  %6062 = vmatmul.msk.f32.gmra.mxu1 %vm1954_vm3, %v9076_v6  ;;  %6144 = vmatmul.msk.f32.gmra.mxu3 %vm1954_vm3, %v9076_v6 }
 0x2b3   :  { %1793 = vrot.lane.b32.xlu2 %v1649_v30, %s7262_s29 }
 0x2b4   :  { %1797 = vrot.lane.b32.xlu1 %v1651_v62, %s7262_s29  ;;  %v638_v62 = vpop.f32.mrf.mxu0 }
 0x2b5   :  { %v9090_v9 = vpop.permute.xlu2 %1406  ;;  %1795 = vrot.lane.b32.xlu0 %v1650_v38, %s7262_s29  ;;  %v1487_v38 = vsel %vm1448_vm0, %v1395_v56, %v9014_v14 }
 0x2b6   :  { %v9096_v60 = vpop.permute.xlu1 %1749 }
 0x2b7   :  { %14559 = vst [vmem:[#allocation7_spill] sm:$0xff] %v9096_v60  ;;  %v1399_v46 = vpop.permute.xlu0 %1398  ;;  %6017 = vmatmul.msk.f32.gmra.mxu0 %vm8858_vm2, %v9096_v60  ;;  %6095 = vmatmul.msk.f32.gmra.mxu2 %vm8858_vm2, %v9096_v60  ;;  %v9107_v44 = vsel %vm1841_vm1, %v9096_v60, %v1752_v61  ;;  %v14563_v61 = vld [vmem:[#allocation47_spill] sm:$0xff] }
 0x2b8   :  { %14560 = vst [vmem:[#allocation26_spill] sm:$0xff] %v9107_v44  ;;  %v1038_v25 = vmax.f32 %v14563_v61, %v632_v51  ;;  %v9130_v51 = vadd.f32 %v8115_v41, %v1067_v24  ;;  %v1488_v13 = vsel %vm1448_vm0, %v9014_v14, %v1399_v46 }
 0x2b9   :  { %6063 = vmatmul.msk.f32.gmra.mxu1 %vm1954_vm3, %v9107_v44  ;;  %6145 = vmatmul.msk.f32.gmra.mxu3 %vm1954_vm3, %v9107_v44  ;;  %v1600_v20 = vmax.f32 %v8579_v23, %v1488_v13 }
 0x2ba   :  { %v1160_v45 = vadd.f32 %v8372_v48, %v1038_v25 }
 0x2bb   :  { %1799 = vrot.lane.b32.xlu2 %v1652_v40, %s7262_s29  ;;  %v1656_v33 = vmax.f32 %v1600_v20, 0.0 }
 0x2bc   :  { %1803 = vrot.lane.b32.xlu1 %v1654_v18, %s7262_s29  ;;  %v1599_v47 = vmax.f32 %v1160_v45, %v1487_v38  ;;  %v641_v26 = vpop.f32.mrf.mxu0  ;;  %v2299_v38 = vld [vmem:[%s14255_s3 + $0x9e0] sm:$0xff]  ;;  %v2108_v45 = vld [vmem:[%s14255_s3 + $0x3e8] sm:$0xff] }
 0x2bd   :  { %v9115_v58 = vpop.permute.xlu2 %1757  ;;  %1801 = vrot.lane.b32.xlu0 %v1653_v54, %s7262_s29  ;;  %v14569_v54 = vld [vmem:[#allocation55_spill] sm:$0xff]  ;;  %2781 = vmatpush.msrb.mxu0 %v2299_v38 }
 0x2be   :  { %14562 = vst [vmem:[#allocation25_spill] sm:$0xff] %v9115_v58  ;;  %v1403_v63 = vpop.permute.xlu1 %1402  ;;  %v1655_v59 = vmax.f32 %v1599_v47, 0.0  ;;  %v1046_v11 = vmax.f32 %v14569_v54, %v638_v62  ;;  %v2363_v47 = vld [vmem:[%s14255_s3 + $0xbe0] sm:$0xff]  ;;  %3084 = vmatpush.msrb.mxu3 %v2108_v45 }
 0x2bf   :  { %v1401_v30 = vpop.permute.xlu0 %1400  ;;  %v1490_v46 = vsel %vm1448_vm0, %v1403_v63, %v9068_v32  ;;  %2882 = vmatpush.msrb.mxu1 %v2363_v47 }
 0x2c0   :  { %v1489_v8 = vsel %vm1448_vm0, %v1401_v30, %v1403_v63  ;;  %v1602_v61 = vmax.f32 %v8693_v29, %v1490_v46  ;;  %v1168_v5 = vadd.f32 %v8372_v48, %v1046_v11  ;;  %v757_v29 = vpop.f32.mrf.mxu1 }
 0x2c1   :  { %v1601_v56 = vmax.f32 %v1164_v39, %v1489_v8 }
 0x2c2   :  { %v1658_v63 = vmax.f32 %v1602_v61, 0.0 }
 0x2c3   :  { %1440 = vrot.lane.b32.xlu2 %v1191_v55, %s7261_s2  ;;  %v1657_v23 = vmax.f32 %v1601_v56, 0.0  ;;  %v14571_v56 = vld [vmem:[#allocation61_spill] sm:$0xff] }
 0x2c4   :  { %1438 = vrot.lane.b32.xlu1 %v1190_v43, %s7261_s2  ;;  %v14570_v43 = vld [vmem:[#allocation58_spill] sm:$0xff]  ;;  %v644_v13 = vpop.f32.mrf.mxu0 }
 0x2c5   :  { %v9136_v22 = vpop.permute.xlu2 %1414  ;;  %1436 = vrot.lane.b32.xlu0 %v9130_v51, %s7261_s2  ;;  %v1071_v8 = vmax.f32 %v14570_v43, %v757_v29 }
 0x2c6   :  { %v1756_v40 = vpop.permute.xlu1 %1755 }
 0x2c7   :  { %v9142_v18 = vpop.permute.xlu0 %1753 }
 0x2c8   :  { %14567 = vst [vmem:[#allocation27_spill] sm:$0xff] %v9142_v18  ;;  %6019 = vmatmul.msk.f32.gmra.mxu0 %vm8858_vm2, %v9142_v18  ;;  %6097 = vmatmul.msk.f32.gmra.mxu2 %vm8858_vm2, %v9142_v18  ;;  %v9152_v14 = vsel %vm1841_vm1, %v9142_v18, %v1756_v40  ;;  %v1050_v40 = vmax.f32 %v14571_v56, %v641_v26  ;;  %v2036_v56 = vld [vmem:[%s14255_s3 + $0x1a8] sm:$0xff] }
 0x2c9   :  { %14568 = vst [vmem:[#allocation8_spill] sm:$0xff] %v9152_v14  ;;  %6064 = vmatmul.msk.f32.gmra.mxu1 %vm1954_vm3, %v9152_v14  ;;  %6146 = vmatmul.msk.f32.gmra.mxu3 %vm1954_vm3, %v9152_v14 }
 0x2ca   :  { %v1172_v26 = vadd.f32 %v8372_v48, %v1050_v40 }
 0x2cb   :  { %1805 = vrot.lane.b32.xlu2 %v1655_v59, %s7262_s29  ;;  %v14572_v59 = vld [vmem:[#allocation59_spill] sm:$0xff] }
 0x2cc   :  { %1809 = vrot.lane.b32.xlu1 %v1657_v23, %s7262_s29  ;;  %v1072_v46 = vmax.f32 %v14572_v59, %v858_v2  ;;  %v14573_v23 = vld [vmem:[#allocation60_spill] sm:$0xff]  ;;  %v9224_v29 = vpop.f32.mrf.mxu0  ;;  %v2295_v2 = vld [vmem:[%s14255_s3 + $0x9c0] sm:$0xff] }
 0x2cd   :  { %v1764_v25 = vpop.permute.xlu2 %1763  ;;  %1807 = vrot.lane.b32.xlu0 %v1656_v33, %s7262_s29  ;;  %v9198_v33 = vadd.f32 %v8115_v41, %v1071_v8  ;;  %2782 = vmatpush.msrb.mxu0 %v2295_v2  ;;  %v14579_v8 = vld [vmem:[#allocation62_spill] sm:$0xff]  ;;  %v2096_v2 = vld [vmem:[%s14255_s3 + $0x388] sm:$0xff] }
 0x2ce   :  { %v1411_v32 = vpop.permute.xlu1 %1410  ;;  %v1194_v41 = vadd.f32 %v8132_v36, %v1072_v46 }
 0x2cf   :  { %v1409_v27 = vpop.permute.xlu0 %1408 }
 0x2d0   :  { %v1491_v53 = vsel %vm1448_vm0, %v9090_v9, %v1409_v27  ;;  %v1492_v24 = vsel %vm1448_vm0, %v1409_v27, %v1411_v32  ;;  %6021 = vmatmul.msk.f32.gmra.mxu0 %vm8858_vm2, %v9115_v58  ;;  %6099 = vmatmul.msk.f32.gmra.mxu2 %vm8858_vm2, %v9115_v58  ;;  %v2044_v9 = vld [vmem:[%s14255_s3 + $0x1e8] sm:$0xff] }
 0x2d1   :  { %v1603_v30 = vmax.f32 %v1168_v5, %v1491_v53  ;;  %v1604_v10 = vmax.f32 %v8770_v15, %v1492_v24  ;;  %v959_v15 = vpop.f32.mrf.mxu3  ;;  %2983 = vmatpush.msrb.mxu2 %v2044_v9  ;;  %v2040_v24 = vld [vmem:[%s14255_s3 + $0x1c8] sm:$0xff] }
 0x2d2   :  { %v1073_v54 = vmax.f32 %v14573_v23, %v959_v15  ;;  %v1054_v15 = vmax.f32 %v14579_v8, %v644_v13  ;;  %v2291_v13 = vld [vmem:[%s14255_s3 + $0x9a0] sm:$0xff] }
 0x2d3   :  { %1811 = vrot.lane.b32.xlu2 %v1658_v63, %s7262_s29  ;;  %v1659_v55 = vmax.f32 %v1603_v30, 0.0  ;;  %v1660_v62 = vmax.f32 %v1604_v10, 0.0  ;;  %2984 = vmatpush.msrb.mxu2 %v2040_v24  ;;  %v2351_v8 = vld [vmem:[%s14255_s3 + $0xb80] sm:$0xff] }
 0x2d4   :  { %v1195_v5 = vadd.f32 %v8129_v42, %v1073_v54  ;;  %v9266_v43 = vpop.f32.mrf.mxu0  ;;  %2783 = vmatpush.msrb.mxu0 %v2291_v13  ;;  %v2283_v13 = vld [vmem:[%s14255_s3 + $0x960] sm:$0xff] }
 0x2d5   :  { %v9187_v39 = vpop.permute.xlu2 %1422  ;;  %1815 = vrot.lane.b32.xlu1 %v1660_v62, %s7262_s29  ;;  %1813 = vrot.lane.b32.xlu0 %v1659_v55, %s7262_s29  ;;  %v2104_v55 = vld [vmem:[%s14255_s3 + $0x3c8] sm:$0xff] }
 0x2d6   :  { %v1413_v20 = vpop.permute.xlu1 %1412  ;;  %3085 = vmatpush.msrb.mxu3 %v2104_v55  ;;  %2985 = vmatpush.msrb.mxu2 %v2036_v56 }
 0x2d7   :  { %v1760_v11 = vpop.permute.xlu0 %1759  ;;  %v1493_v32 = vsel %vm1448_vm0, %v1413_v20, %v9136_v22  ;;  %v1176_v20 = vadd.f32 %v8372_v48, %v1054_v15  ;;  %v1058_v15 = vmax.f32 %v8158_v21, %v9224_v29  ;;  %v2028_v29 = vld [vmem:[%s14255_s3 + $0x168] sm:$0xff] }
 0x2d8   :  { %v9202_v61 = vsel %vm1841_vm1, %v9115_v58, %v1760_v11  ;;  %v1605_v27 = vmax.f32 %v1172_v26, %v1493_v32 }
 0x2d9   :  { %14574 = vst [vmem:[#allocation29_spill] sm:$0xff] %v9202_v61  ;;  %6065 = vmatmul.msk.f32.gmra.mxu1 %vm1954_vm3, %v9202_v61  ;;  %6147 = vmatmul.msk.f32.gmra.mxu3 %vm1954_vm3, %v9202_v61 }
 0x2da   :  { %v1661_v36 = vmax.f32 %v1605_v27, 0.0 }
 0x2db   :  { %1442 = vrot.lane.b32.xlu2 %v9198_v33, %s7261_s2 }
 0x2dc   :  { %v9296_v26 = vpop.f32.mrf.mxu0 }
 0x2dd   :  { %v9215_v63 = vpop.permute.xlu2 %1769  ;;  %1446 = vrot.lane.b32.xlu1 %v1195_v5, %s7261_s2  ;;  %1444 = vrot.lane.b32.xlu0 %v1194_v41, %s7261_s2 }
 0x2de   :  { %14575 = vst [vmem:[#allocation30_spill] sm:$0xff] %v9215_v63  ;;  %v9219_v53 = vpop.permute.xlu1 %1761 }
 0x2df   :  { %v1417_v30 = vpop.permute.xlu0 %1416  ;;  %6023 = vmatmul.msk.f32.gmra.mxu0 %vm8858_vm2, %v9219_v53  ;;  %6101 = vmatmul.msk.f32.gmra.mxu2 %vm8858_vm2, %v9219_v53  ;;  %v9234_v42 = vsel %vm1841_vm1, %v9219_v53, %v1764_v25 }
 0x2e0   :  { %14576 = vst [vmem:[#allocation33_spill] sm:$0xff] %v9234_v42  ;;  %v1494_v10 = vsel %vm1448_vm0, %v9136_v22, %v1417_v30  ;;  %v2359_v22 = vld [vmem:[%s14255_s3 + $0xbc0] sm:$0xff] }
 0x2e1   :  { %v1606_v62 = vmax.f32 %v8804_v12, %v1494_v10  ;;  %6066 = vmatmul.msk.f32.gmra.mxu1 %vm1954_vm3, %v9234_v42  ;;  %6148 = vmatmul.msk.f32.gmra.mxu3 %vm1954_vm3, %v9234_v42  ;;  %v2287_v10 = vld [vmem:[%s14255_s3 + $0x980] sm:$0xff] }
 0x2e2   :  { %2883 = vmatpush.msrb.mxu1 %v2359_v22  ;;  %2784 = vmatpush.msrb.mxu0 %v2287_v10 }
 0x2e3   :  { %1817 = vrot.lane.b32.xlu2 %v1661_v36, %s7262_s29  ;;  %v1662_v25 = vmax.f32 %v1606_v62, 0.0  ;;  %v2032_v36 = vld [vmem:[%s14255_s3 + $0x188] sm:$0xff] }
 0x2e4   :  { %2986 = vmatpush.msrb.mxu2 %v2032_v36  ;;  %v9327_v55 = vpop.f32.mrf.mxu0  ;;  %2785 = vmatpush.msrb.mxu0 %v2283_v13 }
 0x2e5   :  { %v1776_v9 = vpop.permute.xlu2 %1775  ;;  %1819 = vrot.lane.b32.xlu0 %v1662_v25, %s7262_s29 }
 0x2e6   :  { %v1768_v12 = vpop.permute.xlu1 %1767  ;;  %2987 = vmatpush.msrb.mxu2 %v2028_v29 }
 0x2e7   :  { %v9254_v38 = vpop.permute.xlu0 %1765 }
 0x2e8   :  { %14577 = vst [vmem:[#allocation31_spill] sm:$0xff] %v9254_v38  ;;  %6025 = vmatmul.msk.f32.gmra.mxu0 %vm8858_vm2, %v9254_v38  ;;  %6103 = vmatmul.msk.f32.gmra.mxu2 %vm8858_vm2, %v9254_v38  ;;  %v9264_v45 = vsel %vm1841_vm1, %v9254_v38, %v1768_v12 }
 0x2e9   :  { %14578 = vst [vmem:[#allocation9_spill] sm:$0xff] %v9264_v45  ;;  %6067 = vmatmul.msk.f32.gmra.mxu1 %vm1954_vm3, %v9264_v45  ;;  %6149 = vmatmul.msk.f32.gmra.mxu3 %vm1954_vm3, %v9264_v45 }
 0x2ec   :  { %v9350_v56 = vpop.f32.mrf.mxu0 }
 0x2ed   :  { %v1425_v47 = vpop.permute.xlu2 %1424  ;;  %14585 = vst [vmem:[#allocation39_spill] sm:$0xff] %v9350_v56 }
 0x2ee   :  { %v1421_v40 = vpop.permute.xlu1 %1420 }
 0x2ef   :  { %v1496_v59 = vsel %vm1448_vm0, %v1421_v40, %v9187_v39  ;;  %v1419_v46 = vpop.permute.xlu0 %1418  ;;  %v2100_v39 = vld [vmem:[%s14255_s3 + $0x3a8] sm:$0xff] }
 0x2f0   :  { %v1608_v23 = vmax.f32 %v8894_v52, %v1496_v59  ;;  %v1495_v54 = vsel %vm1448_vm0, %v1419_v46, %v1421_v40  ;;  %6027 = vmatmul.msk.f32.gmra.mxu0 %vm8858_vm2, %v9215_v63  ;;  %6105 = vmatmul.msk.f32.gmra.mxu2 %vm8858_vm2, %v9215_v63  ;;  %v2355_v52 = vld [vmem:[%s14255_s3 + $0xba0] sm:$0xff] }
 0x2f1   :  { %v1607_v11 = vmax.f32 %v1176_v20, %v1495_v54  ;;  %3086 = vmatpush.msrb.mxu3 %v2100_v39  ;;  %2884 = vmatpush.msrb.mxu1 %v2355_v52  ;;  %v2092_v39 = vld [vmem:[%s14255_s3 + $0x368] sm:$0xff] }
 0x2f2   :  { %v1664_v32 = vmax.f32 %v1608_v23, 0.0 }
 0x2f3   :  { %v1663_v41 = vmax.f32 %v1607_v11, 0.0  ;;  %3087 = vmatpush.msrb.mxu3 %v2096_v2  ;;  %2885 = vmatpush.msrb.mxu1 %v2351_v8 }
 0x2f4   :  { %1823 = vrot.lane.b32.xlu2 %v1664_v32, %s7262_s29 }
 0x2f5   :  { %v9298_v5 = vpop.permute.xlu2 %1781  ;;  %1821 = vrot.lane.b32.xlu1 %v1663_v41, %s7262_s29  ;;  %3088 = vmatpush.msrb.mxu3 %v2092_v39 }
 0x2f6   :  { %14580 = vst [vmem:[#allocation34_spill] sm:$0xff] %v9298_v5  ;;  %v9302_v27 = vpop.permute.xlu1 %1773 }
 0x2f7   :  { %14581 = vst [vmem:[#allocation35_spill] sm:$0xff] %v9302_v27  ;;  %v1772_v24 = vpop.permute.xlu0 %1771  ;;  %v9339_v12 = vsel %vm1841_vm1, %v9302_v27, %v1776_v9  ;;  %v1180_v9 = vadd.f32 %v8372_v48, %v1058_v15  ;;  %v2024_v15 = vld [vmem:[%s14255_s3 + $0x148] sm:$0xff] }
 0x2f8   :  { %v9306_v30 = vsel %vm1841_vm1, %v9215_v63, %v1772_v24  ;;  %6029 = vmatmul.msk.f32.gmra.mxu0 %vm8858_vm2, %v9302_v27  ;;  %6107 = vmatmul.msk.f32.gmra.mxu2 %vm8858_vm2, %v9302_v27  ;;  %14584 = vst [vmem:[#allocation37_spill] sm:$0xff] %v9339_v12  ;;  %v9386_v24 = vpop.f32.mrf.mxu0 }
 0x2f9   :  { %14582 = vst [vmem:[#allocation10_spill] sm:$0xff] %v9306_v30  ;;  %6068 = vmatmul.msk.f32.gmra.mxu1 %vm1954_vm3, %v9306_v30  ;;  %6150 = vmatmul.msk.f32.gmra.mxu3 %vm1954_vm3, %v9306_v30 }
 0x2fa   :  { %14588 = vst [vmem:[#allocation41_spill] sm:$0xff] %v9386_v24  ;;  %2988 = vmatpush.msrb.mxu2 %v2024_v15 }
 0x2fd   :  { %v1788_v62 = vpop.permute.xlu2 %1787 }
 0x2fe   :  { %v1780_v22 = vpop.permute.xlu1 %1779 }
 0x2ff   :  { %v9329_v25 = vpop.permute.xlu0 %1777 }
 0x300   :  { %14583 = vst [vmem:[#allocation38_spill] sm:$0xff] %v9329_v25  ;;  %6031 = vmatmul.msk.f32.gmra.mxu0 %vm8858_vm2, %v9329_v25  ;;  %6109 = vmatmul.msk.f32.gmra.mxu2 %vm8858_vm2, %v9329_v25  ;;  %v9363_v21 = vsel %vm1841_vm1, %v9329_v25, %v1780_v22 }
 0x301   :  { %6069 = vmatmul.msk.f32.gmra.mxu1 %vm1954_vm3, %v9339_v12  ;;  %6151 = vmatmul.msk.f32.gmra.mxu3 %vm1954_vm3, %v9339_v12  ;;  %14586 = vst [vmem:[#allocation11_spill] sm:$0xff] %v9363_v21 }
 0x305   :  { %v1433_v59 = vpop.permute.xlu2 %1432 }
 0x306   :  { %v1429_v40 = vpop.permute.xlu1 %1428 }
 0x307   :  { %v1427_v20 = vpop.permute.xlu0 %1426 }
 0x308   :  { %v1497_v46 = vsel %vm1448_vm0, %v1425_v47, %v1427_v20  ;;  %v1498_v23 = vsel %vm1448_vm0, %v1427_v20, %v1429_v40  ;;  %6033 = vmatmul.msk.f32.gmra.mxu0 %vm8858_vm2, %v9298_v5  ;;  %6111 = vmatmul.msk.f32.gmra.mxu2 %vm8858_vm2, %v9298_v5  ;;  %v1062_v40 = vmax.f32 %v8178_v28, %v9266_v43  ;;  %v9427_v20 = vpop.f32.mrf.mxu0 }
 0x309   :  { %v1609_v54 = vmax.f32 %v1180_v9, %v1497_v46  ;;  %v1610_v47 = vmax.f32 %v8975_v0, %v1498_v23  ;;  %6070 = vmatmul.msk.f32.gmra.mxu1 %vm1954_vm3, %v9363_v21  ;;  %6152 = vmatmul.msk.f32.gmra.mxu3 %vm1954_vm3, %v9363_v21  ;;  %v2347_v0 = vld [vmem:[%s14255_s3 + $0xb60] sm:$0xff]  ;;  %v9425_v9 = vpop.f32.mrf.mxu1  ;;  %14592 = vst [vmem:[#allocation44_spill] sm:$0xff] %v9427_v20  ;;  %v2088_v46 = vld [vmem:[%s14255_s3 + $0x348] sm:$0xff] }
 0x30a   :  { %2886 = vmatpush.msrb.mxu1 %v2347_v0  ;;  %14591 = vst [vmem:[#allocation13_spill] sm:$0xff] %v9425_v9  ;;  %v2343_v23 = vld [vmem:[%s14255_s3 + $0xb40] sm:$0xff]  ;;  %3089 = vmatpush.msrb.mxu3 %v2088_v46  ;;  %v1184_v28 = vadd.f32 %v8372_v48, %v1062_v40 }
 0x30b   :  { %v1665_v52 = vmax.f32 %v1609_v54, 0.0  ;;  %v1666_v11 = vmax.f32 %v1610_v47, 0.0  ;;  %v2263_v9 = vld [vmem:[%s14255_s3 + $0x8c0] sm:$0xff] }
 0x30c   :  { %2887 = vmatpush.msrb.mxu1 %v2343_v23  ;;  %v2275_v23 = vld [vmem:[%s14255_s3 + $0x920] sm:$0xff] }
 0x30d   :  { %1827 = vrot.lane.b32.xlu1 %v1666_v11, %s7262_s29  ;;  %1825 = vrot.lane.b32.xlu0 %v1665_v52, %s7262_s29  ;;  %v9402_v10 = vpop.permute.xlu2 %1793 }
 0x30e   :  { %v9384_v32 = vpop.permute.xlu1 %1785 }
 0x30f   :  { %14587 = vst [vmem:[#allocation40_spill] sm:$0xff] %v9384_v32  ;;  %v1784_v41 = vpop.permute.xlu0 %1783  ;;  %v9414_v8 = vsel %vm1841_vm1, %v9384_v32, %v1788_v62  ;;  %v2279_v62 = vld [vmem:[%s14255_s3 + $0x940] sm:$0xff] }
 0x310   :  { %v9390_v36 = vsel %vm1841_vm1, %v9298_v5, %v1784_v41  ;;  %6035 = vmatmul.msk.f32.gmra.mxu0 %vm8858_vm2, %v9384_v32  ;;  %6113 = vmatmul.msk.f32.gmra.mxu2 %vm8858_vm2, %v9384_v32  ;;  %14590 = vst [vmem:[#allocation45_spill] sm:$0xff] %v9414_v8  ;;  %v9461_v40 = vpop.f32.mrf.mxu0 }
 0x311   :  { %14589 = vst [vmem:[#allocation12_spill] sm:$0xff] %v9390_v36  ;;  %6071 = vmatmul.msk.f32.gmra.mxu1 %vm1954_vm3, %v9390_v36  ;;  %6153 = vmatmul.msk.f32.gmra.mxu3 %vm1954_vm3, %v9390_v36  ;;  %v9459_v15 = vpop.f32.mrf.mxu1 }
 0x312   :  { %2786 = vmatpush.msrb.mxu0 %v2279_v62  ;;  %14594 = vst [vmem:[#allocation14_spill] sm:$0xff] %v9459_v15 }
 0x313   :  { %14595 = vst [vmem:[#allocation15_spill] sm:$0xff] %v9461_v40 }
 0x314   :  { %2787 = vmatpush.msrb.mxu0 %v2275_v23  ;;  %v2080_v23 = vld [vmem:[%s14255_s3 + $0x308] sm:$0xff] }
 0x315   :  { %v1800_v29 = vpop.permute.xlu2 %1799 }
 0x316   :  { %v1792_v2 = vpop.permute.xlu1 %1791 }
 0x317   :  { %v9404_v22 = vpop.permute.xlu0 %1789 }
 0x318   :  { %6037 = vmatmul.msk.f32.gmra.mxu0 %vm8858_vm2, %v9404_v22  ;;  %6115 = vmatmul.msk.f32.gmra.mxu2 %vm8858_vm2, %v9404_v22  ;;  %v9449_v52 = vsel %vm1841_vm1, %v9404_v22, %v1792_v2 }
 0x319   :  { %6072 = vmatmul.msk.f32.gmra.mxu1 %vm1954_vm3, %v9414_v8  ;;  %6154 = vmatmul.msk.f32.gmra.mxu3 %vm1954_vm3, %v9414_v8  ;;  %14593 = vst [vmem:[#allocation43_spill] sm:$0xff] %v9449_v52 }
 0x31e   :  { %v1431_v43 = vpop.permute.xlu1 %1430 }
 0x31f   :  { %v1499_v54 = vsel %vm1448_vm0, %v1431_v43, %v1433_v59  ;;  %v1435_v47 = vpop.permute.xlu0 %1434  ;;  %v2339_v43 = vld [vmem:[%s14255_s3 + $0xb20] sm:$0xff] }
 0x320   :  { %v1611_v13 = vmax.f32 %v1184_v28, %v1499_v54  ;;  %v1500_v39 = vsel %vm1448_vm0, %v1433_v59, %v1435_v47  ;;  %6039 = vmatmul.msk.f32.gmra.mxu0 %vm8858_vm2, %v9402_v10  ;;  %6117 = vmatmul.msk.f32.gmra.mxu2 %vm8858_vm2, %v9402_v10  ;;  %v2020_v59 = vld [vmem:[%s14255_s3 + $0x128] sm:$0xff]  ;;  %v9490_v54 = vpop.f32.mrf.mxu0  ;;  %v9492_v47 = vpop.f32.mrf.mxu1 }
 0x321   :  { %v1612_v11 = vmax.f32 %v9058_v31, %v1500_v39  ;;  %6073 = vmatmul.msk.f32.gmra.mxu1 %vm1954_vm3, %v9449_v52  ;;  %6155 = vmatmul.msk.f32.gmra.mxu3 %vm1954_vm3, %v9449_v52  ;;  %v1441_v31 = vpop.permute.xlu2 %1440  ;;  %v2084_v28 = vld [vmem:[%s14255_s3 + $0x328] sm:$0xff]  ;;  %14598 = vst [vmem:[#allocation49_spill] sm:$0xff] %v9490_v54 }
 0x322   :  { %v1667_v0 = vmax.f32 %v1611_v13, 0.0  ;;  %2989 = vmatpush.msrb.mxu2 %v2020_v59  ;;  %3090 = vmatpush.msrb.mxu3 %v2084_v28  ;;  %14599 = vst [vmem:[#allocation48_spill] sm:$0xff] %v9492_v47 }
 0x323   :  { %v1668_v41 = vmax.f32 %v1612_v11, 0.0  ;;  %2888 = vmatpush.msrb.mxu1 %v2339_v43 }
 0x324   :  { %1829 = vrot.lane.b32.xlu2 %v1667_v0, %s7262_s29  ;;  %v1066_v0 = vmax.f32 %v8198_v1, %v9296_v26  ;;  %3091 = vmatpush.msrb.mxu3 %v2080_v23 }
 0x325   :  { %1831 = vrot.lane.b32.xlu0 %v1668_v41, %s7262_s29  ;;  %v2016_v41 = vld [vmem:[%s14255_s3 + $0x108] sm:$0xff] }
 0x326   :  { %v9465_v2 = vpop.permute.xlu1 %1797  ;;  %2990 = vmatpush.msrb.mxu2 %v2016_v41  ;;  %v1188_v26 = vadd.f32 %v8372_v48, %v1066_v0  ;;  %v2335_v41 = vld [vmem:[%s14255_s3 + $0xb00] sm:$0xff] }
 0x327   :  { %14596 = vst [vmem:[#allocation46_spill] sm:$0xff] %v9465_v2  ;;  %v1796_v62 = vpop.permute.xlu0 %1795  ;;  %v9506_v59 = vsel %vm1841_vm1, %v9465_v2, %v1800_v29  ;;  %v2271_v29 = vld [vmem:[%s14255_s3 + $0x900] sm:$0xff]  ;;  %2889 = vmatpush.msrb.mxu1 %v2335_v41  ;;  %v2076_v41 = vld [vmem:[%s14255_s3 + $0x2e8] sm:$0xff] }
 0x328   :  { %v9469_v46 = vsel %vm1841_vm1, %v9402_v10, %v1796_v62  ;;  %6041 = vmatmul.msk.f32.gmra.mxu0 %vm8858_vm2, %v9465_v2  ;;  %6119 = vmatmul.msk.f32.gmra.mxu2 %vm8858_vm2, %v9465_v2  ;;  %14602 = vst [vmem:[#allocation52_spill] sm:$0xff] %v9506_v59  ;;  %v9517_v62 = vpop.f32.mrf.mxu0  ;;  %v9525_v28 = vpop.f32.mrf.mxu1 }
 0x329   :  { %14597 = vst [vmem:[#allocation17_spill] sm:$0xff] %v9469_v46  ;;  %6074 = vmatmul.msk.f32.gmra.mxu1 %vm1954_vm3, %v9469_v46  ;;  %6156 = vmatmul.msk.f32.gmra.mxu3 %vm1954_vm3, %v9469_v46  ;;  %v9496_v11 = vpop.permute.xlu2 %1805 }
 0x32a   :  { %14601 = vst [vmem:[#allocation28_spill] sm:$0xff] %v9496_v11  ;;  %2788 = vmatpush.msrb.mxu0 %v2271_v29  ;;  %3092 = vmatpush.msrb.mxu3 %v2076_v41  ;;  %v9604_v41 = vpop.f32.mrf.mxu2 }
 0x32b   :  { %14603 = vst [vmem:[#allocation32_spill] sm:$0xff] %v9517_v62 }
 0x32c   :  { %14604 = vst [vmem:[#allocation50_spill] sm:$0xff] %v9525_v28 }
 0x32d   :  { %14613 = vst [vmem:[#allocation55_spill] sm:$0xff] %v9604_v41 }
 0x32e   :  { %v1804_v13 = vpop.permute.xlu1 %1803 }
 0x32f   :  { %v9494_v39 = vpop.permute.xlu0 %1801 }
 0x330   :  { %14600 = vst [vmem:[#allocation23_spill] sm:$0xff] %v9494_v39  ;;  %6043 = vmatmul.msk.f32.gmra.mxu0 %vm8858_vm2, %v9494_v39  ;;  %6121 = vmatmul.msk.f32.gmra.mxu2 %vm8858_vm2, %v9494_v39  ;;  %v9550_v23 = vpop.f32.mrf.mxu0 }
 0x331   :  { %6075 = vmatmul.msk.f32.gmra.mxu1 %vm1954_vm3, %v9506_v59  ;;  %6157 = vmatmul.msk.f32.gmra.mxu3 %vm1954_vm3, %v9506_v59  ;;  %14606 = vst [vmem:[#allocation36_spill] sm:$0xff] %v9550_v23 }
 0x336   :  { %v1439_v1 = vpop.permute.xlu1 %1438 }
 0x337   :  { %v1502_v43 = vsel %vm1448_vm0, %v1439_v1, %v1441_v31  ;;  %v1437_v16 = vpop.permute.xlu0 %1436  ;;  %v9542_v31 = vsel %vm1841_vm1, %v9494_v39, %v1804_v13 }
 0x338   :  { %v1614_v15 = vmax.f32 %v9130_v51, %v1502_v43  ;;  %v1501_v40 = vsel %vm1448_vm0, %v1437_v16, %v1439_v1  ;;  %6045 = vmatmul.msk.f32.gmra.mxu0 %vm8858_vm2, %v9496_v11  ;;  %6123 = vmatmul.msk.f32.gmra.mxu2 %vm8858_vm2, %v9496_v11  ;;  %14605 = vst [vmem:[#allocation53_spill] sm:$0xff] %v9542_v31  ;;  %v1812_v16 = vpop.permute.xlu2 %1811 }
 0x339   :  { %v1613_v0 = vmax.f32 %v1188_v26, %v1501_v40  ;;  %6076 = vmatmul.msk.f32.gmra.mxu1 %vm1954_vm3, %v9542_v31  ;;  %6158 = vmatmul.msk.f32.gmra.mxu3 %vm1954_vm3, %v9542_v31  ;;  %v2012_v40 = vld [vmem:[%s14255_s3 + $0xe8] sm:$0xff]  ;;  %v2267_v26 = vld [vmem:[%s14255_s3 + $0x8e0] sm:$0xff] }
 0x33a   :  { %v1670_v51 = vmax.f32 %v1614_v15, 0.0  ;;  %v9560_v15 = vpop.f32.mrf.mxu1  ;;  %2991 = vmatpush.msrb.mxu2 %v2012_v40  ;;  %2789 = vmatpush.msrb.mxu0 %v2267_v26  ;;  %v1070_v26 = vmax.f32 %v8219_v19, %v9327_v55  ;;  %v2072_v19 = vld [vmem:[%s14255_s3 + $0x2c8] sm:$0xff]  ;;  %v2327_v55 = vld [vmem:[%s14255_s3 + $0xac0] sm:$0xff] }
 0x33b   :  { %v1669_v29 = vmax.f32 %v1613_v0, 0.0  ;;  %14608 = vst [vmem:[#allocation57_spill] sm:$0xff] %v9560_v15  ;;  %3093 = vmatpush.msrb.mxu3 %v2072_v19  ;;  %v2004_v19 = vld [vmem:[%s14255_s3 + $0xa8] sm:$0xff] }
 0x33c   :  { %1835 = vrot.lane.b32.xlu2 %v1670_v51, %s7262_s29  ;;  %v2331_v51 = vld [vmem:[%s14255_s3 + $0xae0] sm:$0xff]  ;;  %v1192_v20 = vadd.f32 %v8372_v48, %v1070_v26  ;;  %2790 = vmatpush.msrb.mxu0 %v2263_v9 }
 0x33d   :  { %1833 = vrot.lane.b32.xlu1 %v1669_v29, %s7262_s29  ;;  %v9582_v29 = vpop.f32.mrf.mxu0  ;;  %2890 = vmatpush.msrb.mxu1 %v2331_v51 }
 0x33e   :  { %v9552_v1 = vpop.permute.xlu1 %1809  ;;  %14610 = vst [vmem:[#allocation56_spill] sm:$0xff] %v9582_v29 }
 0x33f   :  { %14607 = vst [vmem:[#allocation42_spill] sm:$0xff] %v9552_v1  ;;  %v1808_v13 = vpop.permute.xlu0 %1807  ;;  %v9596_v40 = vsel %vm1841_vm1, %v9552_v1, %v1812_v16  ;;  %v2008_v16 = vld [vmem:[%s14255_s3 + $0xc8] sm:$0xff]  ;;  %2891 = vmatpush.msrb.mxu1 %v2327_v55  ;;  %v2259_v55 = vld [vmem:[%s14255_s3 + $0x8a0] sm:$0xff] }
 0x340   :  { %v9564_v43 = vsel %vm1841_vm1, %v9496_v11, %v1808_v13  ;;  %6047 = vmatmul.msk.f32.gmra.mxu0 %vm8858_vm2, %v9552_v1  ;;  %6125 = vmatmul.msk.f32.gmra.mxu2 %vm8858_vm2, %v9552_v1  ;;  %v1443_v0 = vpop.permute.xlu2 %1442  ;;  %14612 = vst [vmem:[#allocation51_spill] sm:$0xff] %v9596_v40 }
 0x341   :  { %14609 = vst [vmem:[#allocation47_spill] sm:$0xff] %v9564_v43  ;;  %6077 = vmatmul.msk.f32.gmra.mxu1 %vm1954_vm3, %v9564_v43  ;;  %6159 = vmatmul.msk.f32.gmra.mxu3 %vm1954_vm3, %v9564_v43 }
 0x342   :  { %v9586_v24 = vpop.f32.mrf.mxu1  ;;  %2992 = vmatpush.msrb.mxu2 %v2008_v16  ;;  %2791 = vmatpush.msrb.mxu0 %v2259_v55 }
 0x343   :  { %14611 = vst [vmem:[#allocation54_spill] sm:$0xff] %v9586_v24 }
 0x344   :  { %2993 = vmatpush.msrb.mxu2 %v2004_v19 }
 0x345   :  { %v9608_v47 = vpop.f32.mrf.mxu0 }
 0x346   :  { %14614 = vst [vmem:[#allocation58_spill] sm:$0xff] %v9608_v47 }
 0x347   :  { %v1816_v13 = vpop.permute.xlu1 %1815  ;;  %v9584_v28 = vpop.permute.xlu0 %1813 }
 0x348   :  { %6049 = vmatmul.msk.f32.gmra.mxu0 %vm8858_vm2, %v9584_v28  ;;  %6127 = vmatmul.msk.f32.gmra.mxu2 %vm8858_vm2, %v9584_v28  ;;  %v9606_v51 = vpop.permute.xlu2 %1817  ;;  %v9635_v48 = vsel %vm1841_vm1, %v9584_v28, %v1816_v13 }
 0x349   :  { %6078 = vmatmul.msk.f32.gmra.mxu1 %vm1954_vm3, %v9596_v40  ;;  %6160 = vmatmul.msk.f32.gmra.mxu3 %vm1954_vm3, %v9596_v40  ;;  %14616 = vst [vmem:[#allocation59_spill] sm:$0xff] %v9635_v48 }
 0x34a   :  { %v9623_v41 = vpop.f32.mrf.mxu1 }
 0x34b   :  { %14615 = vst [vmem:[#allocation61_spill] sm:$0xff] %v9623_v41 }
 0x34f   :  { %v1447_v56 = vpop.permute.xlu1 %1446  ;;  %v1445_v29 = vpop.permute.xlu0 %1444 }
 0x350   :  { %v1503_v47 = vsel %vm1448_vm0, %v1443_v0, %v1445_v29  ;;  %v1504_v24 = vsel %vm1448_vm0, %v1445_v29, %v1447_v56  ;;  %6051 = vmatmul.msk.f32.gmra.mxu0 %vm8858_vm2, %v9606_v51  ;;  %6129 = vmatmul.msk.f32.gmra.mxu2 %vm8858_vm2, %v9606_v51  ;;  %v9642_v29 = vpop.f32.mrf.mxu3 }
 0x351   :  { %v1615_v9 = vmax.f32 %v1192_v20, %v1503_v47  ;;  %v1616_v26 = vmax.f32 %v9198_v33, %v1504_v24  ;;  %6079 = vmatmul.msk.f32.gmra.mxu1 %vm1954_vm3, %v9635_v48  ;;  %6161 = vmatmul.msk.f32.gmra.mxu3 %vm1954_vm3, %v9635_v48  ;;  %14617 = vst [vmem:[#allocation60_spill] sm:$0xff] %v9642_v29  ;;  %v9646_v20 = vpop.f32.mrf.mxu2  ;;  %v9648_v33 = vpop.f32.mrf.mxu0  ;;  %v2255_v29 = vld [vmem:[%s14255_s3 + $0x880] sm:$0xff] }
 0x352   :  { %14618 = vst [vmem:[#allocation62_spill] sm:$0xff] %v9646_v20  ;;  %v9658_v47 = vpop.f32.mrf.mxu1  ;;  %2792 = vmatpush.msrb.mxu0 %v2255_v29  ;;  %v2319_v29 = vld [vmem:[%s14255_s3 + $0xa80] sm:$0xff] }
 0x353   :  { %v1671_v56 = vmax.f32 %v1615_v9, 0.0  ;;  %v1672_v0 = vmax.f32 %v1616_v26, 0.0  ;;  %14619 = vst [vmem:[#allocation63_spill] sm:$0xff] %v9648_v33  ;;  %v2068_v9 = vld [vmem:[%s14255_s3 + $0x2a8] sm:$0xff] }
 0x354   :  { %14621 = vst [vmem:[#allocation65_spill] sm:$0xff] %v9658_v47  ;;  %3094 = vmatpush.msrb.mxu3 %v2068_v9  ;;  %v2000_v9 = vld [vmem:[%s14255_s3 + $0x88] sm:$0xff] }
 0x355   :  { %1839 = vrot.lane.b32.xlu1 %v1672_v0, %s7262_s29  ;;  %1837 = vrot.lane.b32.xlu0 %v1671_v56, %s7262_s29  ;;  %v2323_v0 = vld [vmem:[%s14255_s3 + $0xaa0] sm:$0xff]  ;;  %v2064_v33 = vld [vmem:[%s14255_s3 + $0x288] sm:$0xff] }
 0x356   :  { %2892 = vmatpush.msrb.mxu1 %v2323_v0  ;;  %v2251_v0 = vld [vmem:[%s14255_s3 + $0x860] sm:$0xff]  ;;  %2994 = vmatpush.msrb.mxu2 %v2000_v9 }
 0x357   :  { %v1820_v13 = vpop.permute.xlu0 %1819  ;;  %2793 = vmatpush.msrb.mxu0 %v2251_v0  ;;  %3095 = vmatpush.msrb.mxu3 %v2064_v33  ;;  %v2239_v9 = vld [vmem:[%s14255_s3 + $0x800] sm:$0xff] }
 0x358   :  { %v9652_v24 = vsel %vm1841_vm1, %v9606_v51, %v1820_v13  ;;  %v9660_v16 = vpop.f32.mrf.mxu3  ;;  %2893 = vmatpush.msrb.mxu1 %v2319_v29 }
 0x359   :  { %14620 = vst [vmem:[#allocation64_spill] sm:$0xff] %v9652_v24  ;;  %6080 = vmatmul.msk.f32.gmra.mxu1 %vm1954_vm3, %v9652_v24  ;;  %6162 = vmatmul.msk.f32.gmra.mxu3 %vm1954_vm3, %v9652_v24  ;;  %v9671_v26 = vpop.f32.mrf.mxu2 }
 0x35a   :  { %14622 = vst [vmem:[#allocation66_spill] sm:$0xff] %v9660_v16  ;;  %v9678_v13 = vpop.f32.mrf.mxu1  ;;  %v1824_v16 = vpop.permute.xlu2 %1823 }
 0x35b   :  { %14623 = vst [vmem:[#allocation67_spill] sm:$0xff] %v9671_v26 }
 0x35c   :  { %v9673_v56 = vpop.f32.mrf.mxu0  ;;  %14625 = vst [vmem:[#allocation69_spill] sm:$0xff] %v9678_v13 }
 0x35d   :  { %14624 = vst [vmem:[#allocation68_spill] sm:$0xff] %v9673_v56  ;;  %v2315_v56 = vld [vmem:[%s14255_s3 + $0xa60] sm:$0xff] }
 0x35e   :  { %2894 = vmatpush.msrb.mxu1 %v2315_v56 }
 0x360   :  { %v9680_v19 = vpop.f32.mrf.mxu3 }
 0x361   :  { %14626 = vst [vmem:[#allocation70_spill] sm:$0xff] %v9680_v19  ;;  %v9687_v26 = vpop.f32.mrf.mxu2 }
 0x362   :  { %14628 = vst [vmem:[#allocation72_spill] sm:$0xff] %v9687_v26  ;;  %v9709_v26 = vpop.f32.mrf.mxu1 }
 0x363   :  { %14630 = vst [vmem:[#allocation74_spill] sm:$0xff] %v9709_v26  ;;  %v2243_v26 = vld [vmem:[%s14255_s3 + $0x820] sm:$0xff] }
 0x365   :  { %v9711_v19 = vpop.f32.mrf.mxu0 }
 0x366   :  { %14631 = vst [vmem:[#allocation75_spill] sm:$0xff] %v9711_v19  ;;  %v1996_v19 = vld [vmem:[%s14255_s3 + $0x68] sm:$0xff] }
 0x367   :  { %v9682_v20 = vpop.permute.xlu1 %1821  ;;  %2995 = vmatpush.msrb.mxu2 %v1996_v19 }
 0x368   :  { %14627 = vst [vmem:[#allocation71_spill] sm:$0xff] %v9682_v20  ;;  %6053 = vmatmul.msk.f32.gmra.mxu0 %vm8858_vm2, %v9682_v20  ;;  %6131 = vmatmul.msk.f32.gmra.mxu2 %vm8858_vm2, %v9682_v20  ;;  %v9697_v55 = vsel %vm1841_vm1, %v9682_v20, %v1824_v16  ;;  %v2247_v16 = vld [vmem:[%s14255_s3 + $0x840] sm:$0xff]  ;;  %v9719_v13 = vpop.f32.mrf.mxu3 }
 0x369   :  { %14629 = vst [vmem:[#allocation73_spill] sm:$0xff] %v9697_v55  ;;  %6081 = vmatmul.msk.f32.gmra.mxu1 %vm1954_vm3, %v9697_v55  ;;  %6163 = vmatmul.msk.f32.gmra.mxu3 %vm1954_vm3, %v9697_v55  ;;  %v9730_v0 = vpop.f32.mrf.mxu2 }
 0x36a   :  { %14632 = vst [vmem:[#allocation76_spill] sm:$0xff] %v9719_v13  ;;  %2794 = vmatpush.msrb.mxu0 %v2247_v16  ;;  %v9732_v13 = vpop.f32.mrf.mxu1 }
 0x36b   :  { %14633 = vst [vmem:[#allocation77_spill] sm:$0xff] %v9730_v0 }
 0x36c   :  { %2795 = vmatpush.msrb.mxu0 %v2243_v26  ;;  %14634 = vst [vmem:[#allocation78_spill] sm:$0xff] %v9732_v13  ;;  %v2060_v26 = vld [vmem:[%s14255_s3 + $0x268] sm:$0xff] }
 0x36d   :  { %v9734_v33 = vpop.f32.mrf.mxu0  ;;  %3096 = vmatpush.msrb.mxu3 %v2060_v26  ;;  %v2303_v26 = vld [vmem:[%s14255_s3 + $0xa00] sm:$0xff] }
 0x36e   :  { %2796 = vmatpush.msrb.mxu0 %v2239_v9  ;;  %14635 = vst [vmem:[#allocation79_spill] sm:$0xff] %v9734_v33  ;;  %v2311_v9 = vld [vmem:[%s14255_s3 + $0xa40] sm:$0xff] }
 0x36f   :  { %2895 = vmatpush.msrb.mxu1 %v2311_v9 }
 0x370   :  { %v9736_v16 = vpop.f32.mrf.mxu3 }
 0x371   :  { %14636 = vst [vmem:[#allocation80_spill] sm:$0xff] %v9736_v16  ;;  %v9747_v29 = vpop.f32.mrf.mxu2  ;;  %v2307_v16 = vld [vmem:[%s14255_s3 + $0xa20] sm:$0xff] }
 0x372   :  { %14637 = vst [vmem:[#allocation81_spill] sm:$0xff] %v9747_v29  ;;  %v9752_v33 = vpop.f32.mrf.mxu1  ;;  %2896 = vmatpush.msrb.mxu1 %v2307_v16  ;;  %v2056_v16 = vld [vmem:[%s14255_s3 + $0x248] sm:$0xff] }
 0x373   :  { %14638 = vst [vmem:[#allocation82_spill] sm:$0xff] %v9752_v33  ;;  %3097 = vmatpush.msrb.mxu3 %v2056_v16  ;;  %v2052_v16 = vld [vmem:[%s14255_s3 + $0x228] sm:$0xff] }
 0x374   :  { %2897 = vmatpush.msrb.mxu1 %v2303_v26 }
 0x375   :  { %v9754_v13 = vpop.f32.mrf.mxu0  ;;  %3098 = vmatpush.msrb.mxu3 %v2052_v16 }
 0x376   :  { %14639 = vst [vmem:[#allocation83_spill] sm:$0xff] %v9754_v13 }
 0x378   :  { %v9761_v0 = vpop.f32.mrf.mxu3 }
 0x379   :  { %14641 = vst [vmem:[#allocation85_spill] sm:$0xff] %v9761_v0  ;;  %v9780_v9 = vpop.f32.mrf.mxu2 }
 0x37a   :  { %14643 = vst [vmem:[#allocation87_spill] sm:$0xff] %v9780_v9  ;;  %v9782_v13 = vpop.f32.mrf.mxu1 }
 0x37b   :  { %14644 = vst [vmem:[#allocation88_spill] sm:$0xff] %v9782_v13 }
 0x37d   :  { %v9800_v26 = vpop.f32.mrf.mxu0 }
 0x37e   :  { %v9784_v33 = vpop.permute.xlu2 %1829  ;;  %14647 = vst [vmem:[#allocation91_spill] sm:$0xff] %v9800_v26  ;;  %v1988_v26 = vld [vmem:[%s14255_s3 + $0x28] sm:$0xff] }
 0x37f   :  { %v1828_v19 = vpop.permute.xlu1 %1827  ;;  %v9756_v47 = vpop.permute.xlu0 %1825  ;;  %14645 = vst [vmem:[#allocation89_spill] sm:$0xff] %v9784_v33 }
 0x380   :  { %14640 = vst [vmem:[#allocation84_spill] sm:$0xff] %v9756_v47  ;;  %6055 = vmatmul.msk.f32.gmra.mxu0 %vm8858_vm2, %v9756_v47  ;;  %6133 = vmatmul.msk.f32.gmra.mxu2 %vm8858_vm2, %v9756_v47  ;;  %v9771_v56 = vsel %vm1841_vm1, %v9756_v47, %v1828_v19  ;;  %v1992_v19 = vld [vmem:[%s14255_s3 + $0x48] sm:$0xff]  ;;  %v9789_v0 = vpop.f32.mrf.mxu3 }
 0x381   :  { %14642 = vst [vmem:[#allocation86_spill] sm:$0xff] %v9771_v56  ;;  %6082 = vmatmul.msk.f32.gmra.mxu1 %vm1954_vm3, %v9771_v56  ;;  %6164 = vmatmul.msk.f32.gmra.mxu3 %vm1954_vm3, %v9771_v56  ;;  %v9802_v13 = vpop.f32.mrf.mxu2 }
 0x382   :  { %14646 = vst [vmem:[#allocation90_spill] sm:$0xff] %v9789_v0  ;;  %2996 = vmatpush.msrb.mxu2 %v1992_v19  ;;  %v9806_v0 = vpop.f32.mrf.mxu1 }
 0x383   :  { %14648 = vst [vmem:[#allocation92_spill] sm:$0xff] %v9802_v13 }
 0x384   :  { %14650 = vst [vmem:[#allocation94_spill] sm:$0xff] %v9806_v0  ;;  %2997 = vmatpush.msrb.mxu2 %v1988_v26 }
 0x385   :  { %v9811_v9 = vpop.f32.mrf.mxu0 }
 0x386   :  { %14651 = vst [vmem:[#allocation95_spill] sm:$0xff] %v9811_v9 }
 0x388   :  { %6057 = vmatmul.msk.f32.gmra.mxu0 %vm8858_vm2, %v9784_v33  ;;  %6135 = vmatmul.msk.f32.gmra.mxu2 %vm8858_vm2, %v9784_v33  ;;  %v9804_v29 = vpop.f32.mrf.mxu3 }
 0x389   :  { %14649 = vst [vmem:[#allocation93_spill] sm:$0xff] %v9804_v29  ;;  %v9813_v62 = vpop.f32.mrf.mxu2 }
 0x38a   :  { %14652 = vst [vmem:[#allocation96_spill] sm:$0xff] %v9813_v62  ;;  %v9834_v9 = vpop.f32.mrf.mxu1 }
 0x38b   :  { %14655 = vst [vmem:[#allocation99_spill] sm:$0xff] %v9834_v9 }
 0x38d   :  { %v9836_v62 = vpop.f32.mrf.mxu0 }
 0x38e   :  { %14656 = vst [vmem:[#allocation100_spill] sm:$0xff] %v9836_v62  ;;  %v2048_v62 = vld [vmem:[%s14255_s3 + $0x208] sm:$0xff] }
 0x38f   :  { %3099 = vmatpush.msrb.mxu3 %v2048_v62 }
 0x390   :  { %6169 = vmatmul.msk.f32.vlgmr.msrb.gmra.mxu0 %vm8858_vm2, %v8955_v57  ;;  %v9832_v26 = vpop.f32.mrf.mxu3 }
 0x391   :  { %14654 = vst [vmem:[#allocation98_spill] sm:$0xff] %v9832_v26  ;;  %v9838_v29 = vpop.f32.mrf.mxu2 }
 0x392   :  { %14657 = vst [vmem:[#allocation101_spill] sm:$0xff] %v9838_v29  ;;  %v9850_v26 = vpop.f32.mrf.mxu1 }
 0x393   :  { %14659 = vst [vmem:[#allocation103_spill] sm:$0xff] %v9850_v26 }
 0x395   :  { %v9855_v9 = vpop.f32.mrf.mxu0 }
 0x396   :  { %14660 = vst [vmem:[#allocation104_spill] sm:$0xff] %v9855_v9  ;;  %v1836_v26 = vpop.permute.xlu2 %1835  ;;  %v2300_v9 = vld [vmem:[%s14255_s3 + $0x9e8] sm:$0xff] }
 0x397   :  { %v1832_v19 = vpop.permute.xlu0 %1831 }
 0x398   :  { %v9823_v0 = vsel %vm1841_vm1, %v9784_v33, %v1832_v19  ;;  %6171 = vmatmul.msk.f32.gmra.mxu0 %vm8858_vm2, %v9021_v34  ;;  %v1984_v19 = vld [vmem:[%s14255_s3 + $0x8] sm:$0xff]  ;;  %v9848_v16 = vpop.f32.mrf.mxu3 }
 0x399   :  { %14653 = vst [vmem:[#allocation97_spill] sm:$0xff] %v9823_v0  ;;  %6083 = vmatmul.msk.f32.gmra.mxu1 %vm1954_vm3, %v9823_v0  ;;  %6165 = vmatmul.msk.f32.gmra.mxu3 %vm1954_vm3, %v9823_v0  ;;  %v9857_v29 = vpop.f32.mrf.mxu2 }
 0x39a   :  { %2998 = vmatpush.msrb.mxu2 %v1984_v19  ;;  %14658 = vst [vmem:[#allocation102_spill] sm:$0xff] %v9848_v16  ;;  %v9866_v16 = vpop.f32.mrf.mxu1 }
 0x39b   :  { %14661 = vst [vmem:[#allocation105_spill] sm:$0xff] %v9857_v29 }
 0x39c   :  { %14663 = vst [vmem:[#allocation107_spill] sm:$0xff] %v9866_v16  ;;  %3387 = vmatpush.msra.mxu2 %v2300_v9 }
 0x39d   :  { %v9883_v16 = vpop.f32.mrf.mxu0 }
 0x39e   :  { %14666 = vst [vmem:[#allocation110_spill] sm:$0xff] %v9883_v16  ;;  %v2236_v16 = vld [vmem:[%s14255_s3 + $0x7e8] sm:$0xff] }
 0x39f   :  { %3286 = vmatpush.msra.mxu1 %v2236_v16  ;;  %v2168_v16 = vld [vmem:[%s14255_s3 + $0x5c8] sm:$0xff] }
 0x3a0   :  { %6173 = vmatmul.msk.f32.gmra.mxu0 %vm8858_vm2, %v8996_v7  ;;  %v9864_v19 = vpop.f32.mrf.mxu3 }
 0x3a1   :  { %6220 = vmatmul.msk.f32.vlgmr.msrb.gmra.mxu1 %vm1954_vm3, %v8970_v35  ;;  %14662 = vst [vmem:[#allocation106_spill] sm:$0xff] %v9864_v19  ;;  %v2172_v19 = vld [vmem:[%s14255_s3 + $0x5e8] sm:$0xff]  ;;  %v9895_v29 = vpop.f32.mrf.mxu2 }
 0x3a2   :  { %14667 = vst [vmem:[#allocation111_spill] sm:$0xff] %v9895_v29  ;;  %3185 = vmatpush.msra.mxu0 %v2172_v19  ;;  %v9902_v15 = vpop.f32.mrf.mxu1  ;;  %v2296_v19 = vld [vmem:[%s14255_s3 + $0x9c8] sm:$0xff] }
 0x3a3   :  { %14669 = vst [vmem:[#allocation113_spill] sm:$0xff] %v9902_v15  ;;  %3388 = vmatpush.msra.mxu2 %v2296_v19  ;;  %v2360_v15 = vld [vmem:[%s14255_s3 + $0xbc8] sm:$0xff] }
 0x3a4   :  { %3186 = vmatpush.msra.mxu0 %v2168_v16  ;;  %v2232_v19 = vld [vmem:[%s14255_s3 + $0x7c8] sm:$0xff] }
 0x3a5   :  { %v9909_v29 = vpop.f32.mrf.mxu0  ;;  %3287 = vmatpush.msra.mxu1 %v2232_v19 }
 0x3a6   :  { %14670 = vst [vmem:[#allocation114_spill] sm:$0xff] %v9909_v29 }
 0x3a8   :  { %6175 = vmatmul.msk.f32.gmra.mxu0 %vm8858_vm2, %v9096_v60  ;;  %v9900_v41 = vpop.f32.mrf.mxu3 }
 0x3a9   :  { %6221 = vmatmul.msk.f32.gmra.mxu1 %vm1954_vm3, %v9031_v3  ;;  %14668 = vst [vmem:[#allocation112_spill] sm:$0xff] %v9900_v41  ;;  %v9911_v9 = vpop.f32.mrf.mxu2 }
 0x3aa   :  { %14671 = vst [vmem:[#allocation115_spill] sm:$0xff] %v9911_v9  ;;  %v9932_v29 = vpop.f32.mrf.mxu1 }
 0x3ab   :  { %14673 = vst [vmem:[#allocation117_spill] sm:$0xff] %v9932_v29  ;;  %v2292_v29 = vld [vmem:[%s14255_s3 + $0x9a8] sm:$0xff] }
 0x3ac   :  { %3389 = vmatpush.msra.mxu2 %v2292_v29 }
 0x3af   :  { %v9868_v13 = vpop.permute.xlu1 %1833 }
 0x3b0   :  { %14664 = vst [vmem:[#allocation108_spill] sm:$0xff] %v9868_v13  ;;  %6137 = vmatmul.msk.f32.gmra.mxu2 %vm8858_vm2, %v9868_v13  ;;  %6177 = vmatmul.msk.f32.gmra.mxu0 %vm8858_vm2, %v9142_v18  ;;  %v9878_v62 = vsel %vm1841_vm1, %v9868_v13, %v1836_v26  ;;  %v2364_v26 = vld [vmem:[%s14255_s3 + $0xbe8] sm:$0xff] }
 0x3b1   :  { %14665 = vst [vmem:[#allocation109_spill] sm:$0xff] %v9878_v62  ;;  %6166 = vmatmul.msk.f32.gmra.mxu3 %vm1954_vm3, %v9878_v62  ;;  %6222 = vmatmul.msk.f32.gmra.mxu1 %vm1954_vm3, %v9076_v6  ;;  %v9936_v9 = vpop.f32.mrf.mxu2 }
 0x3b2   :  { %3488 = vmatpush.msra.mxu3 %v2364_v26  ;;  %v9916_v26 = vpop.f32.mrf.mxu3  ;;  %14675 = vst [vmem:[#allocation119_spill] sm:$0xff] %v9936_v9  ;;  %v9956_v19 = vpop.f32.mrf.mxu1  ;;  %v2164_v9 = vld [vmem:[%s14255_s3 + $0x5a8] sm:$0xff] }
 0x3b3   :  { %14672 = vst [vmem:[#allocation116_spill] sm:$0xff] %v9916_v26  ;;  %v9934_v26 = vpop.f32.mrf.mxu0  ;;  %3187 = vmatpush.msra.mxu0 %v2164_v9 }
 0x3b4   :  { %3489 = vmatpush.msra.mxu3 %v2360_v15  ;;  %14674 = vst [vmem:[#allocation118_spill] sm:$0xff] %v9934_v26  ;;  %v2356_v26 = vld [vmem:[%s14255_s3 + $0xba8] sm:$0xff] }
 0x3b5   :  { %14679 = vst [vmem:[#allocation123_spill] sm:$0xff] %v9956_v19  ;;  %v14681_v19 = vmov 0.0  }
 0x3b6   :  { %3490 = vmatpush.msra.mxu3 %v2356_v26  ;;  %v2288_v26 = vld [vmem:[%s14255_s3 + $0x988] sm:$0xff] }
 0x3b7   :  { %3390 = vmatpush.msra.mxu2 %v2288_v26  ;;  %v2224_v26 = vld [vmem:[%s14255_s3 + $0x788] sm:$0xff] }
 0x3b8   :  { %6179 = vmatmul.msk.f32.gmra.mxu0 %vm8858_vm2, %v9115_v58 }
 0x3b9   :  { %6223 = vmatmul.msk.f32.gmra.mxu1 %vm1954_vm3, %v9107_v44  ;;  %v9976_v54 = vpop.f32.mrf.mxu2 }
 0x3ba   :  { %v9954_v15 = vpop.f32.mrf.mxu3  ;;  %14682 = vst [vmem:[#allocation125_spill] sm:$0xff] %v9976_v54  ;;  %v9983_v9 = vpop.f32.mrf.mxu1 }
 0x3bb   :  { %14678 = vst [vmem:[#allocation122_spill] sm:$0xff] %v9954_v15  ;;  %v2228_v15 = vld [vmem:[%s14255_s3 + $0x7a8] sm:$0xff] }
 0x3bc   :  { %3288 = vmatpush.msra.mxu1 %v2228_v15  ;;  %14684 = vst [vmem:[#allocation127_spill] sm:$0xff] %v9983_v9  ;;  %v2160_v15 = vld [vmem:[%s14255_s3 + $0x588] sm:$0xff] }
 0x3bd   :  { %3188 = vmatpush.msra.mxu0 %v2160_v15 }
 0x3be   :  { %3289 = vmatpush.msra.mxu1 %v2224_v26  ;;  %v2156_v26 = vld [vmem:[%s14255_s3 + $0x568] sm:$0xff] }
 0x3bf   :  { %3189 = vmatpush.msra.mxu0 %v2156_v26  ;;  %v2280_v26 = vld [vmem:[%s14255_s3 + $0x948] sm:$0xff] }
 0x3c0   :  { %6181 = vmatmul.msk.f32.gmra.mxu0 %vm8858_vm2, %v9219_v53 }
 0x3c1   :  { %6224 = vmatmul.msk.f32.gmra.mxu1 %vm1954_vm3, %v9152_v14  ;;  %v10003_v54 = vpop.f32.mrf.mxu2 }
 0x3c2   :  { %v9981_v29 = vpop.f32.mrf.mxu3  ;;  %14686 = vst [vmem:[#allocation129_spill] sm:$0xff] %v10003_v54 }
 0x3c3   :  { %14683 = vst [vmem:[#allocation126_spill] sm:$0xff] %v9981_v29  ;;  %v2352_v29 = vld [vmem:[%s14255_s3 + $0xb88] sm:$0xff] }
 0x3c4   :  { %3491 = vmatpush.msra.mxu3 %v2352_v29 }
 0x3c7   :  { %v1840_v41 = vpop.permute.xlu1 %1839  ;;  %v9938_v23 = vpop.permute.xlu0 %1837 }
 0x3c8   :  { %14676 = vst [vmem:[#allocation120_spill] sm:$0xff] %v9938_v23  ;;  %6139 = vmatmul.msk.f32.gmra.mxu2 %vm8858_vm2, %v9938_v23  ;;  %6183 = vmatmul.msk.f32.gmra.mxu0 %vm8858_vm2, %v9254_v38  ;;  %v9948_v16 = vsel %vm1841_vm1, %v9938_v23, %v1840_v41  ;;  %v9964_v41 = vpop.f32.mrf.mxu0 }
 0x3c9   :  { %14677 = vst [vmem:[#allocation121_spill] sm:$0xff] %v9948_v16  ;;  %6167 = vmatmul.msk.f32.gmra.mxu3 %vm1954_vm3, %v9948_v16  ;;  %6225 = vmatmul.msk.f32.gmra.mxu1 %vm1954_vm3, %v9202_v61  ;;  %v10024_v15 = vpop.f32.mrf.mxu2 }
 0x3ca   :  { %14680 = vst [vmem:[#allocation124_spill] sm:$0xff] %v9964_v41  ;;  %v10005_v9 = vpop.f32.mrf.mxu3 }
 0x3cb   :  { %14687 = vst [vmem:[#allocation130_spill] sm:$0xff] %v10005_v9  ;;  %v2284_v9 = vld [vmem:[%s14255_s3 + $0x968] sm:$0xff] }
 0x3cc   :  { %14690 = vst [vmem:[#allocation133_spill] sm:$0xff] %v10024_v15  ;;  %3391 = vmatpush.msra.mxu2 %v2284_v9  ;;  %v2220_v15 = vld [vmem:[%s14255_s3 + $0x768] sm:$0xff] }
 0x3cd   :  { %3290 = vmatpush.msra.mxu1 %v2220_v15 }
 0x3ce   :  { %3392 = vmatpush.msra.mxu2 %v2280_v26 }
 0x3d0   :  { %6185 = vmatmul.msk.f32.gmra.mxu0 %vm8858_vm2, %v9215_v63  ;;  %2999 = vmatmul.f32.vlgmr.msrb.gmra.mxu2 %v14681_v19  ;;  %v9989_v41 = vpop.f32.mrf.mxu0 }
 0x3d1   :  { %6226 = vmatmul.msk.f32.gmra.mxu1 %vm1954_vm3, %v9234_v42  ;;  %3100 = vmatmul.f32.vlgmr.msrb.gmra.mxu3 %v14681_v19  ;;  %14685 = vst [vmem:[#allocation128_spill] sm:$0xff] %v9989_v41  ;;  %v10007_v41 = vpop.f32.mrf.mxu1 }
 0x3d2   :  { %14688 = vst [vmem:[#allocation131_spill] sm:$0xff] %v10007_v41  ;;  %v10026_v41 = vpop.f32.mrf.mxu3 }
 0x3d3   :  { %14691 = vst [vmem:[#allocation134_spill] sm:$0xff] %v10026_v41 }
 0x3d8   :  { %6187 = vmatmul.msk.f32.gmra.mxu0 %vm8858_vm2, %v9302_v27  ;;  %3002 = vmatmul.f32.gmra.mxu2 %v14681_v19  ;;  %v10022_v29 = vpop.f32.mrf.mxu0 }
 0x3d9   :  { %6227 = vmatmul.msk.f32.gmra.mxu1 %vm1954_vm3, %v9264_v45  ;;  %3103 = vmatmul.f32.gmra.mxu3 %v14681_v19  ;;  %14689 = vst [vmem:[#allocation132_spill] sm:$0xff] %v10022_v29  ;;  %v2348_v29 = vld [vmem:[%s14255_s3 + $0xb68] sm:$0xff]  ;;  %v10047_v41 = vpop.f32.mrf.mxu1 }
 0x3da   :  { %14692 = vst [vmem:[#allocation135_spill] sm:$0xff] %v10047_v41  ;;  %3492 = vmatpush.msra.mxu3 %v2348_v29  ;;  %v10066_v9 = vpop.f32.mrf.mxu3 }
 0x3db   :  { %14695 = vst [vmem:[#allocation138_spill] sm:$0xff] %v10066_v9  ;;  %v2216_v9 = vld [vmem:[%s14255_s3 + $0x748] sm:$0xff] }
 0x3dc   :  { %3291 = vmatpush.msra.mxu1 %v2216_v9 }
 0x3e0   :  { %6189 = vmatmul.msk.f32.gmra.mxu0 %vm8858_vm2, %v9329_v25  ;;  %6247 = vmatmul.msk.f32.gmra.mxu2 %vm8858_vm2, %v8866_v4  ;;  %v10052_v54 = vpop.f32.mrf.mxu0 }
 0x3e1   :  { %6228 = vmatmul.msk.f32.gmra.mxu1 %vm1954_vm3, %v9306_v30  ;;  %6298 = vmatmul.msk.f32.gmra.mxu3 %vm1954_vm3, %v8879_v50  ;;  %14693 = vst [vmem:[#allocation136_spill] sm:$0xff] %v10052_v54  ;;  %v10068_v29 = vpop.f32.mrf.mxu1  ;;  %v2152_v54 = vld [vmem:[%s14255_s3 + $0x548] sm:$0xff] }
 0x3e2   :  { %14696 = vst [vmem:[#allocation139_spill] sm:$0xff] %v10068_v29  ;;  %v2344_v29 = vld [vmem:[%s14255_s3 + $0xb48] sm:$0xff]  ;;  %3190 = vmatpush.msra.mxu0 %v2152_v54 }
 0x3e3   :  { %3493 = vmatpush.msra.mxu3 %v2344_v29  ;;  %v2276_v54 = vld [vmem:[%s14255_s3 + $0x928] sm:$0xff] }
 0x3e4   :  { %3393 = vmatpush.msra.mxu2 %v2276_v54  ;;  %v2212_v54 = vld [vmem:[%s14255_s3 + $0x728] sm:$0xff] }
 0x3e5   :  { %3292 = vmatpush.msra.mxu1 %v2212_v54 }
 0x3e8   :  { %6191 = vmatmul.msk.f32.gmra.mxu0 %vm8858_vm2, %v9298_v5  ;;  %6249 = vmatmul.msk.f32.gmra.mxu2 %vm8858_vm2, %v8838_v37  ;;  %v10070_v15 = vpop.f32.mrf.mxu0 }
 0x3e9   :  { %6229 = vmatmul.msk.f32.gmra.mxu1 %vm1954_vm3, %v9339_v12  ;;  %6299 = vmatmul.msk.f32.gmra.mxu3 %vm1954_vm3, %v8940_v49  ;;  %v10054_v49 = vpop.f32.mrf.mxu2  ;;  %14697 = vst [vmem:[#allocation140_spill] sm:$0xff] %v10070_v15 }
 0x3ea   :  { %14694 = vst [vmem:[#allocation137_spill] sm:$0xff] %v10054_v49  ;;  %v10096_v49 = vpop.f32.mrf.mxu3 }
 0x3eb   :  { %14699 = vst [vmem:[#allocation142_spill] sm:$0xff] %v10096_v49  ;;  %v2340_v49 = vld [vmem:[%s14255_s3 + $0xb28] sm:$0xff] }
 0x3ec   :  { %3494 = vmatpush.msra.mxu3 %v2340_v49  ;;  %v2272_v49 = vld [vmem:[%s14255_s3 + $0x908] sm:$0xff] }
 0x3ed   :  { %3394 = vmatpush.msra.mxu2 %v2272_v49  ;;  %v2208_v49 = vld [vmem:[%s14255_s3 + $0x708] sm:$0xff] }
 0x3ee   :  { %3293 = vmatpush.msra.mxu1 %v2208_v49  ;;  %v2140_v49 = vld [vmem:[%s14255_s3 + $0x4e8] sm:$0xff] }
 0x3f0   :  { %6193 = vmatmul.msk.f32.gmra.mxu0 %vm8858_vm2, %v9384_v32  ;;  %6251 = vmatmul.msk.f32.gmra.mxu2 %vm8858_vm2, %v8955_v57 }
 0x3f1   :  { %6230 = vmatmul.msk.f32.gmra.mxu1 %vm1954_vm3, %v9363_v21  ;;  %6300 = vmatmul.msk.f32.gmra.mxu3 %vm1954_vm3, %v8970_v35  ;;  %v10087_v15 = vpop.f32.mrf.mxu2  ;;  %v10100_v35 = vpop.f32.mrf.mxu1 }
 0x3f2   :  { %14698 = vst [vmem:[#allocation141_spill] sm:$0xff] %v10087_v15  ;;  %v10119_v26 = vpop.f32.mrf.mxu3 }
 0x3f3   :  { %14701 = vst [vmem:[#allocation144_spill] sm:$0xff] %v10100_v35 }
 0x3f4   :  { %14703 = vst [vmem:[#allocation146_spill] sm:$0xff] %v10119_v26 }
 0x3f8   :  { %6195 = vmatmul.msk.f32.gmra.mxu0 %vm8858_vm2, %v9404_v22  ;;  %6253 = vmatmul.msk.f32.gmra.mxu2 %vm8858_vm2, %v9021_v34 }
 0x3f9   :  { %6231 = vmatmul.msk.f32.gmra.mxu1 %vm1954_vm3, %v9390_v36  ;;  %6301 = vmatmul.msk.f32.gmra.mxu3 %vm1954_vm3, %v9031_v3  ;;  %v10115_v9 = vpop.f32.mrf.mxu2  ;;  %v10121_v35 = vpop.f32.mrf.mxu1 }
 0x3fa   :  { %14702 = vst [vmem:[#allocation145_spill] sm:$0xff] %v10115_v9  ;;  %v10148_v15 = vpop.f32.mrf.mxu3 }
 0x3fb   :  { %14704 = vst [vmem:[#allocation147_spill] sm:$0xff] %v10121_v35 }
 0x3fc   :  { %14708 = vst [vmem:[#allocation151_spill] sm:$0xff] %v10148_v15 }
 0x3fd   :  { %v10098_v41 = vpop.f32.mrf.mxu0 }
 0x3fe   :  { %14700 = vst [vmem:[#allocation143_spill] sm:$0xff] %v10098_v41  ;;  %v2148_v41 = vld [vmem:[%s14255_s3 + $0x528] sm:$0xff] }
 0x3ff   :  { %3191 = vmatpush.msra.mxu0 %v2148_v41 }
 0x400   :  { %6197 = vmatmul.msk.f32.gmra.mxu0 %vm8858_vm2, %v9402_v10  ;;  %6255 = vmatmul.msk.f32.gmra.mxu2 %vm8858_vm2, %v8996_v7 }
 0x401   :  { %6232 = vmatmul.msk.f32.gmra.mxu1 %vm1954_vm3, %v9414_v8  ;;  %6302 = vmatmul.msk.f32.gmra.mxu3 %vm1954_vm3, %v9076_v6  ;;  %v10142_v35 = vpop.f32.mrf.mxu2  ;;  %v10146_v9 = vpop.f32.mrf.mxu1 }
 0x402   :  { %14705 = vst [vmem:[#allocation148_spill] sm:$0xff] %v10142_v35 }
 0x403   :  { %14707 = vst [vmem:[#allocation150_spill] sm:$0xff] %v10146_v9  ;;  %v2144_v9 = vld [vmem:[%s14255_s3 + $0x508] sm:$0xff] }
 0x404   :  { %3192 = vmatpush.msra.mxu0 %v2144_v9  ;;  %v10188_v9 = vpop.f32.mrf.mxu3 }
 0x405   :  { %v10117_v29 = vpop.f32.mrf.mxu0  ;;  %14711 = vst [vmem:[#allocation154_spill] sm:$0xff] %v10188_v9  ;;  %v2332_v9 = vld [vmem:[%s14255_s3 + $0xae8] sm:$0xff] }
 0x406   :  { %3193 = vmatpush.msra.mxu0 %v2140_v49  ;;  %v2264_v49 = vld [vmem:[%s14255_s3 + $0x8c8] sm:$0xff] }
 0x408   :  { %6199 = vmatmul.msk.f32.gmra.mxu0 %vm8858_vm2, %v9465_v2  ;;  %6257 = vmatmul.msk.f32.gmra.mxu2 %vm8858_vm2, %v9096_v60 }
 0x409   :  { %6233 = vmatmul.msk.f32.gmra.mxu1 %vm1954_vm3, %v9449_v52  ;;  %6303 = vmatmul.msk.f32.gmra.mxu3 %vm1954_vm3, %v9107_v44  ;;  %v10173_v15 = vpop.f32.mrf.mxu2 }
 0x40a   :  { %14710 = vst [vmem:[#allocation153_spill] sm:$0xff] %v10173_v15 }
 0x40d   :  { %v10144_v26 = vpop.f32.mrf.mxu0 }
 0x40e   :  { %14706 = vst [vmem:[#allocation149_spill] sm:$0xff] %v10144_v26  ;;  %v2336_v26 = vld [vmem:[%s14255_s3 + $0xb08] sm:$0xff] }
 0x40f   :  { %3495 = vmatpush.msra.mxu3 %v2336_v26 }
 0x410   :  { %6201 = vmatmul.msk.f32.gmra.mxu0 %vm8858_vm2, %v9494_v39  ;;  %6259 = vmatmul.msk.f32.gmra.mxu2 %vm8858_vm2, %v9142_v18 }
 0x411   :  { %6234 = vmatmul.msk.f32.gmra.mxu1 %vm1954_vm3, %v9469_v46  ;;  %6304 = vmatmul.msk.f32.gmra.mxu3 %vm1954_vm3, %v9152_v14  ;;  %v10203_v35 = vpop.f32.mrf.mxu2 }
 0x412   :  { %14714 = vst [vmem:[#allocation157_spill] sm:$0xff] %v10203_v35  ;;  %3496 = vmatpush.msra.mxu3 %v2332_v9 }
 0x415   :  { %v10163_v41 = vpop.f32.mrf.mxu0 }
 0x416   :  { %14709 = vst [vmem:[#allocation152_spill] sm:$0xff] %v10163_v41  ;;  %v10165_v54 = vpop.f32.mrf.mxu1  ;;  %v2268_v41 = vld [vmem:[%s14255_s3 + $0x8e8] sm:$0xff] }
 0x417   :  { %3395 = vmatpush.msra.mxu2 %v2268_v41 }
 0x418   :  { %6203 = vmatmul.msk.f32.gmra.mxu0 %vm8858_vm2, %v9496_v11  ;;  %6261 = vmatmul.msk.f32.gmra.mxu2 %vm8858_vm2, %v9115_v58 }
 0x419   :  { %6235 = vmatmul.msk.f32.gmra.mxu1 %vm1954_vm3, %v9506_v59  ;;  %6305 = vmatmul.msk.f32.gmra.mxu3 %vm1954_vm3, %v9202_v61  ;;  %v10230_v61 = vpop.f32.mrf.mxu2 }
 0x41a   :  { %14718 = vst [vmem:[#allocation161_spill] sm:$0xff] %v10230_v61  ;;  %v2328_v61 = vld [vmem:[%s14255_s3 + $0xac8] sm:$0xff]  ;;  %3396 = vmatpush.msra.mxu2 %v2264_v49 }
 0x41b   :  { %3497 = vmatpush.msra.mxu3 %v2328_v61 }
 0x41d   :  { %v10190_v26 = vpop.f32.mrf.mxu0 }
 0x41e   :  { %14712 = vst [vmem:[#allocation155_spill] sm:$0xff] %v10190_v26  ;;  %v10192_v15 = vpop.f32.mrf.mxu1  ;;  %v10218_v26 = vpop.f32.mrf.mxu3 }
 0x41f   :  { %14713 = vst [vmem:[#allocation156_spill] sm:$0xff] %v10192_v15  ;;  %v2204_v15 = vld [vmem:[%s14255_s3 + $0x6e8] sm:$0xff] }
 0x420   :  { %6205 = vmatmul.msk.f32.gmra.mxu0 %vm8858_vm2, %v9552_v1  ;;  %6263 = vmatmul.msk.f32.gmra.mxu2 %vm8858_vm2, %v9219_v53  ;;  %14715 = vst [vmem:[#allocation158_spill] sm:$0xff] %v10218_v26 }
 0x421   :  { %6236 = vmatmul.msk.f32.gmra.mxu1 %vm1954_vm3, %v9542_v31  ;;  %6306 = vmatmul.msk.f32.gmra.mxu3 %vm1954_vm3, %v9234_v42 }
 0x422   :  { %3294 = vmatpush.msra.mxu1 %v2204_v15 }
 0x425   :  { %v10220_v35 = vpop.f32.mrf.mxu0 }
 0x426   :  { %14716 = vst [vmem:[#allocation159_spill] sm:$0xff] %v10220_v35  ;;  %v10222_v42 = vpop.f32.mrf.mxu1  ;;  %v10236_v15 = vpop.f32.mrf.mxu3  ;;  %v2200_v35 = vld [vmem:[%s14255_s3 + $0x6c8] sm:$0xff] }
 0x427   :  { %14717 = vst [vmem:[#allocation160_spill] sm:$0xff] %v10222_v42  ;;  %v10257_v42 = vpop.f32.mrf.mxu2  ;;  %3295 = vmatpush.msra.mxu1 %v2200_v35 }
 0x428   :  { %6207 = vmatmul.msk.f32.gmra.mxu0 %vm8858_vm2, %v9584_v28  ;;  %6265 = vmatmul.msk.f32.gmra.mxu2 %vm8858_vm2, %v9254_v38  ;;  %14719 = vst [vmem:[#allocation162_spill] sm:$0xff] %v10236_v15  ;;  %v2136_v15 = vld [vmem:[%s14255_s3 + $0x4c8] sm:$0xff] }
 0x429   :  { %6237 = vmatmul.msk.f32.gmra.mxu1 %vm1954_vm3, %v9564_v43  ;;  %6307 = vmatmul.msk.f32.gmra.mxu3 %vm1954_vm3, %v9264_v45  ;;  %14722 = vst [vmem:[#allocation165_spill] sm:$0xff] %v10257_v42  ;;  %v2132_v42 = vld [vmem:[%s14255_s3 + $0x4a8] sm:$0xff] }
 0x42a   :  { %3194 = vmatpush.msra.mxu0 %v2136_v15 }
 0x42c   :  { %3195 = vmatpush.msra.mxu0 %v2132_v42  ;;  %v2128_v42 = vld [vmem:[%s14255_s3 + $0x488] sm:$0xff] }
 0x42d   :  { %v10238_v41 = vpop.f32.mrf.mxu0 }
 0x42e   :  { %14720 = vst [vmem:[#allocation163_spill] sm:$0xff] %v10238_v41  ;;  %v10240_v9 = vpop.f32.mrf.mxu1  ;;  %3196 = vmatpush.msra.mxu0 %v2128_v42 }
 0x42f   :  { %14721 = vst [vmem:[#allocation164_spill] sm:$0xff] %v10240_v9  ;;  %v10266_v9 = vpop.f32.mrf.mxu3  ;;  %v10282_v35 = vpop.f32.mrf.mxu2 }
 0x430   :  { %6209 = vmatmul.msk.f32.gmra.mxu0 %vm8858_vm2, %v9606_v51  ;;  %6267 = vmatmul.msk.f32.gmra.mxu2 %vm8858_vm2, %v9215_v63  ;;  %14723 = vst [vmem:[#allocation166_spill] sm:$0xff] %v10266_v9  ;;  %v2260_v9 = vld [vmem:[%s14255_s3 + $0x8a8] sm:$0xff] }
 0x431   :  { %6238 = vmatmul.msk.f32.gmra.mxu1 %vm1954_vm3, %v9596_v40  ;;  %6308 = vmatmul.msk.f32.gmra.mxu3 %vm1954_vm3, %v9306_v30  ;;  %14726 = vst [vmem:[#allocation169_spill] sm:$0xff] %v10282_v35 }
 0x432   :  { %3397 = vmatpush.msra.mxu2 %v2260_v9  ;;  %v2196_v9 = vld [vmem:[%s14255_s3 + $0x6a8] sm:$0xff] }
 0x433   :  { %3296 = vmatpush.msra.mxu1 %v2196_v9  ;;  %v2124_v9 = vld [vmem:[%s14255_s3 + $0x468] sm:$0xff] }
 0x434   :  { %3197 = vmatpush.msra.mxu0 %v2124_v9 }
 0x435   :  { %v10268_v26 = vpop.f32.mrf.mxu0 }
 0x436   :  { %14724 = vst [vmem:[#allocation167_spill] sm:$0xff] %v10268_v26  ;;  %v10270_v41 = vpop.f32.mrf.mxu1 }
 0x437   :  { %14725 = vst [vmem:[#allocation168_spill] sm:$0xff] %v10270_v41  ;;  %v10284_v61 = vpop.f32.mrf.mxu3  ;;  %v2324_v41 = vld [vmem:[%s14255_s3 + $0xaa8] sm:$0xff]  ;;  %v10315_v35 = vpop.f32.mrf.mxu2 }
 0x438   :  { %6211 = vmatmul.msk.f32.gmra.mxu0 %vm8858_vm2, %v9682_v20  ;;  %6269 = vmatmul.msk.f32.gmra.mxu2 %vm8858_vm2, %v9302_v27  ;;  %14727 = vst [vmem:[#allocation170_spill] sm:$0xff] %v10284_v61  ;;  %v2367_v61 = vld [vmem:[%s14256_s4] sm:$0xf] }
 0x439   :  { %6239 = vmatmul.msk.f32.gmra.mxu1 %vm1954_vm3, %v9635_v48  ;;  %6309 = vmatmul.msk.f32.gmra.mxu3 %vm1954_vm3, %v9339_v12  ;;  %14730 = vst [vmem:[#allocation173_spill] sm:$0xff] %v10315_v35 }
 0x43a   :  { %3498 = vmatpush.msra.mxu3 %v2324_v41 }
 0x43d   :  { %v10286_v15 = vpop.f32.mrf.mxu0 }
 0x43e   :  { %14728 = vst [vmem:[#allocation171_spill] sm:$0xff] %v10286_v15  ;;  %v10288_v49 = vpop.f32.mrf.mxu1  ;;  %v10321_v15 = vperm.slane %v2367_v61, 0 }
 0x43f   :  { %14729 = vst [vmem:[#allocation172_spill] sm:$0xff] %v10288_v49  ;;  %v10317_v26 = vpop.f32.mrf.mxu3 }
 0x440   :  { %6213 = vmatmul.msk.f32.gmra.mxu0 %vm8858_vm2, %v9756_v47  ;;  %6271 = vmatmul.msk.f32.gmra.mxu2 %vm8858_vm2, %v9329_v25  ;;  %14731 = vst [vmem:[#allocation174_spill] sm:$0xff] %v10317_v26  ;;  %v2476_v41 = vadd.f32 %v10117_v29, %v10321_v15  ;;  %v2256_v29 = vld [vmem:[%s14255_s3 + $0x888] sm:$0xff] }
 0x441   :  { %6240 = vmatmul.msk.f32.gmra.mxu1 %vm1954_vm3, %v9652_v24  ;;  %6310 = vmatmul.msk.f32.gmra.mxu3 %vm1954_vm3, %v9363_v21  ;;  %14733 = vst [vmem:[#allocation176_spill] sm:$0xff] %v10321_v15  ;;  %v2120_v15 = vld [vmem:[%s14255_s3 + $0x448] sm:$0xff] }
 0x442   :  { %v2577_v26 = vadd.f32 %v10165_v54, %v2476_v41  ;;  %3398 = vmatpush.msra.mxu2 %v2256_v29  ;;  %3198 = vmatpush.msra.mxu0 %v2120_v15  ;;  %v2320_v54 = vld [vmem:[%s14255_s3 + $0xa88] sm:$0xff] }
 0x443   :  { %3499 = vmatpush.msra.mxu3 %v2320_v54  ;;  %v2112_v15 = vld [vmem:[%s14255_s3 + $0x408] sm:$0xff] }
 0x444   :  { %v2252_v54 = vld [vmem:[%s14255_s3 + $0x868] sm:$0xff] }
 0x445   :  { %v10319_v49 = vpop.f32.mrf.mxu0  ;;  %3399 = vmatpush.msra.mxu2 %v2252_v54  ;;  %v2180_v54 = vld [vmem:[%s14255_s3 + $0x628] sm:$0xff] }
 0x446   :  { %14732 = vst [vmem:[#allocation175_spill] sm:$0xff] %v10319_v49  ;;  %v10323_v12 = vpop.f32.mrf.mxu1 }
 0x447   :  { %14734 = vst [vmem:[#allocation177_spill] sm:$0xff] %v10323_v12 }
 0x448   :  { %6215 = vmatmul.msk.f32.gmra.mxu0 %vm8858_vm2, %v9784_v33  ;;  %6273 = vmatmul.msk.f32.gmra.mxu2 %vm8858_vm2, %v9298_v5 }
 0x449   :  { %6241 = vmatmul.msk.f32.gmra.mxu1 %vm1954_vm3, %v9697_v55  ;;  %6311 = vmatmul.msk.f32.gmra.mxu3 %vm1954_vm3, %v9390_v36 }
 0x44b   :  { %v2677_v35 = vpop.f32.mrf.mxu2 }
 0x44c   :  { %v2678_v12 = vadd.f32 %v2677_v35, %v2577_v26  ;;  %v2778_v49 = vpop.f32.mrf.mxu3  ;;  %v2116_v26 = vld [vmem:[%s14255_s3 + $0x428] sm:$0xff] }
 0x44d   :  { %v10350_v36 = vpop.f32.mrf.mxu0  ;;  %v2192_v35 = vld [vmem:[%s14255_s3 + $0x688] sm:$0xff]  ;;  %3199 = vmatpush.msra.mxu0 %v2116_v26 }
 0x44e   :  { %14735 = vst [vmem:[#allocation178_spill] sm:$0xff] %v10350_v36  ;;  %v10352_v21 = vadd.f32 %v2778_v49, %v2678_v12  ;;  %v10354_v5 = vpop.f32.mrf.mxu1  ;;  %v10371_v12 = vperm.slane %v2367_v61, 1  ;;  %3297 = vmatpush.msra.mxu1 %v2192_v35  ;;  %v2188_v26 = vld [vmem:[%s14255_s3 + $0x668] sm:$0xff] }
 0x44f   :  { %14737 = vst [vmem:[#allocation180_spill] sm:$0xff] %v10354_v5  ;;  %3200 = vmatpush.msra.mxu0 %v2112_v15  ;;  %v2316_v35 = vld [vmem:[%s14255_s3 + $0xa68] sm:$0xff] }
 0x450   :  { %14736 = vst [vmem:[#allocation179_spill] sm:$0xff] %v10352_v21  ;;  %6217 = vmatmul.msk.f32.gmra.mxu0 %vm8858_vm2, %v9868_v13  ;;  %6275 = vmatmul.msk.f32.gmra.mxu2 %vm8858_vm2, %v9384_v32  ;;  %v2184_v21 = vld [vmem:[%s14255_s3 + $0x648] sm:$0xff] }
 0x451   :  { %6242 = vmatmul.msk.f32.gmra.mxu1 %vm1954_vm3, %v9771_v56  ;;  %6312 = vmatmul.msk.f32.gmra.mxu3 %vm1954_vm3, %v9414_v8 }
 0x452   :  { %3298 = vmatpush.msra.mxu1 %v2188_v26  ;;  %3500 = vmatpush.msra.mxu3 %v2316_v35 }
 0x453   :  { %v3000_v49 = vpop.f32.mrf.mxu2 }
 0x454   :  { %v3001_v42 = vadd.f32 %v3000_v49, %v10371_v12  ;;  %v3101_v41 = vpop.f32.mrf.mxu3  ;;  %3299 = vmatpush.msra.mxu1 %v2184_v21  ;;  %v2176_v21 = vld [vmem:[%s14255_s3 + $0x608] sm:$0xff] }
 0x455   :  { %v10381_v9 = vpop.f32.mrf.mxu0 }
 0x456   :  { %14738 = vst [vmem:[#allocation181_spill] sm:$0xff] %v10381_v9  ;;  %v10383_v61 = vadd.f32 %v3101_v41, %v3001_v42  ;;  %v10385_v29 = vpop.f32.mrf.mxu1  ;;  %3300 = vmatpush.msra.mxu1 %v2180_v54  ;;  %v2312_v54 = vld [vmem:[%s14255_s3 + $0xa48] sm:$0xff] }
 0x457   :  { %14739 = vst [vmem:[#allocation182_spill] sm:$0xff] %v10385_v29  ;;  %3501 = vmatpush.msra.mxu3 %v2312_v54  ;;  %v2308_v29 = vld [vmem:[%s14255_s3 + $0xa28] sm:$0xff] }
 0x458   :  { %6219 = vmatmul.msk.f32.gmra.mxu0 %vm8858_vm2, %v9938_v23  ;;  %6277 = vmatmul.msk.f32.gmra.mxu2 %vm8858_vm2, %v9404_v22 }
 0x459   :  { %6243 = vmatmul.msk.f32.gmra.mxu1 %vm1954_vm3, %v9823_v0  ;;  %6313 = vmatmul.msk.f32.gmra.mxu3 %vm1954_vm3, %v9449_v52 }
 0x45a   :  { %3301 = vmatpush.msra.mxu1 %v2176_v21  ;;  %3502 = vmatpush.msra.mxu3 %v2308_v29  ;;  %v2240_v29 = vld [vmem:[%s14255_s3 + $0x808] sm:$0xff] }
 0x45b   :  { %v3003_v15 = vpop.f32.mrf.mxu2 }
 0x45c   :  { %v3004_v49 = vadd.f32 %v3003_v15, %v10371_v12  ;;  %v3104_v42 = vpop.f32.mrf.mxu3 }
 0x45d   :  { %v10407_v41 = vpop.f32.mrf.mxu0 }
 0x45e   :  { %14740 = vst [vmem:[#allocation183_spill] sm:$0xff] %v10407_v41  ;;  %v10412_v9 = vadd.f32 %v3104_v42, %v3004_v49  ;;  %v10414_v36 = vpop.f32.mrf.mxu1  ;;  %v2248_v41 = vld [vmem:[%s14255_s3 + $0x848] sm:$0xff] }
 0x45f   :  { %14741 = vst [vmem:[#allocation184_spill] sm:$0xff] %v10414_v36  ;;  %3400 = vmatpush.msra.mxu2 %v2248_v41 }
 0x460   :  { %2875 = vmatmul.f32.gmra.mxu0 %v14681_v19  ;;  %6279 = vmatmul.msk.f32.gmra.mxu2 %vm8858_vm2, %v9402_v10 }
 0x461   :  { %6244 = vmatmul.msk.f32.gmra.mxu1 %vm1954_vm3, %v9878_v62  ;;  %6314 = vmatmul.msk.f32.gmra.mxu3 %vm1954_vm3, %v9469_v46 }
 0x463   :  { %v3006_v26 = vpop.f32.mrf.mxu2 }
 0x464   :  { %v3007_v35 = vadd.f32 %v3006_v26, %v10371_v12  ;;  %v3107_v15 = vpop.f32.mrf.mxu3 }
 0x465   :  { %v10431_v49 = vpop.f32.mrf.mxu0 }
 0x466   :  { %14742 = vst [vmem:[#allocation185_spill] sm:$0xff] %v10431_v49  ;;  %v10433_v42 = vadd.f32 %v3107_v15, %v3007_v35  ;;  %v10435_v36 = vpop.f32.mrf.mxu1 }
 0x467   :  { %14743 = vst [vmem:[#allocation186_spill] sm:$0xff] %v10435_v36 }
 0x468   :  { %2878 = vmatmul.f32.gmra.mxu0 %v14681_v19  ;;  %6281 = vmatmul.msk.f32.gmra.mxu2 %vm8858_vm2, %v9465_v2 }
 0x469   :  { %6245 = vmatmul.msk.f32.gmra.mxu1 %vm1954_vm3, %v9948_v16  ;;  %6315 = vmatmul.msk.f32.gmra.mxu3 %vm1954_vm3, %v9506_v59  ;;  %v2109_v16 = vld [vmem:[%s14255_s3 + $0x3f0] sm:$0xff] }
 0x46a   :  { %3690 = vmatpush.msrb.mxu1 %v2109_v16 }
 0x46b   :  { %v3009_v21 = vpop.f32.mrf.mxu2 }
 0x46c   :  { %v3010_v26 = vadd.f32 %v3009_v21, %v10371_v12  ;;  %v3110_v35 = vpop.f32.mrf.mxu3 }
 0x46d   :  { %v10452_v15 = vpop.f32.mrf.mxu0 }
 0x46e   :  { %14744 = vst [vmem:[#allocation187_spill] sm:$0xff] %v10452_v15  ;;  %v10454_v36 = vadd.f32 %v3110_v35, %v3010_v26  ;;  %v10456_v49 = vpop.f32.mrf.mxu1 }
 0x46f   :  { %14745 = vst [vmem:[#allocation188_spill] sm:$0xff] %v10456_v49  ;;  %v2244_v49 = vld [vmem:[%s14255_s3 + $0x828] sm:$0xff] }
 0x470   :  { %6283 = vmatmul.msk.f32.gmra.mxu2 %vm8858_vm2, %v9494_v39  ;;  %6325 = vmatmul.msk.f32.vlgmr.msra.gmra.mxu0 %vm8858_vm2, %v8866_v4 }
 0x471   :  { %2976 = vmatmul.f32.gmra.mxu1 %v14681_v19  ;;  %6316 = vmatmul.msk.f32.gmra.mxu3 %vm1954_vm3, %v9542_v31 }
 0x472   :  { %3401 = vmatpush.msra.mxu2 %v2244_v49 }
 0x473   :  { %v3012_v41 = vpop.f32.mrf.mxu2 }
 0x474   :  { %v3013_v54 = vadd.f32 %v3012_v41, %v10371_v12  ;;  %v3113_v21 = vpop.f32.mrf.mxu3  ;;  %3402 = vmatpush.msra.mxu2 %v2240_v29  ;;  %v14753_v29 = vld [vmem:[#allocation19_spill] sm:$0xff] }
 0x475   :  { %v10468_v26 = vpop.f32.mrf.mxu0 }
 0x476   :  { %14746 = vst [vmem:[#allocation189_spill] sm:$0xff] %v10468_v26  ;;  %v10470_v35 = vadd.f32 %v3113_v21, %v3013_v54  ;;  %v10472_v15 = vpop.f32.mrf.mxu1 }
 0x477   :  { %14747 = vst [vmem:[#allocation190_spill] sm:$0xff] %v10472_v15 }
 0x478   :  { %6285 = vmatmul.msk.f32.gmra.mxu2 %vm8858_vm2, %v9496_v11  ;;  %6327 = vmatmul.msk.f32.gmra.mxu0 %vm8858_vm2, %v8838_v37  ;;  %v2304_v37 = vld [vmem:[%s14255_s3 + $0xa08] sm:$0xff] }
 0x479   :  { %2979 = vmatmul.f32.gmra.mxu1 %v14681_v19  ;;  %6317 = vmatmul.msk.f32.gmra.mxu3 %vm1954_vm3, %v9564_v43 }
 0x47a   :  { %3503 = vmatpush.msra.mxu3 %v2304_v37 }
 0x47b   :  { %v3015_v41 = vpop.f32.mrf.mxu2 }
 0x47c   :  { %v3016_v49 = vadd.f32 %v3015_v41, %v10371_v12  ;;  %v3116_v54 = vpop.f32.mrf.mxu3 }
 0x47d   :  { %v10490_v21 = vpop.f32.mrf.mxu0 }
 0x47e   :  { %14748 = vst [vmem:[#allocation191_spill] sm:$0xff] %v10490_v21  ;;  %v10492_v26 = vadd.f32 %v3116_v54, %v3016_v49  ;;  %v10494_v15 = vpop.f32.mrf.mxu1 }
 0x47f   :  { %14749 = vst [vmem:[#allocation192_spill] sm:$0xff] %v10494_v15 }
 0x480   :  { %6287 = vmatmul.msk.f32.gmra.mxu2 %vm8858_vm2, %v9552_v1  ;;  %6329 = vmatmul.msk.f32.gmra.mxu0 %vm8858_vm2, %v8955_v57 }
 0x481   :  { %6318 = vmatmul.msk.f32.gmra.mxu3 %vm1954_vm3, %v9596_v40  ;;  %6380 = vmatmul.msk.f32.vlgmr.msra.gmra.mxu1 %vm1954_vm3, %v8879_v50 }
 0x483   :  { %v3018_v41 = vpop.f32.mrf.mxu2 }
 0x484   :  { %v3019_v49 = vadd.f32 %v3018_v41, %v10371_v12  ;;  %v3119_v54 = vpop.f32.mrf.mxu3 }
 0x485   :  { %v10510_v15 = vpop.f32.mrf.mxu0 }
 0x486   :  { %14750 = vst [vmem:[#allocation193_spill] sm:$0xff] %v10510_v15  ;;  %v10512_v21 = vadd.f32 %v3119_v54, %v3019_v49  ;;  %v10514_v5 = vpop.f32.mrf.mxu1 }
 0x487   :  { %14752 = vst [vmem:[#allocation195_spill] sm:$0xff] %v10514_v5 }
 0x488   :  { %14751 = vst [vmem:[#allocation194_spill] sm:$0xff] %v10512_v21  ;;  %6289 = vmatmul.msk.f32.gmra.mxu2 %vm8858_vm2, %v9584_v28  ;;  %6331 = vmatmul.msk.f32.gmra.mxu0 %vm8858_vm2, %v9021_v34 }
 0x489   :  { %6319 = vmatmul.msk.f32.gmra.mxu3 %vm1954_vm3, %v9635_v48  ;;  %6381 = vmatmul.msk.f32.gmra.mxu1 %vm1954_vm3, %v14753_v29  ;;  %v2173_v29 = vld [vmem:[%s14255_s3 + $0x5f0] sm:$0xff] }
 0x48a   :  { %3791 = vmatpush.msrb.mxu2 %v2173_v29 }
 0x48b   :  { %v3021_v41 = vpop.f32.mrf.mxu2 }
 0x48c   :  { %v3022_v49 = vadd.f32 %v3021_v41, %v10371_v12  ;;  %v3122_v54 = vpop.f32.mrf.mxu3  ;;  %v14757_v41 = vld [vmem:[#allocation20_spill] sm:$0xff] }
 0x48d   :  { %v10530_v5 = vpop.f32.mrf.mxu0 }
 0x48e   :  { %14754 = vst [vmem:[#allocation196_spill] sm:$0xff] %v10530_v5  ;;  %v10532_v37 = vadd.f32 %v3122_v54, %v3022_v49  ;;  %v10534_v15 = vpop.f32.mrf.mxu1  ;;  %v2045_v49 = vld [vmem:[%s14255_s3 + $0x1f0] sm:$0xff] }
 0x48f   :  { %14756 = vst [vmem:[#allocation198_spill] sm:$0xff] %v10534_v15  ;;  %v2237_v54 = vld [vmem:[%s14255_s3 + $0x7f0] sm:$0xff]  ;;  %3589 = vmatpush.msrb.mxu0 %v2045_v49 }
 0x490   :  { %14755 = vst [vmem:[#allocation197_spill] sm:$0xff] %v10532_v37  ;;  %6291 = vmatmul.msk.f32.gmra.mxu2 %vm8858_vm2, %v9606_v51  ;;  %6333 = vmatmul.msk.f32.gmra.mxu0 %vm8858_vm2, %v8996_v7 }
 0x491   :  { %6320 = vmatmul.msk.f32.gmra.mxu3 %vm1954_vm3, %v9652_v24  ;;  %6382 = vmatmul.msk.f32.gmra.mxu1 %vm1954_vm3, %v14757_v41 }
 0x492   :  { %3892 = vmatpush.msrb.mxu3 %v2237_v54  ;;  %v2169_v54 = vld [vmem:[%s14255_s3 + $0x5d0] sm:$0xff] }
 0x493   :  { %v3024_v5 = vpop.f32.mrf.mxu2  ;;  %3792 = vmatpush.msrb.mxu2 %v2169_v54 }
 0x494   :  { %v3025_v15 = vadd.f32 %v3024_v5, %v10371_v12  ;;  %v3125_v50 = vpop.f32.mrf.mxu3 }
 0x495   :  { %v10556_v37 = vpop.f32.mrf.mxu0 }
 0x496   :  { %14758 = vst [vmem:[#allocation199_spill] sm:$0xff] %v10556_v37  ;;  %v10558_v4 = vadd.f32 %v3125_v50, %v3025_v15  ;;  %v10560_v21 = vpop.f32.mrf.mxu1 }
 0x497   :  { %14759 = vst [vmem:[#allocation200_spill] sm:$0xff] %v10560_v21 }
 0x498   :  { %6293 = vmatmul.msk.f32.gmra.mxu2 %vm8858_vm2, %v9682_v20  ;;  %6335 = vmatmul.msk.f32.gmra.mxu0 %vm8858_vm2, %v9096_v60 }
 0x499   :  { %6321 = vmatmul.msk.f32.gmra.mxu3 %vm1954_vm3, %v9697_v55  ;;  %6383 = vmatmul.msk.f32.gmra.mxu1 %vm1954_vm3, %v9031_v3 }
 0x49b   :  { %v3027_v50 = vpop.f32.mrf.mxu2 }
 0x49c   :  { %v3028_v5 = vadd.f32 %v3027_v50, %v10371_v12  ;;  %v3128_v15 = vpop.f32.mrf.mxu3  ;;  %v2041_v50 = vld [vmem:[%s14255_s3 + $0x1d0] sm:$0xff] }
 0x49d   :  { %v10576_v29 = vpop.f32.mrf.mxu0  ;;  %3590 = vmatpush.msrb.mxu0 %v2041_v50 }
 0x49e   :  { %14760 = vst [vmem:[#allocation201_spill] sm:$0xff] %v10576_v29  ;;  %v10578_v16 = vadd.f32 %v3128_v15, %v3028_v5  ;;  %v10580_v49 = vpop.f32.mrf.mxu1  ;;  %v2233_v5 = vld [vmem:[%s14255_s3 + $0x7d0] sm:$0xff] }
 0x49f   :  { %14761 = vst [vmem:[#allocation202_spill] sm:$0xff] %v10580_v49  ;;  %v2105_v15 = vld [vmem:[%s14255_s3 + $0x3d0] sm:$0xff]  ;;  %3893 = vmatpush.msrb.mxu3 %v2233_v5 }
 0x4a0   :  { %6295 = vmatmul.msk.f32.gmra.mxu2 %vm8858_vm2, %v9756_v47  ;;  %6337 = vmatmul.msk.f32.gmra.mxu0 %vm8858_vm2, %v9142_v18 }
 0x4a1   :  { %6322 = vmatmul.msk.f32.gmra.mxu3 %vm1954_vm3, %v9771_v56  ;;  %6384 = vmatmul.msk.f32.gmra.mxu1 %vm1954_vm3, %v9076_v6 }
 0x4a2   :  { %3691 = vmatpush.msrb.mxu1 %v2105_v15  ;;  %v2165_v15 = vld [vmem:[%s14255_s3 + $0x5b0] sm:$0xff] }
 0x4a3   :  { %v3030_v37 = vpop.f32.mrf.mxu2  ;;  %3793 = vmatpush.msrb.mxu2 %v2165_v15 }
 0x4a4   :  { %v3031_v49 = vadd.f32 %v3030_v37, %v10371_v12  ;;  %v3131_v29 = vpop.f32.mrf.mxu3 }
 0x4a5   :  { %v10605_v21 = vpop.f32.mrf.mxu0 }
 0x4a6   :  { %14762 = vst [vmem:[#allocation203_spill] sm:$0xff] %v10605_v21  ;;  %v10607_v62 = vadd.f32 %v3131_v29, %v3031_v49  ;;  %v10609_v19 = vpop.f32.mrf.mxu1 }
 0x4a7   :  { %14763 = vst [vmem:[#allocation204_spill] sm:$0xff] %v10609_v19  ;;  %v2037_v19 = vld [vmem:[%s14255_s3 + $0x1b0] sm:$0xff] }
 0x4a8   :  { %6297 = vmatmul.msk.f32.gmra.mxu2 %vm8858_vm2, %v9784_v33  ;;  %6339 = vmatmul.msk.f32.gmra.mxu0 %vm8858_vm2, %v9115_v58 }
 0x4a9   :  { %6323 = vmatmul.msk.f32.gmra.mxu3 %vm1954_vm3, %v9823_v0  ;;  %6385 = vmatmul.msk.f32.gmra.mxu1 %vm1954_vm3, %v9107_v44 }
 0x4aa   :  { %3591 = vmatpush.msrb.mxu0 %v2037_v19  ;;  %v14769_v19 = vld [vmem:[#allocation29_spill] sm:$0xff] }
 0x4ab   :  { %v3033_v37 = vpop.f32.mrf.mxu2 }
 0x4ac   :  { %v3034_v29 = vadd.f32 %v3033_v37, %v10371_v12  ;;  %v3134_v49 = vpop.f32.mrf.mxu3  ;;  %v2229_v37 = vld [vmem:[%s14255_s3 + $0x7b0] sm:$0xff] }
 0x4ad   :  { %v10622_v54 = vpop.f32.mrf.mxu0  ;;  %3894 = vmatpush.msrb.mxu3 %v2229_v37 }
 0x4ae   :  { %14764 = vst [vmem:[#allocation205_spill] sm:$0xff] %v10622_v54  ;;  %v10624_v50 = vadd.f32 %v3134_v49, %v3034_v29  ;;  %v10626_v5 = vpop.f32.mrf.mxu1  ;;  %v2101_v29 = vld [vmem:[%s14255_s3 + $0x3b0] sm:$0xff] }
 0x4af   :  { %14766 = vst [vmem:[#allocation207_spill] sm:$0xff] %v10626_v5  ;;  %3692 = vmatpush.msrb.mxu1 %v2101_v29 }
 0x4b0   :  { %14765 = vst [vmem:[#allocation206_spill] sm:$0xff] %v10624_v50  ;;  %6341 = vmatmul.msk.f32.gmra.mxu0 %vm8858_vm2, %v9219_v53  ;;  %6409 = vmatmul.msk.f32.vlgmr.msra.gmra.mxu2 %vm8858_vm2, %v8955_v57 }
 0x4b1   :  { %6386 = vmatmul.msk.f32.gmra.mxu1 %vm1954_vm3, %v9152_v14  ;;  %6460 = vmatmul.msk.f32.vlgmr.msra.gmra.mxu3 %vm1954_vm3, %v14757_v41  ;;  %v2033_v41 = vld [vmem:[%s14255_s3 + $0x190] sm:$0xff] }
 0x4b2   :  { %3592 = vmatpush.msrb.mxu0 %v2033_v41 }
 0x4b3   :  { %v3036_v49 = vpop.f32.mrf.mxu2 }
 0x4b4   :  { %v3037_v15 = vadd.f32 %v3036_v49, %v10371_v12  ;;  %v3137_v21 = vpop.f32.mrf.mxu3 }
 0x4b5   :  { %v10651_v5 = vpop.f32.mrf.mxu0 }
 0x4b6   :  { %14767 = vst [vmem:[#allocation208_spill] sm:$0xff] %v10651_v5  ;;  %v10653_v54 = vadd.f32 %v3137_v21, %v3037_v15  ;;  %v10655_v50 = vpop.f32.mrf.mxu1  ;;  %v2161_v21 = vld [vmem:[%s14255_s3 + $0x590] sm:$0xff] }
 0x4b7   :  { %14768 = vst [vmem:[#allocation209_spill] sm:$0xff] %v10655_v50  ;;  %3794 = vmatpush.msrb.mxu2 %v2161_v21  ;;  %v2097_v21 = vld [vmem:[%s14255_s3 + $0x390] sm:$0xff] }
 0x4b8   :  { %6343 = vmatmul.msk.f32.gmra.mxu0 %vm8858_vm2, %v9254_v38  ;;  %6411 = vmatmul.msk.f32.gmra.mxu2 %vm8858_vm2, %v9021_v34 }
 0x4b9   :  { %6387 = vmatmul.msk.f32.gmra.mxu1 %vm1954_vm3, %v14769_v19  ;;  %6461 = vmatmul.msk.f32.gmra.mxu3 %vm1954_vm3, %v9031_v3  ;;  %v2225_v3 = vld [vmem:[%s14255_s3 + $0x790] sm:$0xff] }
 0x4ba   :  { %3895 = vmatpush.msrb.mxu3 %v2225_v3  ;;  %3693 = vmatpush.msrb.mxu1 %v2097_v21  ;;  %v2157_v21 = vld [vmem:[%s14255_s3 + $0x570] sm:$0xff] }
 0x4bb   :  { %v3039_v37 = vpop.f32.mrf.mxu2  ;;  %3795 = vmatpush.msrb.mxu2 %v2157_v21 }
 0x4bc   :  { %v3040_v29 = vadd.f32 %v3039_v37, %v10371_v12  ;;  %v3140_v49 = vpop.f32.mrf.mxu3  ;;  %v14772_v37 = vld [vmem:[#allocation33_spill] sm:$0xff] }
 0x4bd   :  { %v10671_v15 = vpop.f32.mrf.mxu0 }
 0x4be   :  { %14770 = vst [vmem:[#allocation210_spill] sm:$0xff] %v10671_v15  ;;  %v10673_v5 = vadd.f32 %v3140_v49, %v3040_v29  ;;  %v10675_v50 = vpop.f32.mrf.mxu1 }
 0x4bf   :  { %14771 = vst [vmem:[#allocation211_spill] sm:$0xff] %v10675_v50 }
 0x4c0   :  { %6345 = vmatmul.msk.f32.gmra.mxu0 %vm8858_vm2, %v9215_v63  ;;  %6413 = vmatmul.msk.f32.gmra.mxu2 %vm8858_vm2, %v8996_v7 }
 0x4c1   :  { %6388 = vmatmul.msk.f32.gmra.mxu1 %vm1954_vm3, %v14772_v37  ;;  %6462 = vmatmul.msk.f32.gmra.mxu3 %vm1954_vm3, %v9076_v6 }
 0x4c3   :  { %v3042_v3 = vpop.f32.mrf.mxu2 }
 0x4c4   :  { %v3043_v41 = vadd.f32 %v3042_v3, %v10371_v12  ;;  %v3143_v29 = vpop.f32.mrf.mxu3  ;;  %v2029_v3 = vld [vmem:[%s14255_s3 + $0x170] sm:$0xff] }
 0x4c5   :  { %v10697_v49 = vpop.f32.mrf.mxu0  ;;  %3593 = vmatpush.msrb.mxu0 %v2029_v3 }
 0x4c6   :  { %14773 = vst [vmem:[#allocation212_spill] sm:$0xff] %v10697_v49  ;;  %v10699_v50 = vadd.f32 %v3143_v29, %v3043_v41  ;;  %v10701_v15 = vpop.f32.mrf.mxu1  ;;  %v2221_v41 = vld [vmem:[%s14255_s3 + $0x770] sm:$0xff] }
 0x4c7   :  { %14775 = vst [vmem:[#allocation214_spill] sm:$0xff] %v10701_v15  ;;  %3896 = vmatpush.msrb.mxu3 %v2221_v41 }
 0x4c8   :  { %14774 = vst [vmem:[#allocation213_spill] sm:$0xff] %v10699_v50  ;;  %6347 = vmatmul.msk.f32.gmra.mxu0 %vm8858_vm2, %v9302_v27  ;;  %6415 = vmatmul.msk.f32.gmra.mxu2 %vm8858_vm2, %v9096_v60  ;;  %v2093_v60 = vld [vmem:[%s14255_s3 + $0x370] sm:$0xff] }
 0x4c9   :  { %6389 = vmatmul.msk.f32.gmra.mxu1 %vm1954_vm3, %v9264_v45  ;;  %6463 = vmatmul.msk.f32.gmra.mxu3 %vm1954_vm3, %v9107_v44 }
 0x4ca   :  { %3694 = vmatpush.msrb.mxu1 %v2093_v60 }
 0x4cb   :  { %v3045_v29 = vpop.f32.mrf.mxu2 }
 0x4cc   :  { %v3046_v15 = vadd.f32 %v3045_v29, %v10371_v12  ;;  %v3146_v49 = vpop.f32.mrf.mxu3  ;;  %v2153_v29 = vld [vmem:[%s14255_s3 + $0x550] sm:$0xff] }
 0x4cd   :  { %v10723_v50 = vpop.f32.mrf.mxu0  ;;  %3796 = vmatpush.msrb.mxu2 %v2153_v29  ;;  %v14785_v29 = vld [vmem:[#allocation11_spill] sm:$0xff] }
 0x4ce   :  { %14776 = vst [vmem:[#allocation215_spill] sm:$0xff] %v10723_v50  ;;  %v10725_v6 = vadd.f32 %v3146_v49, %v3046_v15  ;;  %v10727_v44 = vpop.f32.mrf.mxu1  ;;  %v14781_v50 = vld [vmem:[#allocation34_spill] sm:$0xff] }
 0x4cf   :  { %14778 = vst [vmem:[#allocation217_spill] sm:$0xff] %v10727_v44 }
 0x4d0   :  { %14777 = vst [vmem:[#allocation216_spill] sm:$0xff] %v10725_v6  ;;  %6349 = vmatmul.msk.f32.gmra.mxu0 %vm8858_vm2, %v9329_v25  ;;  %6417 = vmatmul.msk.f32.gmra.mxu2 %vm8858_vm2, %v9142_v18 }
 0x4d1   :  { %6390 = vmatmul.msk.f32.gmra.mxu1 %vm1954_vm3, %v9306_v30  ;;  %6464 = vmatmul.msk.f32.gmra.mxu3 %vm1954_vm3, %v9152_v14 }
 0x4d3   :  { %v3048_v15 = vpop.f32.mrf.mxu2 }
 0x4d4   :  { %v3049_v49 = vadd.f32 %v3048_v15, %v10371_v12  ;;  %v3149_v21 = vpop.f32.mrf.mxu3  ;;  %v2025_v15 = vld [vmem:[%s14255_s3 + $0x150] sm:$0xff] }
 0x4d5   :  { %v10743_v3 = vpop.f32.mrf.mxu0  ;;  %3594 = vmatpush.msrb.mxu0 %v2025_v15 }
 0x4d6   :  { %14779 = vst [vmem:[#allocation218_spill] sm:$0xff] %v10743_v3  ;;  %v10745_v60 = vadd.f32 %v3149_v21, %v3049_v49  ;;  %v10747_v41 = vpop.f32.mrf.mxu1  ;;  %v2217_v49 = vld [vmem:[%s14255_s3 + $0x750] sm:$0xff] }
 0x4d7   :  { %14780 = vst [vmem:[#allocation219_spill] sm:$0xff] %v10747_v41  ;;  %v14782_v21 = vld [vmem:[#allocation37_spill] sm:$0xff]  ;;  %3897 = vmatpush.msrb.mxu3 %v2217_v49 }
 0x4d8   :  { %6351 = vmatmul.msk.f32.gmra.mxu0 %vm8858_vm2, %v14781_v50  ;;  %6419 = vmatmul.msk.f32.gmra.mxu2 %vm8858_vm2, %v9115_v58  ;;  %v2089_v41 = vld [vmem:[%s14255_s3 + $0x350] sm:$0xff] }
 0x4d9   :  { %6391 = vmatmul.msk.f32.gmra.mxu1 %vm1954_vm3, %v14782_v21  ;;  %6465 = vmatmul.msk.f32.gmra.mxu3 %vm1954_vm3, %v14769_v19 }
 0x4da   :  { %3695 = vmatpush.msrb.mxu1 %v2089_v41 }
 0x4db   :  { %v3051_v3 = vpop.f32.mrf.mxu2 }
 0x4dc   :  { %v3052_v44 = vadd.f32 %v3051_v3, %v10371_v12  ;;  %v3152_v6 = vpop.f32.mrf.mxu3 }
 0x4dd   :  { %v10772_v14 = vpop.f32.mrf.mxu0 }
 0x4de   :  { %14783 = vst [vmem:[#allocation220_spill] sm:$0xff] %v10772_v14  ;;  %v10774_v58 = vadd.f32 %v3152_v6, %v3052_v44  ;;  %v10776_v18 = vpop.f32.mrf.mxu1  ;;  %v2021_v14 = vld [vmem:[%s14255_s3 + $0x130] sm:$0xff] }
 0x4df   :  { %14784 = vst [vmem:[#allocation221_spill] sm:$0xff] %v10776_v18  ;;  %v2149_v18 = vld [vmem:[%s14255_s3 + $0x530] sm:$0xff]  ;;  %3595 = vmatpush.msrb.mxu0 %v2021_v14 }
 0x4e0   :  { %6353 = vmatmul.msk.f32.gmra.mxu0 %vm8858_vm2, %v9384_v32  ;;  %6421 = vmatmul.msk.f32.gmra.mxu2 %vm8858_vm2, %v9219_v53  ;;  %v2145_v14 = vld [vmem:[%s14255_s3 + $0x510] sm:$0xff] }
 0x4e1   :  { %6392 = vmatmul.msk.f32.gmra.mxu1 %vm1954_vm3, %v14785_v29  ;;  %6466 = vmatmul.msk.f32.gmra.mxu3 %vm1954_vm3, %v14772_v37 }
 0x4e2   :  { %3797 = vmatpush.msrb.mxu2 %v2149_v18  ;;  %v2085_v18 = vld [vmem:[%s14255_s3 + $0x330] sm:$0xff] }
 0x4e3   :  { %v3054_v3 = vpop.f32.mrf.mxu2  ;;  %3696 = vmatpush.msrb.mxu1 %v2085_v18 }
 0x4e4   :  { %v3055_v6 = vadd.f32 %v3054_v3, %v10371_v12  ;;  %v3155_v44 = vpop.f32.mrf.mxu3  ;;  %v2213_v3 = vld [vmem:[%s14255_s3 + $0x730] sm:$0xff]  ;;  %3798 = vmatpush.msrb.mxu2 %v2145_v14 }
 0x4e5   :  { %v10789_v41 = vpop.f32.mrf.mxu0  ;;  %3898 = vmatpush.msrb.mxu3 %v2213_v3  ;;  %v2081_v14 = vld [vmem:[%s14255_s3 + $0x310] sm:$0xff] }
 0x4e6   :  { %14786 = vst [vmem:[#allocation222_spill] sm:$0xff] %v10789_v41  ;;  %v10791_v15 = vadd.f32 %v3155_v44, %v3055_v6  ;;  %v10793_v49 = vpop.f32.mrf.mxu1  ;;  %v14789_v6 = vld [vmem:[#allocation12_spill] sm:$0xff]  ;;  %3697 = vmatpush.msrb.mxu1 %v2081_v14  ;;  %v2141_v14 = vld [vmem:[%s14255_s3 + $0x4f0] sm:$0xff] }
 0x4e7   :  { %14788 = vst [vmem:[#allocation224_spill] sm:$0xff] %v10793_v49  ;;  %3799 = vmatpush.msrb.mxu2 %v2141_v14 }
 0x4e8   :  { %14787 = vst [vmem:[#allocation223_spill] sm:$0xff] %v10791_v15  ;;  %6355 = vmatmul.msk.f32.gmra.mxu0 %vm8858_vm2, %v9404_v22  ;;  %6423 = vmatmul.msk.f32.gmra.mxu2 %vm8858_vm2, %v9254_v38 }
 0x4e9   :  { %6393 = vmatmul.msk.f32.gmra.mxu1 %vm1954_vm3, %v14789_v6  ;;  %6467 = vmatmul.msk.f32.gmra.mxu3 %vm1954_vm3, %v9264_v45 }
 0x4eb   :  { %v3057_v44 = vpop.f32.mrf.mxu2 }
 0x4ec   :  { %v3058_v49 = vadd.f32 %v3057_v44, %v10371_v12  ;;  %v3158_v41 = vpop.f32.mrf.mxu3 }
 0x4ed   :  { %v3202_v15 = vpop.f32.mrf.mxu0 }
 0x4ee   :  { %v10818_v37 = vadd.f32 %v3158_v41, %v3058_v49  ;;  %v3203_v19 = vadd.f32 %v3202_v15, %v10383_v61  ;;  %v10821_v38 = vpop.f32.mrf.mxu1 }
 0x4ef   :  { %14791 = vst [vmem:[#allocation226_spill] sm:$0xff] %v10821_v38  ;;  %v2017_v38 = vld [vmem:[%s14255_s3 + $0x110] sm:$0xff] }
 0x4f0   :  { %14790 = vst [vmem:[#allocation225_spill] sm:$0xff] %v10818_v37  ;;  %6357 = vmatmul.msk.f32.gmra.mxu0 %vm8858_vm2, %v9402_v10  ;;  %6425 = vmatmul.msk.f32.gmra.mxu2 %vm8858_vm2, %v9215_v63  ;;  %v2209_v37 = vld [vmem:[%s14255_s3 + $0x710] sm:$0xff] }
 0x4f1   :  { %6394 = vmatmul.msk.f32.gmra.mxu1 %vm1954_vm3, %v9414_v8  ;;  %6468 = vmatmul.msk.f32.gmra.mxu3 %vm1954_vm3, %v9306_v30 }
 0x4f2   :  { %3596 = vmatpush.msrb.mxu0 %v2017_v38  ;;  %3899 = vmatpush.msrb.mxu3 %v2209_v37 }
 0x4f3   :  { %v3060_v61 = vpop.f32.mrf.mxu2 }
 0x4f4   :  { %v3061_v41 = vadd.f32 %v3060_v61, %v10371_v12  ;;  %v3161_v15 = vpop.f32.mrf.mxu3 }
 0x4f5   :  { %v3205_v49 = vpop.f32.mrf.mxu0 }
 0x4f6   :  { %v10837_v3 = vadd.f32 %v3161_v15, %v3061_v41  ;;  %v3206_v18 = vadd.f32 %v3205_v49, %v10412_v9  ;;  %v10840_v44 = vpop.f32.mrf.mxu1 }
 0x4f7   :  { %14792 = vst [vmem:[#allocation227_spill] sm:$0xff] %v10840_v44 }
 0x4f8   :  { %6359 = vmatmul.msk.f32.gmra.mxu0 %vm8858_vm2, %v9465_v2  ;;  %6427 = vmatmul.msk.f32.gmra.mxu2 %vm8858_vm2, %v9302_v27 }
 0x4f9   :  { %6395 = vmatmul.msk.f32.gmra.mxu1 %vm1954_vm3, %v9449_v52  ;;  %6469 = vmatmul.msk.f32.gmra.mxu3 %vm1954_vm3, %v14782_v21  ;;  %v2077_v21 = vld [vmem:[%s14255_s3 + $0x2f0] sm:$0xff] }
 0x4fa   :  { %3698 = vmatpush.msrb.mxu1 %v2077_v21 }
 0x4fb   :  { %v3063_v38 = vpop.f32.mrf.mxu2 }
 0x4fc   :  { %v3064_v9 = vadd.f32 %v3063_v38, %v10371_v12  ;;  %v3164_v37 = vpop.f32.mrf.mxu3  ;;  %v2205_v38 = vld [vmem:[%s14255_s3 + $0x6f0] sm:$0xff] }
 0x4fd   :  { %v10862_v61 = vpop.f32.mrf.mxu0  ;;  %3900 = vmatpush.msrb.mxu3 %v2205_v38 }
 0x4fe   :  { %v10864_v41 = vadd.f32 %v3164_v37, %v3064_v9  ;;  %v3303_v15 = vpop.f32.mrf.mxu1 }
 0x4ff   :  { %v10866_v49 = vadd.f32 %v3303_v15, %v3203_v19  ;;  %v2013_v19 = vld [vmem:[%s14255_s3 + $0xf0] sm:$0xff] }
 0x500   :  { %14793 = vst [vmem:[#allocation228_spill] sm:$0xff] %v10864_v41  ;;  %6361 = vmatmul.msk.f32.gmra.mxu0 %vm8858_vm2, %v9494_v39  ;;  %6429 = vmatmul.msk.f32.gmra.mxu2 %vm8858_vm2, %v9329_v25 }
 0x501   :  { %6396 = vmatmul.msk.f32.gmra.mxu1 %vm1954_vm3, %v9469_v46  ;;  %6470 = vmatmul.msk.f32.gmra.mxu3 %vm1954_vm3, %v14785_v29 }
 0x502   :  { %3597 = vmatpush.msrb.mxu0 %v2013_v19 }
 0x503   :  { %v3066_v9 = vpop.f32.mrf.mxu2 }
 0x504   :  { %v3067_v37 = vadd.f32 %v3066_v9, %v10371_v12  ;;  %v3167_v15 = vpop.f32.mrf.mxu3 }
 0x505   :  { %v10888_v44 = vpop.f32.mrf.mxu0 }
 0x506   :  { %v10890_v41 = vadd.f32 %v3167_v15, %v3067_v37  ;;  %v3306_v29 = vpop.f32.mrf.mxu1  ;;  %v2137_v37 = vld [vmem:[%s14255_s3 + $0x4d0] sm:$0xff] }
 0x507   :  { %v10895_v30 = vadd.f32 %v3306_v29, %v3206_v18  ;;  %v2009_v15 = vld [vmem:[%s14255_s3 + $0xd0] sm:$0xff]  ;;  %3800 = vmatpush.msrb.mxu2 %v2137_v37 }
 0x508   :  { %14794 = vst [vmem:[#allocation229_spill] sm:$0xff] %v10890_v41  ;;  %6363 = vmatmul.msk.f32.gmra.mxu0 %vm8858_vm2, %v9496_v11  ;;  %6431 = vmatmul.msk.f32.gmra.mxu2 %vm8858_vm2, %v14781_v50 }
 0x509   :  { %6397 = vmatmul.msk.f32.gmra.mxu1 %vm1954_vm3, %v9506_v59  ;;  %6471 = vmatmul.msk.f32.gmra.mxu3 %vm1954_vm3, %v14789_v6 }
 0x50a   :  { %3598 = vmatpush.msrb.mxu0 %v2009_v15 }
 0x50b   :  { %v3069_v14 = vpop.f32.mrf.mxu2 }
 0x50c   :  { %v3070_v19 = vadd.f32 %v3069_v14, %v10371_v12  ;;  %v3170_v29 = vpop.f32.mrf.mxu3  ;;  %v2073_v14 = vld [vmem:[%s14255_s3 + $0x2d0] sm:$0xff] }
 0x50d   :  { %v3214_v18 = vpop.f32.mrf.mxu0  ;;  %3699 = vmatpush.msrb.mxu1 %v2073_v14 }
 0x50e   :  { %v10908_v21 = vadd.f32 %v3170_v29, %v3070_v19  ;;  %v3215_v38 = vadd.f32 %v3214_v18, %v10470_v35  ;;  %v10911_v9 = vpop.f32.mrf.mxu1  ;;  %v2201_v35 = vld [vmem:[%s14255_s3 + $0x6d0] sm:$0xff] }
 0x50f   :  { %3901 = vmatpush.msrb.mxu3 %v2201_v35 }
 0x510   :  { %14795 = vst [vmem:[#allocation230_spill] sm:$0xff] %v10908_v21  ;;  %6365 = vmatmul.msk.f32.gmra.mxu0 %vm8858_vm2, %v9552_v1  ;;  %6433 = vmatmul.msk.f32.gmra.mxu2 %vm8858_vm2, %v9384_v32 }
 0x511   :  { %6398 = vmatmul.msk.f32.gmra.mxu1 %vm1954_vm3, %v9542_v31  ;;  %6472 = vmatmul.msk.f32.gmra.mxu3 %vm1954_vm3, %v9414_v8 }
 0x513   :  { %v3072_v19 = vpop.f32.mrf.mxu2 }
 0x514   :  { %v3073_v29 = vadd.f32 %v3072_v19, %v10371_v12  ;;  %v3173_v18 = vpop.f32.mrf.mxu3  ;;  %v2133_v19 = vld [vmem:[%s14255_s3 + $0x4b0] sm:$0xff] }
 0x515   :  { %v3217_v21 = vpop.f32.mrf.mxu0  ;;  %3801 = vmatpush.msrb.mxu2 %v2133_v19 }
 0x516   :  { %v10936_v41 = vadd.f32 %v3173_v18, %v3073_v29  ;;  %v3218_v6 = vadd.f32 %v3217_v21, %v10492_v26  ;;  %v10939_v32 = vpop.f32.mrf.mxu1  ;;  %v2005_v18 = vld [vmem:[%s14255_s3 + $0xb0] sm:$0xff] }
 0x517   :  { %3599 = vmatpush.msrb.mxu0 %v2005_v18  ;;  %v2001_v18 = vld [vmem:[%s14255_s3 + $0x90] sm:$0xff] }
 0x518   :  { %6367 = vmatmul.msk.f32.gmra.mxu0 %vm8858_vm2, %v9584_v28  ;;  %6435 = vmatmul.msk.f32.gmra.mxu2 %vm8858_vm2, %v9404_v22 }
 0x519   :  { %6399 = vmatmul.msk.f32.gmra.mxu1 %vm1954_vm3, %v9564_v43  ;;  %6473 = vmatmul.msk.f32.gmra.mxu3 %vm1954_vm3, %v9449_v52 }
 0x51a   :  { %3600 = vmatpush.msrb.mxu0 %v2001_v18  ;;  %v1989_v18 = vld [vmem:[%s14255_s3 + $0x30] sm:$0xff] }
 0x51b   :  { %v3075_v37 = vpop.f32.mrf.mxu2 }
 0x51c   :  { %v3076_v15 = vadd.f32 %v3075_v37, %v10371_v12  ;;  %v3176_v26 = vpop.f32.mrf.mxu3  ;;  %v2197_v37 = vld [vmem:[%s14255_s3 + $0x6b0] sm:$0xff] }
 0x51d   :  { %v10952_v21 = vpop.f32.mrf.mxu0  ;;  %3902 = vmatpush.msrb.mxu3 %v2197_v37 }
 0x51e   :  { %v10954_v35 = vadd.f32 %v3176_v26, %v3076_v15  ;;  %v3315_v14 = vpop.f32.mrf.mxu1 }
 0x51f   :  { %v10959_v29 = vadd.f32 %v3315_v14, %v3215_v38  ;;  %v2069_v38 = vld [vmem:[%s14255_s3 + $0x2b0] sm:$0xff] }
 0x520   :  { %14796 = vst [vmem:[#allocation231_spill] sm:$0xff] %v10954_v35  ;;  %6369 = vmatmul.msk.f32.gmra.mxu0 %vm8858_vm2, %v9606_v51  ;;  %6437 = vmatmul.msk.f32.gmra.mxu2 %vm8858_vm2, %v9402_v10 }
 0x521   :  { %6400 = vmatmul.msk.f32.gmra.mxu1 %vm1954_vm3, %v9596_v40  ;;  %6474 = vmatmul.msk.f32.gmra.mxu3 %vm1954_vm3, %v9469_v46 }
 0x522   :  { %3700 = vmatpush.msrb.mxu1 %v2069_v38 }
 0x523   :  { %v3078_v15 = vpop.f32.mrf.mxu2 }
 0x524   :  { %v3079_v26 = vadd.f32 %v3078_v15, %v10371_v12  ;;  %v3179_v14 = vpop.f32.mrf.mxu3 }
 0x525   :  { %v10981_v19 = vpop.f32.mrf.mxu0 }
 0x526   :  { %v10983_v35 = vadd.f32 %v3179_v14, %v3079_v26  ;;  %v3318_v52 = vpop.f32.mrf.mxu1  ;;  %v1993_v26 = vld [vmem:[%s14255_s3 + $0x50] sm:$0xff] }
 0x527   :  { %v10985_v8 = vadd.f32 %v3318_v52, %v3218_v6  ;;  %v1997_v52 = vld [vmem:[%s14255_s3 + $0x70] sm:$0xff] }
 0x528   :  { %14797 = vst [vmem:[#allocation232_spill] sm:$0xff] %v10983_v35  ;;  %6371 = vmatmul.msk.f32.gmra.mxu0 %vm8858_vm2, %v9682_v20  ;;  %6439 = vmatmul.msk.f32.gmra.mxu2 %vm8858_vm2, %v9465_v2  ;;  %v2129_v6 = vld [vmem:[%s14255_s3 + $0x490] sm:$0xff]  ;;  %v3212_v2 = vadd.f32 %v10888_v44, %v10454_v36 }
 0x529   :  { %6401 = vmatmul.msk.f32.gmra.mxu1 %vm1954_vm3, %v9635_v48  ;;  %6475 = vmatmul.msk.f32.gmra.mxu3 %vm1954_vm3, %v9506_v59 }
 0x52a   :  { %3802 = vmatpush.msrb.mxu2 %v2129_v6  ;;  %3601 = vmatpush.msrb.mxu0 %v1997_v52  ;;  %v1985_v52 = vld [vmem:[%s14255_s3 + $0x10] sm:$0xff]  ;;  %v3313_v36 = vadd.f32 %v10939_v32, %v3212_v2 }
 0x52b   :  { %v3081_v37 = vpop.f32.mrf.mxu2  ;;  %v14804_v2 = vld [vmem:[#allocation109_spill] sm:$0xff] }
 0x52c   :  { %v3082_v38 = vadd.f32 %v3081_v37, %v10371_v12  ;;  %v3182_v15 = vpop.f32.mrf.mxu3  ;;  %3602 = vmatpush.msrb.mxu0 %v1993_v26  ;;  %v2193_v12 = vld [vmem:[%s14255_s3 + $0x690] sm:$0xff] }
 0x52d   :  { %v3226_v14 = vpop.f32.mrf.mxu0  ;;  %3903 = vmatpush.msrb.mxu3 %v2193_v12 }
 0x52e   :  { %v11010_v35 = vadd.f32 %v3182_v15, %v3082_v38  ;;  %v3227_v59 = vadd.f32 %v3226_v14, %v10558_v4  ;;  %v11013_v46 = vpop.f32.mrf.mxu1  ;;  %v2065_v4 = vld [vmem:[%s14255_s3 + $0x290] sm:$0xff]  ;;  %3603 = vmatpush.msrb.mxu0 %v1989_v18 }
 0x52f   :  { %3701 = vmatpush.msrb.mxu1 %v2065_v4  ;;  %v2125_v14 = vld [vmem:[%s14255_s3 + $0x470] sm:$0xff] }
 0x530   :  { %14798 = vst [vmem:[#allocation233_spill] sm:$0xff] %v11010_v35  ;;  %6373 = vmatmul.msk.f32.gmra.mxu0 %vm8858_vm2, %v9756_v47  ;;  %6441 = vmatmul.msk.f32.gmra.mxu2 %vm8858_vm2, %v9494_v39  ;;  %v2189_v18 = vld [vmem:[%s14255_s3 + $0x670] sm:$0xff] }
 0x531   :  { %6402 = vmatmul.msk.f32.gmra.mxu1 %vm1954_vm3, %v9652_v24  ;;  %6476 = vmatmul.msk.f32.gmra.mxu3 %vm1954_vm3, %v9542_v31  ;;  %v2053_v31 = vld [vmem:[%s14255_s3 + $0x230] sm:$0xff] }
 0x532   :  { %3604 = vmatpush.msrb.mxu0 %v1985_v52  ;;  %3803 = vmatpush.msrb.mxu2 %v2125_v14  ;;  %v3209_v14 = vadd.f32 %v10862_v61, %v10433_v42 }
 0x533   :  { %v3404_v6 = vpop.f32.mrf.mxu2  ;;  %3904 = vmatpush.msrb.mxu3 %v2189_v18 }
 0x534   :  { %v3505_v37 = vpop.f32.mrf.mxu3  ;;  %v3405_v42 = vadd.f32 %v3404_v6, %v10866_v49 }
 0x535   :  { %v3229_v38 = vpop.f32.mrf.mxu0 }
 0x536   :  { %v3230_v15 = vadd.f32 %v3229_v38, %v10578_v16  ;;  %v11038_v26 = vpop.f32.mrf.mxu1  ;;  %v2061_v16 = vld [vmem:[%s14255_s3 + $0x270] sm:$0xff] }
 0x537   :  { %3702 = vmatpush.msrb.mxu1 %v2061_v16  ;;  %v2057_v38 = vld [vmem:[%s14255_s3 + $0x250] sm:$0xff] }
 0x538   :  { %6375 = vmatmul.msk.f32.gmra.mxu0 %vm8858_vm2, %v9784_v33  ;;  %6443 = vmatmul.msk.f32.gmra.mxu2 %vm8858_vm2, %v9496_v11 }
 0x539   :  { %6403 = vmatmul.msk.f32.gmra.mxu1 %vm1954_vm3, %v9697_v55  ;;  %6477 = vmatmul.msk.f32.gmra.mxu3 %vm1954_vm3, %v9564_v43 }
 0x53a   :  { %3703 = vmatpush.msrb.mxu1 %v2057_v38 }
 0x53b   :  { %v3407_v12 = vpop.f32.mrf.mxu2 }
 0x53c   :  { %v3508_v4 = vpop.f32.mrf.mxu3  ;;  %3704 = vmatpush.msrb.mxu1 %v2053_v31  ;;  %v2121_v31 = vld [vmem:[%s14255_s3 + $0x450] sm:$0xff]  ;;  %v3408_v44 = vadd.f32 %v3407_v12, %v10895_v30  ;;  %v14803_v30 = vmov 0.0  }
 0x53d   :  { %v11059_v52 = vpop.f32.mrf.mxu0  ;;  %3804 = vmatpush.msrb.mxu2 %v2121_v31  ;;  %v14805_v31 = vld [vmem:[#allocation121_spill] sm:$0xff] }
 0x53e   :  { %v3327_v43 = vpop.f32.mrf.mxu1 }
 0x53f   :  { %v11064_v35 = vadd.f32 %v3327_v43, %v3227_v59  ;;  %v2049_v59 = vld [vmem:[%s14255_s3 + $0x210] sm:$0xff]  ;;  %v3310_v43 = vadd.f32 %v10911_v9, %v3209_v14  ;;  %v11117_v14 = vadd.f32 %v3508_v4, %v3408_v44 }
 0x540   :  { %6377 = vmatmul.msk.f32.gmra.mxu0 %vm8858_vm2, %v9868_v13  ;;  %6445 = vmatmul.msk.f32.gmra.mxu2 %vm8858_vm2, %v9552_v1  ;;  %v11088_v1 = vadd.f32 %v3505_v37, %v3405_v42 }
 0x541   :  { %6404 = vmatmul.msk.f32.gmra.mxu1 %vm1954_vm3, %v9771_v56  ;;  %6478 = vmatmul.msk.f32.gmra.mxu3 %vm1954_vm3, %v9596_v40  ;;  %14801 = vst [vmem:[#allocation236_spill] sm:$0xff] %v11117_v14 }
 0x542   :  { %3705 = vmatpush.msrb.mxu1 %v2049_v59  ;;  %14799 = vst [vmem:[#allocation234_spill] sm:$0xff] %v11088_v1 }
 0x543   :  { %v3410_v61 = vpop.f32.mrf.mxu2 }
 0x544   :  { %v3411_v16 = vadd.f32 %v3410_v61, %v3310_v43  ;;  %v3511_v18 = vpop.f32.mrf.mxu3 }
 0x545   :  { %v11086_v38 = vpop.f32.mrf.mxu0 }
 0x546   :  { %v11090_v11 = vadd.f32 %v3511_v18, %v3411_v16  ;;  %v3330_v40 = vpop.f32.mrf.mxu1  ;;  %v2117_v18 = vld [vmem:[%s14255_s3 + $0x430] sm:$0xff] }
 0x547   :  { %v11092_v39 = vadd.f32 %v3330_v40, %v3230_v15  ;;  %v2185_v40 = vld [vmem:[%s14255_s3 + $0x650] sm:$0xff]  ;;  %3805 = vmatpush.msrb.mxu2 %v2117_v18 }
 0x548   :  { %14800 = vst [vmem:[#allocation235_spill] sm:$0xff] %v11090_v11  ;;  %v7154_v49 = vpack.i.bf16 %v11090_v11, %v11088_v1  ;;  %6379 = vmatmul.msk.f32.gmra.mxu0 %vm8858_vm2, %v9938_v23  ;;  %6447 = vmatmul.msk.f32.gmra.mxu2 %vm8858_vm2, %v9584_v28  ;;  %v14810_v11 = vld [vmem:[#allocation197_spill] sm:$0xff] }
 0x549   :  { %6405 = vmatmul.msk.f32.gmra.mxu1 %vm1954_vm3, %v9823_v0  ;;  %6479 = vmatmul.msk.f32.gmra.mxu3 %vm1954_vm3, %v9635_v48 }
 0x54a   :  { %7155 = vrot.lane.b32.xlu2 %v7154_v49, %s7261_s2  ;;  %3905 = vmatpush.msrb.mxu3 %v2185_v40  ;;  %v2181_v49 = vld [vmem:[%s14255_s3 + $0x630] sm:$0xff] }
 0x54b   :  { %v3413_v9 = vpop.f32.mrf.mxu2 }
 0x54c   :  { %v3414_v6 = vadd.f32 %v3413_v9, %v3313_v36  ;;  %v3514_v37 = vpop.f32.mrf.mxu3  ;;  %3906 = vmatpush.msrb.mxu3 %v2181_v49 }
 0x54d   :  { %v3238_v15 = vpop.f32.mrf.mxu0 }
 0x54e   :  { %v11119_v59 = vadd.f32 %v3514_v37, %v3414_v6  ;;  %v3239_v43 = vadd.f32 %v3238_v15, %v10653_v54  ;;  %v11122_v42 = vpop.f32.mrf.mxu1  ;;  %v14806_v6 = vld [vmem:[#allocation194_spill] sm:$0xff]  ;;  %v14807_v15 = vld [vmem:[#allocation5_spill] sm:$0xff] }
 0x54f   :  { %v3221_v37 = vadd.f32 %v10952_v21, %v14806_v6 }
 0x550   :  { %14802 = vst [vmem:[#allocation237_spill] sm:$0xff] %v11119_v59  ;;  %v7159_v32 = vpack.i.bf16 %v11119_v59, %v11117_v14  ;;  %6449 = vmatmul.msk.f32.gmra.mxu2 %vm8858_vm2, %v9606_v51  ;;  %3605 = vmatmul.f32.vlgmr.msrb.gmra.mxu0 %v14803_v30 }
 0x551   :  { %6406 = vmatmul.msk.f32.gmra.mxu1 %vm1954_vm3, %v14804_v2  ;;  %6480 = vmatmul.msk.f32.gmra.mxu3 %vm1954_vm3, %v9652_v24 }
 0x552   :  { %7160 = vrot.lane.b32.xlu0 %v7159_v32, %s7261_s2  ;;  %v3322_v32 = vadd.f32 %v11013_v46, %v3221_v37 }
 0x553   :  { %v3416_v54 = vpop.f32.mrf.mxu2 }
 0x554   :  { %v3517_v12 = vpop.f32.mrf.mxu3  ;;  %v3417_v21 = vadd.f32 %v3416_v54, %v10959_v29  ;;  %v14811_v29 = vld [vmem:[#allocation16_spill] sm:$0xff]  ;;  %v2177_v54 = vld [vmem:[%s14255_s3 + $0x610] sm:$0xff] }
 0x555   :  { %v3241_v4 = vpop.f32.mrf.mxu0  ;;  %3907 = vmatpush.msrb.mxu3 %v2177_v54 }
 0x556   :  { %v3242_v61 = vadd.f32 %v3241_v4, %v10673_v5  ;;  %v11136_v16 = vpop.f32.mrf.mxu1  ;;  %v11174_v6 = vadd.f32 %v3517_v12, %v3417_v21 }
 0x558   :  { %6451 = vmatmul.msk.f32.gmra.mxu2 %vm8858_vm2, %v9682_v20  ;;  %3608 = vmatmul.f32.gmra.mxu0 %v14803_v30  ;;  %14808 = vst [vmem:[#allocation194_spill] sm:$0xff] %v11174_v6 }
 0x559   :  { %6407 = vmatmul.msk.f32.gmra.mxu1 %vm1954_vm3, %v14805_v31  ;;  %6481 = vmatmul.msk.f32.gmra.mxu3 %vm1954_vm3, %v9697_v55 }
 0x55b   :  { %v3419_v5 = vpop.f32.mrf.mxu2 }
 0x55c   :  { %v3520_v40 = vpop.f32.mrf.mxu3 }
 0x55d   :  { %v11152_v36 = vpop.f32.mrf.mxu0 }
 0x55e   :  { %v3339_v44 = vpop.f32.mrf.mxu1 }
 0x55f   :  { %v11154_v9 = vadd.f32 %v3339_v44, %v3239_v43  ;;  %v2113_v43 = vld [vmem:[%s14255_s3 + $0x410] sm:$0xff] }
 0x560   :  { %6453 = vmatmul.msk.f32.gmra.mxu2 %vm8858_vm2, %v9756_v47  ;;  %6487 = vmatmul.msk.f32.gmra.mxu0 %vm8858_vm2, %v14807_v15 }
 0x561   :  { %6482 = vmatmul.msk.f32.gmra.mxu3 %vm1954_vm3, %v9771_v56  ;;  %3706 = vmatmul.f32.vlgmr.msrb.gmra.mxu1 %v14803_v30  ;;  %v3224_v56 = vadd.f32 %v10981_v19, %v14810_v11  ;;  %v3420_v19 = vadd.f32 %v3419_v5, %v10985_v8  ;;  %v2046_v8 = vld [vmem:[%s14255_s3 + $0x1f8] sm:$0xff] }
 0x562   :  { %3806 = vmatpush.msrb.mxu2 %v2113_v43  ;;  %v2110_v5 = vld [vmem:[%s14255_s3 + $0x3f8] sm:$0xff] }
 0x563   :  { %v3422_v4 = vpop.f32.mrf.mxu2  ;;  %v3325_v11 = vadd.f32 %v11038_v26, %v3224_v56  ;;  %v11199_v43 = vadd.f32 %v3520_v40, %v3420_v19  ;;  %v2301_v26 = vld [vmem:[%s14255_s3 + $0x9f0] sm:$0xff]  ;;  %4296 = vmatpush.msra.mxu3 %v2110_v5  ;;  %v14815_v19 = vld [vmem:[#allocation19_spill] sm:$0xff]  ;;  %v14816_v5 = vld [vmem:[#allocation20_spill] sm:$0xff] }
 0x564   :  { %v3423_v18 = vadd.f32 %v3422_v4, %v3322_v32  ;;  %v3523_v49 = vpop.f32.mrf.mxu3  ;;  %4195 = vmatpush.msra.mxu2 %v2046_v8  ;;  %3993 = vmatpush.msra.mxu0 %v2301_v26  ;;  %v3233_v8 = vadd.f32 %v11059_v52, %v10607_v62  ;;  %v2297_v26 = vld [vmem:[%s14255_s3 + $0x9d0] sm:$0xff] }
 0x565   :  { %v11172_v44 = vpop.f32.mrf.mxu0  ;;  %14812 = vst [vmem:[#allocation197_spill] sm:$0xff] %v11199_v43  ;;  %v2361_v62 = vld [vmem:[%s14255_s3 + $0xbd0] sm:$0xff] }
 0x566   :  { %v11176_v59 = vadd.f32 %v3523_v49, %v3423_v18  ;;  %v3342_v14 = vpop.f32.mrf.mxu1  ;;  %v3334_v52 = vadd.f32 %v11122_v42, %v3233_v8  ;;  %3994 = vmatpush.msra.mxu0 %v2297_v26 }
 0x567   :  { %v11178_v1 = vadd.f32 %v3342_v14, %v3242_v61 }
 0x568   :  { %14809 = vst [vmem:[#allocation238_spill] sm:$0xff] %v11176_v59  ;;  %v7164_v46 = vpack.i.bf16 %v11176_v59, %v11174_v6  ;;  %6455 = vmatmul.msk.f32.gmra.mxu2 %vm8858_vm2, %v9784_v33  ;;  %6489 = vmatmul.msk.f32.gmra.mxu0 %vm8858_vm2, %v14811_v29 }
 0x569   :  { %6483 = vmatmul.msk.f32.gmra.mxu3 %vm1954_vm3, %v9823_v0  ;;  %3709 = vmatmul.f32.gmra.mxu1 %v14803_v30 }
 0x56a   :  { %7165 = vrot.lane.b32.xlu2 %v7164_v46, %s7261_s2 }
 0x56b   :  { %v3425_v14 = vpop.f32.mrf.mxu2 }
 0x56c   :  { %v3426_v12 = vadd.f32 %v3425_v14, %v3325_v11  ;;  %v3526_v61 = vpop.f32.mrf.mxu3  ;;  %v2365_v11 = vld [vmem:[%s14255_s3 + $0xbf0] sm:$0xff] }
 0x56d   :  { %v3250_v37 = vpop.f32.mrf.mxu0  ;;  %4094 = vmatpush.msra.mxu1 %v2365_v11 }
 0x56e   :  { %v11201_v32 = vadd.f32 %v3526_v61, %v3426_v12  ;;  %v3251_v21 = vadd.f32 %v3250_v37, %v10745_v60  ;;  %v11204_v4 = vpop.f32.mrf.mxu1  ;;  %v14814_v60 = vld [vmem:[#allocation18_spill] sm:$0xff] }
 0x56f   :  { %4095 = vmatpush.msra.mxu1 %v2361_v62 }
 0x570   :  { %14813 = vst [vmem:[#allocation239_spill] sm:$0xff] %v11201_v32  ;;  %v7169_v56 = vpack.i.bf16 %v11201_v32, %v11199_v43  ;;  %6457 = vmatmul.msk.f32.gmra.mxu2 %vm8858_vm2, %v9868_v13  ;;  %6491 = vmatmul.msk.f32.gmra.mxu0 %vm8858_vm2, %v8955_v57 }
 0x571   :  { %6484 = vmatmul.msk.f32.gmra.mxu3 %vm1954_vm3, %v14804_v2  ;;  %6538 = vmatmul.msk.f32.gmra.mxu1 %vm1954_vm3, %v14814_v60  ;;  %v14819_v2 = vld [vmem:[#allocation206_spill] sm:$0xff] }
 0x572   :  { %7170 = vrot.lane.b32.xlu0 %v7169_v56, %s7261_s2  ;;  %v2042_v56 = vld [vmem:[%s14255_s3 + $0x1d8] sm:$0xff]  ;;  %v3236_v42 = vadd.f32 %v11086_v38, %v14819_v2 }
 0x573   :  { %v3428_v40 = vpop.f32.mrf.mxu2  ;;  %4196 = vmatpush.msra.mxu2 %v2042_v56 }
 0x574   :  { %v3529_v18 = vpop.f32.mrf.mxu3 }
 0x575   :  { %v3253_v49 = vpop.f32.mrf.mxu0 }
 0x576   :  { %v3254_v46 = vadd.f32 %v3253_v49, %v10774_v58  ;;  %v11229_v54 = vpop.f32.mrf.mxu1  ;;  %v3429_v49 = vadd.f32 %v3428_v40, %v11064_v35  ;;  %v14820_v40 = vld [vmem:[#allocation7_spill] sm:$0xff] }
 0x578   :  { %6459 = vmatmul.msk.f32.gmra.mxu2 %vm8858_vm2, %v9938_v23  ;;  %6493 = vmatmul.msk.f32.gmra.mxu0 %vm8858_vm2, %v9021_v34  ;;  %v11273_v59 = vadd.f32 %v3529_v18, %v3429_v49  ;;  %v14821_v18 = vld [vmem:[#allocation22_spill] sm:$0xff]  ;;  %v2357_v49 = vld [vmem:[%s14255_s3 + $0xbb0] sm:$0xff] }
 0x579   :  { %6485 = vmatmul.msk.f32.gmra.mxu3 %vm1954_vm3, %v14805_v31  ;;  %6539 = vmatmul.msk.f32.gmra.mxu1 %vm1954_vm3, %v14815_v19 }
 0x57a   :  { %14817 = vst [vmem:[#allocation240_spill] sm:$0xff] %v11273_v59  ;;  %4096 = vmatpush.msra.mxu1 %v2357_v49  ;;  %v2353_v49 = vld [vmem:[%s14255_s3 + $0xb90] sm:$0xff] }
 0x57b   :  { %v3431_v58 = vpop.f32.mrf.mxu2 }
 0x57c   :  { %v3532_v14 = vpop.f32.mrf.mxu3  ;;  %4097 = vmatpush.msra.mxu1 %v2353_v49 }
 0x57d   :  { %v11244_v12 = vpop.f32.mrf.mxu0 }
 0x57e   :  { %v3351_v61 = vpop.f32.mrf.mxu1 }
 0x57f   :  { %v11246_v37 = vadd.f32 %v3351_v61, %v3251_v21  ;;  %v2106_v21 = vld [vmem:[%s14255_s3 + $0x3d8] sm:$0xff] }
 0x580   :  { %3481 = vmatmul.f32.gmra.mxu2 %v14803_v30  ;;  %6495 = vmatmul.msk.f32.gmra.mxu0 %vm8858_vm2, %v8996_v7 }
 0x581   :  { %3582 = vmatmul.f32.gmra.mxu3 %v14803_v30  ;;  %6540 = vmatmul.msk.f32.gmra.mxu1 %vm1954_vm3, %v14816_v5 }
 0x582   :  { %4297 = vmatpush.msra.mxu3 %v2106_v21 }
 0x583   :  { %v3434_v11 = vpop.f32.mrf.mxu2 }
 0x584   :  { %v3435_v61 = vadd.f32 %v3434_v11, %v3334_v52  ;;  %v3535_v32 = vpop.f32.mrf.mxu3 }
 0x585   :  { %v11271_v43 = vpop.f32.mrf.mxu0 }
 0x586   :  { %v11275_v6 = vadd.f32 %v3535_v32, %v3435_v61  ;;  %v3354_v31 = vpop.f32.mrf.mxu1  ;;  %v3432_v32 = vadd.f32 %v3431_v58, %v11092_v39  ;;  %v2038_v39 = vld [vmem:[%s14255_s3 + $0x1b8] sm:$0xff] }
 0x587   :  { %v11277_v23 = vadd.f32 %v3354_v31, %v3254_v46  ;;  %v3337_v31 = vadd.f32 %v11136_v16, %v3236_v42  ;;  %v14824_v16 = vld [vmem:[#allocation27_spill] sm:$0xff]  ;;  %v2102_v58 = vld [vmem:[%s14255_s3 + $0x3b8] sm:$0xff]  ;;  %4197 = vmatpush.msra.mxu2 %v2038_v39  ;;  %v2289_v39 = vld [vmem:[%s14255_s3 + $0x990] sm:$0xff] }
 0x588   :  { %14818 = vst [vmem:[#allocation241_spill] sm:$0xff] %v11275_v6  ;;  %v7174_v35 = vpack.i.bf16 %v11275_v6, %v11273_v59  ;;  %3484 = vmatmul.f32.gmra.mxu2 %v14803_v30  ;;  %6497 = vmatmul.msk.f32.gmra.mxu0 %vm8858_vm2, %v14820_v40  ;;  %v11293_v8 = vadd.f32 %v3532_v14, %v3432_v32  ;;  %v14825_v14 = vld [vmem:[#allocation24_spill] sm:$0xff]  ;;  %v14827_v32 = vld [vmem:[#allocation26_spill] sm:$0xff] }
 0x589   :  { %3585 = vmatmul.f32.gmra.mxu3 %v14803_v30  ;;  %6541 = vmatmul.msk.f32.gmra.mxu1 %vm1954_vm3, %v14821_v18  ;;  %v14842_v30 = vld [vmem:[#allocation225_spill] sm:$0xff] }
 0x58a   :  { %7175 = vrot.lane.b32.xlu1 %v7174_v35, %s7261_s2  ;;  %14822 = vst [vmem:[#allocation206_spill] sm:$0xff] %v11293_v8  ;;  %4298 = vmatpush.msra.mxu3 %v2102_v58  ;;  %v3260_v13 = vadd.f32 %v11271_v43, %v14842_v30  ;;  %v2086_v30 = vld [vmem:[%s14255_s3 + $0x338] sm:$0xff]  ;;  %v14843_v43 = vld [vmem:[#allocation37_spill] sm:$0xff] }
 0x58b   :  { %v3437_v38 = vpop.f32.mrf.mxu2 }
 0x58c   :  { %v3438_v2 = vadd.f32 %v3437_v38, %v3337_v31  ;;  %v3538_v46 = vpop.f32.mrf.mxu3  ;;  %v14826_v31 = vld [vmem:[#allocation25_spill] sm:$0xff]  ;;  %v2034_v38 = vld [vmem:[%s14255_s3 + $0x198] sm:$0xff] }
 0x58d   :  { %v3262_v56 = vpop.f32.mrf.mxu0  ;;  %4198 = vmatpush.msra.mxu2 %v2034_v38  ;;  %v14828_v38 = vld [vmem:[#allocation213_spill] sm:$0xff] }
 0x58e   :  { %v11295_v26 = vadd.f32 %v3538_v46, %v3438_v2  ;;  %v3263_v21 = vadd.f32 %v3262_v56, %v10837_v3  ;;  %v11298_v62 = vpop.f32.mrf.mxu1  ;;  %v2293_v3 = vld [vmem:[%s14255_s3 + $0x9b0] sm:$0xff] }
 0x58f   :  { %3995 = vmatpush.msra.mxu0 %v2293_v3  ;;  %v2098_v3 = vld [vmem:[%s14255_s3 + $0x398] sm:$0xff] }
 0x590   :  { %14823 = vst [vmem:[#allocation7_spill] sm:$0xff] %v11295_v26  ;;  %v7179_v52 = vpack.i.bf16 %v11295_v26, %v11293_v8  ;;  %6499 = vmatmul.msk.f32.gmra.mxu0 %vm8858_vm2, %v14824_v16  ;;  %6565 = vmatmul.msk.f32.vlgmr.msrb.gmra.mxu2 %vm8858_vm2, %v14807_v15  ;;  %v3245_v26 = vadd.f32 %v11152_v36, %v14828_v38  ;;  %v14829_v8 = vld [vmem:[#allocation8_spill] sm:$0xff] }
 0x591   :  { %6542 = vmatmul.msk.f32.gmra.mxu1 %vm1954_vm3, %v14825_v14  ;;  %6620 = vmatmul.msk.f32.vlgmr.msrb.gmra.mxu3 %vm1954_vm3, %v14814_v60 }
 0x592   :  { %7180 = vrot.lane.b32.xlu2 %v7179_v52, %s7261_s2  ;;  %3996 = vmatpush.msra.mxu0 %v2289_v39 }
 0x593   :  { %v3440_v11 = vpop.f32.mrf.mxu2  ;;  %4299 = vmatpush.msra.mxu3 %v2098_v3 }
 0x594   :  { %v3541_v61 = vpop.f32.mrf.mxu3 }
 0x595   :  { %v11325_v42 = vpop.f32.mrf.mxu0 }
 0x596   :  { %v11327_v35 = vpop.f32.mrf.mxu1 }
 0x598   :  { %6501 = vmatmul.msk.f32.gmra.mxu0 %vm8858_vm2, %v14826_v31  ;;  %6567 = vmatmul.msk.f32.gmra.mxu2 %vm8858_vm2, %v14811_v29  ;;  %v14832_v29 = vld [vmem:[#allocation216_spill] sm:$0xff] }
 0x599   :  { %6543 = vmatmul.msk.f32.gmra.mxu1 %vm1954_vm3, %v14827_v32  ;;  %6621 = vmatmul.msk.f32.gmra.mxu3 %vm1954_vm3, %v14815_v19  ;;  %v3248_v60 = vadd.f32 %v11172_v44, %v14832_v29  ;;  %v2285_v44 = vld [vmem:[%s14255_s3 + $0x970] sm:$0xff]  ;;  %v2094_v29 = vld [vmem:[%s14255_s3 + $0x378] sm:$0xff] }
 0x59a   :  { %3997 = vmatpush.msra.mxu0 %v2285_v44  ;;  %4300 = vmatpush.msra.mxu3 %v2094_v29  ;;  %v2281_v44 = vld [vmem:[%s14255_s3 + $0x950] sm:$0xff]  ;;  %v2090_v29 = vld [vmem:[%s14255_s3 + $0x358] sm:$0xff] }
 0x59b   :  { %v3443_v2 = vpop.f32.mrf.mxu2 }
 0x59c   :  { %v3544_v46 = vpop.f32.mrf.mxu3  ;;  %v3444_v49 = vadd.f32 %v3443_v2, %v11178_v1  ;;  %3998 = vmatpush.msra.mxu0 %v2281_v44  ;;  %4301 = vmatpush.msra.mxu3 %v2090_v29 }
 0x59d   :  { %v11342_v56 = vpop.f32.mrf.mxu0 }
 0x59e   :  { %v3363_v52 = vpop.f32.mrf.mxu1  ;;  %4302 = vmatpush.msra.mxu3 %v2086_v30  ;;  %v2273_v30 = vld [vmem:[%s14255_s3 + $0x910] sm:$0xff] }
 0x59f   :  { %v11350_v58 = vadd.f32 %v3363_v52, %v3263_v21  ;;  %v3346_v21 = vadd.f32 %v11204_v4, %v3245_v26  ;;  %v3441_v52 = vadd.f32 %v3440_v11, %v11154_v9  ;;  %v14833_v26 = vld [vmem:[#allocation31_spill] sm:$0xff]  ;;  %v2030_v9 = vld [vmem:[%s14255_s3 + $0x178] sm:$0xff]  ;;  %v14834_v11 = vld [vmem:[#allocation29_spill] sm:$0xff] }
 0x5a0   :  { %6503 = vmatmul.msk.f32.gmra.mxu0 %vm8858_vm2, %v9219_v53  ;;  %6569 = vmatmul.msk.f32.gmra.mxu2 %vm8858_vm2, %v8955_v57 }
 0x5a1   :  { %6544 = vmatmul.msk.f32.gmra.mxu1 %vm1954_vm3, %v14829_v8  ;;  %6622 = vmatmul.msk.f32.gmra.mxu3 %vm1954_vm3, %v14816_v5  ;;  %v11371_v6 = vadd.f32 %v3541_v61, %v3441_v52  ;;  %v3349_v61 = vadd.f32 %v11229_v54, %v3248_v60  ;;  %v2349_v60 = vld [vmem:[%s14255_s3 + $0xb70] sm:$0xff] }
 0x5a2   :  { %4199 = vmatpush.msra.mxu2 %v2030_v9  ;;  %v14837_v54 = vld [vmem:[#allocation33_spill] sm:$0xff]  ;;  %4098 = vmatpush.msra.mxu1 %v2349_v60  ;;  %v2026_v9 = vld [vmem:[%s14255_s3 + $0x158] sm:$0xff] }
 0x5a3   :  { %v3446_v36 = vpop.f32.mrf.mxu2  ;;  %14830 = vst [vmem:[#allocation27_spill] sm:$0xff] %v11371_v6 }
 0x5a4   :  { %v3447_v39 = vadd.f32 %v3446_v36, %v3346_v21  ;;  %v3547_v3 = vpop.f32.mrf.mxu3  ;;  %4200 = vmatpush.msra.mxu2 %v2026_v9  ;;  %v14839_v9 = vld [vmem:[#allocation10_spill] sm:$0xff] }
 0x5a5   :  { %v11369_v38 = vpop.f32.mrf.mxu0 }
 0x5a6   :  { %v11373_v59 = vadd.f32 %v3547_v3, %v3447_v39  ;;  %v11375_v19 = vpop.f32.mrf.mxu1  ;;  %v11403_v3 = vadd.f32 %v3544_v46, %v3444_v49 }
 0x5a8   :  { %14831 = vst [vmem:[#allocation24_spill] sm:$0xff] %v11373_v59  ;;  %v7184_v4 = vpack.i.bf16 %v11373_v59, %v11371_v6  ;;  %6505 = vmatmul.msk.f32.gmra.mxu0 %vm8858_vm2, %v14833_v26  ;;  %6571 = vmatmul.msk.f32.gmra.mxu2 %vm8858_vm2, %v9021_v34 }
 0x5a9   :  { %6545 = vmatmul.msk.f32.gmra.mxu1 %vm1954_vm3, %v14834_v11  ;;  %6623 = vmatmul.msk.f32.gmra.mxu3 %vm1954_vm3, %v14821_v18  ;;  %14835 = vst [vmem:[#allocation25_spill] sm:$0xff] %v11403_v3 }
 0x5aa   :  { %7185 = vrot.lane.b32.xlu2 %v7184_v4, %s7261_s2 }
 0x5ab   :  { %v3449_v21 = vpop.f32.mrf.mxu2 }
 0x5ac   :  { %v3450_v52 = vadd.f32 %v3449_v21, %v3349_v61  ;;  %v3550_v36 = vpop.f32.mrf.mxu3  ;;  %v2345_v61 = vld [vmem:[%s14255_s3 + $0xb50] sm:$0xff] }
 0x5ad   :  { %v3274_v39 = vpop.f32.mrf.mxu0  ;;  %4099 = vmatpush.msra.mxu1 %v2345_v61 }
 0x5ae   :  { %v11405_v59 = vadd.f32 %v3550_v36, %v3450_v52  ;;  %v3275_v6 = vadd.f32 %v3274_v39, %v10936_v41  ;;  %v11408_v15 = vpop.f32.mrf.mxu1 }
 0x5b0   :  { %14836 = vst [vmem:[#allocation26_spill] sm:$0xff] %v11405_v59  ;;  %v7189_v1 = vpack.i.bf16 %v11405_v59, %v11403_v3  ;;  %6507 = vmatmul.msk.f32.gmra.mxu0 %vm8858_vm2, %v9215_v63  ;;  %6573 = vmatmul.msk.f32.gmra.mxu2 %vm8858_vm2, %v8996_v7 }
 0x5b1   :  { %6546 = vmatmul.msk.f32.gmra.mxu1 %vm1954_vm3, %v14837_v54  ;;  %6624 = vmatmul.msk.f32.gmra.mxu3 %vm1954_vm3, %v14825_v14 }
 0x5b2   :  { %7190 = vrot.lane.b32.xlu2 %v7189_v1, %s7261_s2  ;;  %v14838_v1 = vld [vmem:[#allocation223_spill] sm:$0xff] }
 0x5b3   :  { %v3452_v41 = vpop.f32.mrf.mxu2  ;;  %v3257_v60 = vadd.f32 %v11244_v12, %v14838_v1 }
 0x5b4   :  { %v3553_v2 = vpop.f32.mrf.mxu3  ;;  %v3453_v44 = vadd.f32 %v3452_v41, %v11246_v37  ;;  %v2022_v37 = vld [vmem:[%s14255_s3 + $0x138] sm:$0xff]  ;;  %v2341_v41 = vld [vmem:[%s14255_s3 + $0xb30] sm:$0xff] }
 0x5b5   :  { %v11426_v46 = vpop.f32.mrf.mxu0  ;;  %4201 = vmatpush.msra.mxu2 %v2022_v37  ;;  %4100 = vmatpush.msra.mxu1 %v2341_v41  ;;  %v2082_v41 = vld [vmem:[%s14255_s3 + $0x318] sm:$0xff] }
 0x5b6   :  { %v11428_v4 = vpop.f32.mrf.mxu1  ;;  %v11472_v1 = vadd.f32 %v3553_v2, %v3453_v44  ;;  %v3361_v2 = vadd.f32 %v11327_v35, %v3260_v13  ;;  %v14846_v13 = vld [vmem:[#allocation40_spill] sm:$0xff]  ;;  %v2018_v35 = vld [vmem:[%s14255_s3 + $0x118] sm:$0xff]  ;;  %4303 = vmatpush.msra.mxu3 %v2082_v41 }
 0x5b7   :  { %4202 = vmatpush.msra.mxu2 %v2018_v35 }
 0x5b8   :  { %6509 = vmatmul.msk.f32.gmra.mxu0 %vm8858_vm2, %v9302_v27  ;;  %6575 = vmatmul.msk.f32.gmra.mxu2 %vm8858_vm2, %v14820_v40  ;;  %14840 = vst [vmem:[#allocation213_spill] sm:$0xff] %v11472_v1 }
 0x5b9   :  { %6547 = vmatmul.msk.f32.gmra.mxu1 %vm1954_vm3, %v9264_v45  ;;  %6625 = vmatmul.msk.f32.gmra.mxu3 %vm1954_vm3, %v14827_v32 }
 0x5bb   :  { %v3455_v49 = vpop.f32.mrf.mxu2 }
 0x5bc   :  { %v3556_v21 = vpop.f32.mrf.mxu3 }
 0x5bd   :  { %v11452_v52 = vpop.f32.mrf.mxu0 }
 0x5be   :  { %v3375_v36 = vpop.f32.mrf.mxu1 }
 0x5bf   :  { %v11454_v39 = vadd.f32 %v3375_v36, %v3275_v6  ;;  %v3358_v6 = vadd.f32 %v11298_v62, %v3257_v60  ;;  %v2277_v62 = vld [vmem:[%s14255_s3 + $0x930] sm:$0xff]  ;;  %v3456_v60 = vadd.f32 %v3455_v49, %v11277_v23 }
 0x5c0   :  { %6511 = vmatmul.msk.f32.gmra.mxu0 %vm8858_vm2, %v9329_v25  ;;  %6577 = vmatmul.msk.f32.gmra.mxu2 %vm8858_vm2, %v14824_v16 }
 0x5c1   :  { %6548 = vmatmul.msk.f32.gmra.mxu1 %vm1954_vm3, %v14839_v9  ;;  %6626 = vmatmul.msk.f32.gmra.mxu3 %vm1954_vm3, %v14829_v8 }
 0x5c2   :  { %3999 = vmatpush.msra.mxu0 %v2277_v62 }
 0x5c3   :  { %v3458_v29 = vpop.f32.mrf.mxu2 }
 0x5c4   :  { %v3459_v12 = vadd.f32 %v3458_v29, %v3358_v6  ;;  %v3559_v61 = vpop.f32.mrf.mxu3  ;;  %4000 = vmatpush.msra.mxu0 %v2273_v30 }
 0x5c5   :  { %v11470_v36 = vpop.f32.mrf.mxu0 }
 0x5c6   :  { %v11474_v59 = vadd.f32 %v3559_v61, %v3459_v12  ;;  %v11476_v3 = vpop.f32.mrf.mxu1  ;;  %v11509_v61 = vadd.f32 %v3556_v21, %v3456_v60  ;;  %v14848_v60 = vld [vmem:[#allocation228_spill] sm:$0xff] }
 0x5c8   :  { %14841 = vst [vmem:[#allocation216_spill] sm:$0xff] %v11474_v59  ;;  %v7194_v8 = vpack.i.bf16 %v11474_v59, %v11472_v1  ;;  %6513 = vmatmul.msk.f32.gmra.mxu0 %vm8858_vm2, %v14781_v50  ;;  %6579 = vmatmul.msk.f32.gmra.mxu2 %vm8858_vm2, %v14826_v31 }
 0x5c9   :  { %6549 = vmatmul.msk.f32.gmra.mxu1 %vm1954_vm3, %v14843_v43  ;;  %6627 = vmatmul.msk.f32.gmra.mxu3 %vm1954_vm3, %v14834_v11  ;;  %14844 = vst [vmem:[#allocation31_spill] sm:$0xff] %v11509_v61 }
 0x5ca   :  { %7195 = vrot.lane.b32.xlu0 %v7194_v8, %s7261_s2  ;;  %v14847_v8 = vld [vmem:[#allocation11_spill] sm:$0xff] }
 0x5cb   :  { %v3461_v6 = vpop.f32.mrf.mxu2 }
 0x5cc   :  { %v3462_v44 = vadd.f32 %v3461_v6, %v3361_v2  ;;  %v3562_v29 = vpop.f32.mrf.mxu3  ;;  %v2337_v2 = vld [vmem:[%s14255_s3 + $0xb10] sm:$0xff]  ;;  %v3266_v6 = vadd.f32 %v11325_v42, %v14848_v60 }
 0x5cd   :  { %v11507_v12 = vpop.f32.mrf.mxu0  ;;  %4101 = vmatpush.msra.mxu1 %v2337_v2  ;;  %v14852_v2 = vld [vmem:[#allocation45_spill] sm:$0xff] }
 0x5ce   :  { %v11511_v59 = vadd.f32 %v3562_v29, %v3462_v44  ;;  %v11513_v1 = vpop.f32.mrf.mxu1  ;;  %v14849_v44 = vld [vmem:[#allocation12_spill] sm:$0xff]  ;;  %v3367_v29 = vadd.f32 %v11375_v19, %v3266_v6  ;;  %v2014_v19 = vld [vmem:[%s14255_s3 + $0xf8] sm:$0xff] }
 0x5cf   :  { %4203 = vmatpush.msra.mxu2 %v2014_v19 }
 0x5d0   :  { %14845 = vst [vmem:[#allocation223_spill] sm:$0xff] %v11511_v59  ;;  %v7199_v23 = vpack.i.bf16 %v11511_v59, %v11509_v61  ;;  %6515 = vmatmul.msk.f32.gmra.mxu0 %vm8858_vm2, %v14846_v13  ;;  %6581 = vmatmul.msk.f32.gmra.mxu2 %vm8858_vm2, %v9219_v53  ;;  %v14851_v59 = vld [vmem:[#allocation229_spill] sm:$0xff] }
 0x5d1   :  { %6550 = vmatmul.msk.f32.gmra.mxu1 %vm1954_vm3, %v14847_v8  ;;  %6628 = vmatmul.msk.f32.gmra.mxu3 %vm1954_vm3, %v14837_v54  ;;  %v3269_v61 = vadd.f32 %v11342_v56, %v14851_v59  ;;  %v2269_v59 = vld [vmem:[%s14255_s3 + $0x8f0] sm:$0xff]  ;;  %v2078_v56 = vld [vmem:[%s14255_s3 + $0x2f8] sm:$0xff] }
 0x5d2   :  { %7200 = vrot.lane.b32.xlu0 %v7199_v23, %s7261_s2  ;;  %4001 = vmatpush.msra.mxu0 %v2269_v59 }
 0x5d3   :  { %v3464_v49 = vpop.f32.mrf.mxu2  ;;  %v3370_v6 = vadd.f32 %v11408_v15, %v3269_v61  ;;  %4304 = vmatpush.msra.mxu3 %v2078_v56  ;;  %v2333_v61 = vld [vmem:[%s14255_s3 + $0xaf0] sm:$0xff] }
 0x5d4   :  { %v3565_v21 = vpop.f32.mrf.mxu3  ;;  %4102 = vmatpush.msra.mxu1 %v2333_v61 }
 0x5d5   :  { %v11531_v37 = vpop.f32.mrf.mxu0 }
 0x5d6   :  { %v11533_v62 = vpop.f32.mrf.mxu1 }
 0x5d8   :  { %6517 = vmatmul.msk.f32.gmra.mxu0 %vm8858_vm2, %v9404_v22  ;;  %6583 = vmatmul.msk.f32.gmra.mxu2 %vm8858_vm2, %v14833_v26 }
 0x5d9   :  { %6551 = vmatmul.msk.f32.gmra.mxu1 %vm1954_vm3, %v14849_v44  ;;  %6629 = vmatmul.msk.f32.gmra.mxu3 %vm1954_vm3, %v9264_v45 }
 0x5db   :  { %v3467_v23 = vpop.f32.mrf.mxu2 }
 0x5dc   :  { %v3468_v35 = vadd.f32 %v3467_v23, %v3367_v29  ;;  %v3568_v42 = vpop.f32.mrf.mxu3  ;;  %v3465_v29 = vadd.f32 %v3464_v49, %v11350_v58  ;;  %v14856_v58 = vld [vmem:[#allocation46_spill] sm:$0xff]  ;;  %v14857_v49 = vld [vmem:[#allocation43_spill] sm:$0xff] }
 0x5dd   :  { %v11557_v30 = vpop.f32.mrf.mxu0 }
 0x5de   :  { %v11559_v41 = vadd.f32 %v3568_v42, %v3468_v35  ;;  %v11561_v60 = vpop.f32.mrf.mxu1 }
 0x5e0   :  { %14850 = vst [vmem:[#allocation225_spill] sm:$0xff] %v11559_v41  ;;  %6519 = vmatmul.msk.f32.gmra.mxu0 %vm8858_vm2, %v9402_v10  ;;  %6585 = vmatmul.msk.f32.gmra.mxu2 %vm8858_vm2, %v9215_v63  ;;  %v14855_v63 = vld [vmem:[#allocation230_spill] sm:$0xff] }
 0x5e1   :  { %6552 = vmatmul.msk.f32.gmra.mxu1 %vm1954_vm3, %v14852_v2  ;;  %6630 = vmatmul.msk.f32.gmra.mxu3 %vm1954_vm3, %v14839_v9  ;;  %v11588_v9 = vadd.f32 %v3565_v21, %v3465_v29  ;;  %v3272_v11 = vadd.f32 %v11369_v38, %v14855_v63  ;;  %v14859_v29 = vld [vmem:[#allocation23_spill] sm:$0xff] }
 0x5e3   :  { %v3470_v23 = vpop.f32.mrf.mxu2  ;;  %14853 = vst [vmem:[#allocation228_spill] sm:$0xff] %v11588_v9  ;;  %v3373_v63 = vadd.f32 %v11428_v4, %v3272_v11  ;;  %v2010_v11 = vld [vmem:[%s14255_s3 + $0xd8] sm:$0xff]  ;;  %v2265_v4 = vld [vmem:[%s14255_s3 + $0x8d0] sm:$0xff] }
 0x5e4   :  { %v3471_v35 = vadd.f32 %v3470_v23, %v3370_v6  ;;  %v3571_v42 = vpop.f32.mrf.mxu3  ;;  %v2074_v23 = vld [vmem:[%s14255_s3 + $0x2d8] sm:$0xff]  ;;  %4204 = vmatpush.msra.mxu2 %v2010_v11  ;;  %4002 = vmatpush.msra.mxu0 %v2265_v4  ;;  %v14863_v11 = vld [vmem:[#allocation52_spill] sm:$0xff] }
 0x5e5   :  { %v11586_v41 = vpop.f32.mrf.mxu0  ;;  %4305 = vmatpush.msra.mxu3 %v2074_v23 }
 0x5e6   :  { %v11590_v45 = vadd.f32 %v3571_v42, %v3471_v35  ;;  %v11592_v54 = vpop.f32.mrf.mxu1  ;;  %v14860_v35 = vld [vmem:[#allocation17_spill] sm:$0xff] }
 0x5e7   :  { %v2329_v42 = vld [vmem:[%s14255_s3 + $0xad0] sm:$0xff] }
 0x5e8   :  { %14854 = vst [vmem:[#allocation229_spill] sm:$0xff] %v11590_v45  ;;  %v7204_v15 = vpack.i.bf16 %v11590_v45, %v11588_v9  ;;  %6521 = vmatmul.msk.f32.gmra.mxu0 %vm8858_vm2, %v14856_v58  ;;  %6587 = vmatmul.msk.f32.gmra.mxu2 %vm8858_vm2, %v9302_v27  ;;  %v14862_v45 = vld [vmem:[#allocation28_spill] sm:$0xff] }
 0x5e9   :  { %6553 = vmatmul.msk.f32.gmra.mxu1 %vm1954_vm3, %v14857_v49  ;;  %6631 = vmatmul.msk.f32.gmra.mxu3 %vm1954_vm3, %v14843_v43 }
 0x5ea   :  { %7205 = vrot.lane.b32.xlu2 %v7204_v15, %s7261_s2  ;;  %4103 = vmatpush.msra.mxu1 %v2329_v42 }
 0x5eb   :  { %v3473_v38 = vpop.f32.mrf.mxu2 }
 0x5ec   :  { %v3474_v21 = vadd.f32 %v3473_v38, %v3373_v63  ;;  %v3574_v19 = vpop.f32.mrf.mxu3 }
 0x5ed   :  { %v11613_v59 = vpop.f32.mrf.mxu0 }
 0x5ee   :  { %v11615_v56 = vadd.f32 %v3574_v19, %v3474_v21  ;;  %v11617_v6 = vpop.f32.mrf.mxu1  ;;  %v14861_v21 = vld [vmem:[#allocation231_spill] sm:$0xff] }
 0x5ef   :  { %v3278_v19 = vadd.f32 %v11426_v46, %v14861_v21 }
 0x5f0   :  { %14858 = vst [vmem:[#allocation45_spill] sm:$0xff] %v11615_v56  ;;  %6523 = vmatmul.msk.f32.gmra.mxu0 %vm8858_vm2, %v14859_v29  ;;  %6589 = vmatmul.msk.f32.gmra.mxu2 %vm8858_vm2, %v9329_v25 }
 0x5f1   :  { %6554 = vmatmul.msk.f32.gmra.mxu1 %vm1954_vm3, %v14860_v35  ;;  %6632 = vmatmul.msk.f32.gmra.mxu3 %vm1954_vm3, %v14847_v8  ;;  %v3379_v4 = vadd.f32 %v11476_v3, %v3278_v19  ;;  %v2006_v8 = vld [vmem:[%s14255_s3 + $0xb8] sm:$0xff]  ;;  %v14865_v19 = vld [vmem:[#allocation232_spill] sm:$0xff] }
 0x5f2   :  { %4205 = vmatpush.msra.mxu2 %v2006_v8  ;;  %v2070_v3 = vld [vmem:[%s14255_s3 + $0x2b8] sm:$0xff]  ;;  %v2325_v8 = vld [vmem:[%s14255_s3 + $0xab0] sm:$0xff] }
 0x5f3   :  { %v3476_v15 = vpop.f32.mrf.mxu2  ;;  %4306 = vmatpush.msra.mxu3 %v2070_v3  ;;  %4104 = vmatpush.msra.mxu1 %v2325_v8 }
 0x5f4   :  { %v3577_v61 = vpop.f32.mrf.mxu3 }
 0x5f5   :  { %v11641_v63 = vpop.f32.mrf.mxu0 }
 0x5f6   :  { %v11643_v38 = vpop.f32.mrf.mxu1 }
 0x5f8   :  { %6525 = vmatmul.msk.f32.gmra.mxu0 %vm8858_vm2, %v14862_v45  ;;  %6591 = vmatmul.msk.f32.gmra.mxu2 %vm8858_vm2, %v14781_v50 }
 0x5f9   :  { %6555 = vmatmul.msk.f32.gmra.mxu1 %vm1954_vm3, %v14863_v11  ;;  %6633 = vmatmul.msk.f32.gmra.mxu3 %vm1954_vm3, %v14849_v44  ;;  %v2261_v44 = vld [vmem:[%s14255_s3 + $0x8b0] sm:$0xff] }
 0x5fa   :  { %4003 = vmatpush.msra.mxu0 %v2261_v44 }
 0x5fb   :  { %v3479_v23 = vpop.f32.mrf.mxu2 }
 0x5fc   :  { %v3480_v42 = vadd.f32 %v3479_v23, %v3379_v4  ;;  %v3580_v9 = vpop.f32.mrf.mxu3  ;;  %v3281_v4 = vadd.f32 %v11452_v52, %v14865_v19  ;;  %v14867_v23 = vld [vmem:[#allocation53_spill] sm:$0xff] }
 0x5fd   :  { %v11658_v46 = vpop.f32.mrf.mxu0 }
 0x5fe   :  { %v11660_v21 = vadd.f32 %v3580_v9, %v3480_v42  ;;  %v11662_v56 = vpop.f32.mrf.mxu1  ;;  %v14866_v9 = vld [vmem:[#allocation42_spill] sm:$0xff]  ;;  %v3382_v52 = vadd.f32 %v11513_v1, %v3281_v4  ;;  %v3477_v42 = vadd.f32 %v3476_v15, %v11454_v39  ;;  %v2257_v1 = vld [vmem:[%s14255_s3 + $0x890] sm:$0xff] }
 0x5ff   :  { %v14870_v4 = vld [vmem:[#allocation233_spill] sm:$0xff]  ;;  %v2002_v15 = vld [vmem:[%s14255_s3 + $0x98] sm:$0xff]  ;;  %4004 = vmatpush.msra.mxu0 %v2257_v1 }
 0x600   :  { %14864 = vst [vmem:[#allocation230_spill] sm:$0xff] %v11660_v21  ;;  %6527 = vmatmul.msk.f32.gmra.mxu0 %vm8858_vm2, %v14866_v9  ;;  %6593 = vmatmul.msk.f32.gmra.mxu2 %vm8858_vm2, %v14846_v13  ;;  %v11692_v50 = vadd.f32 %v3577_v61, %v3477_v42  ;;  %v3284_v39 = vadd.f32 %v11470_v36, %v14870_v4  ;;  %v2253_v36 = vld [vmem:[%s14255_s3 + $0x870] sm:$0xff]  ;;  %v11724_v61 = vld [vmem:[%s14256_s4] sm:$0xf]  ;;  %v2066_v1 = vld [vmem:[%s14255_s3 + $0x298] sm:$0xff] }
 0x601   :  { %6556 = vmatmul.msk.f32.gmra.mxu1 %vm1954_vm3, %v14867_v23  ;;  %6634 = vmatmul.msk.f32.gmra.mxu3 %vm1954_vm3, %v14852_v2  ;;  %14872 = vst [vmem:[#allocation23_spill] sm:$0xff] %v11724_v61  ;;  %v2249_v4 = vld [vmem:[%s14255_s3 + $0x850] sm:$0xff] }
 0x602   :  { %14868 = vst [vmem:[#allocation46_spill] sm:$0xff] %v11692_v50  ;;  %v3385_v3 = vadd.f32 %v11533_v62, %v3284_v39  ;;  %4206 = vmatpush.msra.mxu2 %v2002_v15  ;;  %4005 = vmatpush.msra.mxu0 %v2253_v36  ;;  %v2321_v39 = vld [vmem:[%s14255_s3 + $0xa90] sm:$0xff]  ;;  %v14874_v36 = vld [vmem:[#allocation51_spill] sm:$0xff] }
 0x603   :  { %v3482_v19 = vpop.f32.mrf.mxu2  ;;  %4307 = vmatpush.msra.mxu3 %v2066_v1  ;;  %v2241_v15 = vld [vmem:[%s14255_s3 + $0x810] sm:$0xff]  ;;  %4105 = vmatpush.msra.mxu1 %v2321_v39 }
 0x604   :  { %v3483_v21 = vadd.f32 %v3482_v19, %v3382_v52  ;;  %v3583_v13 = vpop.f32.mrf.mxu3  ;;  %4006 = vmatpush.msra.mxu0 %v2249_v4 }
 0x605   :  { %v11690_v43 = vpop.f32.mrf.mxu0 }
 0x606   :  { %v11694_v25 = vadd.f32 %v3583_v13, %v3483_v21  ;;  %v11696_v27 = vpop.f32.mrf.mxu1  ;;  %v14871_v13 = vld [vmem:[#allocation47_spill] sm:$0xff]  ;;  %v11727_v21 = vperm.slane %v11724_v61, 2  ;;  %v1994_v61 = vld [vmem:[%s14255_s3 + $0x58] sm:$0xff] }
 0x608   :  { %14869 = vst [vmem:[#allocation43_spill] sm:$0xff] %v11694_v25  ;;  %v7209_v44 = vpack.i.bf16 %v11694_v25, %v11692_v50  ;;  %6529 = vmatmul.msk.f32.gmra.mxu0 %vm8858_vm2, %v9584_v28  ;;  %6595 = vmatmul.msk.f32.gmra.mxu2 %vm8858_vm2, %v9404_v22  ;;  %v3607_v52 = vadd.f32 %v11507_v12, %v11727_v21  ;;  %v2245_v12 = vld [vmem:[%s14255_s3 + $0x830] sm:$0xff] }
 0x609   :  { %6557 = vmatmul.msk.f32.gmra.mxu1 %vm1954_vm3, %v14871_v13  ;;  %6635 = vmatmul.msk.f32.gmra.mxu3 %vm1954_vm3, %v14857_v49 }
 0x60a   :  { %7210 = vrot.lane.b32.xlu2 %v7209_v44, %s7261_s2  ;;  %v3708_v44 = vadd.f32 %v11561_v60, %v3607_v52  ;;  %4007 = vmatpush.msra.mxu0 %v2245_v12  ;;  %v2062_v12 = vld [vmem:[%s14255_s3 + $0x278] sm:$0xff] }
 0x60b   :  { %v3485_v8 = vpop.f32.mrf.mxu2  ;;  %4308 = vmatpush.msra.mxu3 %v2062_v12 }
 0x60c   :  { %v3486_v42 = vadd.f32 %v3485_v8, %v3385_v3  ;;  %v3586_v19 = vpop.f32.mrf.mxu3  ;;  %v3610_v3 = vadd.f32 %v11531_v37, %v11727_v21  ;;  %4008 = vmatpush.msra.mxu0 %v2241_v15  ;;  %v1998_v37 = vld [vmem:[%s14255_s3 + $0x78] sm:$0xff] }
 0x60d   :  { %v11736_v50 = vpop.f32.mrf.mxu0  ;;  %4207 = vmatpush.msra.mxu2 %v1998_v37  ;;  %v2309_v37 = vld [vmem:[%s14255_s3 + $0xa30] sm:$0xff] }
 0x60e   :  { %v11738_v25 = vadd.f32 %v3586_v19, %v3486_v42  ;;  %v11740_v62 = vpop.f32.mrf.mxu1  ;;  %v3711_v1 = vadd.f32 %v11592_v54, %v3610_v3  ;;  %v2317_v54 = vld [vmem:[%s14255_s3 + $0xa70] sm:$0xff] }
 0x60f   :  { %4106 = vmatpush.msra.mxu1 %v2317_v54  ;;  %v2313_v3 = vld [vmem:[%s14255_s3 + $0xa50] sm:$0xff]  ;;  %v3613_v54 = vadd.f32 %v11557_v30, %v11727_v21  ;;  %4208 = vmatpush.msra.mxu2 %v1994_v61 }
 0x610   :  { %14873 = vst [vmem:[#allocation231_spill] sm:$0xff] %v11738_v25  ;;  %6531 = vmatmul.msk.f32.gmra.mxu0 %vm8858_vm2, %v9606_v51  ;;  %6597 = vmatmul.msk.f32.gmra.mxu2 %vm8858_vm2, %v9402_v10 }
 0x611   :  { %6558 = vmatmul.msk.f32.gmra.mxu1 %vm1954_vm3, %v14874_v36  ;;  %6636 = vmatmul.msk.f32.gmra.mxu3 %vm1954_vm3, %v14860_v35  ;;  %v3714_v30 = vadd.f32 %v11617_v6, %v3613_v54  ;;  %v2058_v6 = vld [vmem:[%s14255_s3 + $0x258] sm:$0xff] }
 0x612   :  { %4107 = vmatpush.msra.mxu1 %v2313_v3  ;;  %4309 = vmatpush.msra.mxu3 %v2058_v6 }
 0x613   :  { %v3808_v60 = vpop.f32.mrf.mxu2 }
 0x614   :  { %v3809_v8 = vadd.f32 %v3808_v60, %v3708_v44  ;;  %v3909_v52 = vpop.f32.mrf.mxu3  ;;  %4108 = vmatpush.msra.mxu1 %v2309_v37 }
 0x615   :  { %v11767_v42 = vpop.f32.mrf.mxu0 }
 0x616   :  { %v11769_v19 = vadd.f32 %v3909_v52, %v3809_v8  ;;  %v11771_v4 = vpop.f32.mrf.mxu1 }
 0x618   :  { %6533 = vmatmul.msk.f32.gmra.mxu0 %vm8858_vm2, %v9682_v20  ;;  %6599 = vmatmul.msk.f32.gmra.mxu2 %vm8858_vm2, %v14856_v58 }
 0x619   :  { %6559 = vmatmul.msk.f32.gmra.mxu1 %vm1954_vm3, %v9635_v48  ;;  %6637 = vmatmul.msk.f32.gmra.mxu3 %vm1954_vm3, %v14863_v11 }
 0x61b   :  { %v3811_v39 = vpop.f32.mrf.mxu2 }
 0x61c   :  { %v3812_v44 = vadd.f32 %v3811_v39, %v3711_v1  ;;  %v3912_v15 = vpop.f32.mrf.mxu3  ;;  %v2305_v1 = vld [vmem:[%s14255_s3 + $0xa10] sm:$0xff] }
 0x61d   :  { %v11793_v60 = vpop.f32.mrf.mxu0  ;;  %4109 = vmatpush.msra.mxu1 %v2305_v1 }
 0x61e   :  { %v11798_v8 = vadd.f32 %v3912_v15, %v3812_v44  ;;  %v11800_v52 = vpop.f32.mrf.mxu1 }
 0x620   :  { %14875 = vst [vmem:[#allocation28_spill] sm:$0xff] %v11798_v8  ;;  %6535 = vmatmul.msk.f32.gmra.mxu0 %vm8858_vm2, %v9756_v47  ;;  %6601 = vmatmul.msk.f32.gmra.mxu2 %vm8858_vm2, %v14859_v29  ;;  %v3616_v8 = vadd.f32 %v11586_v41, %v11727_v21 }
 0x621   :  { %6560 = vmatmul.msk.f32.gmra.mxu1 %vm1954_vm3, %v9652_v24  ;;  %6638 = vmatmul.msk.f32.gmra.mxu3 %vm1954_vm3, %v14867_v23 }
 0x622   :  { %v3717_v41 = vadd.f32 %v11643_v38, %v3616_v8  ;;  %v14877_v38 = vld [vmem:[#allocation86_spill] sm:$0xff] }
 0x623   :  { %v3814_v12 = vpop.f32.mrf.mxu2 }
 0x624   :  { %v3815_v39 = vadd.f32 %v3814_v12, %v3714_v30  ;;  %v3915_v44 = vpop.f32.mrf.mxu3 }
 0x625   :  { %v11821_v15 = vpop.f32.mrf.mxu0 }
 0x626   :  { %v11823_v3 = vadd.f32 %v3915_v44, %v3815_v39  ;;  %v11825_v25 = vpop.f32.mrf.mxu1  ;;  %v3619_v44 = vadd.f32 %v11613_v59, %v11727_v21 }
 0x628   :  { %6537 = vmatmul.msk.f32.gmra.mxu0 %vm8858_vm2, %v9784_v33  ;;  %6603 = vmatmul.msk.f32.gmra.mxu2 %vm8858_vm2, %v14862_v45  ;;  %v3720_v61 = vadd.f32 %v11662_v56, %v3619_v44  ;;  %v3622_v56 = vadd.f32 %v11641_v63, %v11727_v21 }
 0x629   :  { %6561 = vmatmul.msk.f32.gmra.mxu1 %vm1954_vm3, %v9697_v55  ;;  %6639 = vmatmul.msk.f32.gmra.mxu3 %vm1954_vm3, %v14871_v13 }
 0x62a   :  { %v3723_v44 = vadd.f32 %v11696_v27, %v3622_v56  ;;  %v1986_v27 = vld [vmem:[%s14255_s3 + $0x18] sm:$0xff] }
 0x62b   :  { %v3817_v37 = vpop.f32.mrf.mxu2 }
 0x62c   :  { %v3818_v54 = vadd.f32 %v3817_v37, %v3717_v41  ;;  %v3918_v1 = vpop.f32.mrf.mxu3 }
 0x62d   :  { %v11846_v30 = vpop.f32.mrf.mxu0 }
 0x62e   :  { %v11848_v12 = vadd.f32 %v3918_v1, %v3818_v54  ;;  %v11850_v39 = vpop.f32.mrf.mxu1  ;;  %v1990_v1 = vld [vmem:[%s14255_s3 + $0x38] sm:$0xff] }
 0x62f   :  { %4209 = vmatpush.msra.mxu2 %v1990_v1 }
 0x630   :  { %14876 = vst [vmem:[#allocation52_spill] sm:$0xff] %v11848_v12  ;;  %6605 = vmatmul.msk.f32.gmra.mxu2 %vm8858_vm2, %v14866_v9  ;;  %6649 = vmatmul.msk.f32.vlgmr.msra.gmra.mxu0 %vm8858_vm2, %v8955_v57  ;;  %v2054_v12 = vld [vmem:[%s14255_s3 + $0x238] sm:$0xff] }
 0x631   :  { %6562 = vmatmul.msk.f32.gmra.mxu1 %vm1954_vm3, %v14877_v38  ;;  %6640 = vmatmul.msk.f32.gmra.mxu3 %vm1954_vm3, %v14874_v36 }
 0x632   :  { %4310 = vmatpush.msra.mxu3 %v2054_v12  ;;  %4210 = vmatpush.msra.mxu2 %v1986_v27 }
 0x633   :  { %v3820_v8 = vpop.f32.mrf.mxu2 }
 0x634   :  { %v3821_v6 = vadd.f32 %v3820_v8, %v3720_v61  ;;  %v3921_v41 = vpop.f32.mrf.mxu3 }
 0x635   :  { %v11865_v59 = vpop.f32.mrf.mxu0 }
 0x636   :  { %v11867_v37 = vadd.f32 %v3921_v41, %v3821_v6  ;;  %v11869_v54 = vpop.f32.mrf.mxu1 }
 0x638   :  { %14878 = vst [vmem:[#allocation232_spill] sm:$0xff] %v11867_v37  ;;  %6607 = vmatmul.msk.f32.gmra.mxu2 %vm8858_vm2, %v9584_v28  ;;  %6651 = vmatmul.msk.f32.gmra.mxu0 %vm8858_vm2, %v9021_v34  ;;  %v3625_v37 = vadd.f32 %v11658_v46, %v11727_v21 }
 0x639   :  { %6563 = vmatmul.msk.f32.gmra.mxu1 %vm1954_vm3, %v9823_v0  ;;  %6641 = vmatmul.msk.f32.gmra.mxu3 %vm1954_vm3, %v9635_v48  ;;  %v3646_v48 = vadd.f32 %v11865_v59, %v11727_v21 }
 0x63a   :  { %v3726_v46 = vadd.f32 %v11740_v62, %v3625_v37 }
 0x63b   :  { %v3823_v61 = vpop.f32.mrf.mxu2 }
 0x63c   :  { %v3824_v8 = vadd.f32 %v3823_v61, %v3723_v44  ;;  %v3924_v63 = vpop.f32.mrf.mxu3 }
 0x63d   :  { %v11890_v6 = vpop.f32.mrf.mxu0 }
 0x63e   :  { %v11892_v41 = vadd.f32 %v3924_v63, %v3824_v8  ;;  %v11894_v1 = vpop.f32.mrf.mxu1 }
 0x640   :  { %14879 = vst [vmem:[#allocation42_spill] sm:$0xff] %v11892_v41  ;;  %6609 = vmatmul.msk.f32.gmra.mxu2 %vm8858_vm2, %v9606_v51  ;;  %6653 = vmatmul.msk.f32.gmra.mxu0 %vm8858_vm2, %v8996_v7  ;;  %v2050_v41 = vld [vmem:[%s14255_s3 + $0x218] sm:$0xff] }
 0x641   :  { %6642 = vmatmul.msk.f32.gmra.mxu3 %vm1954_vm3, %v9652_v24  ;;  %6700 = vmatmul.msk.f32.vlgmr.msra.gmra.mxu1 %vm1954_vm3, %v14816_v5  ;;  %v3628_v24 = vadd.f32 %v11690_v43, %v11727_v21 }
 0x642   :  { %4311 = vmatpush.msra.mxu3 %v2050_v41 }
 0x643   :  { %v3826_v12 = vpop.f32.mrf.mxu2  ;;  %v3729_v62 = vadd.f32 %v11771_v4, %v3628_v24  ;;  %v2302_v24 = vld [vmem:[%s14255_s3 + $0x9f8] sm:$0xff] }
 0x644   :  { %v3827_v56 = vadd.f32 %v3826_v12, %v3726_v46  ;;  %v3927_v44 = vpop.f32.mrf.mxu3  ;;  %v2366_v4 = vld [vmem:[%s14255_s3 + $0xbf8] sm:$0xff]  ;;  %4599 = vmatpush.msrb.mxu2 %v2302_v24 }
 0x645   :  { %v11912_v61 = vpop.f32.mrf.mxu0  ;;  %4700 = vmatpush.msrb.mxu3 %v2366_v4 }
 0x646   :  { %v11914_v8 = vadd.f32 %v3927_v44, %v3827_v56  ;;  %v11916_v63 = vpop.f32.mrf.mxu1  ;;  %v3631_v56 = vadd.f32 %v11736_v50, %v11727_v21  ;;  %v2174_v50 = vld [vmem:[%s14255_s3 + $0x5f8] sm:$0xff] }
 0x647   :  { %4397 = vmatpush.msrb.mxu0 %v2174_v50 }
 0x648   :  { %14880 = vst [vmem:[#allocation53_spill] sm:$0xff] %v11914_v8  ;;  %6611 = vmatmul.msk.f32.gmra.mxu2 %vm8858_vm2, %v9682_v20  ;;  %6655 = vmatmul.msk.f32.gmra.mxu0 %vm8858_vm2, %v14820_v40  ;;  %v3732_v44 = vadd.f32 %v11800_v52, %v3631_v56  ;;  %v2238_v8 = vld [vmem:[%s14255_s3 + $0x7f8] sm:$0xff]  ;;  %v3634_v52 = vadd.f32 %v11767_v42, %v11727_v21  ;;  %v14896_v20 = vld [vmem:[#allocation35_spill] sm:$0xff] }
 0x649   :  { %6643 = vmatmul.msk.f32.gmra.mxu3 %vm1954_vm3, %v9697_v55  ;;  %6701 = vmatmul.msk.f32.gmra.mxu1 %vm1954_vm3, %v14821_v18  ;;  %v3640_v55 = vadd.f32 %v11821_v15, %v11727_v21 }
 0x64a   :  { %4498 = vmatpush.msrb.mxu1 %v2238_v8  ;;  %v3735_v56 = vadd.f32 %v11825_v25, %v3634_v52  ;;  %v2170_v25 = vld [vmem:[%s14255_s3 + $0x5d8] sm:$0xff] }
 0x64b   :  { %v3829_v37 = vpop.f32.mrf.mxu2  ;;  %v2362_v52 = vld [vmem:[%s14255_s3 + $0xbd8] sm:$0xff]  ;;  %4398 = vmatpush.msrb.mxu0 %v2170_v25 }
 0x64c   :  { %v3830_v41 = vadd.f32 %v3829_v37, %v3729_v62  ;;  %v3930_v27 = vpop.f32.mrf.mxu3  ;;  %4701 = vmatpush.msrb.mxu3 %v2362_v52 }
 0x64d   :  { %v11934_v43 = vpop.f32.mrf.mxu0 }
 0x64e   :  { %v11936_v46 = vadd.f32 %v3930_v27, %v3830_v41  ;;  %v11938_v12 = vpop.f32.mrf.mxu1 }
 0x650   :  { %14881 = vst [vmem:[#allocation233_spill] sm:$0xff] %v11936_v46  ;;  %6613 = vmatmul.msk.f32.gmra.mxu2 %vm8858_vm2, %v9756_v47  ;;  %6657 = vmatmul.msk.f32.gmra.mxu0 %vm8858_vm2, %v14824_v16 }
 0x651   :  { %6644 = vmatmul.msk.f32.gmra.mxu3 %vm1954_vm3, %v14877_v38  ;;  %6702 = vmatmul.msk.f32.gmra.mxu1 %vm1954_vm3, %v14825_v14 }
 0x653   :  { %v3832_v62 = vpop.f32.mrf.mxu2 }
 0x654   :  { %v3833_v37 = vadd.f32 %v3832_v62, %v3732_v44  ;;  %v3933_v41 = vpop.f32.mrf.mxu3  ;;  %v2298_v62 = vld [vmem:[%s14255_s3 + $0x9d8] sm:$0xff] }
 0x655   :  { %v11962_v27 = vpop.f32.mrf.mxu0  ;;  %4600 = vmatpush.msrb.mxu2 %v2298_v62  ;;  %v14890_v62 = vld [vmem:[#allocation29_spill] sm:$0xff] }
 0x656   :  { %v11964_v46 = vadd.f32 %v3933_v41, %v3833_v37  ;;  %v11966_v38 = vpop.f32.mrf.mxu1  ;;  %v3637_v37 = vadd.f32 %v11793_v60, %v11727_v21  ;;  %v14884_v41 = vld [vmem:[#allocation108_spill] sm:$0xff] }
 0x657   :  { %v14886_v60 = vld [vmem:[#allocation8_spill] sm:$0xff] }
 0x658   :  { %14882 = vst [vmem:[#allocation47_spill] sm:$0xff] %v11964_v46  ;;  %6615 = vmatmul.msk.f32.gmra.mxu2 %vm8858_vm2, %v9784_v33  ;;  %6659 = vmatmul.msk.f32.gmra.mxu0 %vm8858_vm2, %v14826_v31  ;;  %v14888_v33 = vld [vmem:[#allocation120_spill] sm:$0xff] }
 0x659   :  { %6645 = vmatmul.msk.f32.gmra.mxu3 %vm1954_vm3, %v9823_v0  ;;  %6703 = vmatmul.msk.f32.gmra.mxu1 %vm1954_vm3, %v14827_v32 }
 0x65b   :  { %v3835_v8 = vpop.f32.mrf.mxu2 }
 0x65c   :  { %v3836_v24 = vadd.f32 %v3835_v8, %v3735_v56  ;;  %v3936_v50 = vpop.f32.mrf.mxu3  ;;  %v14885_v56 = vld [vmem:[#allocation109_spill] sm:$0xff]  ;;  %v2234_v8 = vld [vmem:[%s14255_s3 + $0x7d8] sm:$0xff] }
 0x65d   :  { %v11984_v42 = vpop.f32.mrf.mxu0  ;;  %4499 = vmatpush.msrb.mxu1 %v2234_v8 }
 0x65e   :  { %v11986_v4 = vadd.f32 %v3936_v50, %v3836_v24  ;;  %v11988_v44 = vpop.f32.mrf.mxu1  ;;  %v3738_v24 = vadd.f32 %v11850_v39, %v3637_v37  ;;  %v14889_v39 = vld [vmem:[#allocation121_spill] sm:$0xff] }
 0x660   :  { %14883 = vst [vmem:[#allocation51_spill] sm:$0xff] %v11986_v4  ;;  %6617 = vmatmul.msk.f32.gmra.mxu2 %vm8858_vm2, %v14884_v41  ;;  %6661 = vmatmul.msk.f32.gmra.mxu0 %vm8858_vm2, %v9219_v53 }
 0x661   :  { %6646 = vmatmul.msk.f32.gmra.mxu3 %vm1954_vm3, %v14885_v56  ;;  %6704 = vmatmul.msk.f32.gmra.mxu1 %vm1954_vm3, %v14886_v60 }
 0x663   :  { %v3838_v50 = vpop.f32.mrf.mxu2 }
 0x664   :  { %v3839_v4 = vadd.f32 %v3838_v50, %v3738_v24  ;;  %v3939_v46 = vpop.f32.mrf.mxu3  ;;  %v2294_v24 = vld [vmem:[%s14255_s3 + $0x9b8] sm:$0xff] }
 0x665   :  { %v12015_v0 = vpop.f32.mrf.mxu0  ;;  %4601 = vmatpush.msrb.mxu2 %v2294_v24  ;;  %v2166_v50 = vld [vmem:[%s14255_s3 + $0x5b8] sm:$0xff] }
 0x666   :  { %v12017_v41 = vadd.f32 %v3939_v46, %v3839_v4  ;;  %v12019_v56 = vpop.f32.mrf.mxu1  ;;  %v3741_v46 = vadd.f32 %v11869_v54, %v3640_v55  ;;  %v2358_v55 = vld [vmem:[%s14255_s3 + $0xbb8] sm:$0xff]  ;;  %v3643_v54 = vadd.f32 %v11846_v30, %v11727_v21  ;;  %4399 = vmatpush.msrb.mxu0 %v2166_v50 }
 0x667   :  { %4702 = vmatpush.msrb.mxu3 %v2358_v55 }
 0x668   :  { %14887 = vst [vmem:[#allocation8_spill] sm:$0xff] %v12017_v41  ;;  %6619 = vmatmul.msk.f32.gmra.mxu2 %vm8858_vm2, %v14888_v33  ;;  %6663 = vmatmul.msk.f32.gmra.mxu0 %vm8858_vm2, %v14833_v26  ;;  %v3744_v24 = vadd.f32 %v11894_v1, %v3643_v54  ;;  %v14897_v1 = vld [vmem:[#allocation9_spill] sm:$0xff] }
 0x669   :  { %6647 = vmatmul.msk.f32.gmra.mxu3 %vm1954_vm3, %v14889_v39  ;;  %6705 = vmatmul.msk.f32.gmra.mxu1 %vm1954_vm3, %v14890_v62 }
 0x66b   :  { %v3841_v4 = vpop.f32.mrf.mxu2 }
 0x66c   :  { %v3842_v37 = vadd.f32 %v3841_v4, %v3741_v46  ;;  %v3942_v25 = vpop.f32.mrf.mxu3  ;;  %v14892_v46 = vld [vmem:[#allocation30_spill] sm:$0xff]  ;;  %v14893_v4 = vmov 0.0  }
 0x66d   :  { %v12034_v15 = vpop.f32.mrf.mxu0 }
 0x66e   :  { %v12036_v52 = vadd.f32 %v3942_v25, %v3842_v37  ;;  %v12038_v8 = vpop.f32.mrf.mxu1  ;;  %v2230_v37 = vld [vmem:[%s14255_s3 + $0x7b8] sm:$0xff]  ;;  %v14894_v25 = vld [vmem:[#allocation33_spill] sm:$0xff] }
 0x66f   :  { %4500 = vmatpush.msrb.mxu1 %v2230_v37 }
 0x670   :  { %14891 = vst [vmem:[#allocation29_spill] sm:$0xff] %v12036_v52  ;;  %6665 = vmatmul.msk.f32.gmra.mxu0 %vm8858_vm2, %v14892_v46  ;;  %4211 = vmatmul.f32.vlgmr.msra.gmra.mxu2 %v14893_v4 }
 0x671   :  { %6706 = vmatmul.msk.f32.gmra.mxu1 %vm1954_vm3, %v14894_v25  ;;  %4312 = vmatmul.f32.vlgmr.msra.gmra.mxu3 %v14893_v4 }
 0x673   :  { %v3844_v30 = vpop.f32.mrf.mxu2 }
 0x674   :  { %v3845_v52 = vadd.f32 %v3844_v30, %v3744_v24  ;;  %v3945_v41 = vpop.f32.mrf.mxu3  ;;  %v2162_v30 = vld [vmem:[%s14255_s3 + $0x598] sm:$0xff] }
 0x675   :  { %v12062_v39 = vpop.f32.mrf.mxu0  ;;  %4400 = vmatpush.msrb.mxu0 %v2162_v30 }
 0x676   :  { %v12064_v33 = vadd.f32 %v3945_v41, %v3845_v52  ;;  %v12066_v47 = vpop.f32.mrf.mxu1  ;;  %v2290_v41 = vld [vmem:[%s14255_s3 + $0x998] sm:$0xff]  ;;  %v3747_v52 = vadd.f32 %v11916_v63, %v3646_v48  ;;  %v3649_v63 = vadd.f32 %v11890_v6, %v11727_v21 }
 0x677   :  { %4602 = vmatpush.msrb.mxu2 %v2290_v41  ;;  %v2226_v48 = vld [vmem:[%s14255_s3 + $0x798] sm:$0xff] }
 0x678   :  { %14895 = vst [vmem:[#allocation30_spill] sm:$0xff] %v12064_v33  ;;  %6667 = vmatmul.msk.f32.gmra.mxu0 %vm8858_vm2, %v14896_v20  ;;  %4214 = vmatmul.f32.gmra.mxu2 %v14893_v4  ;;  %v2354_v33 = vld [vmem:[%s14255_s3 + $0xb98] sm:$0xff] }
 0x679   :  { %6707 = vmatmul.msk.f32.gmra.mxu1 %vm1954_vm3, %v14897_v1  ;;  %4315 = vmatmul.f32.gmra.mxu3 %v14893_v4  ;;  %v14899_v41 = vld [vmem:[#allocation38_spill] sm:$0xff] }
 0x67a   :  { %4703 = vmatpush.msrb.mxu3 %v2354_v33  ;;  %v3750_v33 = vadd.f32 %v11938_v12, %v3649_v63  ;;  %4501 = vmatpush.msrb.mxu1 %v2226_v48  ;;  %v14904_v20 = vld [vmem:[#allocation34_spill] sm:$0xff]  ;;  %v14906_v48 = vld [vmem:[#allocation37_spill] sm:$0xff]  ;;  %v14907_v63 = vld [vmem:[#allocation19_spill] sm:$0xff] }
 0x67b   :  { %v3847_v50 = vpop.f32.mrf.mxu2  ;;  %v2286_v12 = vld [vmem:[%s14255_s3 + $0x978] sm:$0xff] }
 0x67c   :  { %v3848_v59 = vadd.f32 %v3847_v50, %v3747_v52  ;;  %v3948_v55 = vpop.f32.mrf.mxu3  ;;  %v14900_v52 = vld [vmem:[#allocation5_spill] sm:$0xff]  ;;  %v14901_v50 = vld [vmem:[#allocation10_spill] sm:$0xff]  ;;  %4603 = vmatpush.msrb.mxu2 %v2286_v12 }
 0x67d   :  { %v12081_v54 = vpop.f32.mrf.mxu0 }
 0x67e   :  { %v12083_v37 = vadd.f32 %v3948_v55, %v3848_v59  ;;  %v12085_v24 = vpop.f32.mrf.mxu1  ;;  %v14902_v59 = vld [vmem:[#allocation18_spill] sm:$0xff] }
 0x680   :  { %14898 = vst [vmem:[#allocation33_spill] sm:$0xff] %v12083_v37  ;;  %6669 = vmatmul.msk.f32.gmra.mxu0 %vm8858_vm2, %v14899_v41  ;;  %6727 = vmatmul.msk.f32.gmra.mxu2 %vm8858_vm2, %v14900_v52  ;;  %v3652_v52 = vadd.f32 %v11912_v61, %v11727_v21  ;;  %v2158_v61 = vld [vmem:[%s14255_s3 + $0x578] sm:$0xff] }
 0x681   :  { %6708 = vmatmul.msk.f32.gmra.mxu1 %vm1954_vm3, %v14901_v50  ;;  %6778 = vmatmul.msk.f32.gmra.mxu3 %vm1954_vm3, %v14902_v59  ;;  %v14905_v59 = vld [vmem:[#allocation16_spill] sm:$0xff] }
 0x682   :  { %4401 = vmatpush.msrb.mxu0 %v2158_v61 }
 0x683   :  { %v3850_v55 = vpop.f32.mrf.mxu2 }
 0x684   :  { %v3851_v30 = vadd.f32 %v3850_v55, %v3750_v33  ;;  %v3951_v6 = vpop.f32.mrf.mxu3  ;;  %v2350_v33 = vld [vmem:[%s14255_s3 + $0xb78] sm:$0xff]  ;;  %v3753_v55 = vadd.f32 %v11966_v38, %v3652_v52  ;;  %v3655_v38 = vadd.f32 %v11934_v43, %v11727_v21  ;;  %v14909_v52 = vld [vmem:[#allocation40_spill] sm:$0xff] }
 0x685   :  { %v12109_v37 = vpop.f32.mrf.mxu0  ;;  %4704 = vmatpush.msrb.mxu3 %v2350_v33 }
 0x686   :  { %v12111_v4 = vadd.f32 %v3951_v6, %v3851_v30  ;;  %v12113_v41 = vpop.f32.mrf.mxu1  ;;  %v3756_v12 = vadd.f32 %v11988_v44, %v3655_v38  ;;  %v2154_v44 = vld [vmem:[%s14255_s3 + $0x558] sm:$0xff] }
 0x687   :  { %v2346_v38 = vld [vmem:[%s14255_s3 + $0xb58] sm:$0xff]  ;;  %4402 = vmatpush.msrb.mxu0 %v2154_v44 }
 0x688   :  { %14903 = vst [vmem:[#allocation9_spill] sm:$0xff] %v12111_v4  ;;  %6671 = vmatmul.msk.f32.gmra.mxu0 %vm8858_vm2, %v14904_v20  ;;  %6729 = vmatmul.msk.f32.gmra.mxu2 %vm8858_vm2, %v14905_v59 }
 0x689   :  { %6709 = vmatmul.msk.f32.gmra.mxu1 %vm1954_vm3, %v14906_v48  ;;  %6779 = vmatmul.msk.f32.gmra.mxu3 %vm1954_vm3, %v14907_v63  ;;  %v2222_v48 = vld [vmem:[%s14255_s3 + $0x778] sm:$0xff] }
 0x68a   :  { %4502 = vmatpush.msrb.mxu1 %v2222_v48  ;;  %4705 = vmatpush.msrb.mxu3 %v2346_v38 }
 0x68b   :  { %v3853_v30 = vpop.f32.mrf.mxu2 }
 0x68c   :  { %v3854_v6 = vadd.f32 %v3853_v30, %v3753_v55  ;;  %v3954_v4 = vpop.f32.mrf.mxu3 }
 0x68d   :  { %v12137_v59 = vpop.f32.mrf.mxu0 }
 0x68e   :  { %v12139_v20 = vadd.f32 %v3954_v4, %v3854_v6  ;;  %v12141_v63 = vpop.f32.mrf.mxu1  ;;  %v14910_v4 = vld [vmem:[#allocation11_spill] sm:$0xff]  ;;  %v2282_v6 = vld [vmem:[%s14255_s3 + $0x958] sm:$0xff] }
 0x68f   :  { %4604 = vmatpush.msrb.mxu2 %v2282_v6 }
 0x690   :  { %14908 = vst [vmem:[#allocation10_spill] sm:$0xff] %v12139_v20  ;;  %6673 = vmatmul.msk.f32.gmra.mxu0 %vm8858_vm2, %v14909_v52  ;;  %6731 = vmatmul.msk.f32.gmra.mxu2 %vm8858_vm2, %v8955_v57  ;;  %v3658_v20 = vadd.f32 %v11962_v27, %v11727_v21  ;;  %v2218_v27 = vld [vmem:[%s14255_s3 + $0x758] sm:$0xff] }
 0x691   :  { %6710 = vmatmul.msk.f32.gmra.mxu1 %vm1954_vm3, %v14910_v4  ;;  %6780 = vmatmul.msk.f32.gmra.mxu3 %vm1954_vm3, %v14816_v5 }
 0x692   :  { %4503 = vmatpush.msrb.mxu1 %v2218_v27  ;;  %v2278_v27 = vld [vmem:[%s14255_s3 + $0x938] sm:$0xff] }
 0x693   :  { %v3856_v48 = vpop.f32.mrf.mxu2  ;;  %4605 = vmatpush.msrb.mxu2 %v2278_v27 }
 0x694   :  { %v3857_v61 = vadd.f32 %v3856_v48, %v3756_v12  ;;  %v3957_v33 = vpop.f32.mrf.mxu3  ;;  %v14912_v12 = vld [vmem:[#allocation12_spill] sm:$0xff]  ;;  %v3759_v48 = vadd.f32 %v12019_v56, %v3658_v20 }
 0x695   :  { %v12159_v43 = vpop.f32.mrf.mxu0 }
 0x696   :  { %v12161_v55 = vadd.f32 %v3957_v33, %v3857_v61  ;;  %v12163_v30 = vpop.f32.mrf.mxu1 }
 0x698   :  { %14911 = vst [vmem:[#allocation40_spill] sm:$0xff] %v12161_v55  ;;  %6675 = vmatmul.msk.f32.gmra.mxu0 %vm8858_vm2, %v9404_v22  ;;  %6733 = vmatmul.msk.f32.gmra.mxu2 %vm8858_vm2, %v9021_v34 }
 0x699   :  { %6711 = vmatmul.msk.f32.gmra.mxu1 %vm1954_vm3, %v14912_v12  ;;  %6781 = vmatmul.msk.f32.gmra.mxu3 %vm1954_vm3, %v14821_v18  ;;  %v3661_v18 = vadd.f32 %v11984_v42, %v11727_v21 }
 0x69b   :  { %v3859_v61 = vpop.f32.mrf.mxu2  ;;  %v3762_v20 = vadd.f32 %v12038_v8, %v3661_v18  ;;  %v2342_v18 = vld [vmem:[%s14255_s3 + $0xb38] sm:$0xff]  ;;  %v3664_v8 = vadd.f32 %v12015_v0, %v11727_v21 }
 0x69c   :  { %v3860_v33 = vadd.f32 %v3859_v61, %v3759_v48  ;;  %v3960_v55 = vpop.f32.mrf.mxu3  ;;  %v2150_v48 = vld [vmem:[%s14255_s3 + $0x538] sm:$0xff]  ;;  %4706 = vmatpush.msrb.mxu3 %v2342_v18 }
 0x69d   :  { %v12190_v5 = vpop.f32.mrf.mxu0  ;;  %v2214_v61 = vld [vmem:[%s14255_s3 + $0x738] sm:$0xff]  ;;  %v3765_v0 = vadd.f32 %v12066_v47, %v3664_v8  ;;  %4403 = vmatpush.msrb.mxu0 %v2150_v48 }
 0x69e   :  { %v12192_v34 = vadd.f32 %v3960_v55, %v3860_v33  ;;  %v12194_v57 = vpop.f32.mrf.mxu1  ;;  %4504 = vmatpush.msrb.mxu1 %v2214_v61 }
 0x6a0   :  { %6677 = vmatmul.msk.f32.gmra.mxu0 %vm8858_vm2, %v9402_v10  ;;  %6735 = vmatmul.msk.f32.gmra.mxu2 %vm8858_vm2, %v8996_v7 }
 0x6a1   :  { %6712 = vmatmul.msk.f32.gmra.mxu1 %vm1954_vm3, %v14852_v2  ;;  %6782 = vmatmul.msk.f32.gmra.mxu3 %vm1954_vm3, %v14825_v14 }
 0x6a3   :  { %v3862_v56 = vpop.f32.mrf.mxu2 }
 0x6a4   :  { %v3863_v55 = vadd.f32 %v3862_v56, %v3762_v20  ;;  %v3963_v6 = vpop.f32.mrf.mxu3 }
 0x6a5   :  { %v12209_v42 = vpop.f32.mrf.mxu0 }
 0x6a6   :  { %v12211_v44 = vadd.f32 %v3963_v6, %v3863_v55  ;;  %v12213_v38 = vpop.f32.mrf.mxu1 }
 0x6a8   :  { %14913 = vst [vmem:[#allocation12_spill] sm:$0xff] %v12211_v44  ;;  %6679 = vmatmul.msk.f32.gmra.mxu0 %vm8858_vm2, %v14856_v58  ;;  %6737 = vmatmul.msk.f32.gmra.mxu2 %vm8858_vm2, %v14820_v40  ;;  %v3667_v44 = vadd.f32 %v12034_v15, %v11727_v21  ;;  %v2274_v15 = vld [vmem:[%s14255_s3 + $0x918] sm:$0xff] }
 0x6a9   :  { %6713 = vmatmul.msk.f32.gmra.mxu1 %vm1954_vm3, %v14857_v49  ;;  %6783 = vmatmul.msk.f32.gmra.mxu3 %vm1954_vm3, %v14827_v32 }
 0x6aa   :  { %v3768_v47 = vadd.f32 %v12085_v24, %v3667_v44  ;;  %4606 = vmatpush.msrb.mxu2 %v2274_v15  ;;  %v2338_v24 = vld [vmem:[%s14255_s3 + $0xb18] sm:$0xff] }
 0x6ab   :  { %v3865_v33 = vpop.f32.mrf.mxu2  ;;  %4707 = vmatpush.msrb.mxu3 %v2338_v24  ;;  %v2210_v44 = vld [vmem:[%s14255_s3 + $0x718] sm:$0xff] }
 0x6ac   :  { %v3866_v20 = vadd.f32 %v3865_v33, %v3765_v0  ;;  %v3966_v56 = vpop.f32.mrf.mxu3  ;;  %4505 = vmatpush.msrb.mxu1 %v2210_v44 }
 0x6ad   :  { %v4010_v55 = vpop.f32.mrf.mxu0 }
 0x6ae   :  { %v12240_v6 = vadd.f32 %v3966_v56, %v3866_v20  ;;  %v12242_v27 = vpop.f32.mrf.mxu1  ;;  %v2146_v20 = vld [vmem:[%s14255_s3 + $0x518] sm:$0xff]  ;;  %v3670_v56 = vadd.f32 %v12062_v39, %v11727_v21 }
 0x6af   :  { %4404 = vmatpush.msrb.mxu0 %v2146_v20 }
 0x6b0   :  { %14914 = vst [vmem:[#allocation242_spill] sm:$0xff] %v12240_v6  ;;  %6681 = vmatmul.msk.f32.gmra.mxu0 %vm8858_vm2, %v14859_v29  ;;  %6739 = vmatmul.msk.f32.gmra.mxu2 %vm8858_vm2, %v14824_v16  ;;  %v3673_v6 = vadd.f32 %v12081_v54, %v11727_v21 }
 0x6b1   :  { %6714 = vmatmul.msk.f32.gmra.mxu1 %vm1954_vm3, %v14860_v35  ;;  %6784 = vmatmul.msk.f32.gmra.mxu3 %vm1954_vm3, %v14886_v60 }
 0x6b2   :  { %v3774_v54 = vadd.f32 %v12141_v63, %v3673_v6 }
 0x6b3   :  { %v3868_v48 = vpop.f32.mrf.mxu2 }
 0x6b4   :  { %v3869_v18 = vadd.f32 %v3868_v48, %v3768_v47  ;;  %v3969_v8 = vpop.f32.mrf.mxu3  ;;  %v3771_v47 = vadd.f32 %v12113_v41, %v3670_v56  ;;  %v2142_v41 = vld [vmem:[%s14255_s3 + $0x4f8] sm:$0xff] }
 0x6b5   :  { %v4013_v61 = vpop.f32.mrf.mxu0  ;;  %4405 = vmatpush.msrb.mxu0 %v2142_v41 }
 0x6b6   :  { %v12260_v0 = vadd.f32 %v3969_v8, %v3869_v18  ;;  %v12262_v33 = vpop.f32.mrf.mxu1  ;;  %v4011_v18 = vadd.f32 %v4010_v55, %v11769_v19  ;;  %v2270_v19 = vld [vmem:[%s14255_s3 + $0x8f8] sm:$0xff] }
 0x6b7   :  { %4607 = vmatpush.msrb.mxu2 %v2270_v19  ;;  %v2334_v55 = vld [vmem:[%s14255_s3 + $0xaf8] sm:$0xff] }
 0x6b8   :  { %14915 = vst [vmem:[#allocation243_spill] sm:$0xff] %v12260_v0  ;;  %6683 = vmatmul.msk.f32.gmra.mxu0 %vm8858_vm2, %v14862_v45  ;;  %6741 = vmatmul.msk.f32.gmra.mxu2 %vm8858_vm2, %v14826_v31 }
 0x6b9   :  { %6715 = vmatmul.msk.f32.gmra.mxu1 %vm1954_vm3, %v14863_v11  ;;  %6785 = vmatmul.msk.f32.gmra.mxu3 %vm1954_vm3, %v14890_v62 }
 0x6ba   :  { %4708 = vmatpush.msrb.mxu3 %v2334_v55 }
 0x6bb   :  { %v3871_v15 = vpop.f32.mrf.mxu2 }
 0x6bc   :  { %v3872_v48 = vadd.f32 %v3871_v15, %v3771_v47  ;;  %v3972_v39 = vpop.f32.mrf.mxu3  ;;  %v14917_v15 = vld [vmem:[#allocation28_spill] sm:$0xff] }
 0x6bd   :  { %v4016_v8 = vpop.f32.mrf.mxu0 }
 0x6be   :  { %v12287_v20 = vadd.f32 %v3972_v39, %v3872_v48  ;;  %v4111_v24 = vpop.f32.mrf.mxu1  ;;  %v4014_v48 = vadd.f32 %v4013_v61, %v14917_v15  ;;  %v4017_v41 = vadd.f32 %v4016_v8, %v11823_v3  ;;  %v2266_v15 = vld [vmem:[%s14255_s3 + $0x8d8] sm:$0xff] }
 0x6bf   :  { %v4112_v0 = vadd.f32 %v4111_v24, %v4011_v18  ;;  %v3676_v24 = vadd.f32 %v12109_v37, %v11727_v21  ;;  %v2138_v3 = vld [vmem:[%s14255_s3 + $0x4d8] sm:$0xff]  ;;  %4608 = vmatpush.msrb.mxu2 %v2266_v15  ;;  %v14922_v15 = vld [vmem:[#allocation59_spill] sm:$0xff] }
 0x6c0   :  { %14916 = vst [vmem:[#allocation244_spill] sm:$0xff] %v12287_v20  ;;  %6685 = vmatmul.msk.f32.gmra.mxu0 %vm8858_vm2, %v14866_v9  ;;  %6743 = vmatmul.msk.f32.gmra.mxu2 %vm8858_vm2, %v9219_v53  ;;  %v2202_v8 = vld [vmem:[%s14255_s3 + $0x6d8] sm:$0xff] }
 0x6c1   :  { %6716 = vmatmul.msk.f32.gmra.mxu1 %vm1954_vm3, %v14867_v23  ;;  %6786 = vmatmul.msk.f32.gmra.mxu3 %vm1954_vm3, %v14894_v25  ;;  %v3777_v61 = vadd.f32 %v12163_v30, %v3676_v24  ;;  %v2330_v30 = vld [vmem:[%s14255_s3 + $0xad8] sm:$0xff]  ;;  %v14919_v24 = vld [vmem:[#allocation52_spill] sm:$0xff] }
 0x6c2   :  { %4887 = vrot.lane.b32.xlu2 %v4112_v0, %s7261_s2  ;;  %v2206_v0 = vld [vmem:[%s14255_s3 + $0x6f8] sm:$0xff]  ;;  %4406 = vmatpush.msrb.mxu0 %v2138_v3 }
 0x6c3   :  { %v3874_v44 = vpop.f32.mrf.mxu2  ;;  %4506 = vmatpush.msrb.mxu1 %v2206_v0  ;;  %4709 = vmatpush.msrb.mxu3 %v2330_v30 }
 0x6c4   :  { %v3875_v56 = vadd.f32 %v3874_v44, %v3774_v54  ;;  %v3975_v47 = vpop.f32.mrf.mxu3 }
 0x6c5   :  { %v4019_v39 = vpop.f32.mrf.mxu0  ;;  %4507 = vmatpush.msrb.mxu1 %v2202_v8 }
 0x6c6   :  { %v12313_v63 = vadd.f32 %v3975_v47, %v3875_v56  ;;  %v4114_v6 = vpop.f32.mrf.mxu1 }
 0x6c7   :  { %v4115_v18 = vadd.f32 %v4114_v6, %v4014_v48  ;;  %v3679_v48 = vadd.f32 %v12137_v59, %v11727_v21 }
 0x6c8   :  { %6687 = vmatmul.msk.f32.gmra.mxu0 %vm8858_vm2, %v9584_v28  ;;  %6745 = vmatmul.msk.f32.gmra.mxu2 %vm8858_vm2, %v14833_v26 }
 0x6c9   :  { %6717 = vmatmul.msk.f32.gmra.mxu1 %vm1954_vm3, %v14871_v13  ;;  %6787 = vmatmul.msk.f32.gmra.mxu3 %vm1954_vm3, %v14897_v1  ;;  %v3780_v59 = vadd.f32 %v12194_v57, %v3679_v48 }
 0x6ca   :  { %4893 = vrot.lane.b32.xlu1 %v4115_v18, %s7261_s2 }
 0x6cb   :  { %v3877_v19 = vpop.f32.mrf.mxu2 }
 0x6cc   :  { %v3878_v37 = vadd.f32 %v3877_v19, %v3777_v61  ;;  %v3978_v54 = vpop.f32.mrf.mxu3  ;;  %v4020_v61 = vadd.f32 %v4019_v39, %v14919_v24  ;;  %v14923_v39 = vld [vmem:[#allocation37_spill] sm:$0xff]  ;;  %v2262_v24 = vld [vmem:[%s14255_s3 + $0x8b8] sm:$0xff] }
 0x6cd   :  { %v4022_v55 = vpop.f32.mrf.mxu0  ;;  %4609 = vmatpush.msrb.mxu2 %v2262_v24 }
 0x6ce   :  { %v12333_v44 = vadd.f32 %v3978_v54, %v3878_v37  ;;  %v4117_v56 = vpop.f32.mrf.mxu1 }
 0x6cf   :  { %v4118_v47 = vadd.f32 %v4117_v56, %v4017_v41  ;;  %v3682_v41 = vadd.f32 %v12159_v43, %v11727_v21  ;;  %v14920_v56 = vld [vmem:[#allocation71_spill] sm:$0xff] }
 0x6d0   :  { %14918 = vst [vmem:[#allocation28_spill] sm:$0xff] %v12333_v44  ;;  %6689 = vmatmul.msk.f32.gmra.mxu0 %vm8858_vm2, %v9606_v51  ;;  %6747 = vmatmul.msk.f32.gmra.mxu2 %vm8858_vm2, %v14892_v46 }
 0x6d1   :  { %6718 = vmatmul.msk.f32.gmra.mxu1 %vm1954_vm3, %v14874_v36  ;;  %6788 = vmatmul.msk.f32.gmra.mxu3 %vm1954_vm3, %v14901_v50  ;;  %v3783_v48 = vadd.f32 %v12213_v38, %v3682_v41  ;;  %v2134_v38 = vld [vmem:[%s14255_s3 + $0x4b8] sm:$0xff] }
 0x6d2   :  { %4899 = vrot.lane.b32.xlu1 %v4118_v47, %s7261_s2  ;;  %v14921_v47 = vld [vmem:[#allocation35_spill] sm:$0xff]  ;;  %v2326_v41 = vld [vmem:[%s14255_s3 + $0xab8] sm:$0xff]  ;;  %4407 = vmatpush.msrb.mxu0 %v2134_v38 }
 0x6d3   :  { %v3880_v6 = vpop.f32.mrf.mxu2  ;;  %4710 = vmatpush.msrb.mxu3 %v2326_v41  ;;  %v14931_v38 = vld [vmem:[#allocation34_spill] sm:$0xff] }
 0x6d4   :  { %v3881_v0 = vadd.f32 %v3880_v6, %v3780_v59  ;;  %v3981_v18 = vpop.f32.mrf.mxu3  ;;  %v14924_v59 = vld [vmem:[#allocation232_spill] sm:$0xff] }
 0x6d5   :  { %v4025_v19 = vpop.f32.mrf.mxu0  ;;  %v4023_v8 = vadd.f32 %v4022_v55, %v14924_v59  ;;  %v14927_v55 = vld [vmem:[#allocation38_spill] sm:$0xff] }
 0x6d6   :  { %v12362_v37 = vadd.f32 %v3981_v18, %v3881_v0  ;;  %v4120_v54 = vpop.f32.mrf.mxu1 }
 0x6d7   :  { %v4121_v57 = vadd.f32 %v4120_v54, %v4020_v61  ;;  %v3685_v54 = vadd.f32 %v12190_v5, %v11727_v21 }
 0x6d8   :  { %6691 = vmatmul.msk.f32.gmra.mxu0 %vm8858_vm2, %v14920_v56  ;;  %6749 = vmatmul.msk.f32.gmra.mxu2 %vm8858_vm2, %v14921_v47 }
 0x6d9   :  { %6719 = vmatmul.msk.f32.gmra.mxu1 %vm1954_vm3, %v14922_v15  ;;  %6789 = vmatmul.msk.f32.gmra.mxu3 %vm1954_vm3, %v14923_v39  ;;  %v3786_v5 = vadd.f32 %v12242_v27, %v3685_v54  ;;  %v3688_v27 = vadd.f32 %v12209_v42, %v11727_v21  ;;  %v2258_v42 = vld [vmem:[%s14255_s3 + $0x898] sm:$0xff] }
 0x6da   :  { %4905 = vrot.lane.b32.xlu0 %v4121_v57, %s7261_s2  ;;  %v14926_v57 = vld [vmem:[#allocation84_spill] sm:$0xff]  ;;  %4610 = vmatpush.msrb.mxu2 %v2258_v42  ;;  %v14937_v42 = vld [vmem:[#allocation86_spill] sm:$0xff] }
 0x6db   :  { %v3883_v3 = vpop.f32.mrf.mxu2  ;;  %v3789_v21 = vadd.f32 %v12262_v33, %v3688_v27  ;;  %v14935_v27 = vld [vmem:[#allocation108_spill] sm:$0xff] }
 0x6dc   :  { %v3884_v43 = vadd.f32 %v3883_v3, %v3783_v48  ;;  %v3984_v30 = vpop.f32.mrf.mxu3  ;;  %v2198_v48 = vld [vmem:[%s14255_s3 + $0x6b8] sm:$0xff]  ;;  %v14928_v3 = vld [vmem:[#allocation64_spill] sm:$0xff] }
 0x6dd   :  { %v4028_v6 = vpop.f32.mrf.mxu0  ;;  %4508 = vmatpush.msrb.mxu1 %v2198_v48 }
 0x6de   :  { %v12379_v0 = vadd.f32 %v3984_v30, %v3884_v43  ;;  %v4123_v18 = vpop.f32.mrf.mxu1 }
 0x6df   :  { %v4124_v61 = vadd.f32 %v4123_v18, %v4023_v8  ;;  %v14929_v8 = vld [vmem:[#allocation42_spill] sm:$0xff] }
 0x6e0   :  { %14925 = vst [vmem:[#allocation52_spill] sm:$0xff] %v12379_v0  ;;  %6693 = vmatmul.msk.f32.gmra.mxu0 %vm8858_vm2, %v14926_v57  ;;  %6751 = vmatmul.msk.f32.gmra.mxu2 %vm8858_vm2, %v14927_v55  ;;  %v4026_v18 = vadd.f32 %v4025_v19, %v14929_v8  ;;  %v14932_v19 = vld [vmem:[#allocation73_spill] sm:$0xff] }
 0x6e1   :  { %6720 = vmatmul.msk.f32.gmra.mxu1 %vm1954_vm3, %v14928_v3  ;;  %6790 = vmatmul.msk.f32.gmra.mxu3 %vm1954_vm3, %v14910_v4  ;;  %v2130_v4 = vld [vmem:[%s14255_s3 + $0x498] sm:$0xff] }
 0x6e2   :  { %4911 = vrot.lane.b32.xlu0 %v4124_v61, %s7261_s2  ;;  %v14930_v61 = vld [vmem:[#allocation89_spill] sm:$0xff]  ;;  %4408 = vmatpush.msrb.mxu0 %v2130_v4  ;;  %v2322_v4 = vld [vmem:[%s14255_s3 + $0xa98] sm:$0xff] }
 0x6e3   :  { %v3886_v43 = vpop.f32.mrf.mxu2  ;;  %4711 = vmatpush.msrb.mxu3 %v2322_v4 }
 0x6e4   :  { %v3887_v30 = vadd.f32 %v3886_v43, %v3786_v5  ;;  %v3987_v59 = vpop.f32.mrf.mxu3  ;;  %v2122_v5 = vld [vmem:[%s14255_s3 + $0x458] sm:$0xff]  ;;  %v14933_v43 = vld [vmem:[#allocation53_spill] sm:$0xff] }
 0x6e5   :  { %v4031_v24 = vpop.f32.mrf.mxu0 }
 0x6e6   :  { %v12408_v20 = vadd.f32 %v3987_v59, %v3887_v30  ;;  %v4126_v44 = vpop.f32.mrf.mxu1  ;;  %v4029_v30 = vadd.f32 %v4028_v6, %v14933_v43  ;;  %v14936_v6 = vld [vmem:[#allocation23_spill] sm:$0xff]  ;;  %v14938_v43 = vld [vmem:[#allocation233_spill] sm:$0xff] }
 0x6e7   :  { %v4127_v0 = vadd.f32 %v4126_v44, %v4026_v18  ;;  %v2126_v44 = vld [vmem:[%s14255_s3 + $0x478] sm:$0xff] }
 0x6e8   :  { %6695 = vmatmul.msk.f32.gmra.mxu0 %vm8858_vm2, %v14930_v61  ;;  %6753 = vmatmul.msk.f32.gmra.mxu2 %vm8858_vm2, %v14931_v38  ;;  %v2118_v18 = vld [vmem:[%s14255_s3 + $0x438] sm:$0xff] }
 0x6e9   :  { %6721 = vmatmul.msk.f32.gmra.mxu1 %vm1954_vm3, %v14932_v19  ;;  %6791 = vmatmul.msk.f32.gmra.mxu3 %vm1954_vm3, %v14912_v12 }
 0x6ea   :  { %4917 = vrot.lane.b32.xlu0 %v4127_v0, %s7261_s2  ;;  %4409 = vmatpush.msrb.mxu0 %v2126_v44  ;;  %v12452_v44 = vperm.slane %v14936_v6, 3 }
 0x6eb   :  { %v3889_v54 = vpop.f32.mrf.mxu2 }
 0x6ec   :  { %v3890_v41 = vadd.f32 %v3889_v54, %v3789_v21  ;;  %v3990_v48 = vpop.f32.mrf.mxu3  ;;  %4410 = vmatpush.msrb.mxu0 %v2122_v5  ;;  %v2194_v21 = vld [vmem:[%s14255_s3 + $0x698] sm:$0xff] }
 0x6ed   :  { %v4034_v59 = vpop.f32.mrf.mxu0  ;;  %v2114_v54 = vld [vmem:[%s14255_s3 + $0x418] sm:$0xff]  ;;  %4509 = vmatpush.msrb.mxu1 %v2194_v21 }
 0x6ee   :  { %v12437_v33 = vadd.f32 %v3990_v48, %v3890_v41  ;;  %v4129_v0 = vpop.f32.mrf.mxu1  ;;  %4411 = vmatpush.msrb.mxu0 %v2118_v18  ;;  %v14941_v18 = vld [vmem:[#allocation97_spill] sm:$0xff]  ;;  %v2318_v21 = vld [vmem:[%s14255_s3 + $0xa78] sm:$0xff] }
 0x6ef   :  { %v4130_v8 = vadd.f32 %v4129_v0, %v4029_v30  ;;  %v4032_v30 = vadd.f32 %v4031_v24, %v14938_v43  ;;  %v2190_v24 = vld [vmem:[%s14255_s3 + $0x678] sm:$0xff]  ;;  %4712 = vmatpush.msrb.mxu3 %v2318_v21  ;;  %v14944_v21 = vmov 0.0  }
 0x6f0   :  { %14934 = vst [vmem:[#allocation71_spill] sm:$0xff] %v12437_v33  ;;  %6697 = vmatmul.msk.f32.gmra.mxu0 %vm8858_vm2, %v14935_v27  ;;  %6755 = vmatmul.msk.f32.gmra.mxu2 %vm8858_vm2, %v14909_v52  ;;  %v14940_v27 = vld [vmem:[#allocation120_spill] sm:$0xff] }
 0x6f1   :  { %6722 = vmatmul.msk.f32.gmra.mxu1 %vm1954_vm3, %v14937_v42  ;;  %6792 = vmatmul.msk.f32.gmra.mxu3 %vm1954_vm3, %v14852_v2 }
 0x6f2   :  { %4923 = vrot.lane.b32.xlu2 %v4130_v8, %s7261_s2  ;;  %4412 = vmatpush.msrb.mxu0 %v2114_v54  ;;  %v2254_v8 = vld [vmem:[%s14255_s3 + $0x878] sm:$0xff] }
 0x6f3   :  { %v4212_v41 = vpop.f32.mrf.mxu2  ;;  %4611 = vmatpush.msrb.mxu2 %v2254_v8  ;;  %4510 = vmatpush.msrb.mxu1 %v2190_v24  ;;  %v2182_v24 = vld [vmem:[%s14255_s3 + $0x638] sm:$0xff] }
 0x6f4   :  { %v4213_v48 = vadd.f32 %v4212_v41, %v12452_v44  ;;  %v4313_v5 = vpop.f32.mrf.mxu3 }
 0x6f5   :  { %v4037_v0 = vpop.f32.mrf.mxu0 }
 0x6f6   :  { %v12467_v4 = vadd.f32 %v4313_v5, %v4213_v48  ;;  %v4132_v6 = vpop.f32.mrf.mxu1  ;;  %v14942_v5 = vld [vmem:[#allocation47_spill] sm:$0xff] }
 0x6f7   :  { %v4133_v33 = vadd.f32 %v4132_v6, %v4032_v30  ;;  %v4035_v43 = vadd.f32 %v4034_v59, %v14942_v5  ;;  %v14945_v59 = vld [vmem:[#allocation109_spill] sm:$0xff] }
 0x6f8   :  { %14939 = vst [vmem:[#allocation35_spill] sm:$0xff] %v12467_v4  ;;  %6699 = vmatmul.msk.f32.gmra.mxu0 %vm8858_vm2, %v14940_v27  ;;  %6757 = vmatmul.msk.f32.gmra.mxu2 %vm8858_vm2, %v9404_v22 }
 0x6f9   :  { %6723 = vmatmul.msk.f32.gmra.mxu1 %vm1954_vm3, %v14941_v18  ;;  %6793 = vmatmul.msk.f32.gmra.mxu3 %vm1954_vm3, %v14857_v49 }
 0x6fa   :  { %4929 = vrot.lane.b32.xlu2 %v4133_v33, %s7261_s2  ;;  %v2186_v33 = vld [vmem:[%s14255_s3 + $0x658] sm:$0xff] }
 0x6fb   :  { %v4215_v54 = vpop.f32.mrf.mxu2  ;;  %4511 = vmatpush.msrb.mxu1 %v2186_v33 }
 0x6fc   :  { %v4216_v41 = vadd.f32 %v4215_v54, %v12452_v44  ;;  %v4316_v48 = vpop.f32.mrf.mxu3  ;;  %v2178_v54 = vld [vmem:[%s14255_s3 + $0x618] sm:$0xff] }
 0x6fd   :  { %v4040_v30 = vpop.f32.mrf.mxu0  ;;  %4512 = vmatpush.msrb.mxu1 %v2182_v24 }
 0x6fe   :  { %v12494_v6 = vadd.f32 %v4316_v48, %v4216_v41  ;;  %v4135_v8 = vpop.f32.mrf.mxu1 }
 0x6ff   :  { %v4136_v27 = vadd.f32 %v4135_v8, %v4035_v43  ;;  %4513 = vmatpush.msrb.mxu1 %v2178_v54  ;;  %v14946_v43 = vld [vmem:[#allocation51_spill] sm:$0xff] }
 0x700   :  { %14943 = vst [vmem:[#allocation59_spill] sm:$0xff] %v12494_v6  ;;  %4087 = vmatmul.f32.gmra.mxu0 %v14944_v21  ;;  %6759 = vmatmul.msk.f32.gmra.mxu2 %vm8858_vm2, %v9402_v10  ;;  %v4038_v33 = vadd.f32 %v4037_v0, %v14946_v43  ;;  %v14948_v0 = vld [vmem:[#allocation121_spill] sm:$0xff] }
 0x701   :  { %6724 = vmatmul.msk.f32.gmra.mxu1 %vm1954_vm3, %v14945_v59  ;;  %6794 = vmatmul.msk.f32.gmra.mxu3 %vm1954_vm3, %v14860_v35  ;;  %v2250_v35 = vld [vmem:[%s14255_s3 + $0x858] sm:$0xff] }
 0x702   :  { %4935 = vrot.lane.b32.xlu1 %v4136_v27, %s7261_s2  ;;  %v2314_v27 = vld [vmem:[%s14255_s3 + $0xa58] sm:$0xff]  ;;  %4612 = vmatpush.msrb.mxu2 %v2250_v35 }
 0x703   :  { %v4218_v41 = vpop.f32.mrf.mxu2  ;;  %4713 = vmatpush.msrb.mxu3 %v2314_v27  ;;  %v14952_v27 = vld [vmem:[#allocation29_spill] sm:$0xff] }
 0x704   :  { %v4219_v48 = vadd.f32 %v4218_v41, %v12452_v44  ;;  %v4319_v5 = vpop.f32.mrf.mxu3  ;;  %v14949_v41 = vld [vmem:[#allocation8_spill] sm:$0xff] }
 0x705   :  { %v4043_v8 = vpop.f32.mrf.mxu0 }
 0x706   :  { %v12513_v6 = vadd.f32 %v4319_v5, %v4219_v48  ;;  %v4138_v59 = vpop.f32.mrf.mxu1  ;;  %v4041_v48 = vadd.f32 %v4040_v30, %v14949_v41 }
 0x707   :  { %v4139_v4 = vadd.f32 %v4138_v59, %v4038_v33 }
 0x708   :  { %14947 = vst [vmem:[#allocation37_spill] sm:$0xff] %v12513_v6  ;;  %4090 = vmatmul.f32.gmra.mxu0 %v14944_v21  ;;  %6761 = vmatmul.msk.f32.gmra.mxu2 %vm8858_vm2, %v14856_v58 }
 0x709   :  { %6725 = vmatmul.msk.f32.gmra.mxu1 %vm1954_vm3, %v14948_v0  ;;  %6795 = vmatmul.msk.f32.gmra.mxu3 %vm1954_vm3, %v14863_v11  ;;  %v14951_v0 = vld [vmem:[#allocation5_spill] sm:$0xff] }
 0x70a   :  { %4941 = vrot.lane.b32.xlu1 %v4139_v4, %s7261_s2 }
 0x70b   :  { %v4221_v24 = vpop.f32.mrf.mxu2 }
 0x70c   :  { %v4222_v59 = vadd.f32 %v4221_v24, %v12452_v44  ;;  %v4322_v54 = vpop.f32.mrf.mxu3  ;;  %v4044_v24 = vadd.f32 %v4043_v8, %v14952_v27 }
 0x70d   :  { %v4046_v5 = vpop.f32.mrf.mxu0 }
 0x70e   :  { %v12532_v43 = vadd.f32 %v4322_v54, %v4222_v59  ;;  %v4141_v33 = vpop.f32.mrf.mxu1 }
 0x70f   :  { %v4142_v6 = vadd.f32 %v4141_v33, %v4041_v48  ;;  %v14954_v33 = vld [vmem:[#allocation16_spill] sm:$0xff] }
 0x710   :  { %14950 = vst [vmem:[#allocation232_spill] sm:$0xff] %v12532_v43  ;;  %6763 = vmatmul.msk.f32.gmra.mxu2 %vm8858_vm2, %v14859_v29  ;;  %6805 = vmatmul.msk.f32.vlgmr.msrb.gmra.mxu0 %vm8858_vm2, %v14951_v0  ;;  %v2246_v0 = vld [vmem:[%s14255_s3 + $0x838] sm:$0xff] }
 0x711   :  { %4188 = vmatmul.f32.gmra.mxu1 %v14944_v21  ;;  %6796 = vmatmul.msk.f32.gmra.mxu3 %vm1954_vm3, %v14867_v23 }
 0x712   :  { %4947 = vrot.lane.b32.xlu0 %v4142_v6, %s7261_s2  ;;  %4613 = vmatpush.msrb.mxu2 %v2246_v0  ;;  %v2310_v6 = vld [vmem:[%s14255_s3 + $0xa38] sm:$0xff] }
 0x713   :  { %v4224_v35 = vpop.f32.mrf.mxu2  ;;  %4714 = vmatpush.msrb.mxu3 %v2310_v6 }
 0x714   :  { %v4225_v4 = vadd.f32 %v4224_v35, %v12452_v44  ;;  %v4325_v30 = vpop.f32.mrf.mxu3 }
 0x715   :  { %v4049_v59 = vpop.f32.mrf.mxu0 }
 0x716   :  { %v12546_v54 = vadd.f32 %v4325_v30, %v4225_v4  ;;  %v4144_v41 = vpop.f32.mrf.mxu1  ;;  %v14955_v30 = vld [vmem:[#allocation30_spill] sm:$0xff] }
 0x717   :  { %v4145_v48 = vadd.f32 %v4144_v41, %v4044_v24  ;;  %v4047_v27 = vadd.f32 %v4046_v5, %v14955_v30  ;;  %v2242_v5 = vld [vmem:[%s14255_s3 + $0x818] sm:$0xff] }
 0x718   :  { %14953 = vst [vmem:[#allocation84_spill] sm:$0xff] %v12546_v54  ;;  %6765 = vmatmul.msk.f32.gmra.mxu2 %vm8858_vm2, %v14862_v45  ;;  %6807 = vmatmul.msk.f32.gmra.mxu0 %vm8858_vm2, %v14954_v33  ;;  %v14957_v33 = vld [vmem:[#allocation21_spill] sm:$0xff] }
 0x719   :  { %4191 = vmatmul.f32.gmra.mxu1 %v14944_v21  ;;  %6797 = vmatmul.msk.f32.gmra.mxu3 %vm1954_vm3, %v14871_v13 }
 0x71a   :  { %4953 = vrot.lane.b32.xlu0 %v4145_v48, %s7261_s2  ;;  %v14958_v48 = vld [vmem:[#allocation18_spill] sm:$0xff]  ;;  %4614 = vmatpush.msrb.mxu2 %v2242_v5 }
 0x71b   :  { %v4227_v8 = vpop.f32.mrf.mxu2 }
 0x71c   :  { %v4228_v35 = vadd.f32 %v4227_v8, %v12452_v44  ;;  %v4328_v4 = vpop.f32.mrf.mxu3 }
 0x71d   :  { %v4052_v24 = vpop.f32.mrf.mxu0 }
 0x71e   :  { %v12566_v41 = vadd.f32 %v4328_v4, %v4228_v35  ;;  %v4147_v0 = vpop.f32.mrf.mxu1  ;;  %v14959_v4 = vld [vmem:[#allocation33_spill] sm:$0xff] }
 0x71f   :  { %v4148_v54 = vadd.f32 %v4147_v0, %v4047_v27  ;;  %v4050_v30 = vadd.f32 %v4049_v59, %v14959_v4 }
 0x720   :  { %14956 = vst [vmem:[#allocation38_spill] sm:$0xff] %v12566_v41  ;;  %6767 = vmatmul.msk.f32.gmra.mxu2 %vm8858_vm2, %v14866_v9  ;;  %6809 = vmatmul.msk.f32.gmra.mxu0 %vm8858_vm2, %v14957_v33 }
 0x721   :  { %6798 = vmatmul.msk.f32.gmra.mxu3 %vm1954_vm3, %v14874_v36  ;;  %6860 = vmatmul.msk.f32.vlgmr.msrb.gmra.mxu1 %vm1954_vm3, %v14958_v48  ;;  %v14962_v48 = vld [vmem:[#allocation19_spill] sm:$0xff] }
 0x722   :  { %4959 = vrot.lane.b32.xlu1 %v4148_v54, %s7261_s2  ;;  %v14961_v54 = vld [vmem:[#allocation6_spill] sm:$0xff] }
 0x723   :  { %v4230_v6 = vpop.f32.mrf.mxu2 }
 0x724   :  { %v4231_v8 = vadd.f32 %v4230_v6, %v12452_v44  ;;  %v4331_v35 = vpop.f32.mrf.mxu3 }
 0x725   :  { %v4055_v27 = vpop.f32.mrf.mxu0 }
 0x726   :  { %v12584_v0 = vadd.f32 %v4331_v35, %v4231_v8  ;;  %v4150_v21 = vpop.f32.mrf.mxu1  ;;  %v14963_v8 = vld [vmem:[#allocation9_spill] sm:$0xff] }
 0x727   :  { %v4151_v41 = vadd.f32 %v4150_v21, %v4050_v30  ;;  %v2306_v21 = vld [vmem:[%s14255_s3 + $0xa18] sm:$0xff]  ;;  %v4053_v35 = vadd.f32 %v4052_v24, %v14963_v8 }
 0x728   :  { %14960 = vst [vmem:[#allocation64_spill] sm:$0xff] %v12584_v0  ;;  %6769 = vmatmul.msk.f32.gmra.mxu2 %vm8858_vm2, %v9584_v28  ;;  %6811 = vmatmul.msk.f32.gmra.mxu0 %vm8858_vm2, %v14961_v54 }
 0x729   :  { %6799 = vmatmul.msk.f32.gmra.mxu3 %vm1954_vm3, %v14922_v15  ;;  %6861 = vmatmul.msk.f32.gmra.mxu1 %vm1954_vm3, %v14962_v48 }
 0x72a   :  { %4965 = vrot.lane.b32.xlu2 %v4151_v41, %s7261_s2  ;;  %4715 = vmatpush.msrb.mxu3 %v2306_v21  ;;  %v14965_v41 = vld [vmem:[#allocation20_spill] sm:$0xff]  ;;  %v14966_v21 = vld [vmem:[#allocation10_spill] sm:$0xff] }
 0x72b   :  { %v4233_v59 = vpop.f32.mrf.mxu2 }
 0x72c   :  { %v4234_v5 = vadd.f32 %v4233_v59, %v12452_v44  ;;  %v4334_v6 = vpop.f32.mrf.mxu3  ;;  %v4056_v59 = vadd.f32 %v4055_v27, %v14966_v21 }
 0x72d   :  { %v4058_v4 = vpop.f32.mrf.mxu0 }
 0x72e   :  { %v12602_v30 = vadd.f32 %v4334_v6, %v4234_v5  ;;  %v4153_v0 = vpop.f32.mrf.mxu1 }
 0x72f   :  { %v4154_v43 = vadd.f32 %v4153_v0, %v4053_v35 }
 0x730   :  { %14964 = vst [vmem:[#allocation42_spill] sm:$0xff] %v12602_v30  ;;  %6771 = vmatmul.msk.f32.gmra.mxu2 %vm8858_vm2, %v9606_v51  ;;  %6813 = vmatmul.msk.f32.gmra.mxu0 %vm8858_vm2, %v8996_v7 }
 0x731   :  { %6800 = vmatmul.msk.f32.gmra.mxu3 %vm1954_vm3, %v14928_v3  ;;  %6862 = vmatmul.msk.f32.gmra.mxu1 %vm1954_vm3, %v14965_v41 }
 0x732   :  { %4971 = vrot.lane.b32.xlu0 %v4154_v43, %s7261_s2  ;;  %v14968_v43 = vld [vmem:[#allocation22_spill] sm:$0xff] }
 0x733   :  { %v4236_v24 = vpop.f32.mrf.mxu2 }
 0x734   :  { %v4237_v48 = vadd.f32 %v4236_v24, %v12452_v44  ;;  %v4337_v0 = vpop.f32.mrf.mxu3 }
 0x735   :  { %v4061_v5 = vpop.f32.mrf.mxu0 }
 0x736   :  { %v12617_v6 = vadd.f32 %v4337_v0, %v4237_v48  ;;  %v4156_v8 = vpop.f32.mrf.mxu1  ;;  %v14969_v0 = vld [vmem:[#allocation40_spill] sm:$0xff] }
 0x737   :  { %v4157_v35 = vadd.f32 %v4156_v8, %v4056_v59  ;;  %v4059_v21 = vadd.f32 %v4058_v4, %v14969_v0 }
 0x738   :  { %14967 = vst [vmem:[#allocation89_spill] sm:$0xff] %v12617_v6  ;;  %6773 = vmatmul.msk.f32.gmra.mxu2 %vm8858_vm2, %v14920_v56  ;;  %6815 = vmatmul.msk.f32.gmra.mxu0 %vm8858_vm2, %v14820_v40 }
 0x739   :  { %6801 = vmatmul.msk.f32.gmra.mxu3 %vm1954_vm3, %v14932_v19  ;;  %6863 = vmatmul.msk.f32.gmra.mxu1 %vm1954_vm3, %v14968_v43 }
 0x73a   :  { %4977 = vrot.lane.b32.xlu1 %v4157_v35, %s7261_s2 }
 0x73b   :  { %v4239_v27 = vpop.f32.mrf.mxu2 }
 0x73c   :  { %v4240_v24 = vadd.f32 %v4239_v27, %v12452_v44  ;;  %v4340_v48 = vpop.f32.mrf.mxu3  ;;  %v4062_v27 = vadd.f32 %v4061_v5, %v12192_v34  ;;  %v14971_v5 = vld [vmem:[#allocation12_spill] sm:$0xff] }
 0x73d   :  { %v4064_v59 = vpop.f32.mrf.mxu0 }
 0x73e   :  { %v12632_v8 = vadd.f32 %v4340_v48, %v4240_v24  ;;  %v4159_v6 = vpop.f32.mrf.mxu1 }
 0x73f   :  { %v4160_v30 = vadd.f32 %v4159_v6, %v4059_v21 }
 0x740   :  { %6775 = vmatmul.msk.f32.gmra.mxu2 %vm8858_vm2, %v14926_v57  ;;  %6817 = vmatmul.msk.f32.gmra.mxu0 %vm8858_vm2, %v14824_v16 }
 0x741   :  { %6802 = vmatmul.msk.f32.gmra.mxu3 %vm1954_vm3, %v14937_v42  ;;  %6864 = vmatmul.msk.f32.gmra.mxu1 %vm1954_vm3, %v14825_v14 }
 0x742   :  { %4983 = vrot.lane.b32.xlu0 %v4160_v30, %s7261_s2 }
 0x743   :  { %v4242_v4 = vpop.f32.mrf.mxu2 }
 0x744   :  { %v4243_v35 = vadd.f32 %v4242_v4, %v12452_v44  ;;  %v4343_v6 = vpop.f32.mrf.mxu3  ;;  %v4065_v4 = vadd.f32 %v4064_v59, %v14971_v5 }
 0x745   :  { %v4067_v24 = vpop.f32.mrf.mxu0 }
 0x746   :  { %v12647_v48 = vadd.f32 %v4343_v6, %v4243_v35  ;;  %v4162_v0 = vpop.f32.mrf.mxu1 }
 0x747   :  { %v4163_v21 = vadd.f32 %v4162_v0, %v4062_v27 }
 0x748   :  { %14970 = vst [vmem:[#allocation34_spill] sm:$0xff] %v12647_v48  ;;  %6777 = vmatmul.msk.f32.gmra.mxu2 %vm8858_vm2, %v14930_v61  ;;  %6819 = vmatmul.msk.f32.gmra.mxu0 %vm8858_vm2, %v14826_v31 }
 0x749   :  { %6803 = vmatmul.msk.f32.gmra.mxu3 %vm1954_vm3, %v14941_v18  ;;  %6865 = vmatmul.msk.f32.gmra.mxu1 %vm1954_vm3, %v14827_v32 }
 0x74a   :  { %4989 = vrot.lane.b32.xlu1 %v4163_v21, %s7261_s2 }
 0x74b   :  { %v4245_v34 = vpop.f32.mrf.mxu2 }
 0x74c   :  { %v4246_v30 = vadd.f32 %v4245_v34, %v12452_v44  ;;  %v4346_v35 = vpop.f32.mrf.mxu3  ;;  %v14972_v34 = vld [vmem:[#allocation242_spill] sm:$0xff] }
 0x74d   :  { %v4070_v6 = vpop.f32.mrf.mxu0 }
 0x74e   :  { %v12662_v27 = vadd.f32 %v4346_v35, %v4246_v30  ;;  %v4165_v0 = vpop.f32.mrf.mxu1  ;;  %v4068_v30 = vadd.f32 %v4067_v24, %v14972_v34 }
 0x74f   :  { %v4166_v48 = vadd.f32 %v4165_v0, %v4065_v4 }
 0x750   :  { %6821 = vmatmul.msk.f32.gmra.mxu0 %vm8858_vm2, %v9219_v53  ;;  %6889 = vmatmul.msk.f32.vlgmr.msrb.gmra.mxu2 %vm8858_vm2, %v14957_v33 }
 0x751   :  { %6866 = vmatmul.msk.f32.gmra.mxu1 %vm1954_vm3, %v14886_v60  ;;  %6940 = vmatmul.msk.f32.vlgmr.msrb.gmra.mxu3 %vm1954_vm3, %v14965_v41 }
 0x752   :  { %4995 = vrot.lane.b32.xlu2 %v4166_v48, %s7261_s2  ;;  %v14975_v48 = vld [vmem:[#allocation243_spill] sm:$0xff] }
 0x753   :  { %v4248_v59 = vpop.f32.mrf.mxu2 }
 0x754   :  { %v4249_v21 = vadd.f32 %v4248_v59, %v12452_v44  ;;  %v4349_v5 = vpop.f32.mrf.mxu3  ;;  %v4071_v59 = vadd.f32 %v4070_v6, %v14975_v48 }
 0x755   :  { %v12677_v4 = vpop.f32.mrf.mxu0 }
 0x756   :  { %14973 = vst [vmem:[#allocation73_spill] sm:$0xff] %v12677_v4  ;;  %v12679_v35 = vadd.f32 %v4349_v5, %v4249_v21  ;;  %v4168_v0 = vpop.f32.mrf.mxu1 }
 0x757   :  { %v4169_v33 = vadd.f32 %v4168_v0, %v4068_v30 }
 0x758   :  { %14974 = vst [vmem:[#allocation53_spill] sm:$0xff] %v12679_v35  ;;  %6823 = vmatmul.msk.f32.gmra.mxu0 %vm8858_vm2, %v14833_v26  ;;  %6891 = vmatmul.msk.f32.gmra.mxu2 %vm8858_vm2, %v14961_v54  ;;  %v15045_v35 = vld [vmem:[#allocation78_spill] sm:$0xff] }
 0x759   :  { %6867 = vmatmul.msk.f32.gmra.mxu1 %vm1954_vm3, %v14890_v62  ;;  %6941 = vmatmul.msk.f32.gmra.mxu3 %vm1954_vm3, %v14968_v43 }
 0x75a   :  { %5001 = vrot.lane.b32.xlu0 %v4169_v33, %s7261_s2 }
 0x75b   :  { %v4251_v41 = vpop.f32.mrf.mxu2 }
 0x75c   :  { %v4252_v24 = vadd.f32 %v4251_v41, %v12452_v44  ;;  %v4352_v21 = vpop.f32.mrf.mxu3 }
 0x75d   :  { %v4076_v34 = vpop.f32.mrf.mxu0 }
 0x75e   :  { %v12694_v30 = vadd.f32 %v4352_v21, %v4252_v24  ;;  %v4171_v5 = vpop.f32.mrf.mxu1  ;;  %v4077_v48 = vadd.f32 %v4076_v34, %v12313_v63 }
 0x75f   :  { %v4172_v0 = vadd.f32 %v4171_v5, %v4071_v59 }
 0x760   :  { %14976 = vst [vmem:[#allocation23_spill] sm:$0xff] %v12694_v30  ;;  %6825 = vmatmul.msk.f32.gmra.mxu0 %vm8858_vm2, %v14892_v46  ;;  %6893 = vmatmul.msk.f32.gmra.mxu2 %vm8858_vm2, %v8996_v7 }
 0x761   :  { %6868 = vmatmul.msk.f32.gmra.mxu1 %vm1954_vm3, %v14894_v25  ;;  %6942 = vmatmul.msk.f32.gmra.mxu3 %vm1954_vm3, %v14825_v14 }
 0x762   :  { %5007 = vrot.lane.b32.xlu1 %v4172_v0, %s7261_s2 }
 0x763   :  { %v4254_v54 = vpop.f32.mrf.mxu2 }
 0x764   :  { %v4255_v43 = vadd.f32 %v4254_v54, %v12452_v44  ;;  %v4355_v6 = vpop.f32.mrf.mxu3 }
 0x765   :  { %v12708_v33 = vpop.f32.mrf.mxu0 }
 0x766   :  { %14977 = vst [vmem:[#allocation86_spill] sm:$0xff] %v12708_v33  ;;  %v12710_v41 = vadd.f32 %v4355_v6, %v4255_v43  ;;  %v12712_v24 = vpop.f32.mrf.mxu1 }
 0x767   :  { %14979 = vst [vmem:[#allocation97_spill] sm:$0xff] %v12712_v24 }
 0x768   :  { %14978 = vst [vmem:[#allocation233_spill] sm:$0xff] %v12710_v41  ;;  %6827 = vmatmul.msk.f32.gmra.mxu0 %vm8858_vm2, %v14921_v47  ;;  %6895 = vmatmul.msk.f32.gmra.mxu2 %vm8858_vm2, %v14820_v40 }
 0x769   :  { %6869 = vmatmul.msk.f32.gmra.mxu1 %vm1954_vm3, %v14897_v1  ;;  %6943 = vmatmul.msk.f32.gmra.mxu3 %vm1954_vm3, %v14827_v32 }
 0x76b   :  { %v4257_v7 = vpop.f32.mrf.mxu2 }
 0x76c   :  { %v4258_v14 = vadd.f32 %v4257_v7, %v12452_v44  ;;  %v4358_v59 = vpop.f32.mrf.mxu3 }
 0x76d   :  { %v4082_v5 = vpop.f32.mrf.mxu0 }
 0x76e   :  { %v12726_v21 = vadd.f32 %v4358_v59, %v4258_v14  ;;  %v4177_v0 = vpop.f32.mrf.mxu1  ;;  %v4083_v7 = vadd.f32 %v4082_v5, %v12362_v37 }
 0x76f   :  { %v4178_v54 = vadd.f32 %v4177_v0, %v4077_v48 }
 0x770   :  { %14980 = vst [vmem:[#allocation47_spill] sm:$0xff] %v12726_v21  ;;  %6829 = vmatmul.msk.f32.gmra.mxu0 %vm8858_vm2, %v14927_v55  ;;  %6897 = vmatmul.msk.f32.gmra.mxu2 %vm8858_vm2, %v14824_v16  ;;  %v15017_v21 = vld [vmem:[#allocation77_spill] sm:$0xff] }
 0x771   :  { %6870 = vmatmul.msk.f32.gmra.mxu1 %vm1954_vm3, %v14901_v50  ;;  %6944 = vmatmul.msk.f32.gmra.mxu3 %vm1954_vm3, %v14886_v60 }
 0x772   :  { %5019 = vrot.lane.b32.xlu0 %v4178_v54, %s7261_s2 }
 0x773   :  { %v4260_v40 = vpop.f32.mrf.mxu2 }
 0x774   :  { %v4261_v32 = vadd.f32 %v4260_v40, %v12452_v44  ;;  %v4361_v63 = vpop.f32.mrf.mxu3 }
 0x775   :  { %v12744_v6 = vpop.f32.mrf.mxu0 }
 0x776   :  { %v12740_v34 = vadd.f32 %v4361_v63, %v4261_v32  ;;  %v12742_v43 = vpop.f32.mrf.mxu1  ;;  %14983 = vst [vmem:[#allocation5_spill] sm:$0xff] %v12744_v6 }
 0x777   :  { %14982 = vst [vmem:[#allocation8_spill] sm:$0xff] %v12742_v43 }
 0x778   :  { %14981 = vst [vmem:[#allocation51_spill] sm:$0xff] %v12740_v34  ;;  %6831 = vmatmul.msk.f32.gmra.mxu0 %vm8858_vm2, %v14931_v38  ;;  %6899 = vmatmul.msk.f32.gmra.mxu2 %vm8858_vm2, %v14826_v31  ;;  %v14985_v31 = vld [vmem:[#allocation11_spill] sm:$0xff] }
 0x779   :  { %6871 = vmatmul.msk.f32.gmra.mxu1 %vm1954_vm3, %v14923_v39  ;;  %6945 = vmatmul.msk.f32.gmra.mxu3 %vm1954_vm3, %v14890_v62 }
 0x77b   :  { %v4263_v16 = vpop.f32.mrf.mxu2 }
 0x77c   :  { %v4264_v60 = vadd.f32 %v4263_v16, %v12452_v44  ;;  %v4364_v14 = vpop.f32.mrf.mxu3 }
 0x77d   :  { %v4088_v62 = vpop.f32.mrf.mxu0 }
 0x77e   :  { %v12758_v48 = vadd.f32 %v4364_v14, %v4264_v60  ;;  %v4183_v59 = vpop.f32.mrf.mxu1  ;;  %v4089_v16 = vadd.f32 %v4088_v62, %v12408_v20  ;;  %v6981_v20 = vld [vmem:[%s14257_s5 + $0x158] sm:$0xff] }
 0x77f   :  { %v4184_v0 = vadd.f32 %v4183_v59, %v4083_v7  ;;  %5349 = vmatpush.msra.mxu0 %v6981_v20  ;;  %v14993_v20 = vld [vmem:[#allocation17_spill] sm:$0xff] }
 0x780   :  { %14984 = vst [vmem:[#allocation29_spill] sm:$0xff] %v12758_v48  ;;  %6833 = vmatmul.msk.f32.gmra.mxu0 %vm8858_vm2, %v14909_v52  ;;  %6901 = vmatmul.msk.f32.gmra.mxu2 %vm8858_vm2, %v9219_v53  ;;  %v15015_v48 = vld [vmem:[#allocation61_spill] sm:$0xff] }
 0x781   :  { %6872 = vmatmul.msk.f32.gmra.mxu1 %vm1954_vm3, %v14985_v31  ;;  %6946 = vmatmul.msk.f32.gmra.mxu3 %vm1954_vm3, %v14894_v25 }
 0x782   :  { %5031 = vrot.lane.b32.xlu0 %v4184_v0, %s7261_s2 }
 0x783   :  { %v4266_v37 = vpop.f32.mrf.mxu2 }
 0x784   :  { %v4267_v5 = vadd.f32 %v4266_v37, %v12452_v44  ;;  %v4367_v54 = vpop.f32.mrf.mxu3 }
 0x785   :  { %v12786_v25 = vpop.f32.mrf.mxu0 }
 0x786   :  { %v12772_v40 = vadd.f32 %v4367_v54, %v4267_v5  ;;  %v12774_v32 = vpop.f32.mrf.mxu1  ;;  %14988 = vst [vmem:[#allocation21_spill] sm:$0xff] %v12786_v25  ;;  %v6979_v5 = vld [vmem:[%s14257_s5 + $0x148] sm:$0xff]  ;;  %v12829_v54 = vpop.permute.xlu0 %7160 }
 0x787   :  { %14987 = vst [vmem:[#allocation30_spill] sm:$0xff] %v12774_v32  ;;  %v15014_v32 = vld [vmem:[#allocation57_spill] sm:$0xff] }
 0x788   :  { %14986 = vst [vmem:[#allocation16_spill] sm:$0xff] %v12772_v40  ;;  %6835 = vmatmul.msk.f32.gmra.mxu0 %vm8858_vm2, %v9404_v22  ;;  %6903 = vmatmul.msk.f32.gmra.mxu2 %vm8858_vm2, %v14833_v26 }
 0x789   :  { %6873 = vmatmul.msk.f32.gmra.mxu1 %vm1954_vm3, %v14912_v12  ;;  %6947 = vmatmul.msk.f32.gmra.mxu3 %vm1954_vm3, %v14897_v1 }
 0x78b   :  { %v4269_v53 = vpop.f32.mrf.mxu2 }
 0x78c   :  { %v4270_v63 = vadd.f32 %v4269_v53, %v12452_v44  ;;  %v4370_v60 = vpop.f32.mrf.mxu3  ;;  %v6978_v53 = vld [vmem:[%s14257_s5 + $0x140] sm:$0xff] }
 0x78d   :  { %v12807_v62 = vpop.f32.mrf.mxu0 }
 0x78e   :  { %v12790_v7 = vadd.f32 %v4370_v60, %v4270_v63  ;;  %v4189_v14 = vpop.f32.mrf.mxu1 }
 0x78f   :  { %v4190_v59 = vadd.f32 %v4189_v14, %v4089_v16  ;;  %v6977_v16 = vld [vmem:[%s14257_s5 + $0x138] sm:$0xff] }
 0x790   :  { %14989 = vst [vmem:[#allocation18_spill] sm:$0xff] %v12790_v7  ;;  %6837 = vmatmul.msk.f32.gmra.mxu0 %vm8858_vm2, %v9402_v10  ;;  %6905 = vmatmul.msk.f32.gmra.mxu2 %vm8858_vm2, %v14892_v46 }
 0x791   :  { %6874 = vmatmul.msk.f32.gmra.mxu1 %vm1954_vm3, %v14852_v2  ;;  %6948 = vmatmul.msk.f32.gmra.mxu3 %vm1954_vm3, %v14901_v50  ;;  %v6980_v50 = vld [vmem:[%s14257_s5 + $0x150] sm:$0xff] }
 0x792   :  { %5043 = vrot.lane.b32.xlu1 %v4190_v59, %s7261_s2  ;;  %5350 = vmatpush.msra.mxu0 %v6980_v50  ;;  %v12862_v50 = vpop.permute.xlu0 %7170 }
 0x793   :  { %v4272_v26 = vpop.f32.mrf.mxu2 }
 0x794   :  { %v4273_v1 = vadd.f32 %v4272_v26, %v12452_v44  ;;  %v4373_v0 = vpop.f32.mrf.mxu3  ;;  %5351 = vmatpush.msra.mxu0 %v6979_v5  ;;  %v6976_v26 = vld [vmem:[%s14257_s5 + $0x130] sm:$0xff] }
 0x796   :  { %v12809_v46 = vadd.f32 %v4373_v0, %v4273_v1  ;;  %v12811_v37 = vpop.f32.mrf.mxu1  ;;  %5352 = vmatpush.msra.mxu0 %v6978_v53  ;;  %v12847_v1 = vpop.f32.mrf.mxu0  ;;  %v6975_v0 = vld [vmem:[%s14257_s5 + $0x128] sm:$0xff]  ;;  %v6974_v53 = vld [vmem:[%s14257_s5 + $0x120] sm:$0xff] }
 0x797   :  { %14991 = vst [vmem:[#allocation6_spill] sm:$0xff] %v12811_v37  ;;  %v12966_v37 = vpop.permute.xlu1 %7175 }
 0x798   :  { %14990 = vst [vmem:[#allocation33_spill] sm:$0xff] %v12809_v46  ;;  %6839 = vmatmul.msk.f32.gmra.mxu0 %vm8858_vm2, %v14856_v58  ;;  %6907 = vmatmul.msk.f32.gmra.mxu2 %vm8858_vm2, %v14921_v47 }
 0x799   :  { %6875 = vmatmul.msk.f32.gmra.mxu1 %vm1954_vm3, %v14857_v49  ;;  %6949 = vmatmul.msk.f32.gmra.mxu3 %vm1954_vm3, %v14923_v39  ;;  %v12842_v39 = vpop.permute.xlu2 %7155 }
 0x79a   :  { %5353 = vmatpush.msra.mxu0 %v6977_v16 }
 0x79b   :  { %v4275_v63 = vpop.f32.mrf.mxu2 }
 0x79c   :  { %v4276_v47 = vadd.f32 %v4275_v63, %v12452_v44  ;;  %v4376_v60 = vpop.f32.mrf.mxu3  ;;  %5354 = vmatpush.msra.mxu0 %v6976_v26  ;;  %v6972_v26 = vld [vmem:[%s14257_s5 + $0x110] sm:$0xff] }
 0x79e   :  { %v12838_v14 = vadd.f32 %v4376_v60, %v4276_v47  ;;  %v12840_v59 = vpop.f32.mrf.mxu1  ;;  %5355 = vmatpush.msra.mxu0 %v6975_v0  ;;  %v6973_v60 = vld [vmem:[%s14257_s5 + $0x118] sm:$0xff]  ;;  %v12890_v0 = vpop.permute.xlu0 %7195 }
 0x79f   :  { %14995 = vst [vmem:[#allocation20_spill] sm:$0xff] %v12890_v0  ;;  %v12996_v25 = vpop.permute.xlu1 %4893 }
 0x7a0   :  { %14992 = vst [vmem:[#allocation19_spill] sm:$0xff] %v12838_v14  ;;  %6841 = vmatmul.msk.f32.gmra.mxu0 %vm8858_vm2, %v14859_v29  ;;  %6909 = vmatmul.msk.f32.gmra.mxu2 %vm8858_vm2, %v14927_v55 }
 0x7a1   :  { %6876 = vmatmul.msk.f32.gmra.mxu1 %vm1954_vm3, %v14993_v20  ;;  %6950 = vmatmul.msk.f32.gmra.mxu3 %vm1954_vm3, %v14985_v31  ;;  %v12872_v31 = vpop.permute.xlu2 %7165  ;;  %15005 = vst [vmem:[#allocation246_spill] sm:$0xff] %v12996_v25 }
 0x7a2   :  { %5356 = vmatpush.msra.mxu0 %v6974_v53 }
 0x7a3   :  { %v4278_v5 = vpop.f32.mrf.mxu2 }
 0x7a4   :  { %v4279_v55 = vadd.f32 %v4278_v5, %v12452_v44  ;;  %v4379_v63 = vpop.f32.mrf.mxu3  ;;  %v12892_v5 = vpop.f32.mrf.mxu0  ;;  %5357 = vmatpush.msra.mxu0 %v6973_v60  ;;  %v6970_v60 = vld [vmem:[%s14257_s5 + $0x100] sm:$0xff] }
 0x7a6   :  { %v12868_v47 = vadd.f32 %v4379_v63, %v4279_v55  ;;  %v12870_v16 = vpop.f32.mrf.mxu1  ;;  %5358 = vmatpush.msra.mxu0 %v6972_v26  ;;  %v6969_v26 = vld [vmem:[%s14257_s5 + $0xf8] sm:$0xff] }
 0x7a8   :  { %14994 = vst [vmem:[#allocation9_spill] sm:$0xff] %v12868_v47  ;;  %6843 = vmatmul.msk.f32.gmra.mxu0 %vm8858_vm2, %v14862_v45  ;;  %6911 = vmatmul.msk.f32.gmra.mxu2 %vm8858_vm2, %v14931_v38  ;;  %v6971_v38 = vld [vmem:[%s14257_s5 + $0x108] sm:$0xff] }
 0x7a9   :  { %6877 = vmatmul.msk.f32.gmra.mxu1 %vm1954_vm3, %v14863_v11  ;;  %6951 = vmatmul.msk.f32.gmra.mxu3 %vm1954_vm3, %v14912_v12  ;;  %v12902_v14 = vpop.permute.xlu2 %7180 }
 0x7aa   :  { %5359 = vmatpush.msra.mxu0 %v6971_v38  ;;  %v6968_v38 = vld [vmem:[%s14257_s5 + $0xf0] sm:$0xff] }
 0x7ab   :  { %v4281_v53 = vpop.f32.mrf.mxu2 }
 0x7ac   :  { %v4282_v55 = vadd.f32 %v4281_v53, %v12452_v44  ;;  %v4382_v63 = vpop.f32.mrf.mxu3  ;;  %5360 = vmatpush.msra.mxu0 %v6970_v60  ;;  %v6967_v60 = vld [vmem:[%s14257_s5 + $0xe8] sm:$0xff] }
 0x7ae   :  { %v12898_v47 = vadd.f32 %v4382_v63, %v4282_v55  ;;  %v12900_v12 = vpop.f32.mrf.mxu1  ;;  %v12923_v55 = vpop.permute.xlu0 %7200  ;;  %5361 = vmatpush.msra.mxu0 %v6969_v26  ;;  %v7013_v26 = vld [vmem:[%s14257_s5 + $0x238] sm:$0xff] }
 0x7af   :  { %14997 = vst [vmem:[#allocation22_spill] sm:$0xff] %v12923_v55  ;;  %v12925_v63 = vpop.f32.mrf.mxu0 }
 0x7b0   :  { %14996 = vst [vmem:[#allocation10_spill] sm:$0xff] %v12898_v47  ;;  %6845 = vmatmul.msk.f32.gmra.mxu0 %vm8858_vm2, %v14866_v9  ;;  %6913 = vmatmul.msk.f32.gmra.mxu2 %vm8858_vm2, %v14909_v52 }
 0x7b1   :  { %6878 = vmatmul.msk.f32.gmra.mxu1 %vm1954_vm3, %v14867_v23  ;;  %6952 = vmatmul.msk.f32.gmra.mxu3 %vm1954_vm3, %v14852_v2  ;;  %v12930_v2 = vpop.permute.xlu2 %7185 }
 0x7b2   :  { %5362 = vmatpush.msra.mxu0 %v6968_v38  ;;  %14999 = vst [vmem:[#allocation12_spill] sm:$0xff] %v12930_v2 }
 0x7b3   :  { %v4284_v53 = vpop.f32.mrf.mxu2 }
 0x7b4   :  { %v4285_v52 = vadd.f32 %v4284_v53, %v12452_v44  ;;  %v4385_v0 = vpop.f32.mrf.mxu3  ;;  %5363 = vmatpush.msra.mxu0 %v6967_v60  ;;  %v7011_v60 = vld [vmem:[%s14257_s5 + $0x228] sm:$0xff] }
 0x7b6   :  { %v12928_v47 = vadd.f32 %v4385_v0, %v4285_v52  ;;  %v12932_v46 = vpop.f32.mrf.mxu1  ;;  %v6966_v0 = vld [vmem:[%s14257_s5 + $0xe0] sm:$0xff]  ;;  %v12953_v38 = vpop.permute.xlu0 %4905  ;;  %v7012_v52 = vld [vmem:[%s14257_s5 + $0x230] sm:$0xff] }
 0x7b7   :  { %15000 = vst [vmem:[#allocation242_spill] sm:$0xff] %v12953_v38  ;;  %5364 = vmatpush.msra.mxu0 %v6966_v0  ;;  %v12959_v55 = vpop.f32.mrf.mxu0 }
 0x7b8   :  { %14998 = vst [vmem:[#allocation40_spill] sm:$0xff] %v12928_v47  ;;  %6847 = vmatmul.msk.f32.gmra.mxu0 %vm8858_vm2, %v9584_v28  ;;  %6915 = vmatmul.msk.f32.gmra.mxu2 %vm8858_vm2, %v9404_v22 }
 0x7b9   :  { %6879 = vmatmul.msk.f32.gmra.mxu1 %vm1954_vm3, %v14871_v13  ;;  %6953 = vmatmul.msk.f32.gmra.mxu3 %vm1954_vm3, %v14857_v49  ;;  %v12974_v0 = vpop.permute.xlu2 %7190 }
 0x7ba   :  { %5486 = vmatpush.msrb.mxu0 %v7013_v26  ;;  %15002 = vst [vmem:[#allocation11_spill] sm:$0xff] %v12974_v0  ;;  %v15018_v0 = vld [vmem:[#allocation87_spill] sm:$0xff] }
 0x7bb   :  { %v4287_v53 = vpop.f32.mrf.mxu2 }
 0x7bc   :  { %v4288_v22 = vadd.f32 %v4287_v53, %v12452_v44  ;;  %v4388_v49 = vpop.f32.mrf.mxu3  ;;  %5487 = vmatpush.msrb.mxu0 %v7012_v52  ;;  %v7010_v53 = vld [vmem:[%s14257_s5 + $0x220] sm:$0xff] }
 0x7be   :  { %v12961_v47 = vadd.f32 %v4388_v49, %v4288_v22  ;;  %v12976_v26 = vpop.f32.mrf.mxu1  ;;  %5488 = vmatpush.msrb.mxu0 %v7011_v60 }
 0x7bf   :  { %v12998_v60 = vpop.f32.mrf.mxu0 }
 0x7c0   :  { %15001 = vst [vmem:[#allocation243_spill] sm:$0xff] %v12961_v47  ;;  %6849 = vmatmul.msk.f32.gmra.mxu0 %vm8858_vm2, %v9606_v51  ;;  %6917 = vmatmul.msk.f32.gmra.mxu2 %vm8858_vm2, %v9402_v10  ;;  %v7009_v10 = vld [vmem:[%s14257_s5 + $0x218] sm:$0xff]  ;;  %v12989_v47 = vpop.permute.xlu0 %4911 }
 0x7c1   :  { %6880 = vmatmul.msk.f32.gmra.mxu1 %vm1954_vm3, %v14874_v36  ;;  %6954 = vmatmul.msk.f32.gmra.mxu3 %vm1954_vm3, %v14993_v20  ;;  %15003 = vst [vmem:[#allocation17_spill] sm:$0xff] %v12989_v47  ;;  %v7008_v20 = vld [vmem:[%s14257_s5 + $0x210] sm:$0xff] }
 0x7c2   :  { %5489 = vmatpush.msrb.mxu0 %v7010_v53  ;;  %v13006_v53 = vpop.permute.xlu2 %7205 }
 0x7c3   :  { %v4290_v22 = vpop.f32.mrf.mxu2 }
 0x7c4   :  { %v4291_v52 = vadd.f32 %v4290_v22, %v12452_v44  ;;  %v4391_v49 = vpop.f32.mrf.mxu3  ;;  %5490 = vmatpush.msrb.mxu0 %v7009_v10  ;;  %v7007_v22 = vld [vmem:[%s14257_s5 + $0x208] sm:$0xff] }
 0x7c6   :  { %v12991_v24 = vadd.f32 %v4391_v49, %v4291_v52  ;;  %5491 = vmatpush.msrb.mxu0 %v7008_v20  ;;  %v13015_v10 = vpop.f32.mrf.mxu1  ;;  %v15008_v20 = vld [vmem:[#allocation35_spill] sm:$0xff] }
 0x7c7   :  { %v4415_v43 = vadd.f32 %v12807_v62, %v15008_v20  ;;  %v13045_v62 = vpop.permute.xlu1 %4899 }
 0x7c8   :  { %15004 = vst [vmem:[#allocation245_spill] sm:$0xff] %v12991_v24  ;;  %6851 = vmatmul.msk.f32.gmra.mxu0 %vm8858_vm2, %v14920_v56  ;;  %6919 = vmatmul.msk.f32.gmra.mxu2 %vm8858_vm2, %v14856_v58  ;;  %v7006_v58 = vld [vmem:[%s14257_s5 + $0x200] sm:$0xff]  ;;  %v13026_v7 = vpop.permute.xlu0 %4917 }
 0x7c9   :  { %6881 = vmatmul.msk.f32.gmra.mxu1 %vm1954_vm3, %v14922_v15  ;;  %6955 = vmatmul.msk.f32.gmra.mxu3 %vm1954_vm3, %v14863_v11  ;;  %v7005_v11 = vld [vmem:[%s14257_s5 + $0x1f8] sm:$0xff]  ;;  %15007 = vst [vmem:[#allocation248_spill] sm:$0xff] %v13026_v7 }
 0x7ca   :  { %5492 = vmatpush.msrb.mxu0 %v7007_v22  ;;  %v4516_v22 = vadd.f32 %v12840_v59, %v4415_v43  ;;  %v15010_v59 = vld [vmem:[#allocation59_spill] sm:$0xff] }
 0x7cb   :  { %v4293_v52 = vpop.f32.mrf.mxu2 }
 0x7cc   :  { %v4294_v49 = vadd.f32 %v4293_v52, %v12452_v44  ;;  %v4394_v24 = vpop.f32.mrf.mxu3  ;;  %5493 = vmatpush.msrb.mxu0 %v7006_v58  ;;  %v13036_v44 = vpop.permute.xlu2 %7210  ;;  %v7003_v58 = vld [vmem:[%s14257_s5 + $0x1e8] sm:$0xff] }
 0x7cd   :  { %15009 = vst [vmem:[#allocation35_spill] sm:$0xff] %v13036_v44  ;;  %v13048_v52 = vpop.f32.mrf.mxu0 }
 0x7ce   :  { %v13021_v4 = vadd.f32 %v4394_v24, %v4294_v49  ;;  %v7004_v24 = vld [vmem:[%s14257_s5 + $0x1f0] sm:$0xff]  ;;  %5494 = vmatpush.msrb.mxu0 %v7005_v11  ;;  %v13053_v20 = vpop.f32.mrf.mxu1  ;;  %v4418_v11 = vadd.f32 %v12847_v1, %v15010_v59  ;;  %v7001_v1 = vld [vmem:[%s14257_s5 + $0x1d8] sm:$0xff] }
 0x7d0   :  { %15006 = vst [vmem:[#allocation247_spill] sm:$0xff] %v13021_v4  ;;  %6853 = vmatmul.msk.f32.gmra.mxu0 %vm8858_vm2, %v14926_v57  ;;  %6921 = vmatmul.msk.f32.gmra.mxu2 %vm8858_vm2, %v14859_v29  ;;  %v7002_v4 = vld [vmem:[%s14257_s5 + $0x1e0] sm:$0xff]  ;;  %v13058_v43 = vpop.permute.xlu0 %4947 }
 0x7d1   :  { %6882 = vmatmul.msk.f32.gmra.mxu1 %vm1954_vm3, %v14928_v3  ;;  %6956 = vmatmul.msk.f32.gmra.mxu3 %vm1954_vm3, %v14867_v23 }
 0x7d2   :  { %5495 = vmatpush.msrb.mxu0 %v7004_v24  ;;  %v15011_v24 = vld [vmem:[#allocation176_spill] sm:$0xff] }
 0x7d3   :  { %v4616_v29 = vpop.f32.mrf.mxu2 }
 0x7d4   :  { %v4617_v49 = vadd.f32 %v4616_v29, %v4516_v22  ;;  %v4717_v23 = vpop.f32.mrf.mxu3  ;;  %5496 = vmatpush.msrb.mxu0 %v7003_v58  ;;  %v15012_v22 = vld [vmem:[#allocation49_spill] sm:$0xff]  ;;  %v13070_v58 = vpop.permute.xlu2 %4887 }
 0x7d5   :  { %v2407_v29 = vadd.f32 %v15012_v22, %v15011_v24  ;;  %v13088_v33 = vpop.f32.mrf.mxu0 }
 0x7d6   :  { %v4718_v44 = vadd.f32 %v4717_v23, %v4617_v49  ;;  %v13078_v49 = vpop.permute.xlu1 %4935  ;;  %v4519_v23 = vadd.f32 %v12870_v16, %v4418_v11  ;;  %5497 = vmatpush.msrb.mxu0 %v7002_v4  ;;  %v15016_v4 = vld [vmem:[#allocation32_spill] sm:$0xff] }
 0x7d7   :  { %v2508_v6 = vadd.f32 %v15014_v32, %v2407_v29  ;;  %v15020_v29 = vld [vmem:[#allocation108_spill] sm:$0xff] }
 0x7d8   :  { %6855 = vmatmul.msk.f32.gmra.mxu0 %vm8858_vm2, %v14930_v61  ;;  %6923 = vmatmul.msk.f32.gmra.mxu2 %vm8858_vm2, %v14862_v45  ;;  %v15013_v45 = vld [vmem:[#allocation36_spill] sm:$0xff] }
 0x7d9   :  { %4889 = vrot.lane.b32.xlu0 %v4718_v44, %s7261_s2  ;;  %6883 = vmatmul.msk.f32.gmra.mxu1 %vm1954_vm3, %v14932_v19  ;;  %v2413_v59 = vadd.f32 %v15013_v45, %v15011_v24  ;;  %v7000_v44 = vld [vmem:[%s14257_s5 + $0x1d0] sm:$0xff]  ;;  %v2410_v45 = vadd.f32 %v15016_v4, %v15011_v24  ;;  %v2609_v41 = vadd.f32 %v15017_v21, %v2508_v6  ;;  %v15021_v21 = vld [vmem:[#allocation80_spill] sm:$0xff] }
 0x7da   :  { %6957 = vmatmul.msk.f32.gmra.mxu3 %vm1954_vm3, %v14871_v13  ;;  %5498 = vmatpush.msrb.mxu0 %v7001_v1  ;;  %v5308_v13 = vld [vmem:[%s14257_s5 + $0xd8] sm:$0xff]  ;;  %v7167_v1 = vunpack.i.l.bf16 %v12872_v31 }
 0x7db   :  { %v4619_v22 = vpop.f32.mrf.mxu2  ;;  %v2514_v16 = vadd.f32 %v15015_v48, %v2413_v59  ;;  %v6999_v48 = vld [vmem:[%s14257_s5 + $0x1c8] sm:$0xff]  ;;  %5428 = vmatpush.msra.mxu3 %v5308_v13  ;;  %v2710_v6 = vadd.f32 %v15021_v21, %v2609_v41  ;;  %v13122_v59 = vpop.permute.xlu0 %4953  ;;  %v15026_v13 = vld [vmem:[#allocation163_spill] sm:$0xff]  ;;  %v6993_v21 = vld [vmem:[%s14257_s5 + $0x1b8] sm:$0xff] }
 0x7dc   :  { %v4620_v40 = vadd.f32 %v4619_v22, %v4519_v23  ;;  %v4720_v11 = vpop.f32.mrf.mxu3  ;;  %5499 = vmatpush.msrb.mxu0 %v7000_v44  ;;  %v13099_v23 = vpop.f32.mrf.mxu1  ;;  %5376 = vmatpush.msra.mxu1 %v6993_v21  ;;  %v15031_v21 = vld [vmem:[#allocation180_spill] sm:$0xff] }
 0x7dd   :  { %v2615_v30 = vadd.f32 %v15018_v0, %v2514_v16  ;;  %v13113_v0 = vpop.permute.xlu2 %4923  ;;  %v15025_v16 = vld [vmem:[#allocation90_spill] sm:$0xff]  ;;  %v2811_v4 = vadd.f32 %v15026_v13, %v2710_v6 }
 0x7de   :  { %v4721_v34 = vadd.f32 %v4720_v11, %v4620_v40  ;;  %v15019_v40 = vld [vmem:[#allocation37_spill] sm:$0xff]  ;;  %15022 = vst [vmem:[#allocation59_spill] sm:$0xff] %v13113_v0  ;;  %5500 = vmatpush.msrb.mxu0 %v6999_v48  ;;  %v13141_v48 = vpop.permute.xlu1 %4941 }
 0x7df   :  { %v4421_v32 = vadd.f32 %v12892_v5, %v15019_v40  ;;  %v6998_v5 = vld [vmem:[%s14257_s5 + $0x1c0] sm:$0xff]  ;;  %v2716_v11 = vadd.f32 %v15025_v16, %v2615_v30  ;;  %v15027_v30 = vld [vmem:[#allocation81_spill] sm:$0xff]  ;;  %v15029_v16 = vld [vmem:[#allocation172_spill] sm:$0xff] }
 0x7e0   :  { %6857 = vmatmul.msk.f32.gmra.mxu0 %vm8858_vm2, %v15020_v29  ;;  %6925 = vmatmul.msk.f32.gmra.mxu2 %vm8858_vm2, %v14866_v9  ;;  %v15023_v9 = vld [vmem:[#allocation54_spill] sm:$0xff]  ;;  %v2912_v13 = vadd.f32 %v15029_v16, %v2811_v4  ;;  %v15032_v4 = vld [vmem:[#allocation232_spill] sm:$0xff] }
 0x7e1   :  { %4895 = vrot.lane.b32.xlu2 %v4721_v34, %s7261_s2  ;;  %6884 = vmatmul.msk.f32.gmra.mxu1 %vm1954_vm3, %v14937_v42  ;;  %v4522_v22 = vadd.f32 %v12900_v12, %v4421_v32  ;;  %v2511_v41 = vadd.f32 %v15023_v9, %v2410_v45  ;;  %v15024_v34 = vld [vmem:[#allocation56_spill] sm:$0xff]  ;;  %v5296_v12 = vld [vmem:[%s14257_s5 + $0x78] sm:$0xff]  ;;  %v5061_v45 = vsel %vm1448_vm0, %v7167_v1, %v12989_v47  ;;  %v15028_v9 = vld [vmem:[#allocation171_spill] sm:$0xff]  ;;  %v13151_v47 = vpop.f32.mrf.mxu0 }
 0x7e2   :  { %6958 = vmatmul.msk.f32.gmra.mxu3 %vm1954_vm3, %v14874_v36  ;;  %v2416_v44 = vadd.f32 %v15024_v34, %v15011_v24  ;;  %v7168_v36 = vunpack.i.h.bf16 %v12872_v31  ;;  %5501 = vmatpush.msrb.mxu0 %v6998_v5  ;;  %v2817_v34 = vadd.f32 %v15028_v9, %v2716_v11  ;;  %v5295_v31 = vld [vmem:[%s14257_s5 + $0x70] sm:$0xff]  ;;  %v5294_v11 = vld [vmem:[%s14257_s5 + $0x68] sm:$0xff]  ;;  %v15036_v16 = vld [vmem:[#allocation58_spill] sm:$0xff] }
 0x7e3   :  { %v4622_v40 = vpop.f32.mrf.mxu2  ;;  %v2612_v6 = vadd.f32 %v15027_v30, %v2511_v41  ;;  %5401 = vmatpush.msra.mxu2 %v5296_v12  ;;  %v15030_v5 = vld [vmem:[#allocation65_spill] sm:$0xff]  ;;  %v5173_v30 = vmax.f32 %v2912_v13, %v5061_v45  ;;  %v4424_v12 = vadd.f32 %v12925_v63, %v15032_v4  ;;  %v15033_v9 = vld [vmem:[#allocation120_spill] sm:$0xff]  ;;  %v5293_v63 = vld [vmem:[%s14257_s5 + $0x60] sm:$0xff]  ;;  %v2419_v13 = vadd.f32 %v15036_v16, %v15011_v24 }
 0x7e4   :  { %v4623_v32 = vadd.f32 %v4622_v40, %v4522_v22  ;;  %v4723_v2 = vpop.f32.mrf.mxu3  ;;  %v5065_v1 = vsel %vm1448_vm0, %v7168_v36, %v13113_v0  ;;  %v2517_v40 = vadd.f32 %v15030_v5, %v2416_v44  ;;  %v2918_v41 = vadd.f32 %v15031_v21, %v2817_v34  ;;  %v15035_v36 = vld [vmem:[#allocation92_spill] sm:$0xff]  ;;  %v13168_v34 = vpop.f32.mrf.mxu1  ;;  %v15040_v21 = vld [vmem:[#allocation167_spill] sm:$0xff]  ;;  %v5292_v16 = vld [vmem:[%s14257_s5 + $0x58] sm:$0xff] }
 0x7e5   :  { %5402 = vmatpush.msra.mxu2 %v5295_v31  ;;  %v7172_v31 = vunpack.i.l.bf16 %v12862_v50  ;;  %v4525_v5 = vadd.f32 %v12932_v46, %v4424_v12  ;;  %v5229_v4 = vmax.f32 %v5173_v30, 0.0  ;;  %v15044_v0 = vld [vmem:[#allocation69_spill] sm:$0xff] }
 0x7e6   :  { %v4724_v22 = vadd.f32 %v4723_v2, %v4623_v32  ;;  %v15034_v2 = vld [vmem:[#allocation85_spill] sm:$0xff]  ;;  %v2618_v45 = vadd.f32 %v15035_v36, %v2517_v40  ;;  %v5177_v32 = vmax.f32 %v2918_v41, %v5065_v1  ;;  %v13181_v1 = vpop.permute.xlu0 %4971  ;;  %v13196_v12 = vpop.permute.xlu1 %4959 }
 0x7e7   :  { %v2713_v44 = vadd.f32 %v15034_v2, %v2612_v6  ;;  %15038 = vst [vmem:[#allocation176_spill] sm:$0xff] %v13181_v1  ;;  %5403 = vmatpush.msra.mxu2 %v5294_v11  ;;  %v13188_v2 = vpop.permute.xlu2 %4929  ;;  %v5063_v46 = vsel %vm1448_vm0, %v7172_v31, %v13026_v7  ;;  %v15042_v11 = vld [vmem:[#allocation175_spill] sm:$0xff]  ;;  %v2520_v1 = vadd.f32 %v15044_v0, %v2419_v13  ;;  %v15046_v31 = vld [vmem:[#allocation182_spill] sm:$0xff]  ;;  %v15049_v0 = vld [vmem:[#allocation84_spill] sm:$0xff] }
 0x7e8   :  { %6859 = vmatmul.msk.f32.gmra.mxu0 %vm8858_vm2, %v15033_v9  ;;  %6927 = vmatmul.msk.f32.gmra.mxu2 %vm8858_vm2, %v9584_v28  ;;  %v15037_v28 = vld [vmem:[#allocation68_spill] sm:$0xff]  ;;  %15041 = vst [vmem:[#allocation49_spill] sm:$0xff] %v13196_v12 }
 0x7e9   :  { %4901 = vrot.lane.b32.xlu2 %v4724_v22, %s7261_s2  ;;  %6885 = vmatmul.msk.f32.gmra.mxu1 %vm1954_vm3, %v14941_v18  ;;  %v2425_v6 = vadd.f32 %v15037_v28, %v15011_v24  ;;  %v15039_v22 = vld [vmem:[#allocation93_spill] sm:$0xff]  ;;  %v2814_v41 = vadd.f32 %v15040_v21, %v2713_v44  ;;  %v7173_v28 = vunpack.i.h.bf16 %v12862_v50  ;;  %v13212_v13 = vpop.f32.mrf.mxu0 }
 0x7ea   :  { %6959 = vmatmul.msk.f32.gmra.mxu3 %vm1954_vm3, %v14922_v15  ;;  %v2719_v40 = vadd.f32 %v15039_v22, %v2618_v45  ;;  %5404 = vmatpush.msra.mxu2 %v5293_v63  ;;  %v15043_v44 = vld [vmem:[#allocation177_spill] sm:$0xff]  ;;  %v5233_v22 = vmax.f32 %v5177_v32, 0.0  ;;  %v7103_v63 = vld [vmem:[%s14257_s5 + $0x4d8] sm:$0xff] }
 0x7eb   :  { %v4625_v36 = vpop.f32.mrf.mxu2  ;;  %v2915_v30 = vadd.f32 %v15043_v44, %v2814_v41  ;;  %v2526_v25 = vadd.f32 %v15045_v35, %v2425_v6  ;;  %v5067_v50 = vsel %vm1448_vm0, %v7173_v28, %v13188_v2  ;;  %v15048_v41 = vld [vmem:[#allocation105_spill] sm:$0xff]  ;;  %v4427_v35 = vadd.f32 %v12959_v55, %v15049_v0  ;;  %v15057_v0 = vld [vmem:[#allocation82_spill] sm:$0xff] }
 0x7ec   :  { %v4626_v15 = vadd.f32 %v4625_v36, %v4525_v5  ;;  %v2820_v45 = vadd.f32 %v15042_v11, %v2719_v40  ;;  %v4726_v21 = vpop.f32.mrf.mxu3  ;;  %5405 = vmatpush.msra.mxu2 %v5292_v16  ;;  %v5309_v12 = vmax.f32 %v5229_v4, %v5233_v22  ;;  %v15047_v40 = vld [vmem:[#allocation96_spill] sm:$0xff]  ;;  %v5291_v6 = vld [vmem:[%s14257_s5 + $0x50] sm:$0xff] }
 0x7ed   :  { %v5175_v5 = vmax.f32 %v2915_v30, %v5063_v46  ;;  %v2621_v32 = vadd.f32 %v15047_v40, %v2520_v1  ;;  %v2627_v36 = vadd.f32 %v15048_v41, %v2526_v25  ;;  %v5307_v1 = vld [vmem:[%s14257_s5 + $0xd0] sm:$0xff]  ;;  %v15050_v25 = vld [vmem:[#allocation75_spill] sm:$0xff]  ;;  %v15053_v46 = vld [vmem:[#allocation106_spill] sm:$0xff]  ;;  %v13243_v30 = vpop.f32.mrf.mxu1 }
 0x7ee   :  { %v4727_v38 = vadd.f32 %v4726_v21, %v4626_v15  ;;  %v2921_v7 = vadd.f32 %v15046_v31, %v2820_v45  ;;  %v2428_v4 = vadd.f32 %v15050_v25, %v15011_v24  ;;  %v15051_v16 = vld [vmem:[#allocation109_spill] sm:$0xff]  ;;  %v13234_v11 = vpop.permute.xlu0 %4983  ;;  %v4528_v45 = vadd.f32 %v12976_v26, %v4427_v35  ;;  %v7101_v21 = vld [vmem:[%s14257_s5 + $0x4c8] sm:$0xff]  ;;  %5406 = vmatpush.msra.mxu2 %v5291_v6  ;;  %v15054_v26 = vld [vmem:[#allocation74_spill] sm:$0xff]  ;;  %v13251_v41 = vpop.permute.xlu1 %4977 }
 0x7ef   :  { %v2728_v15 = vadd.f32 %v15053_v46, %v2627_v36  ;;  %v5231_v44 = vmax.f32 %v5175_v5, 0.0  ;;  %5429 = vmatpush.msra.mxu3 %v5307_v1  ;;  %v5289_v5 = vld [vmem:[%s14257_s5 + $0x40] sm:$0xff]  ;;  %v7177_v25 = vunpack.i.l.bf16 %v12966_v37  ;;  %v15059_v46 = vld [vmem:[#allocation178_spill] sm:$0xff] }
 0x7f0   :  { %6929 = vmatmul.msk.f32.gmra.mxu2 %vm8858_vm2, %v9606_v51  ;;  %4907 = vrot.lane.b32.xlu1 %v4727_v38, %s7261_s2  ;;  %v5179_v55 = vmax.f32 %v2921_v7, %v5067_v50  ;;  %v7102_v51 = vld [vmem:[%s14257_s5 + $0x4d0] sm:$0xff]  ;;  %v15052_v38 = vld [vmem:[#allocation63_spill] sm:$0xff]  ;;  %v5290_v7 = vld [vmem:[%s14257_s5 + $0x48] sm:$0xff]  ;;  %v2529_v35 = vadd.f32 %v15057_v0, %v2428_v4 }
 0x7f1   :  { %5365 = vmatmul.f32.vlgmr.msra.gmra.mxu0 %v5309_v12  ;;  %6886 = vmatmul.msk.f32.gmra.mxu1 %vm1954_vm3, %v15051_v16  ;;  %v2422_v28 = vadd.f32 %v15052_v38, %v15011_v24  ;;  %v7178_v12 = vunpack.i.h.bf16 %v12966_v37  ;;  %v6992_v37 = vld [vmem:[%s14257_s5 + $0x1b0] sm:$0xff]  ;;  %v15061_v4 = vld [vmem:[#allocation111_spill] sm:$0xff] }
 0x7f2   :  { %6960 = vmatmul.msk.f32.gmra.mxu3 %vm1954_vm3, %v14928_v3  ;;  %5747 = vmatpush.msra.mxu0 %v7103_v63  ;;  %v15055_v3 = vld [vmem:[#allocation98_spill] sm:$0xff]  ;;  %v15056_v63 = vld [vmem:[#allocation183_spill] sm:$0xff]  ;;  %v5235_v6 = vmax.f32 %v5179_v55, 0.0  ;;  %v2630_v55 = vadd.f32 %v15061_v4, %v2529_v35  ;;  %v7097_v4 = vld [vmem:[%s14257_s5 + $0x4a8] sm:$0xff] }
 0x7f3   :  { %v4628_v22 = vpop.f32.mrf.mxu2  ;;  %v2523_v50 = vadd.f32 %v15054_v26, %v2422_v28  ;;  %v2722_v31 = vadd.f32 %v15055_v3, %v2621_v32  ;;  %v2829_v40 = vadd.f32 %v15056_v63, %v2728_v15  ;;  %v5073_v1 = vsel %vm1448_vm0, %v7178_v12, %v13058_v43  ;;  %v7100_v32 = vld [vmem:[%s14257_s5 + $0x4c0] sm:$0xff]  ;;  %5407 = vmatpush.msra.mxu2 %v5290_v7  ;;  %v15058_v28 = vld [vmem:[#allocation101_spill] sm:$0xff]  ;;  %v15062_v7 = vld [vmem:[#allocation184_spill] sm:$0xff] }
 0x7f4   :  { %v4629_v36 = vadd.f32 %v4628_v22, %v4528_v45  ;;  %5748 = vmatpush.msra.mxu0 %v7102_v51  ;;  %v4729_v38 = vpop.f32.mrf.mxu3  ;;  %v15060_v45 = vld [vmem:[#allocation188_spill] sm:$0xff]  ;;  %v5069_v12 = vsel %vm1448_vm0, %v7177_v25, %v13078_v49  ;;  %v5311_v3 = vmax.f32 %v5231_v44, %v5235_v6  ;;  %5377 = vmatpush.msra.mxu1 %v6992_v37  ;;  %v5288_v44 = vld [vmem:[%s14257_s5 + $0x38] sm:$0xff]  ;;  %v13289_v25 = vpop.f32.mrf.mxu0  ;;  %v7098_v6 = vld [vmem:[%s14257_s5 + $0x4b0] sm:$0xff] }
 0x7f5   :  { %v2624_v51 = vadd.f32 %v15058_v28, %v2523_v50  ;;  %v2823_v15 = vadd.f32 %v15059_v46, %v2722_v31  ;;  %v2930_v22 = vadd.f32 %v15060_v45, %v2829_v40  ;;  %5408 = vmatpush.msra.mxu2 %v5289_v5  ;;  %v15063_v31 = vld [vmem:[#allocation38_spill] sm:$0xff]  ;;  %v15068_v45 = vld [vmem:[#allocation185_spill] sm:$0xff] }
 0x7f6   :  { %v4730_v26 = vadd.f32 %v4729_v38, %v4629_v36  ;;  %5749 = vmatpush.msra.mxu0 %v7101_v21  ;;  %v4430_v40 = vadd.f32 %v12998_v60, %v15063_v31  ;;  %v7099_v21 = vld [vmem:[%s14257_s5 + $0x4b8] sm:$0xff]  ;;  %v15064_v36 = vld [vmem:[#allocation112_spill] sm:$0xff]  ;;  %v13287_v35 = vpop.permute.xlu0 %5001  ;;  %v13320_v31 = vpop.f32.mrf.mxu1 }
 0x7f7   :  { %v2924_v50 = vadd.f32 %v15062_v7, %v2823_v15  ;;  %v5185_v63 = vmax.f32 %v2930_v22, %v5073_v1  ;;  %v2731_v5 = vadd.f32 %v15064_v36, %v2630_v55  ;;  %v5287_v1 = vld [vmem:[%s14257_s5 + $0x30] sm:$0xff]  ;;  %5409 = vmatpush.msra.mxu2 %v5288_v44  ;;  %v15067_v46 = vld [vmem:[#allocation102_spill] sm:$0xff]  ;;  %v5286_v55 = vld [vmem:[%s14257_s5 + $0x28] sm:$0xff] }
 0x7f8   :  { %5750 = vmatpush.msra.mxu0 %v7100_v32  ;;  %6931 = vmatmul.msk.f32.gmra.mxu2 %vm8858_vm2, %v14920_v56  ;;  %v4531_v60 = vadd.f32 %v13015_v10, %v4430_v40  ;;  %v15065_v56 = vld [vmem:[#allocation121_spill] sm:$0xff]  ;;  %v15066_v10 = vld [vmem:[#allocation128_spill] sm:$0xff]  ;;  %v7183_v32 = vunpack.i.h.bf16 %v12902_v14  ;;  %v2725_v15 = vadd.f32 %v15067_v46, %v2624_v51  ;;  %v15070_v7 = vld [vmem:[#allocation135_spill] sm:$0xff]  ;;  %v7182_v51 = vunpack.i.l.bf16 %v12902_v14 }
 0x7f9   :  { %4913 = vrot.lane.b32.xlu1 %v4730_v26, %s7261_s2  ;;  %5368 = vmatmul.f32.gmra.mxu0 %v5311_v3  ;;  %v5181_v0 = vmax.f32 %v2924_v50, %v5069_v12  ;;  %v2461_v38 = vadd.f32 %v15066_v10, %v15011_v24  ;;  %v5241_v22 = vmax.f32 %v5185_v63, 0.0  ;;  %v13306_v26 = vpop.permute.xlu1 %4989  ;;  %v15069_v12 = vld [vmem:[#allocation118_spill] sm:$0xff]  ;;  %v15074_v46 = vld [vmem:[#allocation157_spill] sm:$0xff] }
 0x7fa   :  { %6887 = vmatmul.msk.f32.gmra.mxu1 %vm1954_vm3, %v15065_v56  ;;  %6961 = vmatmul.msk.f32.gmra.mxu3 %vm1954_vm3, %v14932_v19  ;;  %v2832_v19 = vadd.f32 %v15068_v45, %v2731_v5  ;;  %v2455_v3 = vadd.f32 %v15069_v12, %v15011_v24  ;;  %v5075_v63 = vsel %vm1448_vm0, %v7183_v32, %v13122_v59  ;;  %v15072_v36 = vld [vmem:[#allocation190_spill] sm:$0xff] }
 0x7fb   :  { %5751 = vmatpush.msra.mxu0 %v7099_v21  ;;  %v4631_v28 = vpop.f32.mrf.mxu2  ;;  %v2562_v50 = vadd.f32 %v15070_v7, %v2461_v38  ;;  %5410 = vmatpush.msra.mxu2 %v5287_v1  ;;  %v15071_v21 = vld [vmem:[#allocation181_spill] sm:$0xff]  ;;  %v7096_v38 = vld [vmem:[%s14257_s5 + $0x4a0] sm:$0xff]  ;;  %v5071_v32 = vsel %vm1448_vm0, %v7182_v51, %v13141_v48 }
 0x7fc   :  { %v4632_v37 = vadd.f32 %v4631_v28, %v4531_v60  ;;  %v4732_v40 = vpop.f32.mrf.mxu3  ;;  %v2826_v44 = vadd.f32 %v15071_v21, %v2725_v15  ;;  %v2933_v5 = vadd.f32 %v15072_v36, %v2832_v19  ;;  %v5237_v60 = vmax.f32 %v5181_v0, 0.0  ;;  %v15073_v28 = vld [vmem:[#allocation127_spill] sm:$0xff]  ;;  %v15076_v19 = vld [vmem:[#allocation64_spill] sm:$0xff] }
 0x7fd   :  { %5752 = vmatpush.msra.mxu0 %v7098_v6  ;;  %v2556_v14 = vadd.f32 %v15073_v28, %v2455_v3  ;;  %v2663_v45 = vadd.f32 %v15074_v46, %v2562_v50  ;;  %5411 = vmatpush.msra.mxu2 %v5286_v55  ;;  %v15075_v6 = vld [vmem:[#allocation186_spill] sm:$0xff]  ;;  %v4433_v0 = vadd.f32 %v13048_v52, %v15076_v19  ;;  %v15077_v55 = vld [vmem:[#allocation148_spill] sm:$0xff]  ;;  %v15079_v21 = vld [vmem:[#allocation151_spill] sm:$0xff] }
 0x7fe   :  { %v4733_v10 = vadd.f32 %v4732_v40, %v4632_v37  ;;  %v2927_v1 = vadd.f32 %v15075_v6, %v2826_v44  ;;  %v5447_v15 = vmax.f32 %v5237_v60, %v5241_v22  ;;  %v5187_v12 = vmax.f32 %v2933_v5, %v5075_v63  ;;  %v7095_v37 = vld [vmem:[%s14257_s5 + $0x498] sm:$0xff]  ;;  %v13347_v51 = vpop.permute.xlu0 %5019  ;;  %v5306_v40 = vld [vmem:[%s14257_s5 + $0xc8] sm:$0xff]  ;;  %v5283_v46 = vld [vmem:[%s14257_s5 + $0x10] sm:$0xff] }
 0x7ff   :  { %5753 = vmatpush.msra.mxu0 %v7097_v4  ;;  %v5285_v4 = vld [vmem:[%s14257_s5 + $0x20] sm:$0xff]  ;;  %v2657_v3 = vadd.f32 %v15077_v55, %v2556_v14  ;;  %v15078_v22 = vld [vmem:[#allocation158_spill] sm:$0xff]  ;;  %v4534_v50 = vadd.f32 %v13053_v20, %v4433_v0  ;;  %v7208_v44 = vunpack.i.h.bf16 %v13006_v53  ;;  %v7093_v14 = vld [vmem:[%s14257_s5 + $0x488] sm:$0xff]  ;;  %5430 = vmatpush.msra.mxu3 %v5306_v40  ;;  %v7207_v6 = vunpack.i.l.bf16 %v13006_v53 }
 0x800   :  { %6933 = vmatmul.msk.f32.gmra.mxu2 %vm8858_vm2, %v14926_v57  ;;  %v2764_v7 = vadd.f32 %v15078_v22, %v2663_v45  ;;  %v5183_v52 = vmax.f32 %v2927_v1, %v5071_v32  ;;  %v7094_v57 = vld [vmem:[%s14257_s5 + $0x490] sm:$0xff]  ;;  %v5284_v63 = vld [vmem:[%s14257_s5 + $0x18] sm:$0xff]  ;;  %v5243_v60 = vmax.f32 %v5187_v12, 0.0  ;;  %v5282_v55 = vld [vmem:[%s14257_s5 + $0x8] sm:$0xff] }
 0x801   :  { %5754 = vmatpush.msra.mxu0 %v7096_v38  ;;  %4919 = vrot.lane.b32.xlu1 %v4733_v10, %s7261_s2  ;;  %v2758_v20 = vadd.f32 %v15079_v21, %v2657_v3  ;;  %v13363_v10 = vpop.permute.xlu1 %5007  ;;  %v13365_v38 = vpop.f32.mrf.mxu0  ;;  %v15081_v45 = vld [vmem:[#allocation205_spill] sm:$0xff]  ;;  %v5097_v1 = vsel %vm1448_vm0, %v7208_v44, %v13347_v51  ;;  %v15083_v3 = vld [vmem:[#allocation211_spill] sm:$0xff]  ;;  %v7091_v40 = vld [vmem:[%s14257_s5 + $0x478] sm:$0xff] }
 0x802   :  { %5502 = vmatmul.f32.vlgmr.msrb.gmra.mxu0 %v5447_v15  ;;  %6962 = vmatmul.msk.f32.gmra.mxu3 %vm1954_vm3, %v14937_v42  ;;  %v15080_v42 = vld [vmem:[#allocation210_spill] sm:$0xff]  ;;  %v15082_v12 = vld [vmem:[#allocation217_spill] sm:$0xff]  ;;  %v5239_v0 = vmax.f32 %v5183_v52, 0.0  ;;  %v5093_v22 = vsel %vm1448_vm0, %v7207_v6, %v13363_v10  ;;  %v5281_v21 = vld [vmem:[%s14257_s5] sm:$0xff] }
 0x803   :  { %5755 = vmatpush.msra.mxu0 %v7095_v37  ;;  %v4634_v36 = vpop.f32.mrf.mxu2  ;;  %5412 = vmatpush.msra.mxu2 %v5285_v4  ;;  %v2865_v5 = vadd.f32 %v15080_v42, %v2764_v7  ;;  %v2859_v32 = vadd.f32 %v15081_v45, %v2758_v20  ;;  %v7092_v4 = vld [vmem:[%s14257_s5 + $0x480] sm:$0xff]  ;;  %v13387_v7 = vpop.f32.mrf.mxu1  ;;  %v7041_v6 = vld [vmem:[%s14257_s5 + $0x308] sm:$0xff] }
 0x804   :  { %v4635_v28 = vadd.f32 %v4634_v36, %v4534_v50  ;;  %v4735_v15 = vpop.f32.mrf.mxu3  ;;  %v15084_v50 = vld [vmem:[#allocation42_spill] sm:$0xff]  ;;  %v7090_v36 = vld [vmem:[%s14257_s5 + $0x470] sm:$0xff] }
 0x805   :  { %5756 = vmatpush.msra.mxu0 %v7094_v57  ;;  %5413 = vmatpush.msra.mxu2 %v5284_v63  ;;  %v2966_v19 = vadd.f32 %v15082_v12, %v2865_v5  ;;  %v2960_v53 = vadd.f32 %v15083_v3, %v2859_v32  ;;  %v4436_v52 = vadd.f32 %v13088_v33, %v15084_v50  ;;  %v7043_v33 = vld [vmem:[%s14257_s5 + $0x318] sm:$0xff]  ;;  %v7042_v5 = vld [vmem:[%s14257_s5 + $0x310] sm:$0xff]  ;;  %v7088_v32 = vld [vmem:[%s14257_s5 + $0x460] sm:$0xff] }
 0x806   :  { %v4736_v37 = vadd.f32 %v4735_v15, %v4635_v28  ;;  %v5449_v63 = vmax.f32 %v5239_v0, %v5243_v60 }
 0x807   :  { %5757 = vmatpush.msra.mxu0 %v7093_v14  ;;  %5414 = vmatpush.msra.mxu2 %v5283_v46  ;;  %v5209_v57 = vmax.f32 %v2966_v19, %v5097_v1  ;;  %v5205_v20 = vmax.f32 %v2960_v53, %v5093_v22  ;;  %v4537_v44 = vadd.f32 %v13099_v23, %v4436_v52  ;;  %v7089_v23 = vld [vmem:[%s14257_s5 + $0x468] sm:$0xff]  ;;  %v15085_v1 = vld [vmem:[#allocation89_spill] sm:$0xff]  ;;  %v7040_v19 = vld [vmem:[%s14257_s5 + $0x300] sm:$0xff] }
 0x808   :  { %6935 = vmatmul.msk.f32.gmra.mxu2 %vm8858_vm2, %v14930_v61  ;;  %4925 = vrot.lane.b32.xlu0 %v4736_v37, %s7261_s2  ;;  %v6991_v61 = vld [vmem:[%s14257_s5 + $0x1a8] sm:$0xff]  ;;  %v4439_v15 = vadd.f32 %v13151_v47, %v15085_v1  ;;  %v7039_v47 = vld [vmem:[%s14257_s5 + $0x2f8] sm:$0xff]  ;;  %v15086_v53 = vld [vmem:[#allocation39_spill] sm:$0xff] }
 0x809   :  { %5758 = vmatpush.msra.mxu0 %v7092_v4  ;;  %5415 = vmatpush.msra.mxu2 %v5282_v55  ;;  %v5265_v60 = vmax.f32 %v5209_v57, 0.0  ;;  %v5261_v14 = vmax.f32 %v5205_v20, 0.0  ;;  %v13419_v46 = vpop.f32.mrf.mxu0  ;;  %v7038_v55 = vld [vmem:[%s14257_s5 + $0x2f0] sm:$0xff]  ;;  %v15087_v22 = vld [vmem:[#allocation44_spill] sm:$0xff]  ;;  %v5305_v57 = vld [vmem:[%s14257_s5 + $0xc0] sm:$0xff] }
 0x80a   :  { %5505 = vmatmul.f32.gmra.mxu0 %v5449_v63  ;;  %6963 = vmatmul.msk.f32.gmra.mxu3 %vm1954_vm3, %v14941_v18  ;;  %v4540_v37 = vadd.f32 %v13168_v34, %v4439_v15  ;;  %v2395_v34 = vadd.f32 %v15086_v53, %v15011_v24  ;;  %v2401_v50 = vadd.f32 %v15087_v22, %v15011_v24  ;;  %v7037_v52 = vld [vmem:[%s14257_s5 + $0x2e8] sm:$0xff]  ;;  %v15094_v15 = vld [vmem:[#allocation70_spill] sm:$0xff]  ;;  %v15099_v22 = vld [vmem:[#allocation155_spill] sm:$0xff] }
 0x80b   :  { %5759 = vmatpush.msra.mxu0 %v7091_v40  ;;  %v4637_v42 = vpop.f32.mrf.mxu2  ;;  %5416 = vmatpush.msra.mxu2 %v5281_v21  ;;  %v5708_v12 = vmax.f32 %v5261_v14, %v5265_v60  ;;  %v13436_v0 = vpop.f32.mrf.mxu1  ;;  %v4442_v63 = vadd.f32 %v13212_v13, %v12632_v8  ;;  %v7036_v21 = vld [vmem:[%s14257_s5 + $0x2e0] sm:$0xff]  ;;  %v15089_v13 = vld [vmem:[#allocation48_spill] sm:$0xff]  ;;  %v15098_v53 = vld [vmem:[#allocation50_spill] sm:$0xff] }
 0x80c   :  { %v4638_v28 = vadd.f32 %v4637_v42, %v4537_v44  ;;  %5378 = vmatpush.msra.mxu1 %v6991_v61  ;;  %v4738_v18 = vpop.f32.mrf.mxu3  ;;  %5431 = vmatpush.msra.mxu3 %v5305_v57  ;;  %v15088_v61 = vld [vmem:[#allocation13_spill] sm:$0xff]  ;;  %v2502_v20 = vadd.f32 %v15089_v13, %v2401_v50  ;;  %v15090_v42 = vld [vmem:[#allocation67_spill] sm:$0xff]  ;;  %v7033_v14 = vld [vmem:[%s14257_s5 + $0x2c8] sm:$0xff] }
 0x80d   :  { %5573 = vmatpush.msrb.mxu2 %v7043_v33  ;;  %5760 = vmatpush.msra.mxu0 %v7090_v36  ;;  %v6990_v33 = vld [vmem:[%s14257_s5 + $0x1a0] sm:$0xff]  ;;  %v2496_v8 = vadd.f32 %v15088_v61, %v2395_v34  ;;  %v4543_v44 = vadd.f32 %v13243_v30, %v4442_v63  ;;  %v15100_v57 = vld [vmem:[#allocation14_spill] sm:$0xff] }
 0x80e   :  { %v4739_v45 = vadd.f32 %v4738_v18, %v4638_v28  ;;  %5379 = vmatpush.msra.mxu1 %v6990_v33  ;;  %v7034_v28 = vld [vmem:[%s14257_s5 + $0x2d0] sm:$0xff]  ;;  %v15091_v30 = vld [vmem:[#allocation55_spill] sm:$0xff] }
 0x80f   :  { %5574 = vmatpush.msrb.mxu2 %v7042_v5  ;;  %5761 = vmatpush.msra.mxu0 %v7089_v23  ;;  %v2603_v5 = vadd.f32 %v15090_v42, %v2502_v20  ;;  %v2597_v18 = vadd.f32 %v15091_v30, %v2496_v8  ;;  %v15101_v8 = vld [vmem:[#allocation72_spill] sm:$0xff]  ;;  %v7030_v42 = vld [vmem:[%s14257_s5 + $0x2b0] sm:$0xff] }
 0x810   :  { %6937 = vmatmul.msk.f32.gmra.mxu2 %vm8858_vm2, %v15020_v29  ;;  %4931 = vrot.lane.b32.xlu0 %v4739_v45, %s7261_s2  ;;  %v15092_v45 = vld [vmem:[#allocation41_spill] sm:$0xff] }
 0x811   :  { %5762 = vmatpush.msra.mxu0 %v7088_v32  ;;  %5575 = vmatpush.msrb.mxu2 %v7041_v6  ;;  %v13459_v40 = vpop.f32.mrf.mxu0  ;;  %v2398_v32 = vadd.f32 %v15092_v45, %v15011_v24  ;;  %v15093_v6 = vld [vmem:[#allocation15_spill] sm:$0xff]  ;;  %v5303_v45 = vld [vmem:[%s14257_s5 + $0xb0] sm:$0xff] }
 0x812   :  { %5763 = vmatmul.f32.vlgmr.msra.gmra.mxu0 %v5708_v12  ;;  %6964 = vmatmul.msk.f32.gmra.mxu3 %vm1954_vm3, %v15051_v16  ;;  %v2404_v1 = vadd.f32 %v15093_v6, %v15011_v24  ;;  %v2704_v12 = vadd.f32 %v15094_v15, %v2603_v5  ;;  %v15106_v15 = vld [vmem:[#allocation76_spill] sm:$0xff] }
 0x813   :  { %v4640_v29 = vpop.f32.mrf.mxu2  ;;  %5576 = vmatpush.msrb.mxu2 %v7040_v19  ;;  %v15095_v19 = vld [vmem:[#allocation34_spill] sm:$0xff]  ;;  %v2499_v63 = vadd.f32 %v15100_v57, %v2398_v32 }
 0x814   :  { %v4641_v4 = vadd.f32 %v4640_v29, %v4540_v37  ;;  %v4741_v3 = vpop.f32.mrf.mxu3  ;;  %v4445_v37 = vadd.f32 %v13289_v25, %v15095_v19  ;;  %v7032_v29 = vld [vmem:[%s14257_s5 + $0x2c0] sm:$0xff]  ;;  %v2505_v34 = vadd.f32 %v15098_v53, %v2404_v1  ;;  %v2805_v50 = vadd.f32 %v15099_v22, %v2704_v12  ;;  %v15105_v32 = vld [vmem:[#allocation62_spill] sm:$0xff]  ;;  %v5302_v1 = vld [vmem:[%s14257_s5 + $0xa8] sm:$0xff] }
 0x815   :  { %5577 = vmatpush.msrb.mxu2 %v7039_v47  ;;  %v15096_v47 = vmov 0.0   ;;  %v2600_v6 = vadd.f32 %v15105_v32, %v2499_v63  ;;  %v7163_v53 = vunpack.i.h.bf16 %v12829_v54  ;;  %v15111_v63 = vld [vmem:[#allocation99_spill] sm:$0xff] }
 0x816   :  { %v4742_v16 = vadd.f32 %v4741_v3, %v4641_v4  ;;  %v7158_v4 = vunpack.i.h.bf16 %v12842_v39  ;;  %v2606_v13 = vadd.f32 %v15101_v8, %v2505_v34  ;;  %v15109_v34 = vld [vmem:[#allocation159_spill] sm:$0xff] }
 0x817   :  { %5578 = vmatpush.msrb.mxu2 %v7038_v55  ;;  %v15097_v55 = vld [vmem:[#allocation60_spill] sm:$0xff] }
 0x818   :  { %6939 = vmatmul.msk.f32.gmra.mxu2 %vm8858_vm2, %v15033_v9  ;;  %4937 = vrot.lane.b32.xlu2 %v4742_v16, %s7261_s2  ;;  %v13479_v9 = vpop.f32.mrf.mxu1  ;;  %v2698_v3 = vadd.f32 %v15097_v55, %v2597_v18  ;;  %v4546_v16 = vadd.f32 %v13320_v31, %v4445_v37  ;;  %v5057_v33 = vsel %vm1448_vm0, %v7158_v4, %v13045_v62  ;;  %v15102_v31 = vld [vmem:[#allocation149_spill] sm:$0xff]  ;;  %v5301_v4 = vld [vmem:[%s14257_s5 + $0xa0] sm:$0xff] }
 0x819   :  { %5579 = vmatpush.msrb.mxu2 %v7037_v52  ;;  %v13506_v25 = vpop.f32.mrf.mxu0  ;;  %v7031_v52 = vld [vmem:[%s14257_s5 + $0x2b8] sm:$0xff]  ;;  %v2707_v12 = vadd.f32 %v15106_v15, %v2606_v13  ;;  %v4448_v37 = vadd.f32 %v13365_v38, %v12662_v27  ;;  %v15107_v55 = vld [vmem:[#allocation91_spill] sm:$0xff]  ;;  %v13564_v13 = vpop.permute.xlu2 %4965  ;;  %v5299_v15 = vld [vmem:[%s14257_s5 + $0x90] sm:$0xff] }
 0x81a   :  { %6965 = vmatmul.msk.f32.gmra.mxu3 %vm1954_vm3, %v15065_v56  ;;  %v2799_v20 = vadd.f32 %v15102_v31, %v2698_v3  ;;  %v2437_v3 = vadd.f32 %v15107_v55, %v15011_v24  ;;  %v15108_v27 = vld [vmem:[#allocation66_spill] sm:$0xff] }
 0x81b   :  { %v4643_v36 = vpop.f32.mrf.mxu2  ;;  %5580 = vmatpush.msrb.mxu2 %v7036_v21  ;;  %v7157_v21 = vunpack.i.l.bf16 %v12842_v39  ;;  %v5304_v39 = vld [vmem:[%s14257_s5 + $0xb8] sm:$0xff]  ;;  %v2701_v38 = vadd.f32 %v15108_v27, %v2600_v6  ;;  %v2808_v22 = vadd.f32 %v15109_v34, %v2707_v12  ;;  %v15119_v12 = vld [vmem:[#allocation115_spill] sm:$0xff]  ;;  %v5298_v27 = vld [vmem:[%s14257_s5 + $0x88] sm:$0xff] }
 0x81c   :  { %v4644_v60 = vadd.f32 %v4643_v36, %v4543_v44  ;;  %v4744_v23 = vpop.f32.mrf.mxu3  ;;  %v15103_v44 = vld [vmem:[#allocation164_spill] sm:$0xff]  ;;  %5432 = vmatpush.msra.mxu3 %v5304_v39 }
 0x81d   :  { %5581 = vmatpush.msrb.mxu2 %v7035_v17  ;;  %v2906_v17 = vadd.f32 %v15103_v44, %v2805_v50  ;;  %v5053_v5 = vsel %vm1448_vm0, %v7157_v21, %v13070_v58  ;;  %v2538_v21 = vadd.f32 %v15111_v63, %v2437_v3  ;;  %v15115_v39 = vld [vmem:[#allocation88_spill] sm:$0xff]  ;;  %v15121_v3 = vld [vmem:[#allocation53_spill] sm:$0xff]  ;;  %v15125_v63 = vld [vmem:[#allocation191_spill] sm:$0xff] }
 0x81e   :  { %v4745_v56 = vadd.f32 %v4744_v23, %v4644_v60  ;;  %v15104_v23 = vld [vmem:[#allocation156_spill] sm:$0xff]  ;;  %5433 = vmatpush.msra.mxu3 %v5303_v45 }
 0x81f   :  { %5582 = vmatpush.msrb.mxu2 %v7034_v28  ;;  %v2900_v30 = vadd.f32 %v15104_v23, %v2799_v20  ;;  %v5169_v18 = vmax.f32 %v2906_v17, %v5057_v33  ;;  %v7162_v33 = vunpack.i.l.bf16 %v12829_v54  ;;  %v15113_v20 = vld [vmem:[#allocation152_spill] sm:$0xff]  ;;  %v5300_v54 = vld [vmem:[%s14257_s5 + $0x98] sm:$0xff] }
 0x820   :  { %4693 = vmatmul.f32.gmra.mxu2 %v15096_v47  ;;  %4943 = vrot.lane.b32.xlu2 %v4745_v56, %s7261_s2  ;;  %v13527_v60 = vpop.f32.mrf.mxu1  ;;  %v2802_v44 = vadd.f32 %v15113_v20, %v2701_v38  ;;  %v15122_v38 = vld [vmem:[#allocation95_spill] sm:$0xff] }
 0x821   :  { %5583 = vmatpush.msrb.mxu2 %v7033_v14  ;;  %v7029_v14 = vld [vmem:[%s14257_s5 + $0x2a8] sm:$0xff]  ;;  %v5165_v19 = vmax.f32 %v2900_v30, %v5053_v5  ;;  %5434 = vmatpush.msra.mxu3 %v5302_v1  ;;  %v5225_v50 = vmax.f32 %v5169_v18, 0.0  ;;  %v15117_v30 = vld [vmem:[#allocation246_spill] sm:$0xff]  ;;  %v2440_v34 = vadd.f32 %v15122_v38, %v15011_v24  ;;  %v15135_v38 = vld [vmem:[#allocation119_spill] sm:$0xff] }
 0x822   :  { %4794 = vmatmul.f32.gmra.mxu3 %v15096_v47  ;;  %v5055_v18 = vsel %vm1448_vm0, %v7162_v33, %v15117_v30 }
 0x823   :  { %v4646_v61 = vpop.f32.mrf.mxu2  ;;  %5584 = vmatpush.msrb.mxu2 %v7032_v29  ;;  %v7028_v29 = vld [vmem:[%s14257_s5 + $0x2a0] sm:$0xff]  ;;  %5435 = vmatpush.msra.mxu3 %v5301_v4 }
 0x824   :  { %v4647_v36 = vadd.f32 %v4646_v61, %v4546_v16  ;;  %v4747_v28 = vpop.f32.mrf.mxu3  ;;  %v4549_v16 = vadd.f32 %v13387_v7, %v4448_v37  ;;  %v15112_v61 = vld [vmem:[#allocation242_spill] sm:$0xff]  ;;  %v15114_v7 = vld [vmem:[#allocation168_spill] sm:$0xff] }
 0x825   :  { %5585 = vmatpush.msrb.mxu2 %v7031_v52  ;;  %v15110_v52 = vld [vmem:[#allocation79_spill] sm:$0xff]  ;;  %v5059_v8 = vsel %vm1448_vm0, %v7163_v53, %v15112_v61  ;;  %v2909_v17 = vadd.f32 %v15114_v7, %v2808_v22  ;;  %5436 = vmatpush.msra.mxu3 %v5300_v54  ;;  %v4451_v53 = vadd.f32 %v13419_v46, %v15121_v3  ;;  %v15123_v22 = vld [vmem:[#allocation12_spill] sm:$0xff]  ;;  %v13609_v54 = vpop.permute.xlu2 %4995 }
 0x826   :  { %v4748_v56 = vadd.f32 %v4747_v28, %v4647_v36  ;;  %v2431_v57 = vadd.f32 %v15110_v52, %v15011_v24  ;;  %v13568_v36 = vpop.f32.mrf.mxu0  ;;  %v15116_v28 = vld [vmem:[#allocation125_spill] sm:$0xff]  ;;  %v5297_v46 = vld [vmem:[%s14257_s5 + $0x80] sm:$0xff]  ;;  %v15124_v52 = vld [vmem:[#allocation116_spill] sm:$0xff] }
 0x827   :  { %5586 = vmatpush.msrb.mxu2 %v7030_v42  ;;  %v2639_v23 = vadd.f32 %v15116_v28, %v2538_v21  ;;  %v5171_v6 = vmax.f32 %v2909_v17, %v5059_v8  ;;  %5437 = vmatpush.msra.mxu3 %v5299_v15  ;;  %v4552_v8 = vadd.f32 %v13436_v0, %v4451_v53  ;;  %v7187_v17 = vunpack.i.l.bf16 %v15123_v22 }
 0x828   :  { %4696 = vmatmul.f32.gmra.mxu2 %v15096_v47  ;;  %4949 = vrot.lane.b32.xlu1 %v4748_v56, %s7261_s2  ;;  %v2532_v5 = vadd.f32 %v15115_v39, %v2431_v57  ;;  %v13582_v37 = vpop.f32.mrf.mxu1 }
 0x829   :  { %5587 = vmatpush.msrb.mxu2 %v7029_v14  ;;  %v15118_v14 = vld [vmem:[#allocation160_spill] sm:$0xff]  ;;  %5438 = vmatpush.msra.mxu3 %v5298_v27  ;;  %v5227_v33 = vmax.f32 %v5171_v6, 0.0 }
 0x82a   :  { %4797 = vmatmul.f32.gmra.mxu3 %v15096_v47  ;;  %v5221_v47 = vmax.f32 %v5165_v19, 0.0  ;;  %v2903_v45 = vadd.f32 %v15118_v14, %v2802_v44  ;;  %v2633_v19 = vadd.f32 %v15119_v12, %v2532_v5  ;;  %v15127_v44 = vld [vmem:[#allocation103_spill] sm:$0xff]  ;;  %v15131_v14 = vld [vmem:[#allocation94_spill] sm:$0xff] }
 0x82b   :  { %v4649_v31 = vpop.f32.mrf.mxu2  ;;  %5588 = vmatpush.msrb.mxu2 %v7028_v29  ;;  %v15120_v29 = vld [vmem:[#allocation126_spill] sm:$0xff]  ;;  %v2541_v7 = vadd.f32 %v15127_v44, %v2440_v34  ;;  %5439 = vmatpush.msra.mxu3 %v5297_v46  ;;  %v15129_v5 = vld [vmem:[#allocation187_spill] sm:$0xff] }
 0x82c   :  { %v4650_v42 = vadd.f32 %v4649_v31, %v4549_v16  ;;  %v4750_v56 = vpop.f32.mrf.mxu3  ;;  %v5277_v32 = vmax.f32 %v5221_v47, %v5225_v50  ;;  %v2740_v4 = vadd.f32 %v15120_v29, %v2639_v23  ;;  %v5167_v55 = vmax.f32 %v2903_v45, %v5055_v18  ;;  %v6989_v16 = vld [vmem:[%s14257_s5 + $0x198] sm:$0xff]  ;;  %v15126_v31 = vld [vmem:[#allocation83_spill] sm:$0xff]  ;;  %v15128_v47 = vld [vmem:[#allocation176_spill] sm:$0xff] }
 0x82d   :  { %v7188_v50 = vunpack.i.h.bf16 %v15123_v22  ;;  %v2734_v57 = vadd.f32 %v15124_v52, %v2633_v19  ;;  %5380 = vmatpush.msra.mxu1 %v6989_v16  ;;  %v2434_v20 = vadd.f32 %v15126_v31, %v15011_v24  ;;  %v15130_v23 = vld [vmem:[#allocation198_spill] sm:$0xff]  ;;  %v15134_v19 = vld [vmem:[#allocation192_spill] sm:$0xff]  ;;  %v15137_v16 = vld [vmem:[#allocation23_spill] sm:$0xff] }
 0x82e   :  { %v4751_v1 = vadd.f32 %v4750_v56, %v4650_v42  ;;  %v2841_v21 = vadd.f32 %v15125_v63, %v2740_v4  ;;  %v5223_v0 = vmax.f32 %v5167_v55, 0.0  ;;  %v13618_v3 = vpop.f32.mrf.mxu0  ;;  %v15136_v22 = vld [vmem:[#allocation130_spill] sm:$0xff]  ;;  %v4454_v46 = vadd.f32 %v13459_v40, %v15137_v16  ;;  %v15138_v52 = vld [vmem:[#allocation11_spill] sm:$0xff]  ;;  %v15140_v31 = vld [vmem:[#allocation193_spill] sm:$0xff] }
 0x82f   :  { %v5081_v42 = vsel %vm1448_vm0, %v7188_v50, %v15128_v47  ;;  %v2835_v28 = vadd.f32 %v15129_v5, %v2734_v57  ;;  %v2535_v45 = vadd.f32 %v15131_v14, %v2434_v20  ;;  %v7193_v57 = vunpack.i.h.bf16 %v15138_v52 }
 0x830   :  { %4955 = vrot.lane.b32.xlu1 %v4751_v1, %s7261_s2  ;;  %5417 = vmatmul.f32.vlgmr.msra.gmra.mxu2 %v5277_v32  ;;  %v2942_v18 = vadd.f32 %v15130_v23, %v2841_v21  ;;  %v15132_v32 = vld [vmem:[#allocation129_spill] sm:$0xff]  ;;  %v5279_v27 = vmax.f32 %v5223_v0, %v5227_v33  ;;  %v4563_v63 = vpop.f32.mrf.mxu1  ;;  %v15139_v21 = vld [vmem:[#allocation122_spill] sm:$0xff]  ;;  %v4555_v33 = vadd.f32 %v13479_v9, %v4454_v46 }
 0x831   :  { %v2642_v6 = vadd.f32 %v15132_v32, %v2541_v7  ;;  %v15133_v1 = vld [vmem:[#allocation49_spill] sm:$0xff]  ;;  %v2936_v29 = vadd.f32 %v15134_v19, %v2835_v28  ;;  %v2636_v34 = vadd.f32 %v15135_v38, %v2535_v45  ;;  %v7192_v7 = vunpack.i.l.bf16 %v15138_v52  ;;  %v15142_v28 = vld [vmem:[#allocation200_spill] sm:$0xff]  ;;  %v15143_v45 = vld [vmem:[#allocation195_spill] sm:$0xff]  ;;  %v13645_v38 = vpop.permute.xlu0 %5031 }
 0x832   :  { %v5077_v15 = vsel %vm1448_vm0, %v7187_v17, %v15133_v1  ;;  %v5193_v4 = vmax.f32 %v2942_v18, %v5081_v42  ;;  %v5083_v17 = vsel %vm1448_vm0, %v7193_v57, %v13251_v41 }
 0x833   :  { %v4652_v39 = vpop.f32.mrf.mxu2  ;;  %v2743_v55 = vadd.f32 %v15136_v22, %v2642_v6  ;;  %v5189_v50 = vmax.f32 %v2936_v29, %v5077_v15  ;;  %v15144_v29 = vld [vmem:[#allocation233_spill] sm:$0xff] }
 0x834   :  { %v4653_v56 = vadd.f32 %v4652_v39, %v4552_v8  ;;  %v4753_v12 = vpop.f32.mrf.mxu3  ;;  %v2737_v8 = vadd.f32 %v15139_v21, %v2636_v34  ;;  %v5249_v44 = vmax.f32 %v5193_v4, 0.0  ;;  %v15141_v39 = vld [vmem:[#allocation189_spill] sm:$0xff]  ;;  %v4457_v4 = vadd.f32 %v13506_v25, %v15144_v29 }
 0x835   :  { %v2844_v20 = vadd.f32 %v15140_v31, %v2743_v55  ;;  %v5245_v18 = vmax.f32 %v5189_v50, 0.0 }
 0x836   :  { %v4754_v53 = vadd.f32 %v4753_v12, %v4653_v56  ;;  %v2838_v5 = vadd.f32 %v15141_v39, %v2737_v8  ;;  %v5079_v56 = vsel %vm1448_vm0, %v7192_v7, %v13564_v13  ;;  %v6988_v12 = vld [vmem:[%s14257_s5 + $0x190] sm:$0xff]  ;;  %v4558_v34 = vadd.f32 %v13527_v60, %v4457_v4  ;;  %v15145_v8 = vld [vmem:[#allocation47_spill] sm:$0xff] }
 0x837   :  { %v2945_v23 = vadd.f32 %v15142_v28, %v2844_v20  ;;  %v5534_v32 = vmax.f32 %v5245_v18, %v5249_v44  ;;  %5381 = vmatpush.msra.mxu1 %v6988_v12  ;;  %v4460_v25 = vadd.f32 %v13568_v36, %v15145_v8  ;;  %v15146_v44 = vld [vmem:[#allocation235_spill] sm:$0xff]  ;;  %v15147_v28 = vld [vmem:[#allocation234_spill] sm:$0xff] }
 0x838   :  { %4961 = vrot.lane.b32.xlu2 %v4754_v53, %s7261_s2  ;;  %5420 = vmatmul.f32.gmra.mxu2 %v5279_v27  ;;  %v2939_v9 = vadd.f32 %v15143_v45, %v2838_v5  ;;  %v4465_v53 = vpop.f32.mrf.mxu0  ;;  %v4566_v22 = vpop.f32.mrf.mxu1  ;;  %v6987_v45 = vld [vmem:[%s14257_s5 + $0x188] sm:$0xff] }
 0x839   :  { %v5195_v6 = vmax.f32 %v2945_v23, %v5083_v17  ;;  %v4561_v20 = vadd.f32 %v13582_v37, %v4460_v25  ;;  %5382 = vmatpush.msra.mxu1 %v6987_v45  ;;  %v7025_v25 = vld [vmem:[%s14257_s5 + $0x298] sm:$0xff] }
 0x83a   :  { %v5191_v19 = vmax.f32 %v2939_v9, %v5079_v56  ;;  %v15148_v56 = vld [vmem:[#allocation51_spill] sm:$0xff] }
 0x83b   :  { %v13632_v42 = vpop.permute.xlu2 %4895  ;;  %v4655_v40 = vpop.f32.mrf.mxu2  ;;  %v5251_v27 = vmax.f32 %v5195_v6, 0.0  ;;  %v6986_v6 = vld [vmem:[%s14257_s5 + $0x180] sm:$0xff] }
 0x83c   :  { %v4656_v0 = vadd.f32 %v4655_v40, %v4555_v33  ;;  %v4756_v14 = vpop.f32.mrf.mxu3  ;;  %v5247_v50 = vmax.f32 %v5191_v19, 0.0  ;;  %5383 = vmatpush.msra.mxu1 %v6986_v6  ;;  %v6985_v19 = vld [vmem:[%s14257_s5 + $0x178] sm:$0xff] }
 0x83e   :  { %v4757_v15 = vadd.f32 %v4756_v14, %v4656_v0  ;;  %v5536_v21 = vmax.f32 %v5247_v50, %v5251_v27  ;;  %v4463_v14 = vadd.f32 %v13618_v3, %v15148_v56  ;;  %5384 = vmatpush.msra.mxu1 %v6985_v19  ;;  %v6984_v27 = vld [vmem:[%s14257_s5 + $0x170] sm:$0xff]  ;;  %v15156_v56 = vld [vmem:[#allocation86_spill] sm:$0xff] }
 0x840   :  { %4967 = vrot.lane.b32.xlu0 %v4757_v15, %s7261_s2  ;;  %5589 = vmatmul.f32.vlgmr.msrb.gmra.mxu2 %v5534_v32  ;;  %v4468_v60 = vpop.f32.mrf.mxu0  ;;  %v4569_v5 = vpop.f32.mrf.mxu1 }
 0x841   :  { %5385 = vmatpush.msra.mxu1 %v6984_v27 }
 0x843   :  { %v4658_v55 = vpop.f32.mrf.mxu2  ;;  %v4902_v46 = vpop.permute.xlu2 %4901 }
 0x844   :  { %v4659_v16 = vadd.f32 %v4658_v55, %v4558_v34  ;;  %v4759_v52 = vpop.f32.mrf.mxu3  ;;  %v5058_v31 = vsel %vm1448_vm0, %v13045_v62, %v4902_v46  ;;  %v6983_v34 = vld [vmem:[%s14257_s5 + $0x168] sm:$0xff]  ;;  %v13679_v55 = vpop.permute.xlu1 %5043 }
 0x845   :  { %v5170_v33 = vmax.f32 %v15146_v44, %v5058_v31  ;;  %5386 = vmatpush.msra.mxu1 %v6983_v34  ;;  %v15150_v46 = vld [vmem:[#allocation52_spill] sm:$0xff]  ;;  %v15152_v31 = vld [vmem:[#allocation30_spill] sm:$0xff] }
 0x846   :  { %v4760_v57 = vadd.f32 %v4759_v52, %v4659_v16  ;;  %v15151_v52 = vld [vmem:[#allocation5_spill] sm:$0xff]  ;;  %v7019_v34 = vld [vmem:[%s14257_s5 + $0x268] sm:$0xff] }
 0x847   :  { %v5226_v62 = vmax.f32 %v5170_v33, 0.0  ;;  %v5056_v33 = vsel %vm1448_vm0, %v15117_v30, %v13632_v42  ;;  %v7022_v42 = vld [vmem:[%s14257_s5 + $0x280] sm:$0xff] }
 0x848   :  { %4973 = vrot.lane.b32.xlu1 %v4760_v57, %s7261_s2  ;;  %5592 = vmatmul.f32.gmra.mxu2 %v5536_v21  ;;  %v4471_v15 = vpop.f32.mrf.mxu0  ;;  %v4572_v29 = vpop.f32.mrf.mxu1  ;;  %v4086_v57 = vadd.f32 %v15151_v52, %v15150_v46  ;;  %v6982_v21 = vld [vmem:[%s14257_s5 + $0x160] sm:$0xff] }
 0x849   :  { %5387 = vmatpush.msra.mxu1 %v6982_v21  ;;  %v7018_v46 = vld [vmem:[%s14257_s5 + $0x260] sm:$0xff] }
 0x84b   :  { %v4890_v7 = vpop.permute.xlu0 %4889  ;;  %v4661_v17 = vpop.f32.mrf.mxu2  ;;  %5513 = vmatpush.msrb.mxu1 %v7025_v25  ;;  %v15162_v25 = vld [vmem:[#allocation71_spill] sm:$0xff] }
 0x84c   :  { %v5054_v40 = vsel %vm1448_vm0, %v13070_v58, %v4890_v7  ;;  %v4662_v39 = vadd.f32 %v4661_v17, %v4561_v20  ;;  %v4762_v23 = vpop.f32.mrf.mxu3  ;;  %v4564_v58 = vadd.f32 %v4563_v63, %v4463_v14  ;;  %v15149_v63 = vld [vmem:[#allocation29_spill] sm:$0xff]  ;;  %v4187_v20 = vadd.f32 %v15152_v31, %v4086_v57  ;;  %v15153_v17 = vld [vmem:[#allocation16_spill] sm:$0xff] }
 0x84d   :  { %v5166_v36 = vmax.f32 %v15147_v28, %v5054_v40  ;;  %v4466_v4 = vadd.f32 %v4465_v53, %v15149_v63  ;;  %v7024_v7 = vld [vmem:[%s14257_s5 + $0x290] sm:$0xff]  ;;  %v4469_v40 = vadd.f32 %v4468_v60, %v15153_v17  ;;  %v15159_v63 = vld [vmem:[#allocation18_spill] sm:$0xff]  ;;  %v15160_v57 = vld [vmem:[#allocation244_spill] sm:$0xff] }
 0x84e   :  { %v4763_v18 = vadd.f32 %v4762_v23, %v4662_v39  ;;  %v7023_v39 = vld [vmem:[%s14257_s5 + $0x288] sm:$0xff]  ;;  %5514 = vmatpush.msrb.mxu1 %v7024_v7  ;;  %v15163_v31 = vld [vmem:[#allocation21_spill] sm:$0xff] }
 0x84f   :  { %v5222_v0 = vmax.f32 %v5166_v36, 0.0  ;;  %v4567_v50 = vadd.f32 %v4566_v22, %v4466_v4  ;;  %v4570_v36 = vadd.f32 %v4569_v5, %v4469_v40  ;;  %v15154_v23 = vld [vmem:[#allocation236_spill] sm:$0xff]  ;;  %v7021_v5 = vld [vmem:[%s14257_s5 + $0x278] sm:$0xff]  ;;  %v4472_v4 = vadd.f32 %v4471_v15, %v15159_v63 }
 0x850   :  { %4979 = vrot.lane.b32.xlu2 %v4763_v18, %s7261_s2  ;;  %v4474_v22 = vpop.f32.mrf.mxu0  ;;  %v4575_v28 = vpop.f32.mrf.mxu1  ;;  %v5168_v18 = vmax.f32 %v15154_v23, %v5056_v33  ;;  %5515 = vmatpush.msrb.mxu1 %v7023_v39  ;;  %v15164_v33 = vld [vmem:[#allocation97_spill] sm:$0xff]  ;;  %v15165_v40 = vld [vmem:[#allocation6_spill] sm:$0xff] }
 0x851   :  { %v5278_v37 = vmax.f32 %v5222_v0, %v5226_v62  ;;  %v15155_v0 = vld [vmem:[#allocation28_spill] sm:$0xff]  ;;  %v15166_v23 = vld [vmem:[#allocation33_spill] sm:$0xff] }
 0x852   :  { %v4080_v14 = vadd.f32 %v15156_v56, %v15155_v0  ;;  %5516 = vmatpush.msrb.mxu1 %v7022_v42 }
 0x853   :  { %6996 = vmatmul.msk.f32.vlgmr.msra.gmra.mxu3 %vm5342_vm4, %v5278_v37  ;;  %v4664_v9 = vpop.f32.mrf.mxu2  ;;  %v15157_v37 = vld [vmem:[#allocation237_spill] sm:$0xff] }
 0x854   :  { %v4665_v32 = vadd.f32 %v4664_v9, %v4564_v58  ;;  %v4765_v3 = vpop.f32.mrf.mxu3  ;;  %5517 = vmatpush.msrb.mxu1 %v7021_v5 }
 0x856   :  { %v4766_v12 = vadd.f32 %v4765_v3, %v4665_v32  ;;  %v15158_v32 = vld [vmem:[#allocation8_spill] sm:$0xff]  ;;  %v5224_v3 = vmax.f32 %v5168_v18, 0.0  ;;  %v4475_v18 = vadd.f32 %v4474_v22, %v15166_v23  ;;  %v7072_v23 = vld [vmem:[%s14257_s5 + $0x3f0] sm:$0xff] }
 0x857   :  { %v4181_v6 = vadd.f32 %v15158_v32, %v4080_v14  ;;  %v15169_v32 = vld [vmem:[#allocation17_spill] sm:$0xff] }
 0x858   :  { %4985 = vrot.lane.b32.xlu1 %v4766_v12, %s7261_s2  ;;  %v4578_v52 = vpop.f32.mrf.mxu1  ;;  %v4576_v42 = vadd.f32 %v4575_v28, %v4475_v18  ;;  %v15170_v28 = vld [vmem:[#allocation19_spill] sm:$0xff] }
 0x85b   :  { %v4667_v16 = vpop.f32.mrf.mxu2 }
 0x85c   :  { %v4668_v53 = vadd.f32 %v4667_v16, %v4567_v50  ;;  %v4477_v50 = vpop.f32.mrf.mxu0  ;;  %v4573_v16 = vadd.f32 %v4572_v29, %v4472_v4  ;;  %v7017_v29 = vld [vmem:[%s14257_s5 + $0x258] sm:$0xff]  ;;  %v15172_v4 = vld [vmem:[#allocation59_spill] sm:$0xff] }
 0x85d   :  { %v4768_v8 = vpop.f32.mrf.mxu3 }
 0x85e   :  { %v4769_v44 = vadd.f32 %v4768_v8, %v4668_v53  ;;  %v15161_v53 = vld [vmem:[#allocation73_spill] sm:$0xff] }
 0x85f   :  { %v4074_v21 = vadd.f32 %v15161_v53, %v15160_v57 }
 0x860   :  { %5037 = vrot.lane.b32.xlu1 %v4187_v20, %s7261_s2  ;;  %4991 = vrot.lane.b32.xlu2 %v4769_v44, %s7261_s2  ;;  %v4092_v20 = vadd.f32 %v15163_v31, %v15162_v25  ;;  %v4581_v14 = vpop.f32.mrf.mxu1 }
 0x861   :  { %v4175_v7 = vadd.f32 %v15164_v33, %v4074_v21 }
 0x862   :  { %v4908_v30 = vpop.permute.xlu1 %4907  ;;  %v4193_v39 = vadd.f32 %v15165_v40, %v4092_v20  ;;  %v15174_v20 = vld [vmem:[#allocation248_spill] sm:$0xff]  ;;  %v15176_v40 = vld [vmem:[#allocation197_spill] sm:$0xff] }
 0x863   :  { %v5060_v60 = vsel %vm1448_vm0, %v15112_v61, %v4908_v30  ;;  %v4670_v62 = vpop.f32.mrf.mxu2  ;;  %v7020_v61 = vld [vmem:[%s14257_s5 + $0x270] sm:$0xff]  ;;  %v7015_v30 = vld [vmem:[%s14257_s5 + $0x248] sm:$0xff] }
 0x864   :  { %v5172_v45 = vmax.f32 %v15157_v37, %v5060_v60  ;;  %v4671_v58 = vadd.f32 %v4670_v62, %v4570_v36  ;;  %5518 = vmatpush.msrb.mxu1 %v7020_v61  ;;  %v7016_v36 = vld [vmem:[%s14257_s5 + $0x250] sm:$0xff]  ;;  %v7014_v62 = vld [vmem:[%s14257_s5 + $0x240] sm:$0xff]  ;;  %v4480_v0 = vpop.f32.mrf.mxu0 }
 0x865   :  { %v4771_v9 = vpop.f32.mrf.mxu3 }
 0x866   :  { %v5228_v12 = vmax.f32 %v5172_v45, 0.0  ;;  %v4772_v19 = vadd.f32 %v4771_v9, %v4671_v58  ;;  %5519 = vmatpush.msrb.mxu1 %v7019_v34  ;;  %v15167_v45 = vld [vmem:[#allocation230_spill] sm:$0xff]  ;;  %v15168_v58 = vld [vmem:[#allocation231_spill] sm:$0xff] }
 0x867   :  { %v7214_v9 = vpack.i.bf16 %v15168_v58, %v15167_v45 }
 0x868   :  { %v5280_v27 = vmax.f32 %v5224_v3, %v5228_v12  ;;  %4997 = vrot.lane.b32.xlu0 %v4772_v19, %s7261_s2  ;;  %5025 = vrot.lane.b32.xlu2 %v4181_v6, %s7261_s2  ;;  %v4478_v3 = vadd.f32 %v4477_v50, %v15170_v28  ;;  %v15171_v19 = vld [vmem:[#allocation194_spill] sm:$0xff]  ;;  %v4584_v31 = vpop.f32.mrf.mxu1 }
 0x869   :  { %5520 = vmatpush.msrb.mxu1 %v7018_v46  ;;  %v15173_v46 = vld [vmem:[#allocation238_spill] sm:$0xff] }
 0x86a   :  { %6997 = vmatmul.msk.f32.gmra.mxu3 %vm5342_vm4, %v5280_v27  ;;  %v4579_v12 = vadd.f32 %v4578_v52, %v4478_v3  ;;  %v7069_v3 = vld [vmem:[%s14257_s5 + $0x3d8] sm:$0xff] }
 0x86b   :  { %v4673_v15 = vpop.f32.mrf.mxu2  ;;  %5521 = vmatpush.msrb.mxu1 %v7017_v29  ;;  %v4914_v60 = vpop.permute.xlu1 %4913 }
 0x86c   :  { %v4674_v8 = vadd.f32 %v4673_v15, %v4573_v16  ;;  %v5062_v6 = vsel %vm1448_vm0, %v15169_v32, %v4914_v60  ;;  %v4483_v53 = vpop.f32.mrf.mxu0  ;;  %v15178_v32 = vld [vmem:[#allocation10_spill] sm:$0xff] }
 0x86d   :  { %v4774_v44 = vpop.f32.mrf.mxu3  ;;  %5522 = vmatpush.msrb.mxu1 %v7016_v36  ;;  %v5174_v61 = vmax.f32 %v15171_v19, %v5062_v6  ;;  %v4484_v6 = vadd.f32 %v4483_v53, %v15178_v32  ;;  %v7053_v19 = vld [vmem:[%s14257_s5 + $0x368] sm:$0xff]  ;;  %v7066_v53 = vld [vmem:[%s14257_s5 + $0x3c0] sm:$0xff] }
 0x86e   :  { %v4775_v17 = vadd.f32 %v4774_v44, %v4674_v8  ;;  %v15175_v44 = vld [vmem:[#allocation9_spill] sm:$0xff] }
 0x86f   :  { %5523 = vmatpush.msrb.mxu1 %v7015_v30  ;;  %v5230_v8 = vmax.f32 %v5174_v61, 0.0  ;;  %v4481_v29 = vadd.f32 %v4480_v0, %v15175_v44  ;;  %v7071_v0 = vld [vmem:[%s14257_s5 + $0x3e8] sm:$0xff] }
 0x870   :  { %5003 = vrot.lane.b32.xlu1 %v4775_v17, %s7261_s2  ;;  %5013 = vrot.lane.b32.xlu0 %v4175_v7, %s7261_s2  ;;  %v7073_v7 = vld [vmem:[%s14257_s5 + $0x3f8] sm:$0xff]  ;;  %v4587_v61 = vpop.f32.mrf.mxu1 }
 0x871   :  { %5049 = vrot.lane.b32.xlu2 %v4193_v39, %s7261_s2  ;;  %5524 = vmatpush.msrb.mxu1 %v7014_v62  ;;  %v4582_v17 = vadd.f32 %v4581_v14, %v4481_v29 }
 0x872   :  { %v4938_v29 = vpop.permute.xlu2 %4937 }
 0x873   :  { %v4676_v56 = vpop.f32.mrf.mxu2  ;;  %v4920_v16 = vpop.permute.xlu1 %4919 }
 0x874   :  { %v4677_v22 = vadd.f32 %v4676_v56, %v4576_v42  ;;  %v5064_v52 = vsel %vm1448_vm0, %v15174_v20, %v4920_v16  ;;  %v15177_v42 = vld [vmem:[#allocation239_spill] sm:$0xff]  ;;  %v7067_v16 = vld [vmem:[%s14257_s5 + $0x3c8] sm:$0xff] }
 0x875   :  { %v4777_v37 = vpop.f32.mrf.mxu3  ;;  %v5176_v39 = vmax.f32 %v15176_v40, %v5064_v52  ;;  %v7049_v20 = vld [vmem:[%s14257_s5 + $0x348] sm:$0xff] }
 0x876   :  { %v4778_v5 = vadd.f32 %v4777_v37, %v4677_v22 }
 0x877   :  { %v5232_v22 = vmax.f32 %v5176_v39, 0.0  ;;  %v7063_v39 = vld [vmem:[%s14257_s5 + $0x3a8] sm:$0xff] }
 0x878   :  { %7215 = vrot.lane.b32.xlu0 %v7214_v9, %s7261_s2  ;;  %v7070_v9 = vld [vmem:[%s14257_s5 + $0x3e0] sm:$0xff] }
 0x879   :  { %5009 = vrot.lane.b32.xlu2 %v4778_v5, %s7261_s2  ;;  %v4486_v5 = vpop.f32.mrf.mxu0 }
 0x87a   :  { %v4926_v63 = vpop.permute.xlu0 %4925 }
 0x87b   :  { %v5066_v27 = vsel %vm1448_vm0, %v15172_v4, %v4926_v63  ;;  %v4679_v34 = vpop.f32.mrf.mxu2  ;;  %v4585_v63 = vadd.f32 %v4584_v31, %v4484_v6  ;;  %v7068_v4 = vld [vmem:[%s14257_s5 + $0x3d0] sm:$0xff]  ;;  %v7065_v31 = vld [vmem:[%s14257_s5 + $0x3b8] sm:$0xff] }
 0x87c   :  { %v5178_v15 = vmax.f32 %v15173_v46, %v5066_v27  ;;  %v4680_v57 = vadd.f32 %v4679_v34, %v4579_v12  ;;  %v7054_v12 = vld [vmem:[%s14257_s5 + $0x370] sm:$0xff]  ;;  %v7052_v46 = vld [vmem:[%s14257_s5 + $0x360] sm:$0xff] }
 0x87d   :  { %v4780_v21 = vpop.f32.mrf.mxu3 }
 0x87e   :  { %v5234_v50 = vmax.f32 %v5178_v15, 0.0  ;;  %v4781_v25 = vadd.f32 %v4780_v21, %v4680_v57  ;;  %v7051_v21 = vld [vmem:[%s14257_s5 + $0x358] sm:$0xff] }
 0x880   :  { %v5310_v33 = vmax.f32 %v5230_v8, %v5234_v50  ;;  %5015 = vrot.lane.b32.xlu1 %v4781_v25, %s7261_s2  ;;  %v7050_v8 = vld [vmem:[%s14257_s5 + $0x350] sm:$0xff]  ;;  %v15179_v50 = vld [vmem:[#allocation40_spill] sm:$0xff] }
 0x881   :  { %v4487_v25 = vadd.f32 %v4486_v5, %v15179_v50  ;;  %v4489_v52 = vpop.f32.mrf.mxu0  ;;  %v15183_v5 = vld [vmem:[#allocation240_spill] sm:$0xff]  ;;  %v15187_v50 = vld [vmem:[#allocation107_spill] sm:$0xff] }
 0x882   :  { %v4932_v36 = vpop.permute.xlu0 %4931  ;;  %6994 = vmatmul.msk.f32.vlgmr.msra.gmra.mxu1 %vm5342_vm4, %v5310_v33  ;;  %v7064_v33 = vld [vmem:[%s14257_s5 + $0x3b0] sm:$0xff] }
 0x883   :  { %v5068_v18 = vsel %vm1448_vm0, %v13188_v2, %v4932_v36  ;;  %v4682_v30 = vpop.f32.mrf.mxu2  ;;  %5660 = vmatpush.msra.mxu1 %v7073_v7  ;;  %v7055_v2 = vld [vmem:[%s14257_s5 + $0x378] sm:$0xff]  ;;  %v4588_v44 = vadd.f32 %v4587_v61, %v4487_v25  ;;  %v4590_v7 = vpop.f32.mrf.mxu1  ;;  %v7048_v36 = vld [vmem:[%s14257_s5 + $0x340] sm:$0xff]  ;;  %v15184_v61 = vld [vmem:[#allocation100_spill] sm:$0xff] }
 0x884   :  { %v5180_v60 = vmax.f32 %v15177_v42, %v5068_v18  ;;  %v4683_v62 = vadd.f32 %v4682_v30, %v4582_v17  ;;  %5600 = vmatpush.msrb.mxu3 %v7055_v2  ;;  %v15180_v18 = vld [vmem:[#allocation225_spill] sm:$0xff] }
 0x885   :  { %v4783_v56 = vpop.f32.mrf.mxu3  ;;  %5661 = vmatpush.msra.mxu1 %v7072_v23  ;;  %v15181_v30 = vld [vmem:[#allocation45_spill] sm:$0xff] }
 0x886   :  { %v5236_v14 = vmax.f32 %v5180_v60, 0.0  ;;  %v4784_v37 = vadd.f32 %v4783_v56, %v4683_v62  ;;  %5601 = vmatpush.msrb.mxu3 %v7054_v12  ;;  %v7219_v42 = vpack.i.bf16 %v15181_v30, %v15180_v18  ;;  %v7062_v62 = vld [vmem:[%s14257_s5 + $0x3a0] sm:$0xff]  ;;  %v5070_v56 = vsel %vm1448_vm0, %v13078_v49, %v4938_v29  ;;  %v7045_v49 = vld [vmem:[%s14257_s5 + $0x328] sm:$0xff]  ;;  %v15188_v29 = vld [vmem:[#allocation117_spill] sm:$0xff] }
 0x887   :  { %5662 = vmatpush.msra.mxu1 %v7071_v0  ;;  %v7047_v0 = vld [vmem:[%s14257_s5 + $0x338] sm:$0xff]  ;;  %v5182_v32 = vmax.f32 %v15183_v5, %v5070_v56 }
 0x888   :  { %v5312_v28 = vmax.f32 %v5232_v22, %v5236_v14  ;;  %5021 = vrot.lane.b32.xlu1 %v4784_v37, %s7261_s2  ;;  %5602 = vmatpush.msrb.mxu3 %v7053_v19  ;;  %v7061_v22 = vld [vmem:[%s14257_s5 + $0x398] sm:$0xff]  ;;  %v15182_v14 = vld [vmem:[#allocation243_spill] sm:$0xff] }
 0x889   :  { %5663 = vmatpush.msra.mxu1 %v7070_v9  ;;  %v4490_v37 = vadd.f32 %v4489_v52, %v15182_v14  ;;  %v7046_v9 = vld [vmem:[%s14257_s5 + $0x330] sm:$0xff]  ;;  %v15193_v14 = vld [vmem:[#allocation206_spill] sm:$0xff] }
 0x88a   :  { %6995 = vmatmul.msk.f32.gmra.mxu1 %vm5342_vm4, %v5312_v28  ;;  %5603 = vmatpush.msrb.mxu3 %v7052_v46  ;;  %v7060_v28 = vld [vmem:[%s14257_s5 + $0x390] sm:$0xff]  ;;  %v7059_v46 = vld [vmem:[%s14257_s5 + $0x388] sm:$0xff] }
 0x88b   :  { %v4685_v27 = vpop.f32.mrf.mxu2  ;;  %5664 = vmatpush.msra.mxu1 %v7069_v3  ;;  %v4591_v2 = vadd.f32 %v4590_v7, %v4490_v37  ;;  %v4492_v3 = vpop.f32.mrf.mxu0 }
 0x88c   :  { %v4686_v34 = vadd.f32 %v4685_v27, %v4585_v63  ;;  %5604 = vmatpush.msrb.mxu3 %v7051_v21  ;;  %v2443_v63 = vadd.f32 %v15184_v61, %v15011_v24  ;;  %v15185_v27 = vld [vmem:[#allocation241_spill] sm:$0xff]  ;;  %v7081_v61 = vld [vmem:[%s14257_s5 + $0x438] sm:$0xff] }
 0x88d   :  { %v4786_v15 = vpop.f32.mrf.mxu3  ;;  %5665 = vmatpush.msra.mxu1 %v7068_v4  ;;  %v4944_v4 = vpop.permute.xlu2 %4943 }
 0x88e   :  { %v4787_v57 = vadd.f32 %v4786_v15, %v4686_v34  ;;  %5605 = vmatpush.msrb.mxu3 %v7050_v8  ;;  %v7044_v15 = vld [vmem:[%s14257_s5 + $0x320] sm:$0xff]  ;;  %v7085_v8 = vld [vmem:[%s14257_s5 + $0x458] sm:$0xff]  ;;  %v2544_v25 = vadd.f32 %v15187_v50, %v2443_v63  ;;  %v5072_v7 = vsel %vm1448_vm0, %v13141_v48, %v4944_v4  ;;  %v15197_v63 = vld [vmem:[#allocation104_spill] sm:$0xff] }
 0x88f   :  { %5666 = vmatpush.msra.mxu1 %v7067_v16  ;;  %v15192_v48 = vld [vmem:[#allocation134_spill] sm:$0xff]  ;;  %v5184_v37 = vmax.f32 %v15193_v14, %v5072_v7  ;;  %v2446_v4 = vadd.f32 %v15197_v63, %v15011_v24  ;;  %v15203_v7 = vld [vmem:[#allocation113_spill] sm:$0xff] }
 0x890   :  { %5027 = vrot.lane.b32.xlu0 %v4787_v57, %s7261_s2  ;;  %5606 = vmatpush.msrb.mxu3 %v7049_v20  ;;  %v15207_v14 = vld [vmem:[#allocation137_spill] sm:$0xff] }
 0x891   :  { %5667 = vmatpush.msra.mxu1 %v7066_v53  ;;  %v4593_v53 = vpop.f32.mrf.mxu1 }
 0x892   :  { %5607 = vmatpush.msrb.mxu3 %v7048_v36  ;;  %v15190_v36 = vld [vmem:[#allocation245_spill] sm:$0xff] }
 0x893   :  { %v4688_v17 = vpop.f32.mrf.mxu2  ;;  %5668 = vmatpush.msra.mxu1 %v7065_v31  ;;  %v5238_v31 = vmax.f32 %v5182_v32, 0.0  ;;  %v15195_v32 = vld [vmem:[#allocation142_spill] sm:$0xff]  ;;  %v4495_v50 = vpop.f32.mrf.mxu0 }
 0x894   :  { %v4689_v40 = vadd.f32 %v4688_v17, %v4588_v44  ;;  %5608 = vmatpush.msrb.mxu3 %v7047_v0  ;;  %v7058_v44 = vld [vmem:[%s14257_s5 + $0x380] sm:$0xff]  ;;  %v7084_v17 = vld [vmem:[%s14257_s5 + $0x450] sm:$0xff] }
 0x895   :  { %v4789_v23 = vpop.f32.mrf.mxu3  ;;  %5669 = vmatpush.msra.mxu1 %v7064_v33 }
 0x896   :  { %v4790_v60 = vadd.f32 %v4789_v23, %v4689_v40  ;;  %5609 = vmatpush.msrb.mxu3 %v7046_v9  ;;  %v15189_v40 = vld [vmem:[#allocation133_spill] sm:$0xff]  ;;  %v4493_v23 = vadd.f32 %v4492_v3, %v15190_v36  ;;  %v15205_v36 = vld [vmem:[#allocation207_spill] sm:$0xff] }
 0x897   :  { %5670 = vmatpush.msra.mxu1 %v7063_v39  ;;  %v2645_v39 = vadd.f32 %v15189_v40, %v2544_v25  ;;  %v15204_v40 = vld [vmem:[#allocation145_spill] sm:$0xff] }
 0x898   :  { %5033 = vrot.lane.b32.xlu1 %v4790_v60, %s7261_s2  ;;  %7220 = vrot.lane.b32.xlu0 %v7219_v42, %s7261_s2  ;;  %v7083_v60 = vld [vmem:[%s14257_s5 + $0x448] sm:$0xff] }
 0x899   :  { %5671 = vmatpush.msra.mxu1 %v7062_v62  ;;  %5610 = vmatpush.msrb.mxu3 %v7045_v49  ;;  %v15191_v62 = vld [vmem:[#allocation141_spill] sm:$0xff]  ;;  %v2746_v56 = vadd.f32 %v15192_v48, %v2645_v39  ;;  %v7082_v49 = vld [vmem:[%s14257_s5 + $0x440] sm:$0xff] }
 0x89a   :  { %v4950_v6 = vpop.permute.xlu1 %4949  ;;  %v15206_v48 = vld [vmem:[#allocation247_spill] sm:$0xff] }
 0x89b   :  { %v5074_v12 = vsel %vm1448_vm0, %v13058_v43, %v4950_v6  ;;  %v4691_v19 = vpop.f32.mrf.mxu2  ;;  %5672 = vmatpush.msra.mxu1 %v7061_v22  ;;  %v15186_v43 = vld [vmem:[#allocation110_spill] sm:$0xff]  ;;  %5611 = vmatpush.msrb.mxu3 %v7044_v15  ;;  %v4594_v22 = vadd.f32 %v4593_v53, %v4493_v23  ;;  %v15201_v53 = vld [vmem:[#allocation201_spill] sm:$0xff] }
 0x89c   :  { %v5186_v34 = vmax.f32 %v15185_v27, %v5074_v12  ;;  %v4692_v16 = vadd.f32 %v4691_v19, %v4591_v2  ;;  %v2449_v57 = vadd.f32 %v15186_v43, %v15011_v24  ;;  %v15194_v2 = vld [vmem:[#allocation114_spill] sm:$0xff]  ;;  %v15198_v27 = vld [vmem:[#allocation196_spill] sm:$0xff]  ;;  %v15200_v43 = vld [vmem:[#allocation123_spill] sm:$0xff] }
 0x89d   :  { %v4792_v21 = vpop.f32.mrf.mxu3  ;;  %5673 = vmatpush.msra.mxu1 %v7060_v28  ;;  %5687 = vmatpush.msra.mxu3 %v7085_v8  ;;  %v2452_v5 = vadd.f32 %v15194_v2, %v15011_v24  ;;  %v15196_v28 = vld [vmem:[#allocation20_spill] sm:$0xff] }
 0x89e   :  { %v5242_v20 = vmax.f32 %v5186_v34, 0.0  ;;  %v4793_v52 = vadd.f32 %v4792_v21, %v4692_v16  ;;  %v2550_v33 = vadd.f32 %v15188_v29, %v2449_v57  ;;  %v7197_v3 = vunpack.i.l.bf16 %v15196_v28  ;;  %v15199_v16 = vld [vmem:[#allocation7_spill] sm:$0xff] }
 0x89f   :  { %5674 = vmatpush.msra.mxu1 %v7059_v46  ;;  %5688 = vmatpush.msra.mxu3 %v7084_v17  ;;  %v2847_v34 = vadd.f32 %v15198_v27, %v2746_v56  ;;  %v2553_v57 = vadd.f32 %v15200_v43, %v2452_v5  ;;  %v2547_v17 = vadd.f32 %v15203_v7, %v2446_v4  ;;  %v15212_v43 = vld [vmem:[#allocation199_spill] sm:$0xff] }
 0x8a0   :  { %v5448_v42 = vmax.f32 %v5238_v31, %v5242_v20  ;;  %5039 = vrot.lane.b32.xlu1 %v4793_v52, %s7261_s2  ;;  %v2651_v0 = vadd.f32 %v15191_v62, %v2550_v33  ;;  %v5085_v8 = vsel %vm1448_vm0, %v7197_v3, %v13234_v11  ;;  %v7080_v31 = vld [vmem:[%s14257_s5 + $0x430] sm:$0xff]  ;;  %v15202_v20 = vld [vmem:[#allocation202_spill] sm:$0xff]  ;;  %v7079_v62 = vld [vmem:[%s14257_s5 + $0x428] sm:$0xff]  ;;  %v4496_v56 = vadd.f32 %v4495_v50, %v15206_v48 }
 0x8a1   :  { %5675 = vmatpush.msra.mxu1 %v7058_v44  ;;  %5689 = vmatpush.msra.mxu3 %v7083_v60  ;;  %v2948_v52 = vadd.f32 %v15202_v20, %v2847_v34  ;;  %v5240_v44 = vmax.f32 %v5184_v37, 0.0  ;;  %v2654_v39 = vadd.f32 %v15204_v40, %v2553_v57  ;;  %v4596_v60 = vpop.f32.mrf.mxu1  ;;  %v2648_v37 = vadd.f32 %v15207_v14, %v2547_v17  ;;  %v7078_v3 = vld [vmem:[%s14257_s5 + $0x420] sm:$0xff]  ;;  %v7076_v50 = vld [vmem:[%s14257_s5 + $0x410] sm:$0xff]  ;;  %v15214_v20 = vld [vmem:[#allocation204_spill] sm:$0xff]  ;;  %v4962_v40 = vpop.permute.xlu2 %4961 }
 0x8a2   :  { %v4956_v9 = vpop.permute.xlu1 %4955  ;;  %7026 = vmatmul.msk.f32.vlgmr.msrb.gmra.mxu1 %vm5342_vm4, %v5448_v42  ;;  %v2752_v6 = vadd.f32 %v15195_v32, %v2651_v0  ;;  %v4597_v5 = vadd.f32 %v4596_v60, %v4496_v56  ;;  %v15209_v32 = vld [vmem:[#allocation22_spill] sm:$0xff]  ;;  %v7074_v7 = vld [vmem:[%s14257_s5 + $0x400] sm:$0xff] }
 0x8a3   :  { %v5076_v12 = vsel %vm1448_vm0, %v13122_v59, %v4956_v9  ;;  %v4694_v19 = vpop.f32.mrf.mxu2  ;;  %5690 = vmatpush.msra.mxu3 %v7082_v49  ;;  %v7198_v59 = vunpack.i.h.bf16 %v15196_v28  ;;  %v5197_v0 = vmax.f32 %v2948_v52, %v5085_v8  ;;  %v15208_v9 = vld [vmem:[#allocation146_spill] sm:$0xff]  ;;  %v7202_v34 = vunpack.i.l.bf16 %v15209_v32 }
 0x8a4   :  { %v5188_v46 = vmax.f32 %v15199_v16, %v5076_v12  ;;  %v4695_v15 = vadd.f32 %v4694_v19, %v4594_v22  ;;  %v2853_v21 = vadd.f32 %v15201_v53, %v2752_v6  ;;  %v2755_v49 = vadd.f32 %v15208_v9, %v2654_v39  ;;  %v15210_v12 = vld [vmem:[#allocation138_spill] sm:$0xff]  ;;  %v15213_v53 = vld [vmem:[#allocation209_spill] sm:$0xff] }
 0x8a5   :  { %v4795_v25 = vpop.f32.mrf.mxu3  ;;  %5691 = vmatpush.msra.mxu3 %v7081_v61  ;;  %v5089_v42 = vsel %vm1448_vm0, %v7198_v59, %v13609_v54  ;;  %v7203_v6 = vunpack.i.h.bf16 %v15209_v32  ;;  %v2749_v19 = vadd.f32 %v15210_v12, %v2648_v37  ;;  %v15211_v61 = vld [vmem:[#allocation203_spill] sm:$0xff]  ;;  %v5253_v4 = vmax.f32 %v5197_v0, 0.0 }
 0x8a6   :  { %v5244_v29 = vmax.f32 %v5188_v46, 0.0  ;;  %v4796_v33 = vadd.f32 %v4795_v25, %v4695_v15  ;;  %v2954_v23 = vadd.f32 %v15205_v36, %v2853_v21  ;;  %v2856_v63 = vadd.f32 %v15211_v61, %v2755_v49  ;;  %v7077_v15 = vld [vmem:[%s14257_s5 + $0x418] sm:$0xff] }
 0x8a7   :  { %5692 = vmatpush.msra.mxu3 %v7080_v31  ;;  %v5091_v16 = vsel %vm1448_vm0, %v7203_v6, %v13287_v35  ;;  %v2850_v57 = vadd.f32 %v15212_v43, %v2749_v19  ;;  %v5087_v25 = vsel %vm1448_vm0, %v7202_v34, %v13306_v26  ;;  %v7075_v31 = vld [vmem:[%s14257_s5 + $0x408] sm:$0xff]  ;;  %v5078_v36 = vsel %vm1448_vm0, %v15133_v1, %v4962_v40  ;;  %v7133_v6 = vld [vmem:[%s14257_s5 + $0x5b8] sm:$0xff]  ;;  %v7130_v19 = vld [vmem:[%s14257_s5 + $0x5a0] sm:$0xff] }
 0x8a8   :  { %v5450_v22 = vmax.f32 %v5240_v44, %v5244_v29  ;;  %5045 = vrot.lane.b32.xlu2 %v4796_v33, %s7261_s2  ;;  %v5201_v2 = vmax.f32 %v2954_v23, %v5089_v42  ;;  %v2957_v21 = vadd.f32 %v15213_v53, %v2856_v63  ;;  %v15215_v42 = vld [vmem:[#allocation27_spill] sm:$0xff]  ;;  %v7129_v63 = vld [vmem:[%s14257_s5 + $0x598] sm:$0xff] }
 0x8a9   :  { %5693 = vmatpush.msra.mxu3 %v7079_v62  ;;  %v2951_v52 = vadd.f32 %v15214_v20, %v2850_v57  ;;  %v5190_v60 = vmax.f32 %v15215_v42, %v5078_v36  ;;  %v7115_v34 = vld [vmem:[%s14257_s5 + $0x538] sm:$0xff]  ;;  %v7112_v53 = vld [vmem:[%s14257_s5 + $0x520] sm:$0xff]  ;;  %v7109_v20 = vld [vmem:[%s14257_s5 + $0x508] sm:$0xff] }
 0x8aa   :  { %7027 = vmatmul.msk.f32.gmra.mxu1 %vm5342_vm4, %v5450_v22  ;;  %v5257_v59 = vmax.f32 %v5201_v2, 0.0  ;;  %v5203_v29 = vmax.f32 %v2957_v21, %v5091_v16  ;;  %v4980_v56 = vpop.permute.xlu2 %4979  ;;  %v15216_v22 = vld [vmem:[#allocation24_spill] sm:$0xff]  ;;  %v15217_v2 = vld [vmem:[#allocation25_spill] sm:$0xff]  ;;  %5774 = vmatpush.msra.mxu2 %v7115_v34  ;;  %v7125_v57 = vld [vmem:[%s14257_s5 + $0x578] sm:$0xff] }
 0x8ab   :  { %v4697_v28 = vpop.f32.mrf.mxu2  ;;  %5694 = vmatpush.msra.mxu3 %v7078_v3  ;;  %v5199_v33 = vmax.f32 %v2951_v52, %v5087_v25  ;;  %v5246_v9 = vmax.f32 %v5190_v60, 0.0  ;;  %v5084_v1 = vsel %vm1448_vm0, %v13251_v41, %v4980_v56  ;;  %v7131_v41 = vld [vmem:[%s14257_s5 + $0x5a8] sm:$0xff]  ;;  %v7114_v16 = vld [vmem:[%s14257_s5 + $0x530] sm:$0xff]  ;;  %v7122_v25 = vld [vmem:[%s14257_s5 + $0x560] sm:$0xff] }
 0x8ac   :  { %v4698_v27 = vadd.f32 %v4697_v28, %v4597_v5  ;;  %v5621_v44 = vmax.f32 %v5253_v4, %v5257_v59  ;;  %v5259_v17 = vmax.f32 %v5203_v29, 0.0  ;;  %v15218_v28 = vld [vmem:[#allocation26_spill] sm:$0xff]  ;;  %v7128_v4 = vld [vmem:[%s14257_s5 + $0x590] sm:$0xff]  ;;  %5775 = vmatpush.msra.mxu2 %v7114_v16  ;;  %v7123_v59 = vld [vmem:[%s14257_s5 + $0x568] sm:$0xff] }
 0x8ad   :  { %v4798_v46 = vpop.f32.mrf.mxu3  ;;  %5695 = vmatpush.msra.mxu3 %v7077_v15  ;;  %v5255_v39 = vmax.f32 %v5199_v33, 0.0  ;;  %v7113_v15 = vld [vmem:[%s14257_s5 + $0x528] sm:$0xff]  ;;  %v7124_v21 = vld [vmem:[%s14257_s5 + $0x570] sm:$0xff]  ;;  %v7121_v33 = vld [vmem:[%s14257_s5 + $0x558] sm:$0xff] }
 0x8ae   :  { %v4799_v8 = vadd.f32 %v4798_v46, %v4698_v27  ;;  %v7127_v27 = vld [vmem:[%s14257_s5 + $0x588] sm:$0xff]  ;;  %v7126_v46 = vld [vmem:[%s14257_s5 + $0x580] sm:$0xff]  ;;  %5776 = vmatpush.msra.mxu2 %v7113_v15  ;;  %v7120_v36 = vld [vmem:[%s14257_s5 + $0x550] sm:$0xff] }
 0x8af   :  { %5696 = vmatpush.msra.mxu3 %v7076_v50  ;;  %v5623_v23 = vmax.f32 %v5255_v39, %v5259_v17  ;;  %v15220_v17 = vld [vmem:[#allocation213_spill] sm:$0xff]  ;;  %v15221_v42 = vld [vmem:[#allocation136_spill] sm:$0xff]  ;;  %v15229_v34 = vld [vmem:[#allocation31_spill] sm:$0xff] }
 0x8b0   :  { %5051 = vrot.lane.b32.xlu2 %v4799_v8, %s7261_s2  ;;  %5777 = vmatpush.msra.mxu2 %v7112_v53  ;;  %v7111_v8 = vld [vmem:[%s14257_s5 + $0x518] sm:$0xff]  ;;  %v2467_v60 = vadd.f32 %v15221_v42, %v15011_v24  ;;  %v15230_v53 = vld [vmem:[#allocation35_spill] sm:$0xff] }
 0x8b1   :  { %5697 = vmatpush.msra.mxu3 %v7075_v31  ;;  %v7110_v31 = vld [vmem:[%s14257_s5 + $0x510] sm:$0xff] }
 0x8b2   :  { %5676 = vmatmul.f32.vlgmr.msra.gmra.mxu1 %v5621_v44  ;;  %v4968_v62 = vpop.permute.xlu0 %4967  ;;  %5778 = vmatpush.msra.mxu2 %v7111_v8  ;;  %v15219_v44 = vld [vmem:[#allocation143_spill] sm:$0xff]  ;;  %v15231_v8 = vld [vmem:[#allocation166_spill] sm:$0xff] }
 0x8b3   :  { %5698 = vmatpush.msra.mxu3 %v7074_v7  ;;  %v5080_v37 = vsel %vm1448_vm0, %v13564_v13, %v4968_v62  ;;  %v7132_v13 = vld [vmem:[%s14257_s5 + $0x5b0] sm:$0xff]  ;;  %v2473_v29 = vadd.f32 %v15219_v44, %v15011_v24  ;;  %v7108_v7 = vld [vmem:[%s14257_s5 + $0x500] sm:$0xff]  ;;  %v15222_v62 = vld [vmem:[#allocation150_spill] sm:$0xff] }
 0x8b4   :  { %v5192_v5 = vmax.f32 %v15217_v2, %v5080_v37  ;;  %5779 = vmatpush.msra.mxu2 %v7110_v31  ;;  %v15224_v37 = vld [vmem:[#allocation144_spill] sm:$0xff]  ;;  %v7141_v44 = vld [vmem:[%s14257_s5 + $0x5f8] sm:$0xff] }
 0x8b6   :  { %v5248_v3 = vmax.f32 %v5192_v5, 0.0  ;;  %5780 = vmatpush.msra.mxu2 %v7109_v20  ;;  %v15233_v20 = vld [vmem:[#allocation223_spill] sm:$0xff] }
 0x8b8   :  { %5781 = vmatpush.msra.mxu2 %v7108_v7  ;;  %v7212_v7 = vunpack.i.l.bf16 %v15230_v53 }
 0x8ba   :  { %v4974_v0 = vpop.permute.xlu1 %4973  ;;  %5679 = vmatmul.f32.gmra.mxu1 %v5623_v23  ;;  %v4992_v50 = vpop.permute.xlu2 %4991 }
 0x8bb   :  { %v5082_v48 = vsel %vm1448_vm0, %v15128_v47, %v4974_v0  ;;  %v5196_v47 = vmax.f32 %v15218_v28, %v5084_v1  ;;  %v2574_v0 = vadd.f32 %v15222_v62, %v2473_v29  ;;  %v7144_v28 = vld [vmem:[%s14257_s5 + $0x610] sm:$0xff]  ;;  %v15234_v29 = vld [vmem:[#allocation147_spill] sm:$0xff]  ;;  %v5101_v62 = vsel %vm1448_vm0, %v7212_v7, %v13645_v38 }
 0x8bc   :  { %v5194_v14 = vmax.f32 %v15216_v22, %v5082_v48  ;;  %v15223_v48 = vld [vmem:[#allocation216_spill] sm:$0xff] }
 0x8bd   :  { %v5252_v12 = vmax.f32 %v5196_v47, 0.0  ;;  %v7119_v22 = vld [vmem:[%s14257_s5 + $0x548] sm:$0xff]  ;;  %v5088_v47 = vsel %vm1448_vm0, %v13306_v26, %v4992_v50  ;;  %v15228_v26 = vld [vmem:[#allocation174_spill] sm:$0xff] }
 0x8be   :  { %v5250_v49 = vmax.f32 %v5194_v14, 0.0  ;;  %v7107_v14 = vld [vmem:[%s14257_s5 + $0x4f8] sm:$0xff]  ;;  %v5200_v16 = vmax.f32 %v15229_v34, %v5088_v47 }
 0x8bf   :  { %v5537_v61 = vmax.f32 %v5248_v3, %v5252_v12  ;;  %5782 = vmatpush.msra.mxu2 %v7107_v14  ;;  %v15240_v47 = vld [vmem:[#allocation218_spill] sm:$0xff] }
 0x8c0   :  { %v5535_v32 = vmax.f32 %v5246_v9, %v5250_v49  ;;  %v2568_v9 = vadd.f32 %v15224_v37, %v2467_v60  ;;  %v15225_v49 = vld [vmem:[#allocation173_spill] sm:$0xff]  ;;  %v7139_v37 = vld [vmem:[%s14257_s5 + $0x5e8] sm:$0xff] }
 0x8c1   :  { %v2675_v1 = vadd.f32 %v15225_v49, %v2574_v0  ;;  %v7140_v60 = vld [vmem:[%s14257_s5 + $0x5f0] sm:$0xff] }
 0x8c2   :  { %7056 = vmatmul.msk.f32.vlgmr.msrb.gmra.mxu3 %vm5342_vm4, %v5535_v32  ;;  %v7118_v32 = vld [vmem:[%s14257_s5 + $0x540] sm:$0xff]  ;;  %v15237_v0 = vld [vmem:[#allocation169_spill] sm:$0xff] }
 0x8c3   :  { %5834 = vmatpush.msrb.mxu3 %v7133_v6  ;;  %v7106_v6 = vld [vmem:[%s14257_s5 + $0x4f0] sm:$0xff] }
 0x8c4   :  { %5783 = vmatpush.msra.mxu2 %v7106_v6 }
 0x8c5   :  { %5835 = vmatpush.msrb.mxu3 %v7132_v13  ;;  %v15226_v13 = vld [vmem:[#allocation165_spill] sm:$0xff] }
 0x8c6   :  { %v2669_v3 = vadd.f32 %v15226_v13, %v2568_v9  ;;  %v15239_v9 = vld [vmem:[#allocation170_spill] sm:$0xff] }
 0x8c7   :  { %5836 = vmatpush.msrb.mxu3 %v7131_v41  ;;  %v14075_v41 = vpop.permute.xlu2 %5025 }
 0x8c8   :  { %v2770_v50 = vadd.f32 %v15231_v8, %v2669_v3  ;;  %v15241_v3 = vld [vmem:[#allocation179_spill] sm:$0xff]  ;;  %v7135_v8 = vld [vmem:[%s14257_s5 + $0x5c8] sm:$0xff] }
 0x8c9   :  { %5837 = vmatpush.msrb.mxu3 %v7130_v19  ;;  %v7105_v19 = vld [vmem:[%s14257_s5 + $0x4e8] sm:$0xff] }
 0x8ca   :  { %7057 = vmatmul.msk.f32.gmra.mxu3 %vm5342_vm4, %v5537_v61  ;;  %v4986_v43 = vpop.permute.xlu1 %4985  ;;  %v7143_v61 = vld [vmem:[%s14257_s5 + $0x608] sm:$0xff]  ;;  %5784 = vmatpush.msra.mxu2 %v7105_v19 }
 0x8cb   :  { %5838 = vmatpush.msrb.mxu3 %v7129_v63  ;;  %v5086_v52 = vsel %vm1448_vm0, %v13234_v11, %v4986_v43  ;;  %v15227_v63 = vld [vmem:[#allocation140_spill] sm:$0xff]  ;;  %v7104_v43 = vld [vmem:[%s14257_s5 + $0x4e0] sm:$0xff] }
 0x8cc   :  { %v5198_v40 = vmax.f32 %v15220_v17, %v5086_v52  ;;  %5785 = vmatpush.msra.mxu2 %v7104_v43 }
 0x8cd   :  { %5839 = vmatpush.msrb.mxu3 %v7128_v4  ;;  %v2470_v4 = vadd.f32 %v15227_v63, %v15011_v24  ;;  %v7137_v63 = vld [vmem:[%s14257_s5 + $0x5d8] sm:$0xff] }
 0x8ce   :  { %v5254_v2 = vmax.f32 %v5198_v40, 0.0 }
 0x8cf   :  { %5840 = vmatpush.msrb.mxu3 %v7127_v27  ;;  %v2776_v27 = vadd.f32 %v15228_v26, %v2675_v1 }
 0x8d1   :  { %5841 = vmatpush.msrb.mxu3 %v7126_v46 }
 0x8d2   :  { %v14041_v39 = vpop.permute.xlu1 %5037 }
 0x8d3   :  { %5842 = vmatpush.msrb.mxu3 %v7125_v57  ;;  %v7142_v57 = vld [vmem:[%s14257_s5 + $0x600] sm:$0xff] }
 0x8d5   :  { %5843 = vmatpush.msrb.mxu3 %v7124_v21  ;;  %v7213_v21 = vunpack.i.h.bf16 %v15230_v53 }
 0x8d7   :  { %5844 = vmatpush.msrb.mxu3 %v7123_v59  ;;  %v5105_v17 = vsel %vm1448_vm0, %v7213_v21, %v13679_v55 }
 0x8d9   :  { %5845 = vmatpush.msrb.mxu3 %v7122_v25  ;;  %v15232_v25 = vld [vmem:[#allocation220_spill] sm:$0xff] }
 0x8da   :  { %v4998_v11 = vpop.permute.xlu0 %4997  ;;  %v2877_v31 = vadd.f32 %v15232_v25, %v2776_v27  ;;  %v15243_v27 = vld [vmem:[#allocation224_spill] sm:$0xff] }
 0x8db   :  { %v5090_v23 = vsel %vm1448_vm0, %v13609_v54, %v4998_v11  ;;  %5846 = vmatpush.msrb.mxu3 %v7121_v33  ;;  %v7145_v54 = vld [vmem:[%s14257_s5 + $0x618] sm:$0xff]  ;;  %v2571_v33 = vadd.f32 %v15234_v29, %v2470_v4 }
 0x8dc   :  { %v5202_v56 = vmax.f32 %v15223_v48, %v5090_v23  ;;  %5861 = vmatpush.msrb.mxu1 %v7145_v54  ;;  %v15236_v11 = vld [vmem:[#allocation226_spill] sm:$0xff]  ;;  %v5256_v23 = vmax.f32 %v5200_v16, 0.0  ;;  %v15244_v16 = vld [vmem:[#allocation227_spill] sm:$0xff] }
 0x8dd   :  { %5847 = vmatpush.msrb.mxu3 %v7120_v36  ;;  %v2978_v36 = vadd.f32 %v15236_v11, %v2877_v31  ;;  %v2672_v48 = vadd.f32 %v15237_v0, %v2571_v33  ;;  %v15245_v33 = vld [vmem:[#allocation228_spill] sm:$0xff] }
 0x8de   :  { %v5258_v5 = vmax.f32 %v5202_v56, 0.0  ;;  %5862 = vmatpush.msrb.mxu1 %v7144_v28  ;;  %v15238_v56 = vld [vmem:[#allocation221_spill] sm:$0xff] }
 0x8df   :  { %5848 = vmatpush.msrb.mxu3 %v7119_v22  ;;  %v5217_v14 = vmax.f32 %v2978_v36, %v5105_v17  ;;  %v2773_v49 = vadd.f32 %v15239_v9, %v2672_v48  ;;  %v15250_v9 = vld [vmem:[#allocation131_spill] sm:$0xff] }
 0x8e0   :  { %v5622_v12 = vmax.f32 %v5254_v2, %v5258_v5  ;;  %5863 = vmatpush.msrb.mxu1 %v7143_v61  ;;  %v14122_v2 = vpop.permute.xlu2 %5049 }
 0x8e1   :  { %5849 = vmatpush.msrb.mxu3 %v7118_v32  ;;  %v7138_v32 = vld [vmem:[%s14257_s5 + $0x5e0] sm:$0xff]  ;;  %v2874_v13 = vadd.f32 %v15240_v47, %v2773_v49  ;;  %v5273_v61 = vmax.f32 %v5217_v14, 0.0 }
 0x8e2   :  { %v5004_v46 = vpop.permute.xlu1 %5003  ;;  %v14087_v15 = vpop.permute.xlu0 %5013  ;;  %7086 = vmatmul.msk.f32.vlgmr.msra.gmra.mxu3 %vm5342_vm4, %v5622_v12  ;;  %5864 = vmatpush.msrb.mxu1 %v7142_v57  ;;  %v15242_v12 = vld [vmem:[#allocation222_spill] sm:$0xff]  ;;  %v7136_v57 = vld [vmem:[%s14257_s5 + $0x5d0] sm:$0xff] }
 0x8e3   :  { %v5092_v59 = vsel %vm1448_vm0, %v13287_v35, %v5004_v46  ;;  %v15235_v35 = vld [vmem:[#allocation215_spill] sm:$0xff]  ;;  %v2880_v19 = vadd.f32 %v15242_v12, %v15241_v3  ;;  %v2975_v34 = vadd.f32 %v15243_v27, %v2874_v13  ;;  %v15253_v13 = vld [vmem:[#allocation154_spill] sm:$0xff] }
 0x8e4   :  { %v5204_v52 = vmax.f32 %v15233_v20, %v5092_v59  ;;  %v2871_v40 = vadd.f32 %v15235_v35, %v2770_v50  ;;  %5865 = vmatpush.msrb.mxu1 %v7141_v44  ;;  %v7134_v50 = vld [vmem:[%s14257_s5 + $0x5c0] sm:$0xff]  ;;  %v15254_v12 = vld [vmem:[#allocation162_spill] sm:$0xff] }
 0x8e5   :  { %v2981_v46 = vadd.f32 %v15244_v16, %v2880_v19 }
 0x8e6   :  { %v5260_v42 = vmax.f32 %v5204_v52, 0.0  ;;  %v2972_v22 = vadd.f32 %v15238_v56, %v2871_v40  ;;  %5866 = vmatpush.msrb.mxu1 %v7140_v60  ;;  %v15246_v40 = vld [vmem:[#allocation229_spill] sm:$0xff]  ;;  %v15247_v60 = vld [vmem:[#allocation132_spill] sm:$0xff]  ;;  %v15249_v56 = vld [vmem:[#allocation139_spill] sm:$0xff] }
 0x8e8   :  { %v5624_v54 = vmax.f32 %v5256_v23, %v5260_v42  ;;  %v5213_v1 = vmax.f32 %v2972_v22, %v5101_v62  ;;  %5867 = vmatpush.msrb.mxu1 %v7139_v37  ;;  %v5010_v31 = vpop.permute.xlu2 %5009  ;;  %v2464_v62 = vadd.f32 %v15247_v60, %v15011_v24 }
 0x8e9   :  { %v5094_v44 = vsel %vm1448_vm0, %v13363_v10, %v5010_v31  ;;  %v15248_v10 = vld [vmem:[#allocation124_spill] sm:$0xff] }
 0x8ea   :  { %v7216_v5 = vpop.permute.xlu0 %7215  ;;  %7087 = vmatmul.msk.f32.gmra.mxu3 %vm5342_vm4, %v5624_v54  ;;  %5868 = vmatpush.msrb.mxu1 %v7138_v32  ;;  %v5269_v43 = vmax.f32 %v5213_v1, 0.0  ;;  %v5206_v7 = vmax.f32 %v15245_v33, %v5094_v44  ;;  %v2458_v48 = vadd.f32 %v15248_v10, %v15011_v24  ;;  %v2565_v22 = vadd.f32 %v15249_v56, %v2464_v62  ;;  %v15251_v1 = vld [vmem:[#allocation161_spill] sm:$0xff]  ;;  %v5901_v56 = vld [vmem:[%s14259_s7 + $0x58] sm:$0xff] }
 0x8eb   :  { %v7218_v6 = vunpack.i.h.bf16 %v7216_v5  ;;  %v7217_v28 = vunpack.i.l.bf16 %v7216_v5 }
 0x8ec   :  { %5869 = vmatpush.msrb.mxu1 %v7137_v63  ;;  %v5795_v53 = vmax.f32 %v5269_v43, %v5273_v61  ;;  %v5262_v36 = vmax.f32 %v5206_v7, 0.0  ;;  %v2559_v49 = vadd.f32 %v15250_v9, %v2458_v48  ;;  %v2666_v5 = vadd.f32 %v15251_v1, %v2565_v22  ;;  %v15255_v63 = vld [vmem:[#allocation208_spill] sm:$0xff]  ;;  %v5366_v22 = vpop.f32.mrf.mxu0  ;;  %v5897_v1 = vld [vmem:[%s14259_s7 + $0x38] sm:$0xff] }
 0x8ed   :  { %v5103_v4 = vsel %vm1448_vm0, %v7217_v28, %v14041_v39  ;;  %v5107_v26 = vsel %vm1448_vm0, %v7218_v6, %v14122_v2  ;;  %v15252_v6 = vld [vmem:[#allocation153_spill] sm:$0xff] }
 0x8ee   :  { %v5215_v21 = vmax.f32 %v2975_v34, %v5103_v4  ;;  %v5219_v59 = vmax.f32 %v2981_v46, %v5107_v26  ;;  %5870 = vmatpush.msrb.mxu1 %v7136_v57  ;;  %v2660_v28 = vadd.f32 %v15252_v6, %v2559_v49  ;;  %v2767_v19 = vadd.f32 %v15254_v12, %v2666_v5  ;;  %v15256_v26 = vld [vmem:[#allocation212_spill] sm:$0xff]  ;;  %v15257_v34 = vld [vmem:[#allocation43_spill] sm:$0xff]  ;;  %v5892_v12 = vld [vmem:[%s14259_s7 + $0x10] sm:$0xff] }
 0x8ef   :  { %v5898_v49 = vld [vmem:[%s14259_s7 + $0x40] sm:$0xff] }
 0x8f0   :  { %5871 = vmatpush.msrb.mxu1 %v7135_v8  ;;  %v5271_v20 = vmax.f32 %v5215_v21, 0.0  ;;  %v5275_v52 = vmax.f32 %v5219_v59, 0.0  ;;  %v2761_v3 = vadd.f32 %v15253_v13, %v2660_v28  ;;  %v2868_v27 = vadd.f32 %v15256_v26, %v2767_v19  ;;  %v15259_v59 = vld [vmem:[#allocation219_spill] sm:$0xff]  ;;  %v5893_v13 = vld [vmem:[%s14259_s7 + $0x18] sm:$0xff] }
 0x8f2   :  { %v5016_v25 = vpop.permute.xlu1 %5015  ;;  %5850 = vmatmul.f32.vlgmr.msrb.gmra.mxu3 %v5795_v53  ;;  %5872 = vmatpush.msrb.mxu1 %v7134_v50  ;;  %v5797_v29 = vmax.f32 %v5271_v20, %v5275_v52  ;;  %v2862_v4 = vadd.f32 %v15255_v63, %v2761_v3  ;;  %v15258_v53 = vld [vmem:[#allocation214_spill] sm:$0xff]  ;;  %v2969_v8 = vadd.f32 %v15259_v59, %v2868_v27 }
 0x8f3   :  { %v5096_v42 = vsel %vm1448_vm0, %v14087_v15, %v5016_v25  ;;  %v15260_v50 = vld [vmem:[#allocation46_spill] sm:$0xff] }
 0x8f4   :  { %v5208_v14 = vmax.f32 %v15180_v18, %v5096_v42  ;;  %v2963_v21 = vadd.f32 %v15258_v53, %v2862_v4  ;;  %v5369_v6 = vpop.f32.mrf.mxu0  ;;  %v5890_v4 = vld [vmem:[%s14259_s7] sm:$0xff] }
 0x8f6   :  { %v5264_v24 = vmax.f32 %v5208_v14, 0.0 }
 0x8fa   :  { %v5022_v17 = vpop.permute.xlu1 %5021  ;;  %5853 = vmatmul.f32.gmra.mxu3 %v5797_v29 }
 0x8fb   :  { %v5098_v35 = vsel %vm1448_vm0, %v13347_v51, %v5022_v17 }
 0x8fc   :  { %v5210_v11 = vmax.f32 %v15246_v40, %v5098_v35  ;;  %v5503_v19 = vpop.f32.mrf.mxu0 }
 0x8fe   :  { %v5266_v23 = vmax.f32 %v5210_v11, 0.0 }
 0x8ff   :  { %v5389_v10 = vpop.f32.mrf.mxu1 }
 0x900   :  { %v5709_v0 = vmax.f32 %v5262_v36, %v5266_v23 }
 0x902   :  { %v5028_v54 = vpop.permute.xlu0 %5027  ;;  %v5046_v51 = vpop.permute.xlu2 %5045  ;;  %7116 = vmatmul.msk.f32.vlgmr.msra.gmra.mxu2 %vm5342_vm4, %v5709_v0 }
 0x903   :  { %v5100_v37 = vsel %vm1448_vm0, %v14075_v41, %v5028_v54  ;;  %v5106_v18 = vsel %vm1448_vm0, %v13679_v55, %v5046_v51  ;;  %v5441_v0 = vpop.f32.mrf.mxu3  ;;  %v5900_v54 = vld [vmem:[%s14259_s7 + $0x50] sm:$0xff]  ;;  %v5418_v51 = vpop.f32.mrf.mxu2 }
 0x904   :  { %v5212_v32 = vmax.f32 %v15181_v30, %v5100_v37  ;;  %v5218_v16 = vmax.f32 %v15257_v34, %v5106_v18  ;;  %v5899_v37 = vld [vmem:[%s14259_s7 + $0x48] sm:$0xff]  ;;  %v5506_v34 = vpop.f32.mrf.mxu0 }
 0x906   :  { %v5268_v47 = vmax.f32 %v5212_v32, 0.0  ;;  %v5274_v44 = vmax.f32 %v5218_v16, 0.0  ;;  %v5896_v32 = vld [vmem:[%s14259_s7 + $0x30] sm:$0xff]  ;;  %v5390_v16 = vadd.f32 %v5389_v10, %v5366_v22 }
 0x907   :  { %v5392_v14 = vpop.f32.mrf.mxu1 }
 0x908   :  { %v5711_v61 = vmax.f32 %v5264_v24, %v5268_v47  ;;  %v5895_v24 = vld [vmem:[%s14259_s7 + $0x28] sm:$0xff]  ;;  %v5894_v47 = vld [vmem:[%s14259_s7 + $0x20] sm:$0xff]  ;;  %v5393_v53 = vadd.f32 %v5392_v14, %v5369_v6 }
 0x90a   :  { %v5034_v46 = vpop.permute.xlu1 %5033  ;;  %v7221_v30 = vpop.permute.xlu0 %7220  ;;  %7117 = vmatmul.msk.f32.gmra.mxu2 %vm5342_vm4, %v5711_v61  ;;  %v5891_v61 = vld [vmem:[%s14259_s7 + $0x8] sm:$0xff] }
 0x90b   :  { %v5102_v43 = vsel %vm1448_vm0, %v13645_v38, %v5034_v46  ;;  %v7223_v57 = vunpack.i.h.bf16 %v7221_v30  ;;  %v7222_v55 = vunpack.i.l.bf16 %v7221_v30  ;;  %v5052_v31 = vpop.permute.xlu2 %5051  ;;  %v5444_v48 = vpop.f32.mrf.mxu3 }
 0x90c   :  { %v5214_v25 = vmax.f32 %v15260_v50, %v5102_v43  ;;  %v5108_v38 = vsel %vm1448_vm0, %v14122_v2, %v5052_v31  ;;  %v5905_v2 = vld [vmem:[%s14259_s7 + $0x78] sm:$0xff]  ;;  %v5421_v28 = vpop.f32.mrf.mxu2  ;;  %v5419_v43 = vadd.f32 %v5418_v51, %v5390_v16  ;;  %v5933_v51 = vlaneseq }
 0x90d   :  { %v5095_v20 = vsel %vm1448_vm0, %v7222_v55, %v14087_v15  ;;  %v5099_v52 = vsel %vm1448_vm0, %v7223_v57, %v14075_v41  ;;  %v5220_v11 = vmax.f32 %v15168_v58, %v5108_v38  ;;  %v5904_v58 = vld [vmem:[%s14259_s7 + $0x70] sm:$0xff]  ;;  %5910 = vmatpush.msrb.mxu2 %v5905_v2 }
 0x90e   :  { %v5270_v29 = vmax.f32 %v5214_v25, 0.0  ;;  %v5207_v33 = vmax.f32 %v2963_v21, %v5095_v20  ;;  %v5211_v7 = vmax.f32 %v2969_v8, %v5099_v52  ;;  %v5442_v21 = vadd.f32 %v5441_v0, %v5419_v43  ;;  %v5764_v8 = vpop.f32.mrf.mxu0 }
 0x90f   :  { %v5276_v42 = vmax.f32 %v5220_v11, 0.0  ;;  %5911 = vmatpush.msrb.mxu2 %v5904_v58  ;;  %v5422_v20 = vadd.f32 %v5421_v28, %v5393_v53 }
 0x910   :  { %v5796_v17 = vmax.f32 %v5270_v29, %v5274_v44  ;;  %v5263_v35 = vmax.f32 %v5207_v33, 0.0  ;;  %v5267_v40 = vmax.f32 %v5211_v7, 0.0 }
 0x912   :  { %v5040_v36 = vpop.permute.xlu1 %5039  ;;  %7146 = vmatmul.msk.f32.vlgmr.msrb.gmra.mxu1 %vm5342_vm4, %v5796_v17  ;;  %v5710_v23 = vmax.f32 %v5263_v35, %v5267_v40  ;;  %v5445_v17 = vadd.f32 %v5444_v48, %v5422_v20 }
 0x913   :  { %v5104_v15 = vsel %vm1448_vm0, %v14041_v39, %v5040_v36  ;;  %v5902_v39 = vld [vmem:[%s14259_s7 + $0x60] sm:$0xff] }
 0x914   :  { %v5216_v41 = vmax.f32 %v15167_v45, %v5104_v15  ;;  %5766 = vmatmul.f32.gmra.mxu0 %v5710_v23  ;;  %v5903_v45 = vld [vmem:[%s14259_s7 + $0x68] sm:$0xff]  ;;  %v5590_v63 = vpop.f32.mrf.mxu2  ;;  %v7224_v36 = vld [vmem:[%s14258_s6] ss:$0 sm:$0xff] }
 0x915   :  { %5912 = vmatpush.msrb.mxu2 %v5903_v45 }
 0x916   :  { %v5272_v60 = vmax.f32 %v5216_v41, 0.0 }
 0x917   :  { %5913 = vmatpush.msrb.mxu2 %v5902_v39 }
 0x918   :  { %v5798_v62 = vmax.f32 %v5272_v60, %v5276_v42 }
 0x919   :  { %5914 = vmatpush.msrb.mxu2 %v5901_v56 }
 0x91a   :  { %7147 = vmatmul.msk.f32.gmra.mxu1 %vm5342_vm4, %v5798_v62 }
 0x91b   :  { %5915 = vmatpush.msrb.mxu2 %v5900_v54 }
 0x91c   :  { %v5593_v46 = vpop.f32.mrf.mxu2 }
 0x91d   :  { %5916 = vmatpush.msrb.mxu2 %v5899_v37  ;;  %v5934_v37 = vand.u32 127, %v5933_v51 }
 0x91f   :  { %v5526_v5 = vpop.f32.mrf.mxu1  ;;  %5917 = vmatpush.msrb.mxu2 %v5898_v49  ;;  %vm5935_vm5 = vcmp.lt.s32.totalorder %v5934_v37, 10 }
 0x920   :  { %v5527_v57 = vadd.f32 %v5526_v5, %v5503_v19 }
 0x921   :  { %5918 = vmatpush.msrb.mxu2 %v5897_v1 }
 0x922   :  { %v5532_v25 = vadd.f32 %v5527_v57, %v5442_v21 }
 0x923   :  { %5919 = vmatpush.msrb.mxu2 %v5896_v32 }
 0x925   :  { %5920 = vmatpush.msrb.mxu2 %v5895_v24 }
 0x927   :  { %5921 = vmatpush.msrb.mxu2 %v5894_v47  ;;  %v5529_v3 = vpop.f32.mrf.mxu1 }
 0x928   :  { %v5530_v33 = vadd.f32 %v5529_v3, %v5506_v34 }
 0x929   :  { %5922 = vmatpush.msrb.mxu2 %v5893_v13 }
 0x92a   :  { %v5533_v15 = vadd.f32 %v5530_v33, %v5445_v17 }
 0x92b   :  { %5923 = vmatpush.msrb.mxu2 %v5892_v12 }
 0x92d   :  { %5924 = vmatpush.msrb.mxu2 %v5891_v61 }
 0x92f   :  { %5925 = vmatpush.msrb.mxu2 %v5890_v4  ;;  %v5677_v27 = vpop.f32.mrf.mxu1 }
 0x937   :  { %v5680_v55 = vpop.f32.mrf.mxu1 }
 0x945   :  { %v5613_v9 = vpop.f32.mrf.mxu3 }
 0x946   :  { %v5614_v59 = vadd.f32 %v5613_v9, %v5590_v63  ;;  %v7225_v9 = vld [vmem:[%s14260_s8] ss:$0 sm:$0xff]  ;;  %s7264_s8 = smov [#allocation2]  }
 0x947   :  { %s5964_s22 = sshll.u32 %s7264_s8, 4  ;;  %s5965_s22 = int_to_ptr.vmem [resolvable:$true] %s5964_s22 }
 0x948   :  { %v5619_v52 = vadd.f32 %v5614_v59, %v5532_v25 }
 0x94d   :  { %v5616_v18 = vpop.f32.mrf.mxu3 }
 0x94e   :  { %v5617_v35 = vadd.f32 %v5616_v18, %v5593_v46 }
 0x950   :  { %v5620_v62 = vadd.f32 %v5617_v35, %v5533_v15 }
 0x965   :  { %v5700_v26 = vpop.f32.mrf.mxu3 }
 0x966   :  { %v5701_v31 = vadd.f32 %v5700_v26, %v5677_v27 }
 0x968   :  { %v5706_v7 = vadd.f32 %v5701_v31, %v5619_v52 }
 0x96d   :  { %v5703_v30 = vpop.f32.mrf.mxu3 }
 0x96e   :  { %v5704_v41 = vadd.f32 %v5703_v30, %v5680_v55 }
 0x970   :  { %v5707_v0 = vadd.f32 %v5704_v41, %v5620_v62 }
 0x975   :  { %v5851_v29 = vpop.f32.mrf.mxu3 }
 0x97d   :  { %v5854_v45 = vpop.f32.mrf.mxu3 }
 0x985   :  { %v5787_v50 = vpop.f32.mrf.mxu2 }
 0x986   :  { %v5788_v44 = vadd.f32 %v5787_v50, %v5764_v8 }
 0x988   :  { %v5793_v40 = vadd.f32 %v5788_v44, %v5706_v7 }
 0x98d   :  { %v5790_v60 = vpop.f32.mrf.mxu2 }
 0x98f   :  { %v5874_v38 = vpop.f32.mrf.mxu1 }
 0x990   :  { %v5875_v11 = vadd.f32 %v5874_v38, %v5851_v29 }
 0x991   :  { %v5767_v23 = vpop.f32.mrf.mxu0 }
 0x992   :  { %v5880_v42 = vadd.f32 %v5875_v11, %v5793_v40  ;;  %v5791_v58 = vadd.f32 %v5790_v60, %v5767_v23 }
 0x994   :  { %v5886_v2 = vadd.f32 %v7224_v36, %v5880_v42  ;;  %v5794_v48 = vadd.f32 %v5791_v58, %v5707_v0 }
 0x996   :  { %v5888_v10 = vmax.f32 %v5886_v2, 0.0 }
 0x997   :  { %v5877_v39 = vpop.f32.mrf.mxu1 }
 0x998   :  { %v5878_v56 = vadd.f32 %v5877_v39, %v5854_v45  ;;  %5926 = vmatmul.f32.vlgmr.msrb.gmra.mxu2 %v5888_v10 }
 0x99a   :  { %v5881_v22 = vadd.f32 %v5878_v56, %v5794_v48 }
 0x99c   :  { %v5887_v14 = vadd.f32 %v7224_v36, %v5881_v22 }
 0x99e   :  { %v5889_v54 = vmax.f32 %v5887_v14, 0.0 }
 0x9a0   :  { %5929 = vmatmul.f32.gmra.mxu2 %v5889_v54 }
 0xa1b   :  { %v5927_v49 = vpop.f32.mrf.mxu2 }
 0xa1c   :  { %v5928_v1 = vadd.f32 %v7225_v9, %v5927_v49 }
 0xa1e   :  { %v5936_v5 = vsel %vm5935_vm5, %v5928_v1, -1e+30 }
 0xa1f   :  { %5938 = vmax.xlane.f32.xlu0 %v5936_v5 }
 0xa23   :  { %v5930_v32 = vpop.f32.mrf.mxu2 }
 0xa24   :  { %v5931_v6 = vadd.f32 %v7225_v9, %v5930_v32 }
 0xa26   :  { %v5937_v28 = vsel %vm5935_vm5, %v5931_v6, -1e+30 }
 0xa27   :  { %5940 = vmax.xlane.f32.xlu1 %v5937_v28 }
 0xa92   :  { %v5939_v24 = vpop.xlane.xlu0 %5938 }
 0xa93   :  { %v5942_v47 = vsub.f32 %v5936_v5, %v5939_v24 }
 0xa95   :  { %v5944_v18 = vmul.f32 1.442695, %v5942_v47 }
 0xa97   :  { %7226 = vpow2.f32 %v5944_v18 }
 0xa9a   :  { %v5941_v13 = vpop.xlane.xlu1 %5940 }
 0xa9b   :  { %v5943_v3 = vsub.f32 %v5937_v28, %v5941_v13 }
 0xa9d   :  { %v7227_v12 = vpop.eup %7226  ;;  %v5946_v19 = vmul.f32 1.442695, %v5943_v3 }
 0xa9e   :  { %5948 = vadd.xlane.f32.xlu2 %v7227_v12 }
 0xa9f   :  { %7228 = vpow2.f32 %v5946_v19 }
 0xaa5   :  { %v7229_v61 = vpop.eup %7228 }
 0xaa6   :  { %5950 = vadd.xlane.f32.xlu2 %v7229_v61 }
 0xb11   :  { %v5949_v63 = vpop.xlane.xlu2 %5948 }
 0xb12   :  { %7230 = vlog2.f32 %v5949_v63 }
 0xb18   :  { %v7231_v4 = vpop.eup %7230 }
 0xb19   :  { %v5953_v26 = vmul.f32 0.6931472, %v7231_v4  ;;  %v5951_v27 = vpop.xlane.xlu2 %5950 }
 0xb1a   :  { %7232 = vlog2.f32 %v5951_v27 }
 0xb1b   :  { %v5956_v34 = vsub.f32 %v5942_v47, %v5953_v26 }
 0xb1d   :  { %5958 = vst [vmem:[#allocation2] sm:$0xff] %v5956_v34 }
 0xb20   :  { %v7233_v16 = vpop.eup %7232 }
 0xb21   :  { %v5955_v46 = vmul.f32 0.6931472, %v7233_v16 }
 0xb23   :  { %v5957_v30 = vsub.f32 %v5943_v3, %v5955_v46 }
 0xb25   :  { %5959 = vst [vmem:[#allocation2 + $0x8] sm:$0xff] %v5957_v30 }
 0xb26   :  { %5972 = dma.vmem_to_hbm [thread:$0]  %s5965_s22, 256, %s5967_s24, [#allocation3], %s7265_s25, %s7265_s25, %s7266_s26  }
 0xb27   :  { %7259 = dma.done.wait [#allocation3], 256  }
 0xb28   :  { %7260 = vsyncadd [#allocation3], 4294967040 }
 0xb29   :  { %5977 = vsyncpa [#allocation3], 1 }

</bundles_post_ra>
